<compile_context>
chip_gen: v5e
topology: v5e:2x2
jax: 0.10.0
libtpu: 0.0.40
codegen_flags: <defaults>
</compile_context>

<pallas_src>
import jax
import jax.numpy as jnp
from jax import lax
from jax.experimental import pallas as pl
from jax.experimental.pallas import tpu as pltpu

NODE_DIM = 32      # must equal HIDDEN_DIM so the module's residual `h = h + h_new` typechecks
HIDDEN_DIM = 32
EDGE_DIM = 16
EA_AUG = 24        # edge features augmented with a ones column (folds deg/biases), 8-aligned
NUM_LAYERS = 3
LN_EPS = 1e-5

# ---- packed parameter slab: every block starts on a multiple-of-8 (sublane-aligned) row ----
ROW_WN = 0                                      # NUM_LAYERS blocks of [H, H]      node_transform W
ROW_WEB = ROW_WN + NUM_LAYERS * HIDDEN_DIM      # NUM_LAYERS blocks of [EA_AUG, H]:
                                                #   rows 0..15 = edge_transform W,
                                                #   row 16 = node_b + edge_b, rows 17..23 = 0
ROW_WO = ROW_WEB + NUM_LAYERS * EA_AUG          # [H, NODE_DIM]                    output_transform W
ROW_GAMMA = ROW_WO + HIDDEN_DIM                 # 1 row (LayerNorm weight), own 8-row slot
ROW_BETA = ROW_GAMMA + 8                        # 1 row (LayerNorm bias)
ROW_BO = ROW_BETA + 8                           # 1 row (output_transform b)
N_ROWS = ROW_BO + 8                             # = 224


def subpart_gnn_kernel(src_ref, dst_ref, x_ref, ea_ref, p_ref, out_ref):
    # src_ref: [E_tot, 1] i32   block-diagonal (global-within-block) source id per edge
    # dst_ref: [1, E_tot] i32   destination id per edge, laid along lanes
    # x_ref:   [N_tot, NODE_DIM] f32   Bt graphs' node features, stacked
    # ea_ref:  [E_tot, EA_AUG]   f32   [edge_attr | 1 | 0...]
    # p_ref:   [N_ROWS, HIDDEN_DIM] f32   packed parameters (fetched once)
    E_tot = ea_ref.shape[0]
    N_tot = x_ref.shape[0]
    H = HIDDEN_DIM

    # ---- block-diagonal one-hot gather/scatter matrices (built once per grid step) ----
    src = src_ref[...]                                           # [E_tot, 1]
    dst = dst_ref[...]                                           # [1, E_tot]
    lane_nodes = lax.broadcasted_iota(jnp.int32, (E_tot, N_tot), 1)
    row_nodes = lax.broadcasted_iota(jnp.int32, (N_tot, E_tot), 0)
    onehot_src = (lane_nodes == src).astype(jnp.float32)         # [E_tot, N_tot]
    onehot_dst_t = (row_nodes == dst).astype(jnp.float32)        # [N_tot, E_tot] pre-transposed

    # A[n, m] = #edges m -> n.  bf16 operands are exact (0/1 values, counts <= E); f32 acc.
    A = jnp.dot(onehot_dst_t.astype(jnp.bfloat16),
                onehot_src.astype(jnp.bfloat16),
                preferred_element_type=jnp.float32)              # [N_tot, N_tot]

    # ea_agg[n] = [ sum_{e->n} edge_attr[e] | in_degree(n) | 0... ]
    ea_agg = jnp.dot(onehot_dst_t, ea_ref[...],
                     preferred_element_type=jnp.float32)         # [N_tot, EA_AUG]

    gamma = p_ref[ROW_GAMMA:ROW_GAMMA + 1, :]                    # [1, H]
    beta = p_ref[ROW_BETA:ROW_BETA + 1, :]                       # [1, H]

    h = x_ref[...]                                               # [N_tot, NODE_DIM] f32
    for l in range(NUM_LAYERS):
        wn_l = p_ref[ROW_WN + l * H:ROW_WN + (l + 1) * H, :]                 # [H, H]
        web_l = p_ref[ROW_WEB + l * EA_AUG:ROW_WEB + (l + 1) * EA_AUG, :]    # [EA_AUG, H]

        # message = x_j + edge_transform(edge_attr) (alpha == softmax over size-1 dim == 1),
        # aggr='add' folded through the one-hots:
        #   agg = A @ (h @ Wn) + [sum_in(ea) | deg] @ [[We], [bn + be]]
        xt = jnp.dot(h, wn_l, preferred_element_type=jnp.float32)            # [N_tot, H]
        agg = (jnp.dot(A, xt, preferred_element_type=jnp.float32)
               + jnp.dot(ea_agg, web_l, preferred_element_type=jnp.float32))

        # residual + LayerNorm (one-pass statistics) + ReLU
        h = h + agg
        mean = jnp.mean(h, axis=-1, keepdims=True)
        msq = jnp.mean(h * h, axis=-1, keepdims=True)
        var = msq - mean * mean
        h = (h - mean) * lax.rsqrt(var + LN_EPS) * gamma + beta
        h = jnp.maximum(h, 0.0)

    wo = p_ref[ROW_WO:ROW_WO + H, :]                             # [H, NODE_DIM]
    bo = p_ref[ROW_BO:ROW_BO + 1, :]                             # [1, NODE_DIM]
    out = jnp.dot(h, wo, preferred_element_type=jnp.float32) + bo
    out_ref[...] = out.astype(out_ref.dtype)


def subpart_gnn(x, edge_index, edge_attr, params_slab, *, block_graphs=32):
    """x: [B, N, NODE_DIM] f32;  edge_index: [B, E, 2] i32 (col 0 = src / x_j,
    col 1 = dst / aggregation target, local ids in [0, N));  edge_attr: [B, E, EDGE_DIM];
    params_slab: [N_ROWS, HIDDEN_DIM] (see init_params_slab).

    block_graphs (Bt) graphs are fused per grid step.  Pick Bt=16 on v5e (Bt*N = 128)
    and Bt=32 on v6e/v7x (256-wide MXU); keep B // Bt >= 2 and even so the "parallel"
    grid axis fills both v7x TensorCores.
    """
    B, N, node_dim = x.shape
    E = edge_attr.shape[1]
    assert node_dim == NODE_DIM and edge_attr.shape[2] == EDGE_DIM
    Bt = min(block_graphs, B)
    assert B % Bt == 0, "batch must be divisible by block_graphs (pad host-side if ragged)"
    NB = B // Bt
    N_tot, E_tot = Bt * N, Bt * E

    # ---- host-side layout prep (cheap XLA ops) ----
    # Offset node ids by the graph's position inside its block -> block-diagonal ids,
    # already in the orientation each one-hot wants (no in-kernel index transpose).
    g_off = (jnp.arange(B, dtype=jnp.int32) % Bt) * N                        # [B]
    src_col = (edge_index[:, :, 0] + g_off[:, None]).reshape(NB, E_tot, 1)   # sublane-major
    dst_row = (edge_index[:, :, 1] + g_off[:, None]).reshape(NB, 1, E_tot)   # lane-major
    # Append [1, 0, ..., 0] to every edge feature: after aggregation the ones column
    # becomes the in-degree, which carries the node+edge biases inside one matmul.
    pad = jnp.zeros((B, E, EA_AUG - EDGE_DIM), x.dtype).at[:, :, 0].set(1.0)
    ea_aug = jnp.concatenate([edge_attr, pad], axis=-1).reshape(NB, E_tot, EA_AUG)
    x_blk = x.reshape(NB, N_tot, NODE_DIM)

    out = pl.pallas_call(
        subpart_gnn_kernel,
        out_shape=jax.ShapeDtypeStruct((NB, N_tot, NODE_DIM), jnp.float32),
        grid_spec=pltpu.PrefetchScalarGridSpec(
            num_scalar_prefetch=0,
            grid=(NB,),
            in_specs=[
                pl.BlockSpec((None, E_tot, 1), lambda b: (b, 0, 0)),          # src ids
                pl.BlockSpec((None, 1, E_tot), lambda b: (b, 0, 0)),          # dst ids
                pl.BlockSpec((None, N_tot, NODE_DIM), lambda b: (b, 0, 0)),   # node features
                pl.BlockSpec((None, E_tot, EA_AUG), lambda b: (b, 0, 0)),     # edge features (aug)
                pl.BlockSpec((N_ROWS, HIDDEN_DIM), lambda b: (0, 0)),         # params (fetched once)
            ],
            out_specs=pl.BlockSpec((None, N_tot, NODE_DIM), lambda b: (b, 0, 0)),
        ),
        # NOTE: on v5e add pipeline_mode=pl.Buffered(3) to the input specs only if the
        # trace still shows exposed input DMA after batching.
        compiler_params=pltpu.CompilerParams(
            dimension_semantics=("parallel",)),   # graph blocks -> both TCs on v7x
    )(src_col, dst_row, x_blk, ea_aug, params_slab)
    return out.reshape(B, N, NODE_DIM)


def init_params_slab(key):
    """Deterministic PyTorch-Linear-style init packed into one [N_ROWS, 32] slab.
    The attention Linear(3H -> 1) parameters are mathematically dead in the forward
    pass (softmax over a size-1 dim == 1) and are not packed."""
    def lin(k, fan_in, fan_out):
        k1, k2 = jax.random.split(k)
        bound = 1.0 / (fan_in ** 0.5)
        w = jax.random.uniform(k1, (fan_in, fan_out), jnp.float32, -bound, bound)
        b = jax.random.uniform(k2, (fan_out,), jnp.float32, -bound, bound)
        return w, b

    k_layers, k_out = jax.random.split(key)
    slab = jnp.zeros((N_ROWS, HIDDEN_DIM), jnp.float32)
    for l in range(NUM_LAYERS):
        kl = jax.random.fold_in(k_layers, l)
        in_dim = NODE_DIM if l == 0 else HIDDEN_DIM
        wn, bn = lin(jax.random.fold_in(kl, 0), in_dim, HIDDEN_DIM)      # node_transform
        we, be = lin(jax.random.fold_in(kl, 1), EDGE_DIM, HIDDEN_DIM)    # edge_transform
        slab = slab.at[ROW_WN + l * HIDDEN_DIM:ROW_WN + (l + 1) * HIDDEN_DIM, :].set(wn)
        slab = slab.at[ROW_WEB + l * EA_AUG:ROW_WEB + l * EA_AUG + EDGE_DIM, :].set(we)
        slab = slab.at[ROW_WEB + l * EA_AUG + EDGE_DIM, :].set(bn + be)  # exact fold (see kernel)
    wo, bo = lin(k_out, HIDDEN_DIM, NODE_DIM)                            # output_transform
    slab = slab.at[ROW_WO:ROW_WO + HIDDEN_DIM, :].set(wo)
    slab = slab.at[ROW_GAMMA, :].set(1.0)                                # LayerNorm weight
    # ROW_BETA stays zero (LayerNorm bias)
    slab = slab.at[ROW_BO, :].set(bo)
    return slab


def subpart_gnn_reference(x, edge_index, edge_attr, params_slab):
    """Pure-JAX per-edge gather + scatter_add mirror of the PyTorch module (alpha == 1),
    reading the same packed slab.  Used only to validate the fused kernel."""
    hi = jax.lax.Precision.HIGHEST

    def one_graph(xg, eig, eag):
        h = xg
        src, dst = eig[:, 0], eig[:, 1]
        for l in range(NUM_LAYERS):
            wn = params_slab[ROW_WN + l * HIDDEN_DIM:ROW_WN + (l + 1) * HIDDEN_DIM]
            web = params_slab[ROW_WEB + l * EA_AUG:ROW_WEB + (l + 1) * EA_AUG]
            we, bias = web[:EDGE_DIM], web[EDGE_DIM]                  # bias = node_b + edge_b
            xt = jnp.dot(h, wn, precision=hi)
            msg = xt[src] + jnp.dot(eag, we, precision=hi) + bias     # x_j + edge_transform(ea)
            agg = jnp.zeros_like(xt).at[dst].add(msg)                 # aggr='add'
            h = h + agg
            mean = jnp.mean(h, axis=-1, keepdims=True)
            var = jnp.mean((h - mean) ** 2, axis=-1, keepdims=True)
            h = (h - mean) / jnp.sqrt(var + LN_EPS)
            h = h * params_slab[ROW_GAMMA] + params_slab[ROW_BETA]
            h = jnp.maximum(h, 0.0)
        wo = params_slab[ROW_WO:ROW_WO + HIDDEN_DIM]
        return jnp.dot(h, wo, precision=hi) + params_slab[ROW_BO]

    return jax.vmap(one_graph)(x, edge_index, edge_attr)


if __name__ == "__main__":
    key = jax.random.PRNGKey(0)
    k_x, k_ea, k_ei, k_p = jax.random.split(key, 4)

    # 64 small graphs (N=8 nodes, E=16 edges each).  Bt=32 graphs fused per grid step
    # -> grid=(2,): even and >=2, so v7x's two TensorCores each take one block.
    B, N, E = 64, 8, 16
    x = jax.random.normal(k_x, (B, N, NODE_DIM), dtype=jnp.float32)
    edge_attr = jax.random.normal(k_ea, (B, E, EDGE_DIM), dtype=jnp.float32)
    # [B, E, 2]: col 0 = source node (x_j), col 1 = destination / aggregation target (x_i)
    edge_index = jax.random.randint(k_ei, (B, E, 2), 0, N, dtype=jnp.int32)
    params_slab = init_params_slab(k_p)

    run = jax.jit(subpart_gnn, static_argnames=("block_graphs",))
    out = run(x, edge_index, edge_attr, params_slab, block_graphs=32)
    jax.block_until_ready(out)
    assert out.shape == (B, N, NODE_DIM) and out.dtype == jnp.float32

    # validate against the straightforward gather/scatter reference
    ref = subpart_gnn_reference(x, edge_index, edge_attr, params_slab)
    max_err = float(jnp.max(jnp.abs(out - ref)))
    assert max_err < 3e-2, f"kernel/reference mismatch: max_abs_err={max_err}"

    print("KERNEL_OK")
</pallas_src>

<mosaic_0001>
module attributes {stable_mosaic.version = 11 : i64} {
  func.func @subpart_gnn_kernel(%arg0: i32, %arg1: memref<1x512x1xi32, #tpu.memory_space<vmem>>, %arg2: memref<1x1x512xi32, #tpu.memory_space<vmem>>, %arg3: memref<1x256x32xf32, #tpu.memory_space<vmem>>, %arg4: memref<1x512x24xf32, #tpu.memory_space<vmem>>, %arg5: memref<224x32xf32, #tpu.memory_space<vmem>>, %arg6: memref<1x256x32xf32, #tpu.memory_space<vmem>>) attributes {dimension_semantics = [#tpu.dimension_semantics<parallel>], iteration_bounds = array<i64: 2>, scalar_prefetch = 0 : i64, scratch_operands = 0 : i64, tpu.core_type = #tpu.core_type<tc>, window_params = [{transform_indices = @transform_0, window_bounds = array<i64: 1, 512, 1>}, {transform_indices = @transform_1, window_bounds = array<i64: 1, 1, 512>}, {transform_indices = @transform_2, window_bounds = array<i64: 1, 256, 32>}, {transform_indices = @transform_3, window_bounds = array<i64: 1, 512, 24>}, {pipeline_mode = #tpu.pipeline_mode<synchronous>, transform_indices = @transform_4, window_bounds = array<i64: 224, 32>}, {transform_indices = @transform_5, window_bounds = array<i64: 1, 256, 32>}]} {
    %c0 = arith.constant 0 : index
    %c0_0 = arith.constant 0 : index
    %c0_1 = arith.constant 0 : index
    %0 = vector.load %arg1[%c0, %c0_0, %c0_1] : memref<1x512x1xi32, #tpu.memory_space<vmem>>, vector<1x512x1xi32>
    %1 = vector.shape_cast %0 : vector<1x512x1xi32> to vector<512x1xi32>
    %c0_2 = arith.constant 0 : index
    %c0_3 = arith.constant 0 : index
    %c0_4 = arith.constant 0 : index
    %2 = vector.load %arg2[%c0_2, %c0_3, %c0_4] : memref<1x1x512xi32, #tpu.memory_space<vmem>>, vector<1x1x512xi32>
    %3 = vector.shape_cast %2 : vector<1x1x512xi32> to vector<1x512xi32>
    %4 = tpu.iota {dimensions = array<i32: 1>} : vector<512x256xi32>
    %5 = tpu.iota {dimensions = array<i32: 0>} : vector<256x512xi32>
    %6 = vector.broadcast %1 : vector<512x1xi32> to vector<512x256xi32>
    %7 = arith.cmpi eq, %4, %6 : vector<512x256xi32>
    %8 = arith.extui %7 : vector<512x256xi1> to vector<512x256xi32>
    %9 = arith.sitofp %8 : vector<512x256xi32> to vector<512x256xf32>
    %10 = vector.broadcast %3 : vector<1x512xi32> to vector<256x512xi32>
    %11 = arith.cmpi eq, %5, %10 : vector<256x512xi32>
    %12 = arith.extui %11 : vector<256x512xi1> to vector<256x512xi32>
    %13 = arith.sitofp %12 : vector<256x512xi32> to vector<256x512xf32>
    %14 = arith.truncf %13 : vector<256x512xf32> to vector<256x512xbf16>
    %15 = arith.truncf %9 : vector<512x256xf32> to vector<512x256xbf16>
    %cst = arith.constant dense<0.000000e+00> : vector<256x256xf32>
    %16 = tpu.matmul %14, %15, %cst {dimension_numbers = #tpu.dot_dimension_numbers<[1], [0], [0], [1], [0, 0, 1, 1], [], []>} : vector<256x512xbf16>, vector<512x256xbf16>, vector<256x256xf32> -> vector<256x256xf32>
    %c0_5 = arith.constant 0 : index
    %c0_6 = arith.constant 0 : index
    %c0_7 = arith.constant 0 : index
    %17 = vector.load %arg4[%c0_5, %c0_6, %c0_7] : memref<1x512x24xf32, #tpu.memory_space<vmem>>, vector<1x512x24xf32>
    %18 = vector.shape_cast %17 : vector<1x512x24xf32> to vector<512x24xf32>
    %cst_8 = arith.constant dense<0.000000e+00> : vector<256x24xf32>
    %19 = tpu.matmul %13, %18, %cst_8 {dimension_numbers = #tpu.dot_dimension_numbers<[1], [0], [0], [1], [0, 0, 1, 1], [], []>} : vector<256x512xf32>, vector<512x24xf32>, vector<256x24xf32> -> vector<256x24xf32>
    %c200 = arith.constant 200 : index
    %c0_9 = arith.constant 0 : index
    %20 = vector.load %arg5[%c200, %c0_9] : memref<224x32xf32, #tpu.memory_space<vmem>>, vector<1x32xf32>
    %c208 = arith.constant 208 : index
    %c0_10 = arith.constant 0 : index
    %21 = vector.load %arg5[%c208, %c0_10] : memref<224x32xf32, #tpu.memory_space<vmem>>, vector<1x32xf32>
    %c0_11 = arith.constant 0 : index
    %c0_12 = arith.constant 0 : index
    %c0_13 = arith.constant 0 : index
    %22 = vector.load %arg3[%c0_11, %c0_12, %c0_13] : memref<1x256x32xf32, #tpu.memory_space<vmem>>, vector<1x256x32xf32>
    %23 = vector.shape_cast %22 : vector<1x256x32xf32> to vector<256x32xf32>
    %c0_14 = arith.constant 0 : index
    %c0_15 = arith.constant 0 : index
    %24 = vector.load %arg5[%c0_14, %c0_15] : memref<224x32xf32, #tpu.memory_space<vmem>>, vector<32x32xf32>
    %c96 = arith.constant 96 : index
    %c0_16 = arith.constant 0 : index
    %25 = vector.load %arg5[%c96, %c0_16] : memref<224x32xf32, #tpu.memory_space<vmem>>, vector<24x32xf32>
    %cst_17 = arith.constant dense<0.000000e+00> : vector<256x32xf32>
    %26 = tpu.matmul %23, %24, %cst_17 {dimension_numbers = #tpu.dot_dimension_numbers<[1], [0], [0], [1], [0, 0, 1, 1], [], []>} : vector<256x32xf32>, vector<32x32xf32>, vector<256x32xf32> -> vector<256x32xf32>
    %cst_18 = arith.constant dense<0.000000e+00> : vector<256x32xf32>
    %27 = tpu.matmul %16, %26, %cst_18 {dimension_numbers = #tpu.dot_dimension_numbers<[1], [0], [0], [1], [0, 0, 1, 1], [], []>} : vector<256x256xf32>, vector<256x32xf32>, vector<256x32xf32> -> vector<256x32xf32>
    %cst_19 = arith.constant dense<0.000000e+00> : vector<256x32xf32>
    %28 = tpu.matmul %19, %25, %cst_19 {dimension_numbers = #tpu.dot_dimension_numbers<[1], [0], [0], [1], [0, 0, 1, 1], [], []>} : vector<256x24xf32>, vector<24x32xf32>, vector<256x32xf32> -> vector<256x32xf32>
    %29 = arith.addf %27, %28 : vector<256x32xf32>
    %30 = arith.addf %23, %29 : vector<256x32xf32>
    %cst_20 = arith.constant dense<0.000000e+00> : vector<256xf32>
    %31 = vector.multi_reduction <add>, %30, %cst_20 [1] : vector<256x32xf32> to vector<256xf32>
    %32 = vector.shape_cast %31 : vector<256xf32> to vector<256x1xf32>
    %cst_21 = arith.constant 3.200000e+01 : f32
    %33 = vector.broadcast %cst_21 : f32 to vector<256x1xf32>
    %34 = arith.divf %32, %33 : vector<256x1xf32>
    %35 = arith.mulf %30, %30 : vector<256x32xf32>
    %cst_22 = arith.constant dense<0.000000e+00> : vector<256xf32>
    %36 = vector.multi_reduction <add>, %35, %cst_22 [1] : vector<256x32xf32> to vector<256xf32>
    %37 = vector.shape_cast %36 : vector<256xf32> to vector<256x1xf32>
    %cst_23 = arith.constant 3.200000e+01 : f32
    %38 = vector.broadcast %cst_23 : f32 to vector<256x1xf32>
    %39 = arith.divf %37, %38 : vector<256x1xf32>
    %40 = arith.mulf %34, %34 : vector<256x1xf32>
    %41 = arith.subf %39, %40 : vector<256x1xf32>
    %42 = vector.broadcast %34 : vector<256x1xf32> to vector<256x32xf32>
    %43 = arith.subf %30, %42 : vector<256x32xf32>
    %cst_24 = arith.constant 9.99999974E-6 : f32
    %44 = vector.broadcast %cst_24 : f32 to vector<256x1xf32>
    %45 = arith.addf %41, %44 : vector<256x1xf32>
    %46 = math.rsqrt %45 : vector<256x1xf32>
    %47 = vector.broadcast %46 : vector<256x1xf32> to vector<256x32xf32>
    %48 = arith.mulf %43, %47 : vector<256x32xf32>
    %49 = vector.broadcast %20 : vector<1x32xf32> to vector<256x32xf32>
    %50 = arith.mulf %48, %49 : vector<256x32xf32>
    %51 = vector.broadcast %21 : vector<1x32xf32> to vector<256x32xf32>
    %52 = arith.addf %50, %51 : vector<256x32xf32>
    %cst_25 = arith.constant 0.000000e+00 : f32
    %53 = vector.broadcast %cst_25 : f32 to vector<256x32xf32>
    %54 = arith.maximumf %52, %53 : vector<256x32xf32>
    %c32 = arith.constant 32 : index
    %c0_26 = arith.constant 0 : index
    %55 = vector.load %arg5[%c32, %c0_26] : memref<224x32xf32, #tpu.memory_space<vmem>>, vector<32x32xf32>
    %c120 = arith.constant 120 : index
    %c0_27 = arith.constant 0 : index
    %56 = vector.load %arg5[%c120, %c0_27] : memref<224x32xf32, #tpu.memory_space<vmem>>, vector<24x32xf32>
    %cst_28 = arith.constant dense<0.000000e+00> : vector<256x32xf32>
    %57 = tpu.matmul %54, %55, %cst_28 {dimension_numbers = #tpu.dot_dimension_numbers<[1], [0], [0], [1], [0, 0, 1, 1], [], []>} : vector<256x32xf32>, vector<32x32xf32>, vector<256x32xf32> -> vector<256x32xf32>
    %cst_29 = arith.constant dense<0.000000e+00> : vector<256x32xf32>
    %58 = tpu.matmul %16, %57, %cst_29 {dimension_numbers = #tpu.dot_dimension_numbers<[1], [0], [0], [1], [0, 0, 1, 1], [], []>} : vector<256x256xf32>, vector<256x32xf32>, vector<256x32xf32> -> vector<256x32xf32>
    %cst_30 = arith.constant dense<0.000000e+00> : vector<256x32xf32>
    %59 = tpu.matmul %19, %56, %cst_30 {dimension_numbers = #tpu.dot_dimension_numbers<[1], [0], [0], [1], [0, 0, 1, 1], [], []>} : vector<256x24xf32>, vector<24x32xf32>, vector<256x32xf32> -> vector<256x32xf32>
    %60 = arith.addf %58, %59 : vector<256x32xf32>
    %61 = arith.addf %54, %60 : vector<256x32xf32>
    %cst_31 = arith.constant dense<0.000000e+00> : vector<256xf32>
    %62 = vector.multi_reduction <add>, %61, %cst_31 [1] : vector<256x32xf32> to vector<256xf32>
    %63 = vector.shape_cast %62 : vector<256xf32> to vector<256x1xf32>
    %cst_32 = arith.constant 3.200000e+01 : f32
    %64 = vector.broadcast %cst_32 : f32 to vector<256x1xf32>
    %65 = arith.divf %63, %64 : vector<256x1xf32>
    %66 = arith.mulf %61, %61 : vector<256x32xf32>
    %cst_33 = arith.constant dense<0.000000e+00> : vector<256xf32>
    %67 = vector.multi_reduction <add>, %66, %cst_33 [1] : vector<256x32xf32> to vector<256xf32>
    %68 = vector.shape_cast %67 : vector<256xf32> to vector<256x1xf32>
    %cst_34 = arith.constant 3.200000e+01 : f32
    %69 = vector.broadcast %cst_34 : f32 to vector<256x1xf32>
    %70 = arith.divf %68, %69 : vector<256x1xf32>
    %71 = arith.mulf %65, %65 : vector<256x1xf32>
    %72 = arith.subf %70, %71 : vector<256x1xf32>
    %73 = vector.broadcast %65 : vector<256x1xf32> to vector<256x32xf32>
    %74 = arith.subf %61, %73 : vector<256x32xf32>
    %cst_35 = arith.constant 9.99999974E-6 : f32
    %75 = vector.broadcast %cst_35 : f32 to vector<256x1xf32>
    %76 = arith.addf %72, %75 : vector<256x1xf32>
    %77 = math.rsqrt %76 : vector<256x1xf32>
    %78 = vector.broadcast %77 : vector<256x1xf32> to vector<256x32xf32>
    %79 = arith.mulf %74, %78 : vector<256x32xf32>
    %80 = vector.broadcast %20 : vector<1x32xf32> to vector<256x32xf32>
    %81 = arith.mulf %79, %80 : vector<256x32xf32>
    %82 = vector.broadcast %21 : vector<1x32xf32> to vector<256x32xf32>
    %83 = arith.addf %81, %82 : vector<256x32xf32>
    %cst_36 = arith.constant 0.000000e+00 : f32
    %84 = vector.broadcast %cst_36 : f32 to vector<256x32xf32>
    %85 = arith.maximumf %83, %84 : vector<256x32xf32>
    %c64 = arith.constant 64 : index
    %c0_37 = arith.constant 0 : index
    %86 = vector.load %arg5[%c64, %c0_37] : memref<224x32xf32, #tpu.memory_space<vmem>>, vector<32x32xf32>
    %c144 = arith.constant 144 : index
    %c0_38 = arith.constant 0 : index
    %87 = vector.load %arg5[%c144, %c0_38] : memref<224x32xf32, #tpu.memory_space<vmem>>, vector<24x32xf32>
    %cst_39 = arith.constant dense<0.000000e+00> : vector<256x32xf32>
    %88 = tpu.matmul %85, %86, %cst_39 {dimension_numbers = #tpu.dot_dimension_numbers<[1], [0], [0], [1], [0, 0, 1, 1], [], []>} : vector<256x32xf32>, vector<32x32xf32>, vector<256x32xf32> -> vector<256x32xf32>
    %cst_40 = arith.constant dense<0.000000e+00> : vector<256x32xf32>
    %89 = tpu.matmul %16, %88, %cst_40 {dimension_numbers = #tpu.dot_dimension_numbers<[1], [0], [0], [1], [0, 0, 1, 1], [], []>} : vector<256x256xf32>, vector<256x32xf32>, vector<256x32xf32> -> vector<256x32xf32>
    %cst_41 = arith.constant dense<0.000000e+00> : vector<256x32xf32>
    %90 = tpu.matmul %19, %87, %cst_41 {dimension_numbers = #tpu.dot_dimension_numbers<[1], [0], [0], [1], [0, 0, 1, 1], [], []>} : vector<256x24xf32>, vector<24x32xf32>, vector<256x32xf32> -> vector<256x32xf32>
    %91 = arith.addf %89, %90 : vector<256x32xf32>
    %92 = arith.addf %85, %91 : vector<256x32xf32>
    %cst_42 = arith.constant dense<0.000000e+00> : vector<256xf32>
    %93 = vector.multi_reduction <add>, %92, %cst_42 [1] : vector<256x32xf32> to vector<256xf32>
    %94 = vector.shape_cast %93 : vector<256xf32> to vector<256x1xf32>
    %cst_43 = arith.constant 3.200000e+01 : f32
    %95 = vector.broadcast %cst_43 : f32 to vector<256x1xf32>
    %96 = arith.divf %94, %95 : vector<256x1xf32>
    %97 = arith.mulf %92, %92 : vector<256x32xf32>
    %cst_44 = arith.constant dense<0.000000e+00> : vector<256xf32>
    %98 = vector.multi_reduction <add>, %97, %cst_44 [1] : vector<256x32xf32> to vector<256xf32>
    %99 = vector.shape_cast %98 : vector<256xf32> to vector<256x1xf32>
    %cst_45 = arith.constant 3.200000e+01 : f32
    %100 = vector.broadcast %cst_45 : f32 to vector<256x1xf32>
    %101 = arith.divf %99, %100 : vector<256x1xf32>
    %102 = arith.mulf %96, %96 : vector<256x1xf32>
    %103 = arith.subf %101, %102 : vector<256x1xf32>
    %104 = vector.broadcast %96 : vector<256x1xf32> to vector<256x32xf32>
    %105 = arith.subf %92, %104 : vector<256x32xf32>
    %cst_46 = arith.constant 9.99999974E-6 : f32
    %106 = vector.broadcast %cst_46 : f32 to vector<256x1xf32>
    %107 = arith.addf %103, %106 : vector<256x1xf32>
    %108 = math.rsqrt %107 : vector<256x1xf32>
    %109 = vector.broadcast %108 : vector<256x1xf32> to vector<256x32xf32>
    %110 = arith.mulf %105, %109 : vector<256x32xf32>
    %111 = vector.broadcast %20 : vector<1x32xf32> to vector<256x32xf32>
    %112 = arith.mulf %110, %111 : vector<256x32xf32>
    %113 = vector.broadcast %21 : vector<1x32xf32> to vector<256x32xf32>
    %114 = arith.addf %112, %113 : vector<256x32xf32>
    %cst_47 = arith.constant 0.000000e+00 : f32
    %115 = vector.broadcast %cst_47 : f32 to vector<256x32xf32>
    %116 = arith.maximumf %114, %115 : vector<256x32xf32>
    %c168 = arith.constant 168 : index
    %c0_48 = arith.constant 0 : index
    %117 = vector.load %arg5[%c168, %c0_48] : memref<224x32xf32, #tpu.memory_space<vmem>>, vector<32x32xf32>
    %c216 = arith.constant 216 : index
    %c0_49 = arith.constant 0 : index
    %118 = vector.load %arg5[%c216, %c0_49] : memref<224x32xf32, #tpu.memory_space<vmem>>, vector<1x32xf32>
    %cst_50 = arith.constant dense<0.000000e+00> : vector<256x32xf32>
    %119 = tpu.matmul %116, %117, %cst_50 {dimension_numbers = #tpu.dot_dimension_numbers<[1], [0], [0], [1], [0, 0, 1, 1], [], []>} : vector<256x32xf32>, vector<32x32xf32>, vector<256x32xf32> -> vector<256x32xf32>
    %120 = vector.broadcast %118 : vector<1x32xf32> to vector<256x32xf32>
    %121 = arith.addf %119, %120 : vector<256x32xf32>
    %c0_51 = arith.constant 0 : index
    %c0_52 = arith.constant 0 : index
    %c0_53 = arith.constant 0 : index
    %122 = vector.load %arg6[%c0_51, %c0_52, %c0_53] : memref<1x256x32xf32, #tpu.memory_space<vmem>>, vector<1x256x32xf32>
    %123 = vector.shape_cast %122 : vector<1x256x32xf32> to vector<256x32xf32>
    %124 = vector.shape_cast %121 : vector<256x32xf32> to vector<1x256x32xf32>
    tpu.vector_store %arg6[%c0_51, %c0_52, %c0_53], %124 {strides = array<i32>} : memref<1x256x32xf32, #tpu.memory_space<vmem>>, vector<1x256x32xf32>,
    return
  }
  func.func @transform_0(%arg0: i32) -> (i32, i32, i32) {
    %c0_i32 = arith.constant 0 : i32
    %c0_i32_0 = arith.constant 0 : i32
    %c0_i32_1 = arith.constant 0 : i32
    return %arg0, %c0_i32, %c0_i32_0 : i32, i32, i32
  }
  func.func @transform_1(%arg0: i32) -> (i32, i32, i32) {
    %c0_i32 = arith.constant 0 : i32
    %c0_i32_0 = arith.constant 0 : i32
    %c0_i32_1 = arith.constant 0 : i32
    return %arg0, %c0_i32, %c0_i32_0 : i32, i32, i32
  }
  func.func @transform_2(%arg0: i32) -> (i32, i32, i32) {
    %c0_i32 = arith.constant 0 : i32
    %c0_i32_0 = arith.constant 0 : i32
    %c0_i32_1 = arith.constant 0 : i32
    return %arg0, %c0_i32, %c0_i32_0 : i32, i32, i32
  }
  func.func @transform_3(%arg0: i32) -> (i32, i32, i32) {
    %c0_i32 = arith.constant 0 : i32
    %c0_i32_0 = arith.constant 0 : i32
    %c0_i32_1 = arith.constant 0 : i32
    return %arg0, %c0_i32, %c0_i32_0 : i32, i32, i32
  }
  func.func @transform_4(%arg0: i32) -> (i32, i32) {
    %c0_i32 = arith.constant 0 : i32
    %c0_i32_0 = arith.constant 0 : i32
    %c0_i32_1 = arith.constant 0 : i32
    return %c0_i32, %c0_i32_0 : i32, i32
  }
  func.func @transform_5(%arg0: i32) -> (i32, i32, i32) {
    %c0_i32 = arith.constant 0 : i32
    %c0_i32_0 = arith.constant 0 : i32
    %c0_i32_1 = arith.constant 0 : i32
    return %arg0, %c0_i32, %c0_i32_0 : i32, i32, i32
  }
}

</mosaic_0001>

<bundles_post_ra>
// kernel: subpart_gnn.1
= control target key start
LH: loop header
LB: loop body
LE: loop exit
PB: predicated region body
PF: predicated region fallthrough
CT: control target
= control target key end

     0   :  { %s8867_s18 = smov 0   ;;  %s15815_s0 = inlined_call_operand.vmem [shape: s32[2,512,1], index: 0, kind: input, shape index: {}]   ;;  %s15816_s1 = inlined_call_operand.vmem [shape: s32[2,1,512], index: 1, kind: input, shape index: {}]   ;;  %s15817_s2 = inlined_call_operand.vmem [shape: f32[2,256,32], index: 2, kind: input, shape index: {}]   ;;  %s15818_s3 = inlined_call_operand.vmem [shape: f32[2,512,24], index: 3, kind: input, shape index: {}]   ;;  %s15819_s4 = inlined_call_operand.vmem [shape: f32[224,32], index: 4, kind: input, shape index: {}]   ;;  %s15820_s5 = inlined_call_operand.vmem [shape: f32[2,256,32], index: 5, kind: output, shape index: {}]  }
   0x1 LB: > { %s7535_s19 = sadd.s32 4294967295, %s8831_s18   ;;  %p7539_p0 = scmp.ge.s32.totalorder %s8831_s18, 1  ;;  %s8831_s18 = sphi %s8867_s18, %s15_s18  }
   0x2   : > { %p216_p1 = scmp.lt.s32.totalorder %s8831_s18, 3 }
   0x4   : > { %p217_p2 = pnand %p7539_p0, %p216_p1 }
   0x6   : > { %220 = sbr.rel (%p217_p2) target bundleno = 3211 (0xc8b), region = 40 }
   0xb   : > { %p258_p3 = scmp.lt.s32.totalorder %s7535_s19, 1  ;;  %v8833_v0 = vmov 0   ;;  %v347_v52 = vlaneseq  ;;  %v15859_v60 = vmov 1.0|1.0  }
   0xc   : > { %8585 = vset.pattern.permute.xlu2 %v8833_v0  ;;  %8584 = vset.pattern.permute.xlu1 %v8833_v0 }
   0xd   : > { %8583 = vset.pattern.permute.xlu0 %v8833_v0  ;;  %s17355_s19 = smov (!%p258_p3, %s7535_s19), 1  ;;  %v8946_v56 = vand.u32 127, %v347_v52 }
   0xe   : > { %s8543_s20 = sshll.u32 %s17355_s19, 9  ;;  %s7542_s24 = sshll.u32 %s17355_s19, 2 }
   0xf   : > { %s8883_s23 = scalar_lea.vmem %s15815_s0, %s8543_s20  ;;  %s266_s27 = scalar_lea.vmem %s15816_s1, %s7542_s24 }
  0x10   : > { %v296_v1 = vld [vmem:[%s8883_s23 + $0x70] sm:$0xff]  ;;  %v294_v2 = vld [vmem:[%s8883_s23 + $0x60] sm:$0xff]  ;;  %v297_v4 = vld [vmem:[%s8883_s23 + $0x78] sm:$0xff]  ;;  %s10431_s30 = scalar_lea.vmem %s15818_s3, %s8543_s20  ;;  %s8544_s14 = sshll.u32 %s17355_s19, 8 }
  0x11   : > { %v292_v3 = vld [vmem:[%s8883_s23 + $0x50] sm:$0xff]  ;;  %426 = vperm.xlu0 %8583, %v296_v1   ;;  %420 = vperm.xlu1 %8584, %v294_v2   ;;  %v295_v5 = vld [vmem:[%s8883_s23 + $0x68] sm:$0xff]  ;;  %v293_v6 = vld [vmem:[%s8883_s23 + $0x58] sm:$0xff]  ;;  %s11268_s17 = scalar_lea.vmem %s15817_s2, %s8544_s14  ;;  %s15562_s24 = scalar_lea.vmem %s15820_s5, %s8544_s14 }
  0x12   : > { %414 = vperm.xlu2 %8585, %v292_v3   ;;  %v291_v7 = vld [vmem:[%s8883_s23 + $0x48] sm:$0xff]  ;;  %v290_v8 = vld [vmem:[%s8883_s23 + $0x40] sm:$0xff]  ;;  %v288_v9 = vld [vmem:[%s8883_s23 + $0x30] sm:$0xff] }
  0x13   : > { %v289_v10 = vld [vmem:[%s8883_s23 + $0x38] sm:$0xff]  ;;  %v286_v11 = vld [vmem:[%s8883_s23 + $0x20] sm:$0xff]  ;;  %v287_v12 = vld [vmem:[%s8883_s23 + $0x28] sm:$0xff] }
  0x14   : > { %v285_v13 = vld [vmem:[%s8883_s23 + $0x18] sm:$0xff]  ;;  %v284_v14 = vld [vmem:[%s8883_s23 + $0x10] sm:$0xff]  ;;  %v282_v15 = vld [vmem:[%s8883_s23] sm:$0xff] }
  0x15   : > { %v328_v16 = vld [vmem:[%s8883_s23 + $0x170] sm:$0xff]  ;;  %v283_v17 = vld [vmem:[%s8883_s23 + $0x8] sm:$0xff]  ;;  %v329_v18 = vld [vmem:[%s8883_s23 + $0x178] sm:$0xff] }
  0x16   : > { %v345_v19 = vld [vmem:[%s8883_s23 + $0x1f8] sm:$0xff]  ;;  %v344_v20 = vld [vmem:[%s8883_s23 + $0x1f0] sm:$0xff]  ;;  %v326_v21 = vld [vmem:[%s8883_s23 + $0x160] sm:$0xff] }
  0x17   : > { %v312_v22 = vld [vmem:[%s8883_s23 + $0xf0] sm:$0xff]  ;;  %v327_v23 = vld [vmem:[%s8883_s23 + $0x168] sm:$0xff]  ;;  %v313_v24 = vld [vmem:[%s8883_s23 + $0xf8] sm:$0xff] }
  0x18   : > { %v343_v25 = vld [vmem:[%s8883_s23 + $0x1e8] sm:$0xff]  ;;  %v342_v26 = vld [vmem:[%s8883_s23 + $0x1e0] sm:$0xff]  ;;  %v324_v27 = vld [vmem:[%s8883_s23 + $0x150] sm:$0xff] }
  0x19   : > { %429 = vperm.xlu0 %8583, %v297_v4   ;;  %423 = vperm.xlu1 %8584, %v295_v5   ;;  %v310_v28 = vld [vmem:[%s8883_s23 + $0xe0] sm:$0xff]  ;;  %v325_v29 = vld [vmem:[%s8883_s23 + $0x158] sm:$0xff]  ;;  %v311_v30 = vld [vmem:[%s8883_s23 + $0xe8] sm:$0xff] }
  0x1a   : > { %417 = vperm.xlu2 %8585, %v293_v6   ;;  %v341_v31 = vld [vmem:[%s8883_s23 + $0x1d8] sm:$0xff]  ;;  %v340_v32 = vld [vmem:[%s8883_s23 + $0x1d0] sm:$0xff]  ;;  %v322_v33 = vld [vmem:[%s8883_s23 + $0x140] sm:$0xff] }
  0x1b   : > { %v308_v34 = vld [vmem:[%s8883_s23 + $0xd0] sm:$0xff]  ;;  %v323_v35 = vld [vmem:[%s8883_s23 + $0x148] sm:$0xff]  ;;  %v309_v36 = vld [vmem:[%s8883_s23 + $0xd8] sm:$0xff] }
  0x1c   : > { %v339_v38 = vld [vmem:[%s8883_s23 + $0x1c8] sm:$0xff]  ;;  %v338_v39 = vld [vmem:[%s8883_s23 + $0x1c0] sm:$0xff]  ;;  %v320_v40 = vld [vmem:[%s8883_s23 + $0x130] sm:$0xff] }
  0x1d   : > { %v306_v42 = vld [vmem:[%s8883_s23 + $0xc0] sm:$0xff]  ;;  %v321_v43 = vld [vmem:[%s8883_s23 + $0x138] sm:$0xff]  ;;  %v307_v44 = vld [vmem:[%s8883_s23 + $0xc8] sm:$0xff] }
  0x1e   : > { %v337_v46 = vld [vmem:[%s8883_s23 + $0x1b8] sm:$0xff]  ;;  %v336_v47 = vld [vmem:[%s8883_s23 + $0x1b0] sm:$0xff]  ;;  %v318_v48 = vld [vmem:[%s8883_s23 + $0x120] sm:$0xff] }
  0x1f   : > { %v304_v53 = vld [vmem:[%s8883_s23 + $0xb0] sm:$0xff]  ;;  %v319_v54 = vld [vmem:[%s8883_s23 + $0x128] sm:$0xff]  ;;  %v305_v55 = vld [vmem:[%s8883_s23 + $0xb8] sm:$0xff] }
  0x20   : > { %v335_v61 = vld [vmem:[%s8883_s23 + $0x1a8] sm:$0xff]  ;;  %v334_v62 = vld [vmem:[%s8883_s23 + $0x1a0] sm:$0xff]  ;;  %v316_v63 = vld [vmem:[%s8883_s23 + $0x110] sm:$0xff] }
  0x21   : > { %411 = vperm.xlu1 %8584, %v291_v7   ;;  %408 = vperm.xlu0 %8583, %v290_v8   ;;  %v302_v3 = vld [vmem:[%s8883_s23 + $0xa0] sm:$0xff]  ;;  %v317_v4 = vld [vmem:[%s8883_s23 + $0x118] sm:$0xff]  ;;  %v303_v5 = vld [vmem:[%s8883_s23 + $0xa8] sm:$0xff] }
  0x22   : > { %402 = vperm.xlu2 %8585, %v288_v9   ;;  %v333_v9 = vld [vmem:[%s8883_s23 + $0x198] sm:$0xff] }
  0x29   : > { %405 = vperm.xlu0 %8583, %v289_v10   ;;  %396 = vperm.xlu1 %8584, %v286_v11   ;;  %v332_v10 = vld [vmem:[%s8883_s23 + $0x190] sm:$0xff]  ;;  %v314_v11 = vld [vmem:[%s8883_s23 + $0x100] sm:$0xff] }
  0x2a   : > { %399 = vperm.xlu2 %8585, %v287_v12  }
  0x31   : > { %393 = vperm.xlu1 %8584, %v285_v13   ;;  %390 = vperm.xlu0 %8583, %v284_v14  }
  0x32   : > { %384 = vperm.xlu2 %8585, %v282_v15   ;;  %v9038_v15 = vshrl.u32 %v347_v52, 7 }
  0x34   : > { %16288 = vst [vmem:[#allocation2_spill] sm:$0xff] %v9038_v15  ;;  %v9253_v52 = vadd.s32 64, %v9038_v15 }
  0x39   : > { %522 = vperm.xlu1 %8584, %v328_v16   ;;  %387 = vperm.xlu0 %8583, %v283_v17   ;;  %v300_v16 = vld [vmem:[%s8883_s23 + $0x90] sm:$0xff]  ;;  %v315_v17 = vld [vmem:[%s8883_s23 + $0x108] sm:$0xff] }
  0x3a   : > { %525 = vperm.xlu2 %8585, %v329_v18   ;;  %v9043_v18 = vld [vmem:[%s266_s27] sm:$0xf] }
  0x41   : > { %573 = vperm.xlu1 %8584, %v345_v19   ;;  %570 = vperm.xlu0 %8583, %v344_v20   ;;  %v301_v19 = vld [vmem:[%s8883_s23 + $0x98] sm:$0xff]  ;;  %v9049_v20 = vadd.s32 128, %v8946_v56 }
  0x42   : > { %516 = vperm.xlu2 %8585, %v326_v21   ;;  %v9053_v21 = vadd.s32 8, %v9038_v15 }
  0x44   : > { %16289 = vst [vmem:[#allocation3_spill] sm:$0xff] %v9053_v21 }
  0x49   : > { %474 = vperm.xlu1 %8584, %v312_v22   ;;  %519 = vperm.xlu0 %8583, %v327_v23   ;;  %v9056_v22 = vperm.slane %v9043_v18, 0 }
  0x4a   : > { %477 = vperm.xlu2 %8585, %v313_v24  }
  0x4b   : > { %16290 = vst [vmem:[#allocation4_spill] sm:$0xff] %v9056_v22 }
  0x51   : > { %567 = vperm.xlu1 %8584, %v343_v25   ;;  %564 = vperm.xlu0 %8583, %v342_v26   ;;  %v331_v26 = vld [vmem:[%s8883_s23 + $0x188] sm:$0xff] }
  0x52   : > { %510 = vperm.xlu2 %8585, %v324_v27   ;;  %v330_v27 = vld [vmem:[%s8883_s23 + $0x180] sm:$0xff] }
  0x59   : > { %468 = vperm.xlu1 %8584, %v310_v28   ;;  %513 = vperm.xlu0 %8583, %v325_v29   ;;  %v298_v28 = vld [vmem:[%s8883_s23 + $0x80] sm:$0xff] }
  0x5a   : > { %471 = vperm.xlu2 %8585, %v311_v30  }
  0x61   : > { %561 = vperm.xlu1 %8584, %v341_v31   ;;  %558 = vperm.xlu0 %8583, %v340_v32  }
  0x62   : > { %504 = vperm.xlu2 %8585, %v322_v33   ;;  %v299_v33 = vld [vmem:[%s8883_s23 + $0x88] sm:$0xff] }
  0x69   : > { %462 = vperm.xlu1 %8584, %v308_v34   ;;  %507 = vperm.xlu0 %8583, %v323_v35   ;;  %v9129_v34 = vadd.s32 16, %v9038_v15  ;;  %v9132_v35 = vadd.s32 24, %v9038_v15 }
  0x6a   : > { %465 = vperm.xlu2 %8585, %v309_v36  }
  0x6b   : > { %16293 = vst [vmem:[#allocation5_spill] sm:$0xff] %v9129_v34 }
  0x6c   : > { %v8921_v37 = vpop.permute.xlu2 %414  ;;  %16294 = vst [vmem:[#allocation6_spill] sm:$0xff] %v9132_v35 }
  0x6d   : > { %vm595_vm6 = vcmp.eq.s32.totalorder %v8946_v56, %v8921_v37 }
  0x71   : > { %555 = vperm.xlu1 %8584, %v339_v38   ;;  %552 = vperm.xlu0 %8583, %v338_v39  }
  0x72   : > { %498 = vperm.xlu2 %8585, %v320_v40   ;;  %v9170_v40 = vadd.s32 128, %v9038_v15 }
  0x74   : > { %v8926_v41 = vpop.permute.xlu2 %417  ;;  %16297 = vst [vmem:[#allocation7_spill] sm:$0xff] %v9170_v40 }
  0x75   : > { %vm597_vm7 = vcmp.eq.s32.totalorder %v8946_v56, %v8926_v41 }
  0x76   : > { %vm7809_vm8 = vmpackc.low %vm597_vm7, %vm595_vm6 }
  0x79   : > { %456 = vperm.xlu1 %8584, %v306_v42   ;;  %501 = vperm.xlu0 %8583, %v321_v43  }
  0x7a   : > { %459 = vperm.xlu2 %8585, %v307_v44   ;;  %v16299_v44 = vmov 0 }
  0x7c   : > { %v8931_v45 = vpop.permute.xlu2 %402 }
  0x7d   : > { %vm587_vm12 = vcmp.eq.s32.totalorder %v8946_v56, %v8931_v45 }
  0x81   : > { %549 = vperm.xlu1 %8584, %v337_v46   ;;  %546 = vperm.xlu0 %8583, %v336_v47   ;;  %v9220_v46 = vadd.s32 32, %v9038_v15  ;;  %v9223_v47 = vadd.s32 40, %v9038_v15 }
  0x82   : > { %492 = vperm.xlu2 %8585, %v318_v48  }
  0x83   : > { %v8936_v49 = vpop.permute.xlu0 %426  ;;  %v8938_v50 = vpop.permute.xlu1 %420  ;;  %16302 = vst [vmem:[#allocation10_spill] sm:$0xff] %v9220_v46 }
  0x84   : > { %v8940_v51 = vpop.permute.xlu2 %399  ;;  %vm603_vm0 = vcmp.eq.s32.totalorder %v8946_v56, %v8936_v49  ;;  %vm599_vm4 = vcmp.eq.s32.totalorder %v8946_v56, %v8938_v50  ;;  %16303 = vst [vmem:[#allocation11_spill] sm:$0xff] %v9223_v47 }
  0x89   : > { %450 = vperm.xlu1 %8584, %v304_v53   ;;  %495 = vperm.xlu0 %8583, %v319_v54   ;;  %v9256_v53 = vadd.s32 72, %v9038_v15  ;;  %v9259_v54 = vadd.s32 144, %v9038_v15 }
  0x8a   : > { %453 = vperm.xlu2 %8585, %v305_v55   ;;  %v9262_v55 = vadd.s32 152, %v9038_v15 }
  0x8b   : > { %v8948_v57 = vpop.permute.xlu0 %429  ;;  %v8950_v58 = vpop.permute.xlu1 %423  ;;  %16306 = vst [vmem:[#allocation14_spill] sm:$0xff] %v9259_v54 }
  0x8c   : > { %vm605_vm1 = vcmp.eq.s32.totalorder %v8946_v56, %v8948_v57  ;;  %v8956_v59 = vpop.permute.xlu2 %384  ;;  %vm601_vm3 = vcmp.eq.s32.totalorder %v8946_v56, %v8950_v58  ;;  %16307 = vst [vmem:[#allocation15_spill] sm:$0xff] %v9262_v55 }
  0x8d   : > { %vm7805_vm2 = vmpackc.low %vm605_vm1, %vm603_vm0  ;;  %vm585_vm0 = vcmp.eq.s32.totalorder %v8946_v56, %v8940_v51 }
  0x8e   : > { %7806 = vmatpush.bf16.msk.msra.mxu0 %vm7805_vm2, %v15859_v60  ;;  %8547 = vmatpush.bf16.msk.msra.mxu1 %vm7805_vm2, %v15859_v60  ;;  %vm7807_vm5 = vmpackc.low %vm601_vm3, %vm599_vm4 }
  0x8f   : > { %8548 = vmatpush.bf16.msk.msra.mxu2 %vm7805_vm2, %v15859_v60  ;;  %8549 = vmatpush.bf16.msk.msra.mxu3 %vm7805_vm2, %v15859_v60 }
  0x91   : > { %543 = vperm.xlu1 %8584, %v335_v61   ;;  %540 = vperm.xlu0 %8583, %v334_v62  }
  0x92   : > { %486 = vperm.xlu2 %8585, %v316_v63   ;;  %7808 = vmatpush.bf16.msk.msra.mxu0 %vm7807_vm5, %v15859_v60 }
  0x93   : > { %8550 = vmatpush.bf16.msk.msra.mxu1 %vm7807_vm5, %v15859_v60  ;;  %8551 = vmatpush.bf16.msk.msra.mxu2 %vm7807_vm5, %v15859_v60  ;;  %v8976_v0 = vpop.permute.xlu1 %411  ;;  %v8978_v1 = vpop.permute.xlu0 %408 }
  0x94   : > { %8552 = vmatpush.bf16.msk.msra.mxu3 %vm7807_vm5, %v15859_v60  ;;  %v8981_v2 = vpop.permute.xlu2 %525  ;;  %vm593_vm9 = vcmp.eq.s32.totalorder %v8946_v56, %v8976_v0  ;;  %vm591_vm10 = vcmp.eq.s32.totalorder %v8946_v56, %v8978_v1  ;;  %vm606_vm5 = vcmp.eq.s32.totalorder %v9049_v20, %v8948_v57 }
  0x95   : > { %vm7811_vm11 = vmpackc.low %vm593_vm9, %vm591_vm10  ;;  %vm575_vm9 = vcmp.eq.s32.totalorder %v8946_v56, %v8956_v59 }
  0x96   : > { %7810 = vmatpush.bf16.msk.msra.mxu0 %vm7809_vm8, %v15859_v60 }
  0x97   : > { %8553 = vmatpush.bf16.msk.msra.mxu1 %vm7809_vm8, %v15859_v60  ;;  %8554 = vmatpush.bf16.msk.msra.mxu2 %vm7809_vm8, %v15859_v60 }
  0x98   : > { %8555 = vmatpush.bf16.msk.msra.mxu3 %vm7809_vm8, %v15859_v60  ;;  %vm604_vm8 = vcmp.eq.s32.totalorder %v9049_v20, %v8936_v49 }
  0x99   : > { %444 = vperm.xlu1 %8584, %v302_v3   ;;  %489 = vperm.xlu0 %8583, %v317_v4   ;;  %vm7997_vm10 = vmpackc.low %vm606_vm5, %vm604_vm8  ;;  %v9343_v3 = vadd.s32 56, %v9038_v15 }
  0x9a   : > { %447 = vperm.xlu2 %8585, %v303_v5   ;;  %7812 = vmatpush.bf16.msk.msra.mxu0 %vm7811_vm11, %v15859_v60 }
  0x9b   : > { %8556 = vmatpush.bf16.msk.msra.mxu1 %vm7811_vm11, %v15859_v60  ;;  %8557 = vmatpush.bf16.msk.msra.mxu2 %vm7811_vm11, %v15859_v60  ;;  %v8997_v6 = vpop.permute.xlu0 %405  ;;  %v8999_v7 = vpop.permute.xlu1 %396 }
  0x9c   : > { %8558 = vmatpush.bf16.msk.msra.mxu3 %vm7811_vm11, %v15859_v60  ;;  %vm589_vm13 = vcmp.eq.s32.totalorder %v8946_v56, %v8997_v6  ;;  %v9006_v8 = vpop.permute.xlu2 %516  ;;  %vm583_vm15 = vcmp.eq.s32.totalorder %v8946_v56, %v8999_v7  ;;  %vm15840_vm11 = vcmp.eq.s32.totalorder %v9038_v15, %v9056_v22 }
  0x9d   : > { %vm7813_vm14 = vmpackc.low %vm589_vm13, %vm587_vm12  ;;  %vm15833_vm12 = vcmp.eq.s32.totalorder %v9053_v21, %v9056_v22 }
  0x9e   : > { %7814 = vmatpush.bf16.msk.msra.mxu0 %vm7813_vm14, %v15859_v60  ;;  %vm7815_vm1 = vmpackc.low %vm585_vm0, %vm583_vm15 }
  0x9f   : > { %8559 = vmatpush.bf16.msk.msra.mxu1 %vm7813_vm14, %v15859_v60  ;;  %8560 = vmatpush.bf16.msk.msra.mxu2 %vm7813_vm14, %v15859_v60  ;;  %vm9093_vm0 = vmpackc.low %vm15833_vm12, %vm15840_vm11 }
  0xa0   : > { %8561 = vmatpush.bf16.msk.msra.mxu3 %vm7813_vm14, %v15859_v60  ;;  %vm669_vm14 = vcmp.eq.s32.totalorder %v8946_v56, %v8981_v2 }
  0xa1   : > { %537 = vperm.xlu1 %8584, %v333_v9   ;;  %534 = vperm.xlu0 %8583, %v332_v10   ;;  %v9368_v9 = vadd.s32 216, %v9038_v15  ;;  %v9372_v10 = vadd.s32 80, %v9038_v15 }
  0xa2   : > { %480 = vperm.xlu2 %8585, %v314_v11   ;;  %7816 = vmatpush.bf16.msk.msra.mxu0 %vm7815_vm1, %v15859_v60  ;;  %v9375_v11 = vadd.s32 88, %v9038_v15 }
  0xa3   : > { %8562 = vmatpush.bf16.msk.msra.mxu1 %vm7815_vm1, %v15859_v60  ;;  %8563 = vmatpush.bf16.msk.msra.mxu2 %vm7815_vm1, %v15859_v60  ;;  %v9023_v12 = vpop.permute.xlu1 %393  ;;  %v9025_v13 = vpop.permute.xlu0 %390  ;;  %16319 = vst [vmem:[#allocation19_spill] sm:$0xff] %v9368_v9 }
  0xa4   : > { %8564 = vmatpush.bf16.msk.msra.mxu3 %vm7815_vm1, %v15859_v60  ;;  %vm581_vm2 = vcmp.eq.s32.totalorder %v8946_v56, %v9023_v12  ;;  %vm579_vm3 = vcmp.eq.s32.totalorder %v8946_v56, %v9025_v13  ;;  %v9035_v14 = vpop.permute.xlu2 %477  ;;  %vm602_vm1 = vcmp.eq.s32.totalorder %v9049_v20, %v8950_v58  ;;  %v16310_v58 = vmov 0  ;;  %16320 = vst [vmem:[#allocation20_spill] sm:$0xff] %v9372_v10 }
  0xa5   : > { %vm7817_vm4 = vmpackc.low %vm581_vm2, %vm579_vm3  ;;  %vm600_vm2 = vcmp.eq.s32.totalorder %v9049_v20, %v8938_v50  ;;  %v9246_v50 = vadd.s32 192, %v9038_v15  ;;  %16321 = vst [vmem:[#allocation21_spill] sm:$0xff] %v9375_v11 }
  0xa6   : > { %7818 = vmatpush.bf16.msk.msra.mxu0 %vm7817_vm4, %v15859_v60  ;;  %vm7999_vm3 = vmpackc.low %vm602_vm1, %vm600_vm2 }
  0xa7   : > { %8565 = vmatpush.bf16.msk.msra.mxu1 %vm7817_vm4, %v15859_v60  ;;  %8566 = vmatpush.bf16.msk.msra.mxu2 %vm7817_vm4, %v15859_v60  ;;  %16304 = vst [vmem:[#allocation12_spill] sm:$0xff] %v9246_v50 }
  0xa8   : > { %8567 = vmatpush.bf16.msk.msra.mxu3 %vm7817_vm4, %v15859_v60 }
  0xa9   : > { %438 = vperm.xlu1 %8584, %v300_v16   ;;  %483 = vperm.xlu0 %8583, %v315_v17   ;;  %v16326_v17 = vmov 0 }
  0xaa   : > { %441 = vperm.xlu2 %8585, %v301_v19  }
  0xab   : > { %v9060_v23 = vpop.permute.xlu1 %522  ;;  %v9062_v24 = vpop.permute.xlu0 %387 }
  0xac   : > { %vm577_vm6 = vcmp.eq.s32.totalorder %v8946_v56, %v9062_v24  ;;  %v9066_v25 = vpop.permute.xlu2 %510  ;;  %vm667_vm7 = vcmp.eq.s32.totalorder %v8946_v56, %v9060_v23 }
  0xad   : > { %vm7819_vm13 = vmpackc.low %vm577_vm6, %vm575_vm9  ;;  %vm596_vm6 = vcmp.eq.s32.totalorder %v9049_v20, %v8921_v37 }
  0xae   : > { %7820 = vmatpush.bf16.msk.msra.mxu0 %vm7819_vm13, %v15859_v60  ;;  %8568 = vmatpush.bf16.msk.msra.mxu1 %vm7819_vm13, %v15859_v60  ;;  %vm7901_vm15 = vmpackc.low %vm669_vm14, %vm667_vm7  ;;  %vm598_vm7 = vcmp.eq.s32.totalorder %v9049_v20, %v8926_v41  ;;  %vm590_vm14 = vcmp.eq.s32.totalorder %v9049_v20, %v8997_v6  ;;  %v9173_v41 = vadd.s32 136, %v9038_v15 }
  0xaf   : > { %8569 = vmatpush.bf16.msk.msra.mxu2 %vm7819_vm13, %v15859_v60  ;;  %8570 = vmatpush.bf16.msk.msra.mxu3 %vm7819_vm13, %v15859_v60  ;;  %vm8001_vm9 = vmpackc.low %vm598_vm7, %vm596_vm6  ;;  %vm594_vm13 = vcmp.eq.s32.totalorder %v9049_v20, %v8976_v0  ;;  %vm15832_vm6 = vcmp.eq.s32.totalorder %v9129_v34, %v9056_v22  ;;  %vm15831_vm7 = vcmp.eq.s32.totalorder %v9132_v35, %v9056_v22  ;;  %v16315_v0 = vmov 0 }
  0xb0   : > { %16298 = vst [vmem:[#allocation8_spill] sm:$0xff] %v9173_v41 }
  0xb1   : > { %531 = vperm.xlu1 %8584, %v331_v26   ;;  %528 = vperm.xlu0 %8583, %v330_v27   ;;  %v16331_v27 = vmov 0 }
  0xb2   : > { %7998 = vmatpush.bf16.msk.msrb.mxu0 %vm7997_vm10, %v15859_v60  ;;  %432 = vperm.xlu2 %8585, %v298_v28   ;;  %vm592_vm10 = vcmp.eq.s32.totalorder %v9049_v20, %v8978_v1  ;;  %v9340_v1 = vadd.s32 48, %v9038_v15 }
  0xb3   : > { %7902 = vmatpush.bf16.msk.msrb.mxu2 %vm7901_vm15, %v15859_v60  ;;  %7822 = vmatmul.msk.bf16.vlgmr.msra.gmra.mxu0 %vm9093_vm0, %v15859_v60  ;;  %v9104_v30 = vpop.permute.xlu1 %573  ;;  %v9106_v31 = vpop.permute.xlu0 %570  ;;  %vm8003_vm15 = vmpackc.low %vm594_vm13, %vm592_vm10 }
  0xb4   : > { %v9110_v32 = vpop.permute.xlu2 %471  ;;  %vm699_vm4 = vcmp.eq.s32.totalorder %v8946_v56, %v9106_v31  ;;  %vm701_vm5 = vcmp.eq.s32.totalorder %v8946_v56, %v9104_v30  ;;  %vm9165_vm13 = vmpackc.low %vm15831_vm7, %vm15832_vm6  ;;  %vm15835_vm7 = vcmp.eq.s32.totalorder %v9340_v1, %v9056_v22  ;;  %vm15834_vm6 = vcmp.eq.s32.totalorder %v9343_v3, %v9056_v22 }
  0xb5   : > { %vm7949_vm8 = vmpackc.low %vm701_vm5, %vm699_vm4  ;;  %vm637_vm4 = vcmp.eq.s32.totalorder %v8946_v56, %v9035_v14 }
  0xb6   : > { %8000 = vmatpush.bf16.msk.msrb.mxu0 %vm7999_vm3, %v15859_v60  ;;  %7950 = vmatpush.bf16.msk.msrb.mxu3 %vm7949_vm8, %v15859_v60  ;;  %vm588_vm3 = vcmp.eq.s32.totalorder %v9049_v20, %v8931_v45 }
  0xb7   : > { %vm8005_vm5 = vmpackc.low %vm590_vm14, %vm588_vm3  ;;  %vm584_vm14 = vcmp.eq.s32.totalorder %v9049_v20, %v8999_v7  ;;  %v9365_v7 = vadd.s32 208, %v9038_v15 }
  0xb9   : > { %435 = vperm.xlu0 %8583, %v299_v33   ;;  %16318 = vst [vmem:[#allocation18_spill] sm:$0xff] %v9365_v7 }
  0xba   : > { %8002 = vmatpush.bf16.msk.msrb.mxu0 %vm8001_vm9, %v15859_v60  ;;  %vm663_vm9 = vcmp.eq.s32.totalorder %v8946_v56, %v9006_v8 }
  0xbb   : > { %v9136_v36 = vpop.permute.xlu1 %474  ;;  %v9138_v37 = vpop.permute.xlu0 %519 }
  0xbc   : > { %vm635_vm1 = vcmp.eq.s32.totalorder %v8946_v56, %v9136_v36  ;;  %vm665_vm2 = vcmp.eq.s32.totalorder %v8946_v56, %v9138_v37  ;;  %v9153_v38 = vpop.permute.xlu2 %504 }
  0xbd   : > { %vm7853_vm8 = vmpackc.low %vm637_vm4, %vm635_vm1  ;;  %vm15821_vm1 = vcmp.eq.s32.totalorder %v9173_v41, %v9056_v22  ;;  %v9574_v41 = vadd.s32 248, %v9038_v15 }
  0xbe   : > { %8004 = vmatpush.bf16.msk.msrb.mxu0 %vm8003_vm15, %v15859_v60  ;;  %7854 = vmatpush.bf16.msk.msrb.mxu1 %vm7853_vm8, %v15859_v60  ;;  %vm7903_vm10 = vmpackc.low %vm665_vm2, %vm663_vm9  ;;  %vm15822_vm15 = vcmp.eq.s32.totalorder %v9170_v40, %v9056_v22  ;;  %vm586_vm2 = vcmp.eq.s32.totalorder %v9049_v20, %v8940_v51  ;;  %v9249_v51 = vadd.s32 200, %v9038_v15  ;;  %v9582_v40 = vadd.s32 112, %v9038_v15 }
  0xbf   : > { %7904 = vmatpush.bf16.msk.msrb.mxu2 %vm7903_vm10, %v15859_v60  ;;  %vm9197_vm3 = vmpackc.low %vm15821_vm1, %vm15822_vm15  ;;  %vm580_vm10 = vcmp.eq.s32.totalorder %v9049_v20, %v9025_v13  ;;  %vm582_vm1 = vcmp.eq.s32.totalorder %v9049_v20, %v9023_v12  ;;  %vm15828_vm15 = vcmp.eq.s32.totalorder %v9220_v46, %v9056_v22  ;;  %v9378_v12 = vadd.s32 160, %v9038_v15  ;;  %16350 = vst [vmem:[#allocation35_spill] sm:$0xff] %v9574_v41 }
  0xc0   : > { %v16300_v44 = vsel %vm9197_vm3, 4294967295, %v16299_v44  ;;  %vm8007_vm4 = vmpackc.low %vm586_vm2, %vm584_vm14  ;;  %7838 = vmatmul.msk.bf16.vlgmr.msra.gmra.mxu2 %vm9197_vm3, %v15859_v60  ;;  %vm578_vm2 = vcmp.eq.s32.totalorder %v9049_v20, %v9062_v24  ;;  %16305 = vst [vmem:[#allocation13_spill] sm:$0xff] %v9249_v51  ;;  %v9381_v13 = vadd.s32 168, %v9038_v15 }
  0xc1   : > { %16301 = vst [vmem:[#allocation9_spill] sm:$0xff] %v16300_v44  ;;  %vm8009_vm14 = vmpackc.low %vm582_vm1, %vm580_vm10  ;;  %v9660_v44 = vperm.slane %v9043_v18, 2 }
  0xc2   : > { %8006 = vmatpush.bf16.msk.msrb.mxu0 %vm8005_vm5, %v15859_v60  ;;  %16322 = vst [vmem:[#allocation22_spill] sm:$0xff] %v9378_v12 }
  0xc3   : > { %7824 = vmatmul.msk.bf16.gmra.mxu0 %vm9165_vm13, %v15859_v60  ;;  %v9185_v42 = vpop.permute.xlu1 %567  ;;  %v9187_v43 = vpop.permute.xlu0 %564  ;;  %16323 = vst [vmem:[#allocation23_spill] sm:$0xff] %v9381_v13 }
  0xc4   : > { %vm695_vm5 = vcmp.eq.s32.totalorder %v8946_v56, %v9187_v43  ;;  %vm697_vm8 = vcmp.eq.s32.totalorder %v8946_v56, %v9185_v42  ;;  %v9214_v45 = vpop.permute.xlu2 %465  ;;  %16351 = vst [vmem:[#allocation36_spill] sm:$0xff] %v9582_v40 }
  0xc5   : > { %vm7951_vm9 = vmpackc.low %vm697_vm8, %vm695_vm5  ;;  %vm633_vm8 = vcmp.eq.s32.totalorder %v8946_v56, %v9110_v32  ;;  %16358 = vst [vmem:[#allocation39_spill] sm:$0xff] %v9660_v44 }
  0xc6   : > { %8008 = vmatpush.bf16.msk.msrb.mxu0 %vm8007_vm4, %v15859_v60  ;;  %7952 = vmatpush.bf16.msk.msrb.mxu3 %vm7951_vm9, %v15859_v60  ;;  %vm576_vm4 = vcmp.eq.s32.totalorder %v9049_v20, %v8956_v59 }
  0xc7   : > { %vm8011_vm5 = vmpackc.low %vm578_vm2, %vm576_vm4  ;;  %vm15823_vm2 = vcmp.eq.s32.totalorder %v9223_v47, %v9056_v22 }
  0xc8   : > { %v16416_v19 = vld [vmem:[#allocation9_spill] sm:$0xff] }
  0xca   : > { %8010 = vmatpush.bf16.msk.msrb.mxu0 %vm8009_vm14, %v15859_v60  ;;  %vm659_vm14 = vcmp.eq.s32.totalorder %v8946_v56, %v9066_v25 }
  0xcb   : > { %v9225_v48 = vpop.permute.xlu1 %468  ;;  %v9227_v49 = vpop.permute.xlu0 %513 }
  0xcc   : > { %vm631_vm1 = vcmp.eq.s32.totalorder %v8946_v56, %v9225_v48  ;;  %vm661_vm9 = vcmp.eq.s32.totalorder %v8946_v56, %v9227_v49  ;;  %v9296_v59 = vpop.permute.xlu2 %498 }
  0xcd   : > { %vm7855_vm10 = vmpackc.low %vm633_vm8, %vm631_vm1  ;;  %vm15825_vm1 = vcmp.eq.s32.totalorder %v9246_v50, %v9056_v22  ;;  %vm15824_vm8 = vcmp.eq.s32.totalorder %v9249_v51, %v9056_v22  ;;  %v9475_v51 = vadd.s32 232, %v9038_v15  ;;  %v9479_v50 = vadd.s32 96, %v9038_v15 }
  0xce   : > { %8012 = vmatpush.bf16.msk.msrb.mxu0 %vm8011_vm5, %v15859_v60  ;;  %7856 = vmatpush.bf16.msk.msrb.mxu1 %vm7855_vm10, %v15859_v60  ;;  %vm7905_vm4 = vmpackc.low %vm661_vm9, %vm659_vm14  ;;  %vm15827_vm10 = vcmp.eq.s32.totalorder %v9253_v52, %v9056_v22  ;;  %vm15826_vm14 = vcmp.eq.s32.totalorder %v9256_v53, %v9056_v22 }
  0xcf   : > { %7906 = vmatpush.bf16.msk.msrb.mxu2 %vm7905_vm4, %v15859_v60  ;;  %vm9270_vm5 = vmpackc.low %vm15823_vm2, %vm15828_vm15  ;;  %vm15830_vm4 = vcmp.eq.s32.totalorder %v9259_v54, %v9056_v22  ;;  %vm15829_vm2 = vcmp.eq.s32.totalorder %v9262_v55, %v9056_v22  ;;  %16335 = vst [vmem:[#allocation27_spill] sm:$0xff] %v9475_v51 }
  0xd0   : > { %vm9284_vm9 = vmpackc.low %vm15824_vm8, %vm15825_vm1  ;;  %16336 = vst [vmem:[#allocation28_spill] sm:$0xff] %v9479_v50 }
  0xd1   : > { %v16311_v58 = vsel %vm9284_vm9, 4294967295, %v16310_v58  ;;  %7846 = vmatmul.msk.bf16.vlgmr.msra.gmra.mxu3 %vm9284_vm9, %v15859_v60  ;;  %vm9307_vm8 = vmpackc.low %vm15826_vm14, %vm15827_vm10 }
  0xd2   : > { %16312 = vst [vmem:[#allocation16_spill] sm:$0xff] %v16311_v58  ;;  %7830 = vmatmul.msk.bf16.vlgmr.msra.gmra.mxu1 %vm9307_vm8, %v15859_v60  ;;  %vm9327_vm1 = vmpackc.low %vm15829_vm2, %vm15830_vm4  ;;  %vm655_vm4 = vcmp.eq.s32.totalorder %v8946_v56, %v9153_v38 }
  0xd3   : > { %7826 = vmatmul.msk.bf16.gmra.mxu0 %vm9270_vm5, %v15859_v60  ;;  %v9314_v62 = vpop.permute.xlu1 %561  ;;  %v9316_v63 = vpop.permute.xlu0 %558  ;;  %v16316_v0 = vsel %vm9327_vm1, 4294967295, %v16315_v0  ;;  %7840 = vmatmul.msk.bf16.gmra.mxu2 %vm9327_vm1, %v15859_v60 }
  0xd4   : > { %16317 = vst [vmem:[#allocation17_spill] sm:$0xff] %v16316_v0  ;;  %vm691_vm14 = vcmp.eq.s32.totalorder %v8946_v56, %v9316_v63  ;;  %vm693_vm10 = vcmp.eq.s32.totalorder %v8946_v56, %v9314_v62  ;;  %v9349_v6 = vpop.permute.xlu2 %459  ;;  %v16353_v0 = vmov 0 }
  0xd5   : > { %vm7953_vm15 = vmpackc.low %vm693_vm10, %vm691_vm14  ;;  %vm629_vm10 = vcmp.eq.s32.totalorder %v8946_v56, %v9214_v45 }
  0xd6   : > { %7954 = vmatpush.bf16.msk.msrb.mxu3 %vm7953_vm15, %v15859_v60 }
  0xdb   : > { %v9345_v4 = vpop.permute.xlu1 %462  ;;  %v9347_v5 = vpop.permute.xlu0 %507 }
  0xdc   : > { %vm627_vm2 = vcmp.eq.s32.totalorder %v8946_v56, %v9345_v4  ;;  %vm657_vm15 = vcmp.eq.s32.totalorder %v8946_v56, %v9347_v5  ;;  %v9455_v28 = vpop.permute.xlu2 %492 }
  0xdd   : > { %vm7857_vm14 = vmpackc.low %vm629_vm10, %vm627_vm2 }
  0xde   : > { %7858 = vmatpush.bf16.msk.msrb.mxu1 %vm7857_vm14, %v15859_v60  ;;  %vm7907_vm12 = vmpackc.low %vm657_vm15, %vm655_vm4  ;;  %vm15836_vm4 = vcmp.eq.s32.totalorder %v9368_v9, %v9056_v22  ;;  %vm15839_vm15 = vcmp.eq.s32.totalorder %v9372_v10, %v9056_v22  ;;  %vm15838_vm14 = vcmp.eq.s32.totalorder %v9375_v11, %v9056_v22 }
  0xdf   : > { %7908 = vmatpush.bf16.msk.msrb.mxu2 %vm7907_vm12, %v15859_v60  ;;  %vm9389_vm2 = vmpackc.low %vm15834_vm6, %vm15835_vm7  ;;  %vm15837_vm12 = vcmp.eq.s32.totalorder %v9365_v7, %v9056_v22  ;;  %vm15844_vm6 = vcmp.eq.s32.totalorder %v9378_v12, %v9056_v22  ;;  %vm15843_vm7 = vcmp.eq.s32.totalorder %v9381_v13, %v9056_v22  ;;  %v9472_v7 = vadd.s32 224, %v9038_v15 }
  0xe0   : > { %vm9403_vm10 = vmpackc.low %vm15836_vm4, %vm15837_vm12  ;;  %v9485_v13 = vadd.s32 176, %v9038_v15  ;;  %v9488_v12 = vadd.s32 184, %v9038_v15 }
  0xe1   : > { %v16327_v17 = vsel %vm9403_vm10, 4294967295, %v16326_v17  ;;  %7848 = vmatmul.msk.bf16.gmra.mxu3 %vm9403_vm10, %v15859_v60  ;;  %vm9424_vm4 = vmpackc.low %vm15838_vm14, %vm15839_vm15  ;;  %16334 = vst [vmem:[#allocation26_spill] sm:$0xff] %v9472_v7 }
  0xe2   : > { %16328 = vst [vmem:[#allocation24_spill] sm:$0xff] %v16327_v17  ;;  %7832 = vmatmul.msk.bf16.gmra.mxu1 %vm9424_vm4, %v15859_v60  ;;  %vm9444_vm12 = vmpackc.low %vm15843_vm7, %vm15844_vm6  ;;  %vm625_vm6 = vcmp.eq.s32.totalorder %v8946_v56, %v9349_v6  ;;  %v9482_v17 = vadd.s32 104, %v9038_v15 }
  0xe3   : > { %7828 = vmatmul.msk.bf16.gmra.mxu0 %vm9389_vm2, %v15859_v60  ;;  %v9431_v24 = vpop.permute.xlu1 %555  ;;  %v9433_v26 = vpop.permute.xlu0 %552  ;;  %v16332_v27 = vsel %vm9444_vm12, 4294967295, %v16331_v27  ;;  %7842 = vmatmul.msk.bf16.gmra.mxu2 %vm9444_vm12, %v15859_v60  ;;  %16338 = vst [vmem:[#allocation30_spill] sm:$0xff] %v9485_v13 }
  0xe4   : > { %16333 = vst [vmem:[#allocation25_spill] sm:$0xff] %v16332_v27  ;;  %vm687_vm14 = vcmp.eq.s32.totalorder %v8946_v56, %v9433_v26  ;;  %vm689_vm15 = vcmp.eq.s32.totalorder %v8946_v56, %v9431_v24  ;;  %v9490_v58 = vpop.permute.xlu2 %453  ;;  %v9585_v27 = vadd.s32 120, %v9038_v15 }
  0xe5   : > { %vm7955_vm11 = vmpackc.low %vm689_vm15, %vm687_vm14  ;;  %vm651_vm15 = vcmp.eq.s32.totalorder %v8946_v56, %v9296_v59  ;;  %16337 = vst [vmem:[#allocation29_spill] sm:$0xff] %v9482_v17  ;;  %vm15872_vm14 = vcmp.eq.s32.totalorder %v9482_v17, %v9056_v22 }
  0xe6   : > { %7956 = vmatpush.bf16.msk.msrb.mxu3 %vm7955_vm11, %v15859_v60  ;;  %16339 = vst [vmem:[#allocation31_spill] sm:$0xff] %v9488_v12 }
  0xe7   : > { %16352 = vst [vmem:[#allocation37_spill] sm:$0xff] %v9585_v27 }
  0xeb   : > { %v9458_v33 = vpop.permute.xlu1 %456  ;;  %v9460_v9 = vpop.permute.xlu0 %501 }
  0xec   : > { %vm623_vm7 = vcmp.eq.s32.totalorder %v8946_v56, %v9458_v33  ;;  %vm653_vm10 = vcmp.eq.s32.totalorder %v8946_v56, %v9460_v9  ;;  %v9555_v29 = vpop.permute.xlu2 %486 }
  0xed   : > { %vm7859_vm9 = vmpackc.low %vm625_vm6, %vm623_vm7  ;;  %vm15870_vm6 = vcmp.eq.s32.totalorder %v9472_v7, %v9056_v22  ;;  %vm15863_vm7 = vcmp.eq.s32.totalorder %v9475_v51, %v9056_v22  ;;  %v16343_v7 = vmov 1.0|1.0   ;;  %v16344_v51 = vmov 0 }
  0xee   : > { %7860 = vmatpush.bf16.msk.msrb.mxu1 %vm7859_vm9, %v15859_v60  ;;  %vm7909_vm11 = vmpackc.low %vm653_vm10, %vm651_vm15  ;;  %vm15873_vm10 = vcmp.eq.s32.totalorder %v9479_v50, %v9056_v22  ;;  %vm15879_vm15 = vcmp.eq.s32.totalorder %v9485_v13, %v9056_v22 }
  0xef   : > { %7910 = vmatpush.bf16.msk.msrb.mxu2 %vm7909_vm11, %v15859_v60  ;;  %vm9502_vm9 = vmpackc.low %vm15863_vm7, %vm15870_vm6  ;;  %v16340_v60 = vmov 0  ;;  %vm15878_vm11 = vcmp.eq.s32.totalorder %v9488_v12, %v9056_v22 }
  0xf0   : > { %v16341_v60 = vsel %vm9502_vm9, 4294967295, %v16340_v60  ;;  %vm9523_vm7 = vmpackc.low %vm15872_vm14, %vm15873_vm10 }
  0xf1   : > { %16342 = vst [vmem:[#allocation32_spill] sm:$0xff] %v16341_v60  ;;  %7850 = vmatmul.msk.bf16.gmra.mxu3 %vm9502_vm9, %v16343_v7  ;;  %v16345_v51 = vsel %vm9523_vm7, 4294967295, %v16344_v51  ;;  %vm9543_vm6 = vmpackc.low %vm15878_vm11, %vm15879_vm15  ;;  %v16346_v60 = vmov 0  ;;  %vm621_vm15 = vcmp.eq.s32.totalorder %v8946_v56, %v9490_v58 }
  0xf2   : > { %7834 = vmatmul.msk.bf16.gmra.mxu1 %vm9523_vm7, %v16343_v7  ;;  %v16347_v60 = vsel %vm9543_vm6, 4294967295, %v16346_v60 }
  0xf3   : > { %8014 = vmatmul.msk.bf16.vlgmr.msrb.gmra.mxu0 %vm9093_vm0, %v16343_v7  ;;  %v9530_v55 = vpop.permute.xlu1 %549  ;;  %v9532_v54 = vpop.permute.xlu0 %546  ;;  %16348 = vst [vmem:[#allocation33_spill] sm:$0xff] %v16347_v60  ;;  %7844 = vmatmul.msk.bf16.gmra.mxu2 %vm9543_vm6, %v16343_v7  ;;  %v9571_v60 = vadd.s32 240, %v9038_v15  ;;  %vm643_vm6 = vcmp.eq.s32.totalorder %v8946_v56, %v9555_v29 }
  0xf4   : > { %vm683_vm0 = vcmp.eq.s32.totalorder %v8946_v56, %v9532_v54  ;;  %vm685_vm14 = vcmp.eq.s32.totalorder %v8946_v56, %v9530_v55  ;;  %v9628_v39 = vpop.permute.xlu2 %447 }
  0xf5   : > { %vm7957_vm10 = vmpackc.low %vm685_vm14, %vm683_vm0  ;;  %vm647_vm14 = vcmp.eq.s32.totalorder %v8946_v56, %v9455_v28  ;;  %16349 = vst [vmem:[#allocation34_spill] sm:$0xff] %v9571_v60  ;;  %vm15899_vm0 = vcmp.eq.s32.totalorder %v9571_v60, %v9056_v22 }
  0xf6   : > { %7958 = vmatpush.bf16.msk.msrb.mxu3 %vm7957_vm10, %v16343_v7 }
  0xfb   : > { %v9557_v12 = vpop.permute.xlu1 %450  ;;  %v9559_v13 = vpop.permute.xlu0 %495 }
  0xfc   : > { %vm619_vm11 = vcmp.eq.s32.totalorder %v8946_v56, %v9557_v12  ;;  %vm649_vm9 = vcmp.eq.s32.totalorder %v8946_v56, %v9559_v13 }
  0xfd   : > { %vm7861_vm12 = vmpackc.low %vm621_vm15, %vm619_vm11  ;;  %vm15894_vm15 = vcmp.eq.s32.totalorder %v9574_v41, %v9056_v22  ;;  %vm15900_vm11 = vcmp.eq.s32.totalorder %v9585_v27, %v9056_v22 }
  0xfe   : > { %7862 = vmatpush.bf16.msk.msrb.mxu1 %vm7861_vm12, %v16343_v7  ;;  %vm7911_vm10 = vmpackc.low %vm649_vm9, %vm647_vm14  ;;  %vm15901_vm9 = vcmp.eq.s32.totalorder %v9582_v40, %v9056_v22  ;;  %v9644_v40 = vpop.permute.xlu2 %480 }
  0xff   : > { %7912 = vmatpush.bf16.msk.msrb.mxu2 %vm7911_vm10, %v16343_v7  ;;  %vm9593_vm12 = vmpackc.low %vm15894_vm15, %vm15899_vm0  ;;  %vm639_vm1 = vcmp.eq.s32.totalorder %v8946_v56, %v9644_v40 }
 0x100   : > { %v16354_v0 = vsel %vm9593_vm12, 4294967295, %v16353_v0  ;;  %vm9617_vm14 = vmpackc.low %vm15900_vm11, %vm15901_vm9  ;;  %vm617_vm11 = vcmp.eq.s32.totalorder %v8946_v56, %v9628_v39 }
 0x101   : > { %16355 = vst [vmem:[#allocation38_spill] sm:$0xff] %v16354_v0  ;;  %7852 = vmatmul.msk.bf16.gmra.mxu3 %vm9593_vm12, %v16343_v7  ;;  %v16356_v0 = vmov 0 }
 0x102   : > { %v16357_v0 = vsel %vm9617_vm14, 4294967295, %v16356_v0  ;;  %7836 = vmatmul.msk.bf16.gmra.mxu1 %vm9617_vm14, %v16343_v7  ;;  %vm16374_vm14 = vcmp.eq.s32.totalorder %v9132_v35, %v9660_v44 }
 0x103   : > { %8016 = vmatmul.msk.bf16.gmra.mxu0 %vm9165_vm13, %v16343_v7  ;;  %v9607_v60 = vpop.permute.xlu1 %543  ;;  %v9609_v41 = vpop.permute.xlu0 %540 }
 0x104   : > { %vm679_vm10 = vcmp.eq.s32.totalorder %v8946_v56, %v9609_v41  ;;  %vm681_vm13 = vcmp.eq.s32.totalorder %v8946_v56, %v9607_v60 }
 0x105   : > { %vm7959_vm15 = vmpackc.low %vm681_vm13, %vm679_vm10 }
 0x106   : > { %7960 = vmatpush.bf16.msk.msrb.mxu3 %vm7959_vm15, %v16343_v7  ;;  %v9664_v57 = vpop.permute.xlu2 %441 }
 0x10b   : > { %v9631_v22 = vpop.permute.xlu1 %444  ;;  %v9633_v27 = vpop.permute.xlu0 %489 }
 0x10c   : > { %vm615_vm0 = vcmp.eq.s32.totalorder %v8946_v56, %v9631_v22  ;;  %vm645_vm9 = vcmp.eq.s32.totalorder %v8946_v56, %v9633_v27 }
 0x10d   : > { %vm7863_vm12 = vmpackc.low %vm617_vm11, %vm615_vm0 }
 0x10e   : > { %7864 = vmatpush.bf16.msk.msrb.mxu1 %vm7863_vm12, %v16343_v7  ;;  %vm7913_vm15 = vmpackc.low %vm645_vm9, %vm643_vm6  ;;  %vm668_vm6 = vcmp.eq.s32.totalorder %v9049_v20, %v9060_v23  ;;  %v9700_v23 = vperm.slane %v9043_v18, 3 }
 0x10f   : > { %7914 = vmatpush.bf16.msk.msrb.mxu2 %vm7913_vm15, %v16343_v7  ;;  %vm613_vm15 = vcmp.eq.s32.totalorder %v8946_v56, %v9664_v57 }
 0x113   : > { %8018 = vmatmul.msk.bf16.gmra.mxu0 %vm9270_vm5, %v16343_v7  ;;  %v9650_v17 = vpop.permute.xlu1 %537  ;;  %v9652_v50 = vpop.permute.xlu0 %534  ;;  %vm670_vm5 = vcmp.eq.s32.totalorder %v9049_v20, %v8981_v2  ;;  %v16360_v2 = vmov 0 }
 0x114   : > { %vm675_vm0 = vcmp.eq.s32.totalorder %v8946_v56, %v9652_v50  ;;  %vm677_vm11 = vcmp.eq.s32.totalorder %v8946_v56, %v9650_v17  ;;  %vm8093_vm10 = vmpackc.low %vm670_vm5, %vm668_vm6  ;;  %vm16359_vm6 = vcmp.eq.s32.totalorder %v9038_v15, %v9660_v44 }
 0x115   : > { %vm7961_vm12 = vmpackc.low %vm677_vm11, %vm675_vm0  ;;  %vm15916_vm11 = vcmp.eq.s32.totalorder %v9053_v21, %v9660_v44 }
 0x116   : > { %7962 = vmatpush.bf16.msk.msrb.mxu3 %vm7961_vm12, %v16343_v7  ;;  %vm9692_vm5 = vmpackc.low %vm15916_vm11, %vm16359_vm6  ;;  %vm15918_vm11 = vcmp.eq.s32.totalorder %v9038_v15, %v9700_v23 }
 0x117   : > { %v16361_v2 = vsel %vm9692_vm5, 4294967295, %v16360_v2 }
 0x11b   : > { %v9668_v11 = vpop.permute.xlu1 %438  ;;  %v9670_v10 = vpop.permute.xlu0 %483 }
 0x11c   : > { %vm611_vm13 = vcmp.eq.s32.totalorder %v8946_v56, %v9668_v11  ;;  %vm641_vm0 = vcmp.eq.s32.totalorder %v8946_v56, %v9670_v10 }
 0x11d   : > { %vm7865_vm12 = vmpackc.low %vm613_vm15, %vm611_vm13  ;;  %vm666_vm13 = vcmp.eq.s32.totalorder %v9049_v20, %v9138_v37  ;;  %vm664_vm15 = vcmp.eq.s32.totalorder %v9049_v20, %v9006_v8 }
 0x11e   : > { %7866 = vmatpush.bf16.msk.msrb.mxu1 %vm7865_vm12, %v16343_v7  ;;  %vm7915_vm9 = vmpackc.low %vm641_vm0, %vm639_vm1  ;;  %vm702_vm1 = vcmp.eq.s32.totalorder %v9049_v20, %v9104_v30  ;;  %vm662_vm0 = vcmp.eq.s32.totalorder %v9049_v20, %v9227_v49  ;;  %vm660_vm12 = vcmp.eq.s32.totalorder %v9049_v20, %v9066_v25  ;;  %v9738_v25 = vperm.slane %v9043_v18, 1 }
 0x11f   : > { %7916 = vmatpush.bf16.msk.msrb.mxu2 %vm7915_vm9, %v16343_v7  ;;  %vm700_vm9 = vcmp.eq.s32.totalorder %v9049_v20, %v9106_v31 }
 0x120   : > { %vm9718_vm6 = vmpackc.low %vm702_vm1, %vm700_vm9  ;;  %16364 = vst [vmem:[#allocation40_spill] sm:$0xff] %v9738_v25 }
 0x121   : > { %vm8097_vm9 = vmpackc.low %vm662_vm0, %vm660_vm12  ;;  %vm16365_vm0 = vcmp.eq.s32.totalorder %v9053_v21, %v9700_v23 }
 0x122   : > { %7918 = vmatmul.msk.bf16.vlgmr.msrb.gmra.mxu2 %vm9692_vm5, %v16343_v7  ;;  %vm9751_vm12 = vmpackc.low %vm16365_vm0, %vm15918_vm11  ;;  %vm654_vm0 = vcmp.eq.s32.totalorder %v9049_v20, %v9460_v9  ;;  %vm656_vm11 = vcmp.eq.s32.totalorder %v9049_v20, %v9153_v38 }
 0x123   : > { %8094 = vmatpush.bf16.msk.msra.mxu2 %vm8093_vm10, %v16343_v7  ;;  %8020 = vmatmul.msk.bf16.gmra.mxu0 %vm9389_vm2, %v16343_v7  ;;  %vm8095_vm10 = vmpackc.low %vm666_vm13, %vm664_vm15  ;;  %v9722_v8 = vpop.permute.xlu1 %531  ;;  %v9724_v31 = vpop.permute.xlu0 %528  ;;  %vm636_vm15 = vcmp.eq.s32.totalorder %v9049_v20, %v9136_v36  ;;  %vm696_vm2 = vcmp.eq.s32.totalorder %v9049_v20, %v9187_v43  ;;  %v16366_v36 = vmov 0 }
 0x124   : > { %vm671_vm13 = vcmp.eq.s32.totalorder %v8946_v56, %v9724_v31  ;;  %vm673_vm1 = vcmp.eq.s32.totalorder %v8946_v56, %v9722_v8  ;;  %v16367_v36 = vsel %vm9751_vm12, 4294967295, %v16366_v36 }
 0x125   : > { %vm7963_vm5 = vmpackc.low %vm673_vm1, %vm671_vm13  ;;  %vm638_vm13 = vcmp.eq.s32.totalorder %v9049_v20, %v9035_v14  ;;  %vm658_vm1 = vcmp.eq.s32.totalorder %v9049_v20, %v9347_v5  ;;  %v9771_v14 = vpop.permute.xlu2 %432 }
 0x126   : > { %7964 = vmatpush.bf16.msk.msrb.mxu3 %vm7963_vm5, %v16343_v7  ;;  %vm9763_vm5 = vmpackc.low %vm638_vm13, %vm636_vm15  ;;  %vm652_vm15 = vcmp.eq.s32.totalorder %v9049_v20, %v9296_v59  ;;  %v16398_v59 = vmov 0 }
 0x127   : > { %8096 = vmatpush.bf16.msk.msra.mxu2 %vm8095_vm10, %v16343_v7  ;;  %vm698_vm10 = vcmp.eq.s32.totalorder %v9049_v20, %v9185_v42  ;;  %vm8099_vm13 = vmpackc.low %vm658_vm1, %vm656_vm11  ;;  %vm607_vm11 = vcmp.eq.s32.totalorder %v8946_v56, %v9771_v14 }
 0x128   : > { %vm8143_vm3 = vmpackc.low %vm698_vm10, %vm696_vm2  ;;  %vm15923_vm10 = vcmp.eq.s32.totalorder %v9129_v34, %v9660_v44 }
 0x129   : > { %7966 = vmatmul.msk.bf16.vlgmr.msrb.gmra.mxu3 %vm9751_vm12, %v16343_v7  ;;  %vm8101_vm2 = vmpackc.low %vm654_vm0, %vm652_vm15  ;;  %vm692_vm12 = vcmp.eq.s32.totalorder %v9049_v20, %v9316_v63  ;;  %vm16371_vm0 = vcmp.eq.s32.totalorder %v9053_v21, %v9738_v25 }
 0x12a   : > { %8142 = vmatpush.bf16.msk.msra.mxu3 %vm9718_vm6, %v16343_v7  ;;  %vm632_vm6 = vcmp.eq.s32.totalorder %v9049_v20, %v9225_v48  ;;  %vm9817_vm7 = vmpackc.low %vm16374_vm14, %vm15923_vm10  ;;  %vm690_vm14 = vcmp.eq.s32.totalorder %v9049_v20, %v9431_v24 }
 0x12b   : > { %8098 = vmatpush.bf16.msk.msra.mxu2 %vm8097_vm9, %v16343_v7  ;;  %v9782_v37 = vpop.permute.xlu0 %435  ;;  %vm694_vm9 = vcmp.eq.s32.totalorder %v9049_v20, %v9314_v62 }
 0x12c   : > { %vm609_vm1 = vcmp.eq.s32.totalorder %v8946_v56, %v9782_v37 }
 0x12e   : > { %8144 = vmatpush.bf16.msk.msra.mxu3 %vm8143_vm3, %v16343_v7  ;;  %vm16370_vm3 = vcmp.eq.s32.totalorder %v9038_v15, %v9738_v25 }
 0x12f   : > { %8100 = vmatpush.bf16.msk.msra.mxu2 %vm8099_vm13, %v16343_v7  ;;  %vm9804_vm15 = vmpackc.low %vm16371_vm0, %vm16370_vm3  ;;  %vm650_vm3 = vcmp.eq.s32.totalorder %v9049_v20, %v9559_v13  ;;  %vm688_vm0 = vcmp.eq.s32.totalorder %v9049_v20, %v9433_v26  ;;  %v16411_v13 = vmov 0 }
 0x130   : > { %vm7867_vm13 = vmpackc.low %vm609_vm1, %vm607_vm11  ;;  %v9823_v42 = vpop.f32.mrf.mxu0  ;;  %vm634_vm1 = vcmp.eq.s32.totalorder %v9049_v20, %v9110_v32 }
 0x131   : > { %7868 = vmatpush.bf16.msk.msrb.mxu1 %vm7867_vm13, %v16343_v7  ;;  %vm8145_vm11 = vmpackc.low %vm694_vm9, %vm692_vm12  ;;  %vm628_vm13 = vcmp.eq.s32.totalorder %v9049_v20, %v9345_v4  ;;  %vm646_vm9 = vcmp.eq.s32.totalorder %v9049_v20, %v9633_v27  ;;  %v16402_v4 = vmov 0  ;;  %v16418_v27 = vmov 0 }
 0x132   : > { %8146 = vmatpush.bf16.msk.msra.mxu3 %vm8145_vm11, %v16343_v7  ;;  %7920 = vmatmul.msk.bf16.gmra.mxu2 %vm9817_vm7, %v16343_v7  ;;  %vm8047_vm12 = vmpackc.low %vm634_vm1, %vm632_vm6  ;;  %vm630_vm11 = vcmp.eq.s32.totalorder %v9049_v20, %v9214_v45  ;;  %vm15925_vm6 = vcmp.eq.s32.totalorder %v9129_v34, %v9700_v23  ;;  %vm15924_vm1 = vcmp.eq.s32.totalorder %v9132_v35, %v9700_v23 }
 0x133   : > { %8102 = vmatpush.bf16.msk.msra.mxu2 %vm8101_vm2, %v16343_v7  ;;  %8022 = vmatmul.msk.bf16.gmra.mxu0 %vm9307_vm8, %v16343_v7  ;;  %vm8147_vm10 = vmpackc.low %vm690_vm14, %vm688_vm0  ;;  %vm644_vm8 = vcmp.eq.s32.totalorder %v9049_v20, %v9555_v29  ;;  %v16423_v29 = vld [vmem:[#allocation28_spill] sm:$0xff] }
 0x134   : > { %7870 = vmatmul.msk.bf16.vlgmr.msrb.gmra.mxu1 %vm9804_vm15, %v16343_v7  ;;  %vm8049_vm14 = vmpackc.low %vm630_vm11, %vm628_vm13  ;;  %vm682_vm11 = vcmp.eq.s32.totalorder %v9049_v20, %v9607_v60 }
 0x135   : > { %8046 = vmatpush.bf16.msk.msra.mxu1 %vm9763_vm5, %v16343_v7  ;;  %vm648_vm5 = vcmp.eq.s32.totalorder %v9049_v20, %v9455_v28  ;;  %vm8105_vm0 = vmpackc.low %vm646_vm9, %vm644_vm8  ;;  %vm626_vm9 = vcmp.eq.s32.totalorder %v9049_v20, %v9349_v6  ;;  %vm680_vm8 = vcmp.eq.s32.totalorder %v9049_v20, %v9609_v41 }
 0x136   : > { %vm8103_vm2 = vmpackc.low %vm650_vm3, %vm648_vm5  ;;  %vm686_vm3 = vcmp.eq.s32.totalorder %v9049_v20, %v9530_v55  ;;  %vm684_vm5 = vcmp.eq.s32.totalorder %v9049_v20, %v9532_v54  ;;  %8148 = vmatpush.bf16.msk.msra.mxu3 %vm8147_vm10, %v16343_v7  ;;  %vm642_vm10 = vcmp.eq.s32.totalorder %v9049_v20, %v9670_v10  ;;  %v16406_v10 = vld [vmem:[#allocation20_spill] sm:$0xff] }
 0x137   : > { %8104 = vmatpush.bf16.msk.msra.mxu2 %vm8103_vm2, %v16343_v7  ;;  %vm9883_vm2 = vmpackc.low %vm15924_vm1, %vm15925_vm6 }
 0x138   : > { %v9889_v43 = vpop.f32.mrf.mxu0  ;;  %vm8149_vm13 = vmpackc.low %vm686_vm3, %vm684_vm5  ;;  %vm15928_vm5 = vcmp.eq.s32.totalorder %v9129_v34, %v9738_v25 }
 0x139   : > { %8048 = vmatpush.bf16.msk.msra.mxu1 %vm8047_vm12, %v16343_v7  ;;  %vm624_vm12 = vcmp.eq.s32.totalorder %v9049_v20, %v9458_v33  ;;  %7968 = vmatmul.msk.bf16.gmra.mxu3 %vm9883_vm2, %v16343_v7  ;;  %vm8151_vm1 = vmpackc.low %vm682_vm11, %vm680_vm8  ;;  %vm16380_vm11 = vcmp.eq.s32.totalorder %v9132_v35, %v9738_v25 }
 0x13a   : > { %8150 = vmatpush.bf16.msk.msra.mxu3 %vm8149_vm13, %v16343_v7  ;;  %vm8051_vm6 = vmpackc.low %vm626_vm9, %vm624_vm12  ;;  %vm622_vm13 = vcmp.eq.s32.totalorder %v9049_v20, %v9490_v58  ;;  %vm15927_vm12 = vcmp.eq.s32.totalorder %v9220_v46, %v9660_v44  ;;  %vm678_vm9 = vcmp.eq.s32.totalorder %v9049_v20, %v9650_v17  ;;  %v16395_v58 = vmov 0 }
 0x13b   : > { %8106 = vmatpush.bf16.msk.msra.mxu2 %vm8105_vm0, %v16343_v7  ;;  %vm9933_vm8 = vmpackc.low %vm16380_vm11, %vm15928_vm5  ;;  %vm672_vm11 = vcmp.eq.s32.totalorder %v9049_v20, %v9724_v31  ;;  %vm614_vm5 = vcmp.eq.s32.totalorder %v9049_v20, %v9664_v57  ;;  %v16428_v31 = vmov 0 }
 0x13d   : > { %8050 = vmatpush.bf16.msk.msra.mxu1 %vm8049_vm14, %v16343_v7  ;;  %vm640_vm14 = vcmp.eq.s32.totalorder %v9049_v20, %v9644_v40  ;;  %v16383_v40 = vmov 0 }
 0x13e   : > { %vm8107_vm3 = vmpackc.low %vm642_vm10, %vm640_vm14  ;;  %vm15926_vm10 = vcmp.eq.s32.totalorder %v9223_v47, %v9660_v44  ;;  %vm676_vm14 = vcmp.eq.s32.totalorder %v9049_v20, %v9652_v50  ;;  %8152 = vmatpush.bf16.msk.msra.mxu3 %vm8151_vm1, %v16343_v7 }
 0x13f   : > { %8108 = vmatpush.bf16.msk.msra.mxu2 %vm8107_vm3, %v16343_v7  ;;  %vm9943_vm1 = vmpackc.low %vm15926_vm10, %vm15927_vm12  ;;  %vm616_vm3 = vcmp.eq.s32.totalorder %v9049_v20, %v9631_v22  ;;  %vm618_vm10 = vcmp.eq.s32.totalorder %v9049_v20, %v9628_v39  ;;  %vm15932_vm12 = vcmp.eq.s32.totalorder %v9223_v47, %v9700_v23  ;;  %v16424_v39 = vld [vmem:[#allocation29_spill] sm:$0xff] }
 0x140   : > { %v16384_v40 = vsel %vm9943_vm1, 4294967295, %v16383_v40  ;;  %v9949_v41 = vpop.f32.mrf.mxu0 }
 0x141   : > { %8052 = vmatpush.bf16.msk.msra.mxu1 %vm8051_vm6, %v16343_v7  ;;  %vm16379_vm6 = vcmp.eq.s32.totalorder %v9049_v20, %v9557_v12  ;;  %v16408_v12 = vmov 0 }
 0x142   : > { %vm8053_vm0 = vmpackc.low %vm622_vm13, %vm16379_vm6  ;;  %vm674_vm6 = vcmp.eq.s32.totalorder %v9049_v20, %v9722_v8  ;;  %7922 = vmatmul.msk.bf16.gmra.mxu2 %vm9943_vm1, %v16343_v7  ;;  %v16425_v8 = vmov 0 }
 0x143   : > { %vm8153_vm13 = vmpackc.low %vm678_vm9, %vm676_vm14  ;;  %8024 = vmatmul.msk.bf16.gmra.mxu0 %vm9424_vm4, %v16343_v7  ;;  %v10042_v50 = vpop.f32.mrf.mxu2 }
 0x144   : > { %8154 = vmatpush.bf16.msk.msra.mxu3 %vm8153_vm13, %v16343_v7  ;;  %7872 = vmatmul.msk.bf16.gmra.mxu1 %vm9933_vm8, %v16343_v7  ;;  %vm8055_vm9 = vmpackc.low %vm618_vm10, %vm616_vm3  ;;  %vm15943_vm13 = vcmp.eq.s32.totalorder %v9220_v46, %v9700_v23  ;;  %vm610_vm10 = vcmp.eq.s32.totalorder %v9049_v20, %v9782_v37 }
 0x145   : > { %8054 = vmatpush.bf16.msk.msra.mxu1 %vm8053_vm0, %v16343_v7  ;;  %vm612_vm0 = vcmp.eq.s32.totalorder %v9049_v20, %v9668_v11  ;;  %vm8155_vm14 = vmpackc.low %vm674_vm6, %vm672_vm11  ;;  %vm15942_vm6 = vcmp.eq.s32.totalorder %v9220_v46, %v9738_v25  ;;  %vm15931_vm11 = vcmp.eq.s32.totalorder %v9223_v47, %v9738_v25  ;;  %v16407_v11 = vld [vmem:[#allocation21_spill] sm:$0xff] }
 0x146   : > { %vm8057_vm1 = vmpackc.low %vm614_vm5, %vm612_vm0  ;;  %vm608_vm5 = vcmp.eq.s32.totalorder %v9049_v20, %v9771_v14  ;;  %vm15935_vm0 = vcmp.eq.s32.totalorder %v9340_v1, %v9660_v44  ;;  %v16432_v14 = vld [vmem:[#allocation17_spill] sm:$0xff] }
 0x147   : > { %vm9984_vm4 = vmpackc.low %vm15932_vm12, %vm15943_vm13  ;;  %vm15938_vm12 = vcmp.eq.s32.totalorder %v9253_v52, %v9660_v44 }
 0x148   : > { %8156 = vmatpush.bf16.msk.msra.mxu3 %vm8155_vm14, %v16343_v7  ;;  %v9990_v45 = vpop.f32.mrf.mxu0  ;;  %vm8059_vm3 = vmpackc.low %vm610_vm10, %vm608_vm5  ;;  %vm16391_vm10 = vnez %v16345_v51  ;;  %vm15934_vm5 = vcmp.eq.s32.totalorder %v9340_v1, %v9700_v23 }
 0x149   : > { %8056 = vmatpush.bf16.msk.msra.mxu1 %vm8055_vm9, %v16343_v7  ;;  %7970 = vmatmul.msk.bf16.gmra.mxu3 %vm9984_vm4, %v16343_v7  ;;  %vm10013_vm9 = vmpackc.low %vm15931_vm11, %vm15942_vm6  ;;  %vm15937_vm11 = vcmp.eq.s32.totalorder %v9343_v3, %v9738_v25  ;;  %vm15946_vm6 = vcmp.eq.s32.totalorder %v16407_v11, %v9660_v44 }
 0x14b   : > { %v10089_v61 = vpop.f32.mrf.mxu2 }
 0x14d   : > { %8058 = vmatpush.bf16.msk.msra.mxu1 %vm8057_vm1, %v16343_v7  ;;  %vm15930_vm1 = vcmp.eq.s32.totalorder %v9343_v3, %v9660_v44 }
 0x14e   : > { %vm10023_vm14 = vmpackc.low %vm15930_vm1, %vm15935_vm0 }
 0x14f   : > { %v10091_v62 = vpop.f32.mrf.mxu1 }
 0x150   : > { %v10027_v49 = vpop.f32.mrf.mxu0 }
 0x151   : > { %8060 = vmatpush.bf16.msk.msra.mxu1 %vm8059_vm3, %v16343_v7  ;;  %vm15933_vm3 = vcmp.eq.s32.totalorder %v9343_v3, %v9700_v23 }
 0x152   : > { %7924 = vmatmul.msk.bf16.gmra.mxu2 %vm10023_vm14, %v16343_v7  ;;  %vm10050_vm1 = vmpackc.low %vm15933_vm3, %vm15934_vm5  ;;  %vm15936_vm3 = vcmp.eq.s32.totalorder %v9256_v53, %v9660_v44 }
 0x153   : > { %8026 = vmatmul.msk.bf16.gmra.mxu0 %vm16391_vm10, %v16343_v7  ;;  %vm15939_vm10 = vcmp.eq.s32.totalorder %v9340_v1, %v9738_v25  ;;  %vm10085_vm0 = vmpackc.low %vm15936_vm3, %vm15938_vm12  ;;  %vm16401_vm3 = vnez %v16357_v0  ;;  %vm15940_vm12 = vcmp.eq.s32.totalorder %v9256_v53, %v9700_v23 }
 0x154   : > { %7874 = vmatmul.msk.bf16.gmra.mxu1 %vm10013_vm9, %v16343_v7  ;;  %v10067_v55 = vpop.f32.mrf.mxu3  ;;  %vm10075_vm5 = vmpackc.low %vm15937_vm11, %vm15939_vm10  ;;  %v16399_v59 = vsel %vm10085_vm0, 4294967295, %v16398_v59  ;;  %vm15941_vm11 = vcmp.eq.s32.totalorder %v9253_v52, %v9700_v23 }
 0x155   : > { %16394 = vst [vmem:[#allocation41_spill] sm:$0xff] %v10067_v55  ;;  %v16396_v58 = vsel %vm10075_vm5, 4294967295, %v16395_v58  ;;  %vm10114_vm10 = vmpackc.low %vm15940_vm12, %vm15941_vm11  ;;  %vm15945_vm12 = vcmp.eq.s32.totalorder %v9256_v53, %v9738_v25  ;;  %vm15947_vm11 = vcmp.eq.s32.totalorder %v16406_v10, %v9660_v44 }
 0x156   : > { %16397 = vst [vmem:[#allocation42_spill] sm:$0xff] %v16396_v58  ;;  %v16403_v4 = vsel %vm10114_vm10, 4294967295, %v16402_v4  ;;  %v10122_v6 = vpop.f32.mrf.mxu2 }
 0x157   : > { %16400 = vst [vmem:[#allocation43_spill] sm:$0xff] %v16399_v59  ;;  %v10124_v9 = vpop.f32.mrf.mxu1 }
 0x158   : > { %v10054_v51 = vpop.f32.mrf.mxu0  ;;  %16404 = vst [vmem:[#allocation44_spill] sm:$0xff] %v16403_v4 }
 0x159   : > { %7972 = vmatmul.msk.bf16.gmra.mxu3 %vm10050_vm1, %v16343_v7 }
 0x15c   : > { %v10118_v5 = vpop.f32.mrf.mxu3 }
 0x15d   : > { %16405 = vst [vmem:[#allocation45_spill] sm:$0xff] %v10118_v5  ;;  %v16458_v5 = vld [vmem:[#allocation7_spill] sm:$0xff] }
 0x15e   : > { %v10170_v24 = vpop.f32.mrf.mxu2 }
 0x15f   : > { %v10172_v26 = vpop.f32.mrf.mxu1 }
 0x160   : > { %v10093_v63 = vpop.f32.mrf.mxu0 }
 0x162   : > { %7926 = vmatmul.msk.bf16.gmra.mxu2 %vm10085_vm0, %v16343_v7 }
 0x163   : > { %8028 = vmatmul.msk.bf16.gmra.mxu0 %vm16401_vm3, %v16343_v7  ;;  %vm15948_vm3 = vcmp.eq.s32.totalorder %v9253_v52, %v9738_v25 }
 0x164   : > { %7876 = vmatmul.msk.bf16.gmra.mxu1 %vm10075_vm5, %v16343_v7  ;;  %vm10143_vm13 = vmpackc.low %vm15945_vm12, %vm15948_vm3  ;;  %v10159_v17 = vpop.f32.mrf.mxu3  ;;  %vm16417_vm12 = vnez %v16416_v19 }
 0x165   : > { %v16409_v12 = vsel %vm10143_vm13, 4294967295, %v16408_v12  ;;  %16415 = vst [vmem:[#allocation47_spill] sm:$0xff] %v10159_v17 }
 0x166   : > { %16410 = vst [vmem:[#allocation20_spill] sm:$0xff] %v16409_v12  ;;  %v10203_v57 = vpop.f32.mrf.mxu2  ;;  %v16467_v12 = vld [vmem:[#allocation33_spill] sm:$0xff] }
 0x167   : > { %v10205_v30 = vpop.f32.mrf.mxu1 }
 0x168   : > { %v10120_v0 = vpop.f32.mrf.mxu0 }
 0x169   : > { %7974 = vmatmul.msk.bf16.gmra.mxu3 %vm10114_vm10, %v16343_v7  ;;  %vm10153_vm10 = vmpackc.low %vm15946_vm6, %vm15947_vm11  ;;  %vm15951_vm6 = vcmp.eq.s32.totalorder %v16406_v10, %v9700_v23  ;;  %vm15950_vm11 = vcmp.eq.s32.totalorder %v16407_v11, %v9700_v23 }
 0x16a   : > { %v16412_v13 = vsel %vm10153_vm10, 4294967295, %v16411_v13  ;;  %vm10184_vm3 = vmpackc.low %vm15950_vm11, %vm15951_vm6  ;;  %vm15956_vm11 = vcmp.eq.s32.totalorder %v16423_v29, %v9660_v44  ;;  %vm15955_vm6 = vcmp.eq.s32.totalorder %v16424_v39, %v9660_v44 }
 0x16b   : > { %16413 = vst [vmem:[#allocation21_spill] sm:$0xff] %v16412_v13  ;;  %v16419_v27 = vsel %vm10184_vm3, 4294967295, %v16418_v27 }
 0x16c   : > { %16420 = vst [vmem:[#allocation9_spill] sm:$0xff] %v16419_v27  ;;  %v10197_v33 = vpop.f32.mrf.mxu3  ;;  %v16450_v27 = vld [vmem:[#allocation25_spill] sm:$0xff] }
 0x16d   : > { %16422 = vst [vmem:[#allocation49_spill] sm:$0xff] %v10197_v33 }
 0x16e   : > { %v10244_v19 = vpop.f32.mrf.mxu2 }
 0x170   : > { %v10157_v16 = vpop.f32.mrf.mxu0 }
 0x171   : > { %16414 = vst [vmem:[#allocation46_spill] sm:$0xff] %v10157_v16  ;;  %v16439_v16 = vld [vmem:[#allocation36_spill] sm:$0xff] }
 0x172   : > { %7928 = vmatmul.msk.bf16.gmra.mxu2 %vm10153_vm10, %v16343_v7  ;;  %vm15954_vm10 = vcmp.eq.s32.totalorder %v16407_v11, %v9738_v25 }
 0x173   : > { %8030 = vmatmul.msk.bf16.gmra.mxu0 %vm16417_vm12, %v16343_v7  ;;  %vm15957_vm12 = vcmp.eq.s32.totalorder %v16406_v10, %v9738_v25 }
 0x174   : > { %7878 = vmatmul.msk.bf16.gmra.mxu1 %vm10143_vm13, %v16343_v7  ;;  %vm10223_vm13 = vmpackc.low %vm15955_vm6, %vm15956_vm11  ;;  %vm15961_vm6 = vcmp.eq.s32.totalorder %v16423_v29, %v9700_v23  ;;  %vm15960_vm11 = vcmp.eq.s32.totalorder %v16424_v39, %v9700_v23  ;;  %v10242_v37 = vpop.f32.mrf.mxu3 }
 0x175   : > { %v16429_v31 = vsel %vm10223_vm13, 4294967295, %v16428_v31  ;;  %16434 = vst [vmem:[#allocation17_spill] sm:$0xff] %v10242_v37  ;;  %v16440_v37 = vld [vmem:[#allocation37_spill] sm:$0xff] }
 0x176   : > { %16430 = vst [vmem:[#allocation29_spill] sm:$0xff] %v16429_v31 }
 0x178   : > { %v10188_v28 = vpop.f32.mrf.mxu0 }
 0x179   : > { %16421 = vst [vmem:[#allocation48_spill] sm:$0xff] %v10188_v28  ;;  %7976 = vmatmul.msk.bf16.gmra.mxu3 %vm10184_vm3, %v16343_v7  ;;  %vm10213_vm3 = vmpackc.low %vm15954_vm10, %vm15957_vm12  ;;  %vm16433_vm10 = vnez %v16432_v14  ;;  %v16435_v14 = vmov 0 }
 0x17a   : > { %v16426_v8 = vsel %vm10213_vm3, 4294967295, %v16425_v8  ;;  %vm10254_vm12 = vmpackc.low %vm15960_vm11, %vm15961_vm6  ;;  %vm15967_vm11 = vcmp.eq.s32.totalorder %v16440_v37, %v9660_v44 }
 0x17b   : > { %16427 = vst [vmem:[#allocation28_spill] sm:$0xff] %v16426_v8  ;;  %v16436_v14 = vsel %vm10254_vm12, 4294967295, %v16435_v14  ;;  %v10295_v8 = vpop.f32.mrf.mxu2 }
 0x17c   : > { %16437 = vst [vmem:[#allocation51_spill] sm:$0xff] %v16436_v14  ;;  %v16444_v14 = vmov 0  ;;  %v10291_v33 = vpop.f32.mrf.mxu3 }
 0x17d   : > { %16447 = vst [vmem:[#allocation55_spill] sm:$0xff] %v10291_v33 }
 0x17e   : > { %16449 = vst [vmem:[#allocation57_spill] sm:$0xff] %v10295_v8 }
 0x180   : > { %v10227_v18 = vpop.f32.mrf.mxu0 }
 0x181   : > { %16431 = vst [vmem:[#allocation50_spill] sm:$0xff] %v10227_v18  ;;  %v10246_v18 = vpop.f32.mrf.mxu1 }
 0x182   : > { %7930 = vmatmul.msk.bf16.gmra.mxu2 %vm10223_vm13, %v16343_v7  ;;  %vm15968_vm13 = vcmp.eq.s32.totalorder %v16424_v39, %v9738_v25 }
 0x183   : > { %8032 = vmatmul.msk.bf16.gmra.mxu0 %vm16433_vm10, %v16343_v7  ;;  %vm15970_vm10 = vcmp.eq.s32.totalorder %v16423_v29, %v9738_v25 }
 0x184   : > { %7880 = vmatmul.msk.bf16.gmra.mxu1 %vm10213_vm3, %v16343_v7  ;;  %vm15969_vm3 = vcmp.eq.s32.totalorder %v16439_v16, %v9660_v44  ;;  %vm10277_vm6 = vmpackc.low %vm15968_vm13, %vm15970_vm10  ;;  %vm15974_vm13 = vcmp.eq.s32.totalorder %v16439_v16, %v9700_v23 }
 0x188   : > { %v10258_v28 = vpop.f32.mrf.mxu0 }
 0x189   : > { %16438 = vst [vmem:[#allocation52_spill] sm:$0xff] %v10258_v28  ;;  %7978 = vmatmul.msk.bf16.gmra.mxu3 %vm10254_vm12, %v16343_v7  ;;  %v16441_v28 = vmov 0  ;;  %vm10287_vm12 = vmpackc.low %vm15967_vm11, %vm15969_vm3  ;;  %v10297_v17 = vpop.f32.mrf.mxu1  ;;  %vm16451_vm11 = vnez %v16450_v27  ;;  %vm15973_vm3 = vcmp.eq.s32.totalorder %v16440_v37, %v9700_v23  ;;  %v10324_v27 = vpop.f32.mrf.mxu3 }
 0x18a   : > { %v16442_v28 = vsel %vm10277_vm6, 4294967295, %v16441_v28  ;;  %v16445_v14 = vsel %vm10287_vm12, 4294967295, %v16444_v14  ;;  %vm10318_vm10 = vmpackc.low %vm15973_vm3, %vm15974_vm13  ;;  %16456 = vst [vmem:[#allocation59_spill] sm:$0xff] %v10324_v27  ;;  %vm15981_vm3 = vcmp.eq.s32.totalorder %v16440_v37, %v9738_v25  ;;  %vm15983_vm13 = vcmp.eq.s32.totalorder %v16458_v5, %v9660_v44  ;;  %v16475_v37 = vld [vmem:[#allocation15_spill] sm:$0xff] }
 0x18b   : > { %16443 = vst [vmem:[#allocation53_spill] sm:$0xff] %v16442_v28  ;;  %v16460_v27 = vmov 0 }
 0x18c   : > { %16446 = vst [vmem:[#allocation54_spill] sm:$0xff] %v16445_v14  ;;  %v10329_v14 = vpop.f32.mrf.mxu2 }
 0x18d   : > { %16457 = vst [vmem:[#allocation60_spill] sm:$0xff] %v10329_v14 }
 0x190   : > { %v10293_v31 = vpop.f32.mrf.mxu0 }
 0x191   : > { %16448 = vst [vmem:[#allocation56_spill] sm:$0xff] %v10293_v31  ;;  %v16452_v31 = vmov 0  ;;  %v10331_v28 = vpop.f32.mrf.mxu1  ;;  %v10372_v55 = vpop.f32.mrf.mxu3 }
 0x192   : > { %7932 = vmatmul.msk.bf16.gmra.mxu2 %vm10287_vm12, %v16343_v7  ;;  %v16453_v31 = vsel %vm10318_vm10, 4294967295, %v16452_v31  ;;  %16469 = vst [vmem:[#allocation33_spill] sm:$0xff] %v10372_v55 }
 0x193   : > { %8034 = vmatmul.msk.bf16.gmra.mxu0 %vm16451_vm11, %v16343_v7  ;;  %16454 = vst [vmem:[#allocation25_spill] sm:$0xff] %v16453_v31  ;;  %vm15985_vm11 = vcmp.eq.s32.totalorder %v16439_v16, %v9738_v25  ;;  %v16463_v31 = vmov 0  ;;  %v16479_v16 = vmov 0 }
 0x194   : > { %7882 = vmatmul.msk.bf16.gmra.mxu1 %vm10277_vm6, %v16343_v7 }
 0x198   : > { %v10322_v33 = vpop.f32.mrf.mxu0 }
 0x199   : > { %16455 = vst [vmem:[#allocation58_spill] sm:$0xff] %v10322_v33  ;;  %7980 = vmatmul.msk.bf16.gmra.mxu3 %vm10318_vm10, %v16343_v7  ;;  %v16459_v33 = vld [vmem:[#allocation8_spill] sm:$0xff]  ;;  %vm10347_vm10 = vmpackc.low %vm15981_vm3, %vm15985_vm11  ;;  %vm16468_vm3 = vnez %v16467_v12  ;;  %v16470_v12 = vmov 0 }
 0x19a   : > { %vm15982_vm12 = vcmp.eq.s32.totalorder %v16459_v33, %v9660_v44  ;;  %v16461_v27 = vsel %vm10347_vm10, 4294967295, %v16460_v27 }
 0x19b   : > { %16462 = vst [vmem:[#allocation61_spill] sm:$0xff] %v16461_v27  ;;  %vm10357_vm6 = vmpackc.low %vm15982_vm12, %vm15983_vm13  ;;  %vm15992_vm12 = vcmp.eq.s32.totalorder %v16458_v5, %v9700_v23  ;;  %vm15990_vm13 = vcmp.eq.s32.totalorder %v16459_v33, %v9700_v23  ;;  %v10378_v27 = vpop.f32.mrf.mxu1 }
 0x19c   : > { %v16464_v31 = vsel %vm10357_vm6, 4294967295, %v16463_v31  ;;  %vm10386_vm11 = vmpackc.low %vm15990_vm13, %vm15992_vm12  ;;  %vm15998_vm13 = vcmp.eq.s32.totalorder %v16475_v37, %v9660_v44 }
 0x19d   : > { %16465 = vst [vmem:[#allocation62_spill] sm:$0xff] %v16464_v31  ;;  %v16471_v12 = vsel %vm10386_vm11, 4294967295, %v16470_v12  ;;  %v16474_v31 = vld [vmem:[#allocation14_spill] sm:$0xff] }
 0x19e   : > { %16472 = vst [vmem:[#allocation64_spill] sm:$0xff] %v16471_v12 }
 0x1a0   : > { %v10361_v13 = vpop.f32.mrf.mxu0 }
 0x1a1   : > { %16466 = vst [vmem:[#allocation63_spill] sm:$0xff] %v10361_v13 }
 0x1a2   : > { %7934 = vmatmul.msk.bf16.gmra.mxu2 %vm10357_vm6, %v16343_v7  ;;  %vm15999_vm6 = vcmp.eq.s32.totalorder %v16459_v33, %v9738_v25 }
 0x1a3   : > { %8036 = vmatmul.msk.bf16.gmra.mxu0 %vm16468_vm3, %v16343_v7  ;;  %vm16007_vm3 = vcmp.eq.s32.totalorder %v16458_v5, %v9738_v25 }
 0x1a4   : > { %7884 = vmatmul.msk.bf16.gmra.mxu1 %vm10347_vm10, %v16343_v7  ;;  %vm16000_vm10 = vcmp.eq.s32.totalorder %v16474_v31, %v9660_v44  ;;  %vm10409_vm12 = vmpackc.low %vm15999_vm6, %vm16007_vm3  ;;  %vm16006_vm6 = vcmp.eq.s32.totalorder %v16474_v31, %v9700_v23 }
 0x1a5   : > { %v1662_v13 = vpop.f32.mrf.mxu2 }
 0x1a8   : > { %v10390_v55 = vpop.f32.mrf.mxu0 }
 0x1a9   : > { %16473 = vst [vmem:[#allocation65_spill] sm:$0xff] %v10390_v55  ;;  %7982 = vmatmul.msk.bf16.gmra.mxu3 %vm10386_vm11, %v16343_v7  ;;  %v16476_v55 = vmov 0  ;;  %vm10419_vm11 = vmpackc.low %vm15998_vm13, %vm16000_vm10  ;;  %vm16005_vm10 = vcmp.eq.s32.totalorder %v16475_v37, %v9700_v23 }
 0x1aa   : > { %v16477_v55 = vsel %vm10409_vm12, 4294967295, %v16476_v55  ;;  %v16480_v16 = vsel %vm10419_vm11, 4294967295, %v16479_v16 }
 0x1ab   : > { %16478 = vst [vmem:[#allocation66_spill] sm:$0xff] %v16477_v55  ;;  %v2202_v55 = vld [vmem:[%s10431_s30 + $0x78] sm:$0xff] }
 0x1ac   : > { %v1751_v14 = vpop.f32.mrf.mxu3  ;;  %16481 = vst [vmem:[#allocation67_spill] sm:$0xff] %v16480_v16  ;;  %2251 = vmatpush.msra.mxu0 %v2202_v55  ;;  %v2201_v16 = vld [vmem:[%s10431_s30 + $0x70] sm:$0xff]  ;;  %v2200_v55 = vld [vmem:[%s10431_s30 + $0x68] sm:$0xff] }
 0x1ad   : > { %v1664_v4 = vpop.f32.mrf.mxu2 }
 0x1ae   : > { %2252 = vmatpush.msra.mxu0 %v2201_v16  ;;  %v16491_v16 = vld [vmem:[#allocation22_spill] sm:$0xff] }
 0x1af   : > { %vm16018_vm3 = vcmp.eq.s32.totalorder %v16491_v16, %v9660_v44 }
 0x1b0   : > { %v10424_v59 = vpop.f32.mrf.mxu0  ;;  %2253 = vmatpush.msra.mxu0 %v2200_v55 }
 0x1b1   : > { %v1573_v12 = vpop.f32.mrf.mxu1  ;;  %16482 = vst [vmem:[#allocation68_spill] sm:$0xff] %v10424_v59 }
 0x1b2   : > { %v1574_v5 = vadd.f32 %v1573_v12, %v9823_v42  ;;  %7936 = vmatmul.msk.bf16.gmra.mxu2 %vm10419_vm11, %v16343_v7  ;;  %v16483_v12 = vld [vmem:[#allocation16_spill] sm:$0xff] }
 0x1b3   : > { %vm16484_vm13 = vnez %v16483_v12 }
 0x1b4   : > { %7886 = vmatmul.msk.bf16.gmra.mxu1 %vm10409_vm12, %v16343_v7  ;;  %v1663_v42 = vadd.f32 %v1662_v13, %v1574_v5  ;;  %8038 = vmatmul.msk.bf16.gmra.mxu0 %vm16484_vm13, %v16343_v7  ;;  %v1753_v58 = vpop.f32.mrf.mxu3  ;;  %vm10456_vm13 = vmpackc.low %vm16005_vm10, %vm16006_vm6  ;;  %v16486_v5 = vmov 0  ;;  %vm16021_vm10 = vcmp.eq.s32.totalorder %v16474_v31, %v9738_v25  ;;  %vm16017_vm6 = vcmp.eq.s32.totalorder %v16475_v37, %v9738_v25  ;;  %v16500_v31 = vld [vmem:[#allocation24_spill] sm:$0xff] }
 0x1b5   : > { %v1667_v33 = vpop.f32.mrf.mxu2  ;;  %v16487_v5 = vsel %vm10456_vm13, 4294967295, %v16486_v5 }
 0x1b6   : > { %v10442_v59 = vadd.f32 %v1751_v14, %v1663_v42  ;;  %16488 = vst [vmem:[#allocation69_spill] sm:$0xff] %v16487_v5  ;;  %v2199_v42 = vld [vmem:[%s10431_s30 + $0x60] sm:$0xff] }
 0x1b7   : > { %2254 = vmatpush.msra.mxu0 %v2199_v42  ;;  %v2195_v5 = vld [vmem:[%s10431_s30 + $0x40] sm:$0xff] }
 0x1b8   : > { %16485 = vst [vmem:[#allocation16_spill] sm:$0xff] %v10442_v59  ;;  %v10461_v14 = vpop.f32.mrf.mxu0  ;;  %v2197_v59 = vld [vmem:[%s10431_s30 + $0x50] sm:$0xff] }
 0x1b9   : > { %v1575_v8 = vpop.f32.mrf.mxu1  ;;  %16489 = vst [vmem:[#allocation70_spill] sm:$0xff] %v10461_v14  ;;  %7984 = vmatmul.msk.bf16.gmra.mxu3 %vm10456_vm13, %v16343_v7  ;;  %vm10486_vm13 = vmpackc.low %vm16017_vm6, %vm16021_vm10  ;;  %v2196_v14 = vld [vmem:[%s10431_s30 + $0x48] sm:$0xff]  ;;  %vm16020_vm6 = vcmp.eq.s32.totalorder %v16491_v16, %v9700_v23 }
 0x1ba   : > { %v1576_v13 = vadd.f32 %v1575_v8, %v9889_v43  ;;  %v2198_v8 = vld [vmem:[%s10431_s30 + $0x58] sm:$0xff] }
 0x1bb   : > { %2255 = vmatpush.msra.mxu0 %v2198_v8 }
 0x1bc   : > { %v1665_v12 = vadd.f32 %v1664_v4, %v1576_v13  ;;  %v16492_v4 = vld [vmem:[#allocation23_spill] sm:$0xff]  ;;  %v1756_v55 = vpop.f32.mrf.mxu3 }
 0x1bd   : > { %vm16016_vm11 = vcmp.eq.s32.totalorder %v16492_v4, %v9660_v44  ;;  %v1669_v13 = vpop.f32.mrf.mxu2  ;;  %2256 = vmatpush.msra.mxu0 %v2197_v59  ;;  %v2194_v59 = vld [vmem:[%s10431_s30 + $0x38] sm:$0xff] }
 0x1be   : > { %v10472_v43 = vadd.f32 %v1753_v58, %v1665_v12  ;;  %v16493_v58 = vmov 0  ;;  %vm10496_vm12 = vmpackc.low %vm16016_vm11, %vm16018_vm3  ;;  %v16496_v12 = vmov 0  ;;  %vm16501_vm11 = vnez %v16500_v31 }
 0x1bf   : > { %v16494_v58 = vsel %vm10486_vm13, 4294967295, %v16493_v58  ;;  %v16497_v12 = vsel %vm10496_vm12, 4294967295, %v16496_v12  ;;  %2257 = vmatpush.msra.mxu0 %v2196_v14  ;;  %vm16019_vm3 = vcmp.eq.s32.totalorder %v16492_v4, %v9700_v23  ;;  %v16503_v31 = vmov 0 }
 0x1c0   : > { %16490 = vst [vmem:[#allocation71_spill] sm:$0xff] %v10472_v43  ;;  %v10501_v43 = vpop.f32.mrf.mxu0 }
 0x1c1   : > { %16495 = vst [vmem:[#allocation72_spill] sm:$0xff] %v16494_v58  ;;  %v1578_v42 = vpop.f32.mrf.mxu1  ;;  %2258 = vmatpush.msra.mxu0 %v2195_v5  ;;  %v2187_v58 = vld [vmem:[%s10431_s30] sm:$0xff] }
 0x1c2   : > { %16498 = vst [vmem:[#allocation73_spill] sm:$0xff] %v16497_v12  ;;  %v1579_v8 = vadd.f32 %v1578_v42, %v9949_v41  ;;  %7938 = vmatmul.msk.bf16.gmra.mxu2 %vm10496_vm12, %v16343_v7  ;;  %v16515_v12 = vld [vmem:[#allocation32_spill] sm:$0xff] }
 0x1c3   : > { %16499 = vst [vmem:[#allocation74_spill] sm:$0xff] %v10501_v43  ;;  %v2193_v43 = vld [vmem:[%s10431_s30 + $0x30] sm:$0xff]  ;;  %2259 = vmatpush.msra.mxu0 %v2194_v59 }
 0x1c4   : > { %7888 = vmatmul.msk.bf16.gmra.mxu1 %vm10486_vm13, %v16343_v7  ;;  %v1668_v37 = vadd.f32 %v1667_v33, %v1579_v8  ;;  %8040 = vmatmul.msk.bf16.gmra.mxu0 %vm16501_vm11, %v16343_v7  ;;  %v1758_v42 = vpop.f32.mrf.mxu3  ;;  %vm10528_vm11 = vmpackc.low %vm16019_vm3, %vm16020_vm6  ;;  %v2191_v8 = vld [vmem:[%s10431_s30 + $0x20] sm:$0xff]  ;;  %vm16034_vm3 = vcmp.eq.s32.totalorder %v16491_v16, %v9738_v25  ;;  %vm16032_vm6 = vcmp.eq.s32.totalorder %v16492_v4, %v9738_v25 }
 0x1c5   : > { %v1672_v14 = vpop.f32.mrf.mxu2  ;;  %v16504_v31 = vsel %vm10528_vm11, 4294967295, %v16503_v31  ;;  %2260 = vmatpush.msra.mxu0 %v2193_v43  ;;  %v16509_v43 = vld [vmem:[#allocation31_spill] sm:$0xff] }
 0x1c6   : > { %v10514_v41 = vadd.f32 %v1756_v55, %v1668_v37  ;;  %16505 = vst [vmem:[#allocation75_spill] sm:$0xff] %v16504_v31  ;;  %v2192_v55 = vld [vmem:[%s10431_s30 + $0x28] sm:$0xff]  ;;  %vm16029_vm12 = vcmp.eq.s32.totalorder %v16509_v43, %v9660_v44 }
 0x1c7   : > { %2261 = vmatpush.msra.mxu0 %v2192_v55  ;;  %v2188_v31 = vld [vmem:[%s10431_s30 + $0x8] sm:$0xff] }
 0x1c8   : > { %16502 = vst [vmem:[#allocation24_spill] sm:$0xff] %v10514_v41  ;;  %v10533_v5 = vpop.f32.mrf.mxu0  ;;  %v2189_v41 = vld [vmem:[%s10431_s30 + $0x10] sm:$0xff] }
 0x1c9   : > { %v1580_v33 = vpop.f32.mrf.mxu1  ;;  %16506 = vst [vmem:[#allocation76_spill] sm:$0xff] %v10533_v5  ;;  %7986 = vmatmul.msk.bf16.gmra.mxu3 %vm10528_vm11, %v16343_v7  ;;  %2262 = vmatpush.msra.mxu0 %v2191_v8  ;;  %vm10558_vm11 = vmpackc.low %vm16032_vm6, %vm16034_vm3  ;;  %v16512_v8 = vmov 0 }
 0x1ca   : > { %v1581_v37 = vadd.f32 %v1580_v33, %v9990_v45  ;;  %v16508_v33 = vld [vmem:[#allocation30_spill] sm:$0xff] }
 0x1cb   : > { %vm16033_vm10 = vcmp.eq.s32.totalorder %v16508_v33, %v9660_v44  ;;  %vm16037_vm6 = vcmp.eq.s32.totalorder %v16508_v33, %v9700_v23  ;;  %vm16045_vm3 = vcmp.eq.s32.totalorder %v16508_v33, %v9738_v25 }
 0x1cc   : > { %v1670_v59 = vadd.f32 %v1669_v13, %v1581_v37  ;;  %v2190_v13 = vld [vmem:[%s10431_s30 + $0x18] sm:$0xff]  ;;  %v1761_v55 = vpop.f32.mrf.mxu3  ;;  %vm10568_vm13 = vmpackc.low %vm16029_vm12, %vm16033_vm10  ;;  %vm16516_vm12 = vnez %v16515_v12  ;;  %vm16036_vm10 = vcmp.eq.s32.totalorder %v16509_v43, %v9700_v23  ;;  %v16518_v12 = vmov 0 }
 0x1cd   : > { %v1674_v37 = vpop.f32.mrf.mxu2  ;;  %2263 = vmatpush.msra.mxu0 %v2190_v13  ;;  %v16513_v8 = vsel %vm10568_vm13, 4294967295, %v16512_v8 }
 0x1ce   : > { %v10544_v45 = vadd.f32 %v1758_v42, %v1670_v59  ;;  %v16510_v42 = vmov 0 }
 0x1cf   : > { %v16511_v42 = vsel %vm10558_vm11, 4294967295, %v16510_v42  ;;  %2264 = vmatpush.msra.mxu0 %v2189_v41 }
 0x1d0   : > { %16507 = vst [vmem:[#allocation77_spill] sm:$0xff] %v10544_v45  ;;  %v10573_v5 = vpop.f32.mrf.mxu0 }
 0x1d1   : > { %v1583_v59 = vpop.f32.mrf.mxu1  ;;  %16514 = vst [vmem:[#allocation30_spill] sm:$0xff] %v10573_v5  ;;  %2265 = vmatpush.msra.mxu0 %v2188_v31  ;;  %v16523_v31 = vld [vmem:[#allocation12_spill] sm:$0xff] }
 0x1d2   : > { %v1584_v45 = vadd.f32 %v1583_v59, %v10027_v49  ;;  %7940 = vmatmul.msk.bf16.gmra.mxu2 %vm10568_vm13, %v16343_v7  ;;  %vm16042_vm13 = vcmp.eq.s32.totalorder %v16509_v43, %v9738_v25 }
 0x1d3   : > { %2266 = vmatpush.msra.mxu0 %v2187_v58 }
 0x1d4   : > { %7890 = vmatmul.msk.bf16.gmra.mxu1 %vm10558_vm11, %v16343_v7  ;;  %v1673_v13 = vadd.f32 %v1672_v14, %v1584_v45  ;;  %8042 = vmatmul.msk.bf16.gmra.mxu0 %vm16516_vm12, %v16343_v7  ;;  %v1763_v41 = vpop.f32.mrf.mxu3  ;;  %vm10598_vm12 = vmpackc.low %vm16036_vm10, %vm16037_vm6  ;;  %vm16044_vm10 = vcmp.eq.s32.totalorder %v16523_v31, %v9660_v44 }
 0x1d5   : > { %v1677_v49 = vpop.f32.mrf.mxu2  ;;  %v16519_v12 = vsel %vm10598_vm12, 4294967295, %v16518_v12 }
 0x1d6   : > { %v10586_v4 = vadd.f32 %v1761_v55, %v1673_v13  ;;  %16520 = vst [vmem:[#allocation32_spill] sm:$0xff] %v16519_v12 }
 0x1d8   : > { %16517 = vst [vmem:[#allocation31_spill] sm:$0xff] %v10586_v4  ;;  %v10603_v45 = vpop.f32.mrf.mxu0 }
 0x1d9   : > { %v1585_v59 = vpop.f32.mrf.mxu1  ;;  %16521 = vst [vmem:[#allocation78_spill] sm:$0xff] %v10603_v45  ;;  %7988 = vmatmul.msk.bf16.gmra.mxu3 %vm10598_vm12, %v16343_v7  ;;  %vm10624_vm12 = vmpackc.low %vm16042_vm13, %vm16045_vm3  ;;  %v16532_v45 = vld [vmem:[#allocation38_spill] sm:$0xff] }
 0x1da   : > { %v1586_v14 = vadd.f32 %v1585_v59, %v10054_v51  ;;  %v16524_v51 = vld [vmem:[#allocation13_spill] sm:$0xff]  ;;  %v16525_v59 = vmov 0  ;;  %vm16533_vm13 = vnez %v16532_v45 }
 0x1db   : > { %vm16043_vm6 = vcmp.eq.s32.totalorder %v16524_v51, %v9660_v44  ;;  %v16526_v59 = vsel %vm10624_vm12, 4294967295, %v16525_v59 }
 0x1dc   : > { %v1675_v55 = vadd.f32 %v1674_v37, %v1586_v14  ;;  %v1766_v37 = vpop.f32.mrf.mxu3  ;;  %16527 = vst [vmem:[#allocation12_spill] sm:$0xff] %v16526_v59  ;;  %vm10634_vm11 = vmpackc.low %vm16043_vm6, %vm16044_vm10  ;;  %v16528_v14 = vmov 0  ;;  %vm16049_vm6 = vcmp.eq.s32.totalorder %v16523_v31, %v9700_v23  ;;  %vm16048_vm10 = vcmp.eq.s32.totalorder %v16524_v51, %v9700_v23  ;;  %v16547_v59 = vld [vmem:[#allocation4_spill] sm:$0xff] }
 0x1dd   : > { %v1679_v13 = vpop.f32.mrf.mxu2  ;;  %v16529_v14 = vsel %vm10634_vm11, 4294967295, %v16528_v14  ;;  %vm10662_vm3 = vmpackc.low %vm16048_vm10, %vm16049_vm6 }
 0x1de   : > { %v10612_v58 = vadd.f32 %v1763_v41, %v1675_v55  ;;  %16530 = vst [vmem:[#allocation13_spill] sm:$0xff] %v16529_v14  ;;  %v16066_v14 = vmov 1.0  }
 0x1e0   : > { %16522 = vst [vmem:[#allocation79_spill] sm:$0xff] %v10612_v58  ;;  %v10639_v58 = vpop.f32.mrf.mxu0 }
 0x1e1   : > { %v1588_v41 = vpop.f32.mrf.mxu1  ;;  %16531 = vst [vmem:[#allocation80_spill] sm:$0xff] %v10639_v58 }
 0x1e2   : > { %v1589_v55 = vadd.f32 %v1588_v41, %v10093_v63  ;;  %7942 = vmatmul.msk.bf16.gmra.mxu2 %vm10634_vm11, %v16343_v7  ;;  %vm16058_vm11 = vcmp.eq.s32.totalorder %v16524_v51, %v9738_v25 }
 0x1e4   : > { %7892 = vmatmul.msk.bf16.gmra.mxu1 %vm10624_vm12, %v16343_v7  ;;  %v1678_v4 = vadd.f32 %v1677_v49, %v1589_v55  ;;  %8044 = vmatmul.msk.bf16.gmra.mxu0 %vm16533_vm13, %v16343_v7  ;;  %v1768_v41 = vpop.f32.mrf.mxu3  ;;  %v16535_v49 = vmov 0  ;;  %vm16060_vm13 = vcmp.eq.s32.totalorder %v16523_v31, %v9738_v25 }
 0x1e5   : > { %v1682_v63 = vpop.f32.mrf.mxu2  ;;  %v16536_v49 = vsel %vm10662_vm3, 4294967295, %v16535_v49 }
 0x1e6   : > { %v10650_v5 = vadd.f32 %v1766_v37, %v1678_v4  ;;  %16537 = vst [vmem:[#allocation81_spill] sm:$0xff] %v16536_v49 }
 0x1e8   : > { %16534 = vst [vmem:[#allocation38_spill] sm:$0xff] %v10650_v5  ;;  %v10667_v45 = vpop.f32.mrf.mxu0  ;;  %v16540_v5 = vld [vmem:[#allocation18_spill] sm:$0xff] }
 0x1e9   : > { %v1590_v58 = vpop.f32.mrf.mxu1  ;;  %16538 = vst [vmem:[#allocation82_spill] sm:$0xff] %v10667_v45  ;;  %7990 = vmatmul.msk.bf16.gmra.mxu3 %vm10662_vm3, %v16343_v7  ;;  %vm16059_vm10 = vcmp.eq.s32.totalorder %v16540_v5, %v9660_v44  ;;  %vm10688_vm3 = vmpackc.low %vm16058_vm11, %vm16060_vm13  ;;  %vm16062_vm11 = vcmp.eq.s32.totalorder %v16540_v5, %v9700_v23 }
 0x1ea   : > { %v1591_v4 = vadd.f32 %v1590_v58, %v10120_v0  ;;  %v16541_v0 = vld [vmem:[#allocation19_spill] sm:$0xff] }
 0x1eb   : > { %vm16056_vm6 = vcmp.eq.s32.totalorder %v16541_v0, %v9660_v44 }
 0x1ec   : > { %v1680_v37 = vadd.f32 %v1679_v13, %v1591_v4  ;;  %v1771_v13 = vpop.f32.mrf.mxu3  ;;  %v16542_v4 = vmov 0  ;;  %vm10698_vm12 = vmpackc.low %vm16056_vm6, %vm16059_vm10  ;;  %vm16548_vm6 = vcmp.eq.s32.totalorder %v9038_v15, %v16547_v59  ;;  %vm16061_vm10 = vcmp.eq.s32.totalorder %v16541_v0, %v9700_v23 }
 0x1ed   : > { %v1684_v58 = vpop.f32.mrf.mxu2  ;;  %v16543_v4 = vsel %vm10688_vm3, 4294967295, %v16542_v4  ;;  %vm10727_vm13 = vmpackc.low %vm16061_vm10, %vm16062_vm11  ;;  %vm16078_vm10 = vcmp.eq.s32.totalorder %v16540_v5, %v9738_v25  ;;  %vm16076_vm11 = vcmp.eq.s32.totalorder %v16541_v0, %v9738_v25  ;;  %v16563_v15 = vmov 1.0  }
 0x1ee   : > { %v10676_v55 = vadd.f32 %v1768_v41, %v1680_v37  ;;  %v16544_v37 = vmov 0 }
 0x1ef   : > { %v16545_v37 = vsel %vm10698_vm12, 4294967295, %v16544_v37 }
 0x1f0   : > { %16539 = vst [vmem:[#allocation83_spill] sm:$0xff] %v10676_v55  ;;  %v10703_v45 = vpop.f32.mrf.mxu0 }
 0x1f1   : > { %v1593_v41 = vpop.f32.mrf.mxu1  ;;  %16546 = vst [vmem:[#allocation18_spill] sm:$0xff] %v10703_v45 }
 0x1f2   : > { %v1594_v55 = vadd.f32 %v1593_v41, %v10091_v62  ;;  %7944 = vmatmul.msk.bf16.gmra.mxu2 %vm10698_vm12, %v16343_v7 }
 0x1f4   : > { %7894 = vmatmul.msk.bf16.gmra.mxu1 %vm10688_vm3, %v16343_v7  ;;  %v1683_v49 = vadd.f32 %v1682_v63, %v1594_v55  ;;  %8189 = vmatmul.msk.f32.vlgmr.msra.gmra.mxu0 %vm16548_vm6, %v16066_v14  ;;  %v1773_v41 = vpop.f32.mrf.mxu3  ;;  %v16550_v63 = vmov 0  ;;  %vm16554_vm6 = vcmp.eq.s32.totalorder %v9053_v21, %v16547_v59 }
 0x1f5   : > { %v1687_v62 = vpop.f32.mrf.mxu2  ;;  %v16551_v63 = vsel %vm10727_vm13, 4294967295, %v16550_v63 }
 0x1f6   : > { %v10715_v12 = vadd.f32 %v1771_v13, %v1683_v49  ;;  %16552 = vst [vmem:[#allocation4_spill] sm:$0xff] %v16551_v63 }
 0x1f8   : > { %16549 = vst [vmem:[#allocation19_spill] sm:$0xff] %v10715_v12  ;;  %v10732_v55 = vpop.f32.mrf.mxu0 }
 0x1f9   : > { %v1595_v45 = vpop.f32.mrf.mxu1  ;;  %16553 = vst [vmem:[#allocation84_spill] sm:$0xff] %v10732_v55  ;;  %7992 = vmatmul.msk.bf16.gmra.mxu3 %vm10727_vm13, %v16343_v7 }
 0x1fa   : > { %v1596_v49 = vadd.f32 %v1595_v45, %v10124_v9  ;;  %v16556_v9 = vld [vmem:[#allocation26_spill] sm:$0xff]  ;;  %v16557_v45 = vld [vmem:[#allocation27_spill] sm:$0xff] }
 0x1fb   : > { %vm16077_vm12 = vcmp.eq.s32.totalorder %v16556_v9, %v9660_v44  ;;  %vm16074_vm3 = vcmp.eq.s32.totalorder %v16557_v45, %v9660_v44 }
 0x1fc   : > { %v1685_v13 = vadd.f32 %v1684_v58, %v1596_v49  ;;  %8190 = vmatmul.msk.f32.gmra.mxu0 %vm16554_vm6, %v16066_v14  ;;  %v1776_v49 = vpop.f32.mrf.mxu3  ;;  %vm10757_vm6 = vmpackc.low %vm16076_vm11, %vm16078_vm10  ;;  %v16558_v14 = vmov 0  ;;  %vm16080_vm11 = vcmp.eq.s32.totalorder %v16556_v9, %v9700_v23 }
 0x1fd   : > { %v1689_v58 = vpop.f32.mrf.mxu2  ;;  %v16559_v14 = vsel %vm10757_vm6, 4294967295, %v16558_v14  ;;  %vm10767_vm13 = vmpackc.low %vm16074_vm3, %vm16077_vm12  ;;  %vm16564_vm3 = vcmp.eq.s32.totalorder %v9129_v34, %v16547_v59  ;;  %vm16079_vm12 = vcmp.eq.s32.totalorder %v16557_v45, %v9700_v23 }
 0x1fe   : > { %v10745_v12 = vadd.f32 %v1773_v41, %v1685_v13  ;;  %v16560_v13 = vmov 0  ;;  %vm10796_vm10 = vmpackc.low %vm16079_vm12, %vm16080_vm11  ;;  %vm16095_vm12 = vcmp.eq.s32.totalorder %v16556_v9, %v9738_v25  ;;  %vm16093_vm11 = vcmp.eq.s32.totalorder %v16557_v45, %v9738_v25 }
 0x1ff   : > { %v16561_v13 = vsel %vm10767_vm13, 4294967295, %v16560_v13 }
 0x200   : > { %16555 = vst [vmem:[#allocation85_spill] sm:$0xff] %v10745_v12  ;;  %v10772_v55 = vpop.f32.mrf.mxu0 }
 0x201   : > { %v1598_v41 = vpop.f32.mrf.mxu1  ;;  %16562 = vst [vmem:[#allocation26_spill] sm:$0xff] %v10772_v55 }
 0x202   : > { %v1599_v12 = vadd.f32 %v1598_v41, %v10172_v26  ;;  %7946 = vmatmul.msk.bf16.gmra.mxu2 %vm10767_vm13, %v16343_v7 }
 0x204   : > { %7896 = vmatmul.msk.bf16.gmra.mxu1 %vm10757_vm6, %v16343_v7  ;;  %v1688_v21 = vadd.f32 %v1687_v62, %v1599_v12  ;;  %8191 = vmatmul.msk.f32.gmra.mxu0 %vm16564_vm3, %v16563_v15  ;;  %v1778_v41 = vpop.f32.mrf.mxu3  ;;  %v16566_v12 = vmov 0  ;;  %vm16569_vm3 = vcmp.eq.s32.totalorder %v9132_v35, %v16547_v59 }
 0x205   : > { %v1692_v26 = vpop.f32.mrf.mxu2  ;;  %v16567_v12 = vsel %vm10796_vm10, 4294967295, %v16566_v12 }
 0x206   : > { %v10784_v63 = vadd.f32 %v1776_v49, %v1688_v21 }
 0x208   : > { %16565 = vst [vmem:[#allocation27_spill] sm:$0xff] %v10784_v63  ;;  %v10801_v62 = vpop.f32.mrf.mxu0 }
 0x209   : > { %v1600_v55 = vpop.f32.mrf.mxu1  ;;  %16568 = vst [vmem:[#allocation86_spill] sm:$0xff] %v10801_v62  ;;  %7994 = vmatmul.msk.bf16.gmra.mxu3 %vm10796_vm10, %v16343_v7 }
 0x20a   : > { %v1601_v21 = vadd.f32 %v1600_v55, %v10205_v30  ;;  %v16571_v30 = vld [vmem:[#allocation34_spill] sm:$0xff]  ;;  %v16572_v55 = vld [vmem:[#allocation35_spill] sm:$0xff] }
 0x20b   : > { %vm16094_vm13 = vcmp.eq.s32.totalorder %v16571_v30, %v9660_v44  ;;  %vm16090_vm6 = vcmp.eq.s32.totalorder %v16572_v55, %v9660_v44 }
 0x20c   : > { %v1690_v49 = vadd.f32 %v1689_v58, %v1601_v21  ;;  %8192 = vmatmul.msk.f32.gmra.mxu0 %vm16569_vm3, %v16563_v15  ;;  %v1781_v21 = vpop.f32.mrf.mxu3  ;;  %vm10826_vm3 = vmpackc.low %vm16093_vm11, %vm16095_vm12  ;;  %vm16098_vm11 = vcmp.eq.s32.totalorder %v16571_v30, %v9700_v23 }
 0x20d   : > { %v1694_v58 = vpop.f32.mrf.mxu2  ;;  %vm10836_vm10 = vmpackc.low %vm16090_vm6, %vm16094_vm13  ;;  %vm16578_vm6 = vcmp.eq.s32.totalorder %v9220_v46, %v16547_v59  ;;  %vm16097_vm13 = vcmp.eq.s32.totalorder %v16572_v55, %v9700_v23 }
 0x20e   : > { %v10814_v63 = vadd.f32 %v1778_v41, %v1690_v49  ;;  %vm10865_vm12 = vmpackc.low %vm16097_vm13, %vm16098_vm11  ;;  %vm16108_vm13 = vcmp.eq.s32.totalorder %v16571_v30, %v9738_v25  ;;  %vm16101_vm11 = vcmp.eq.s32.totalorder %v16572_v55, %v9738_v25  ;;  %v16749_v49 = vld [vmem:[#allocation78_spill] sm:$0xff] }
 0x210   : > { %16570 = vst [vmem:[#allocation87_spill] sm:$0xff] %v10814_v63  ;;  %v10841_v35 = vpop.f32.mrf.mxu0 }
 0x211   : > { %v1603_v41 = vpop.f32.mrf.mxu1  ;;  %16577 = vst [vmem:[#allocation34_spill] sm:$0xff] %v10841_v35 }
 0x212   : > { %v1604_v63 = vadd.f32 %v1603_v41, %v10246_v18  ;;  %7948 = vmatmul.msk.bf16.gmra.mxu2 %vm10836_vm10, %v16343_v7 }
 0x214   : > { %7898 = vmatmul.msk.bf16.gmra.mxu1 %vm10826_vm3, %v16343_v7  ;;  %v1693_v34 = vadd.f32 %v1692_v26, %v1604_v63  ;;  %8193 = vmatmul.msk.f32.gmra.mxu0 %vm16578_vm6, %v16563_v15  ;;  %v1783_v41 = vpop.f32.mrf.mxu3  ;;  %v16580_v63 = vmov 0  ;;  %vm16583_vm6 = vcmp.eq.s32.totalorder %v9223_v47, %v16547_v59 }
 0x215   : > { %v1697_v18 = vpop.f32.mrf.mxu2  ;;  %v16581_v63 = vsel %vm10865_vm12, 4294967295, %v16580_v63 }
 0x216   : > { %v10853_v44 = vadd.f32 %v1781_v21, %v1693_v34 }
 0x218   : > { %16579 = vst [vmem:[#allocation35_spill] sm:$0xff] %v10853_v44  ;;  %v10870_v26 = vpop.f32.mrf.mxu0 }
 0x219   : > { %v1605_v35 = vpop.f32.mrf.mxu1  ;;  %16582 = vst [vmem:[#allocation88_spill] sm:$0xff] %v10870_v26  ;;  %7996 = vmatmul.msk.bf16.gmra.mxu3 %vm10865_vm12, %v16343_v7  ;;  %vm10891_vm12 = vmpackc.low %vm16101_vm11, %vm16108_vm13  ;;  %vm16589_vm11 = vcmp.eq.s32.totalorder %v9340_v1, %v16547_v59  ;;  %vm16591_vm13 = vnez %v16367_v36 }
 0x21a   : > { %v1606_v34 = vadd.f32 %v1605_v35, %v10297_v17 }
 0x21c   : > { %v1695_v21 = vadd.f32 %v1694_v58, %v1606_v34  ;;  %8194 = vmatmul.msk.f32.gmra.mxu0 %vm16583_vm6, %v16563_v15  ;;  %v1786_v17 = vpop.f32.mrf.mxu3  ;;  %vm16588_vm6 = vnez %v16361_v2  ;;  %v2712_v34 = vld [vmem:[%s11268_s17 + $0x38] sm:$0xff] }
 0x21d   : > { %v1699_v35 = vpop.f32.mrf.mxu2 }
 0x21e   : > { %v10879_v44 = vadd.f32 %v1783_v41, %v1695_v21 }
 0x220   : > { %16584 = vst [vmem:[#allocation89_spill] sm:$0xff] %v10879_v44  ;;  %v10896_v21 = vpop.f32.mrf.mxu0 }
 0x221   : > { %v1608_v58 = vpop.f32.mrf.mxu1  ;;  %16587 = vst [vmem:[#allocation90_spill] sm:$0xff] %v10896_v21 }
 0x222   : > { %v1609_v41 = vadd.f32 %v1608_v58, %v10331_v28  ;;  %8110 = vmatmul.msk.bf16.vlgmr.msra.gmra.mxu2 %vm16588_vm6, %v16343_v7  ;;  %vm16592_vm6 = vcmp.eq.s32.totalorder %v9343_v3, %v16547_v59 }
 0x224   : > { %7900 = vmatmul.msk.bf16.gmra.mxu1 %vm10891_vm12, %v16343_v7  ;;  %v1698_v44 = vadd.f32 %v1697_v18, %v1609_v41  ;;  %8195 = vmatmul.msk.f32.gmra.mxu0 %vm16589_vm11, %v16563_v15  ;;  %v1788_v28 = vpop.f32.mrf.mxu3  ;;  %vm16594_vm11 = vcmp.eq.s32.totalorder %v9253_v52, %v16547_v59 }
 0x225   : > { %v1702_v47 = vpop.f32.mrf.mxu2 }
 0x226   : > { %v10908_v26 = vadd.f32 %v1786_v17, %v1698_v44 }
 0x228   : > { %16590 = vst [vmem:[#allocation91_spill] sm:$0xff] %v10908_v26  ;;  %v10911_v46 = vpop.f32.mrf.mxu0 }
 0x229   : > { %v1610_v58 = vpop.f32.mrf.mxu1  ;;  %8158 = vmatmul.msk.bf16.vlgmr.msra.gmra.mxu3 %vm16591_vm13, %v16343_v7 }
 0x22a   : > { %v1611_v21 = vadd.f32 %v1610_v58, %v10378_v27 }
 0x22c   : > { %v1700_v25 = vadd.f32 %v1699_v35, %v1611_v21  ;;  %8196 = vmatmul.msk.f32.gmra.mxu0 %vm16592_vm6, %v16563_v15  ;;  %v1791_v18 = vpop.f32.mrf.mxu3 }
 0x22d   : > { %v1704_v44 = vpop.f32.mrf.mxu2 }
 0x22e   : > { %v10920_v2 = vadd.f32 %v1788_v28, %v1700_v25 }
 0x230   : > { %16593 = vst [vmem:[#allocation92_spill] sm:$0xff] %v10920_v2 }
 0x231   : > { %v1613_v17 = vpop.f32.mrf.mxu1  ;;  %v10923_v27 = vpop.f32.mrf.mxu0 }
 0x232   : > { %v1614_v41 = vadd.f32 %v1613_v17, %v10042_v50  ;;  %8112 = vmatmul.msk.bf16.gmra.mxu2 %vm9817_vm7, %v16343_v7  ;;  %vm16596_vm7 = vcmp.eq.s32.totalorder %v9256_v53, %v16547_v59 }
 0x234   : > { %8062 = vmatmul.msk.bf16.vlgmr.msra.gmra.mxu1 %vm9804_vm15, %v16343_v7  ;;  %v1703_v36 = vadd.f32 %v1702_v47, %v1614_v41  ;;  %8197 = vmatmul.msk.f32.gmra.mxu0 %vm16594_vm11, %v16563_v15  ;;  %v1793_v50 = vpop.f32.mrf.mxu3  ;;  %vm16598_vm15 = vnez %v16384_v40 }
 0x235   : > { %v1707_v35 = vpop.f32.mrf.mxu2 }
 0x236   : > { %v10935_v25 = vadd.f32 %v1791_v18, %v1703_v36 }
 0x238   : > { %16595 = vst [vmem:[#allocation93_spill] sm:$0xff] %v10935_v25  ;;  %v16629_v25 = vld [vmem:[#allocation9_spill] sm:$0xff] }
 0x239   : > { %v1615_v21 = vpop.f32.mrf.mxu1  ;;  %v10938_v58 = vpop.f32.mrf.mxu0  ;;  %8160 = vmatmul.msk.bf16.gmra.mxu3 %vm9883_vm2, %v16343_v7  ;;  %vm16599_vm2 = vcmp.eq.s32.totalorder %v16406_v10, %v16547_v59  ;;  %vm16630_vm11 = vnez %v16629_v25  ;;  %v16638_v25 = vld [vmem:[#allocation29_spill] sm:$0xff] }
 0x23a   : > { %v1616_v28 = vadd.f32 %v1615_v21, %v10089_v61 }
 0x23c   : > { %v1705_v38 = vadd.f32 %v1704_v44, %v1616_v28  ;;  %8198 = vmatmul.msk.f32.gmra.mxu0 %vm16596_vm7, %v16563_v15  ;;  %v1796_v18 = vpop.f32.mrf.mxu3 }
 0x23d   : > { %v1709_v56 = vpop.f32.mrf.mxu2 }
 0x23e   : > { %v10947_v47 = vadd.f32 %v1793_v50, %v1705_v38 }
 0x240   : > { %16597 = vst [vmem:[#allocation94_spill] sm:$0xff] %v10947_v47 }
 0x241   : > { %v1618_v17 = vpop.f32.mrf.mxu1  ;;  %v10950_v61 = vpop.f32.mrf.mxu0 }
 0x242   : > { %v1619_v41 = vadd.f32 %v1618_v17, %v10122_v6  ;;  %8114 = vmatmul.msk.bf16.gmra.mxu2 %vm16598_vm15, %v16343_v7 }
 0x244   : > { %8064 = vmatmul.msk.bf16.gmra.mxu1 %vm9933_vm8, %v16343_v7  ;;  %v1708_v32 = vadd.f32 %v1707_v35, %v1619_v41  ;;  %8199 = vmatmul.msk.f32.gmra.mxu0 %vm16599_vm2, %v16563_v15  ;;  %v1798_v6 = vpop.f32.mrf.mxu3  ;;  %vm16601_vm8 = vcmp.eq.s32.totalorder %v16407_v11, %v16547_v59  ;;  %vm16639_vm2 = vnez %v16638_v25 }
 0x245   : > { %v1712_v36 = vpop.f32.mrf.mxu2 }
 0x246   : > { %v10962_v44 = vadd.f32 %v1796_v18, %v1708_v32 }
 0x248   : > { %16600 = vst [vmem:[#allocation95_spill] sm:$0xff] %v10962_v44 }
 0x249   : > { %v1620_v50 = vpop.f32.mrf.mxu1  ;;  %v10965_v28 = vpop.f32.mrf.mxu0  ;;  %8162 = vmatmul.msk.bf16.gmra.mxu3 %vm9984_vm4, %v16343_v7  ;;  %vm16603_vm4 = vcmp.eq.s32.totalorder %v16423_v29, %v16547_v59 }
 0x24a   : > { %v1621_v21 = vadd.f32 %v1620_v50, %v10170_v24 }
 0x24c   : > { %v1710_v60 = vadd.f32 %v1709_v56, %v1621_v21  ;;  %8200 = vmatmul.msk.f32.gmra.mxu0 %vm16601_vm8, %v16563_v15  ;;  %v1801_v38 = vpop.f32.mrf.mxu3 }
 0x24d   : > { %v1714_v35 = vpop.f32.mrf.mxu2 }
 0x24e   : > { %v10974_v40 = vadd.f32 %v1798_v6, %v1710_v60 }
 0x250   : > { %16602 = vst [vmem:[#allocation96_spill] sm:$0xff] %v10974_v40 }
 0x251   : > { %v1623_v18 = vpop.f32.mrf.mxu1  ;;  %v10977_v24 = vpop.f32.mrf.mxu0 }
 0x252   : > { %v1624_v17 = vadd.f32 %v1623_v18, %v10203_v57  ;;  %8116 = vmatmul.msk.bf16.gmra.mxu2 %vm10023_vm14, %v16343_v7 }
 0x254   : > { %8066 = vmatmul.msk.bf16.gmra.mxu1 %vm10013_vm9, %v16343_v7  ;;  %v1713_v22 = vadd.f32 %v1712_v36, %v1624_v17  ;;  %8201 = vmatmul.msk.f32.gmra.mxu0 %vm16603_vm4, %v16563_v15  ;;  %v1803_v57 = vpop.f32.mrf.mxu3  ;;  %vm16605_vm9 = vcmp.eq.s32.totalorder %v16424_v39, %v16547_v59 }
 0x255   : > { %v1717_v41 = vpop.f32.mrf.mxu2 }
 0x256   : > { %v10989_v56 = vadd.f32 %v1801_v38, %v1713_v22  ;;  %v16607_v38 = vld [vmem:[#allocation57_spill] sm:$0xff]  ;;  %v16610_v22 = vld [vmem:[#allocation36_spill] sm:$0xff] }
 0x258   : > { %16604 = vst [vmem:[#allocation97_spill] sm:$0xff] %v10989_v56  ;;  %v16614_v56 = vld [vmem:[#allocation44_spill] sm:$0xff] }
 0x259   : > { %v1625_v32 = vpop.f32.mrf.mxu1  ;;  %v10992_v50 = vpop.f32.mrf.mxu0  ;;  %8164 = vmatmul.msk.bf16.gmra.mxu3 %vm10050_vm1, %v16343_v7  ;;  %vm16611_vm1 = vcmp.eq.s32.totalorder %v16610_v22, %v16547_v59  ;;  %vm16615_vm14 = vnez %v16614_v56  ;;  %v16622_v56 = vld [vmem:[#allocation21_spill] sm:$0xff] }
 0x25a   : > { %v1626_v6 = vadd.f32 %v1625_v32, %v10244_v19  ;;  %vm16623_vm13 = vnez %v16622_v56 }
 0x25c   : > { %v1715_v20 = vadd.f32 %v1714_v35, %v1626_v6  ;;  %8202 = vmatmul.msk.f32.gmra.mxu0 %vm16605_vm9, %v16563_v15  ;;  %v1806_v21 = vpop.f32.mrf.mxu3 }
 0x25d   : > { %v1719_v36 = vpop.f32.mrf.mxu2 }
 0x25e   : > { %v11001_v48 = vadd.f32 %v1803_v57, %v1715_v20 }
 0x260   : > { %16606 = vst [vmem:[#allocation98_spill] sm:$0xff] %v11001_v48 }
 0x261   : > { %v1628_v60 = vpop.f32.mrf.mxu1  ;;  %v11004_v19 = vpop.f32.mrf.mxu0 }
 0x262   : > { %v1629_v18 = vadd.f32 %v1628_v60, %v16607_v38  ;;  %8118 = vmatmul.msk.bf16.gmra.mxu2 %vm10085_vm0, %v16343_v7  ;;  %v16613_v60 = vld [vmem:[#allocation60_spill] sm:$0xff] }
 0x264   : > { %8068 = vmatmul.msk.bf16.gmra.mxu1 %vm10075_vm5, %v16343_v7  ;;  %v1718_v17 = vadd.f32 %v1717_v41, %v1629_v18  ;;  %8203 = vmatmul.msk.f32.gmra.mxu0 %vm16611_vm1, %v16563_v15  ;;  %v1808_v6 = vpop.f32.mrf.mxu3  ;;  %v16616_v41 = vld [vmem:[#allocation37_spill] sm:$0xff] }
 0x265   : > { %v1722_v32 = vpop.f32.mrf.mxu2  ;;  %vm16617_vm0 = vcmp.eq.s32.totalorder %v16616_v41, %v16547_v59 }
 0x266   : > { %v11016_v57 = vadd.f32 %v1806_v21, %v1718_v17 }
 0x268   : > { %16612 = vst [vmem:[#allocation57_spill] sm:$0xff] %v11016_v57  ;;  %v16619_v57 = vld [vmem:[#allocation41_spill] sm:$0xff] }
 0x269   : > { %v1630_v20 = vpop.f32.mrf.mxu1  ;;  %v11019_v48 = vpop.f32.mrf.mxu0  ;;  %8166 = vmatmul.msk.bf16.gmra.mxu3 %vm16615_vm14, %v16343_v7 }
 0x26a   : > { %v1631_v38 = vadd.f32 %v1630_v20, %v16613_v60 }
 0x26c   : > { %v1720_v35 = vadd.f32 %v1719_v36, %v1631_v38  ;;  %8204 = vmatmul.msk.f32.gmra.mxu0 %vm16617_vm0, %v16563_v15  ;;  %v1811_v54 = vpop.f32.mrf.mxu3  ;;  %v16620_v36 = vld [vmem:[#allocation20_spill] sm:$0xff]  ;;  %v16624_v38 = vld [vmem:[#allocation7_spill] sm:$0xff]  ;;  %vm16656_vm0 = vcmp.eq.s32.totalorder %v16491_v16, %v16547_v59 }
 0x26d   : > { %v1724_v21 = vpop.f32.mrf.mxu2  ;;  %vm16621_vm5 = vnez %v16620_v36  ;;  %vm16625_vm6 = vcmp.eq.s32.totalorder %v16624_v38, %v16547_v59 }
 0x26e   : > { %v11028_v18 = vadd.f32 %v1808_v6, %v1720_v35 }
 0x270   : > { %16618 = vst [vmem:[#allocation42_spill] sm:$0xff] %v11028_v18  ;;  %v16627_v18 = vld [vmem:[#allocation45_spill] sm:$0xff] }
 0x271   : > { %v1633_v17 = vpop.f32.mrf.mxu1  ;;  %v11031_v20 = vpop.f32.mrf.mxu0 }
 0x272   : > { %v1634_v40 = vadd.f32 %v1633_v17, %v16619_v57  ;;  %8120 = vmatmul.msk.bf16.gmra.mxu2 %vm16623_vm13, %v16343_v7 }
 0x274   : > { %8070 = vmatmul.msk.bf16.gmra.mxu1 %vm16621_vm5, %v16343_v7  ;;  %v1723_v60 = vadd.f32 %v1722_v32, %v1634_v40  ;;  %8205 = vmatmul.msk.f32.gmra.mxu0 %vm16625_vm6, %v16563_v15  ;;  %v1813_v57 = vpop.f32.mrf.mxu3  ;;  %v16631_v40 = vld [vmem:[#allocation8_spill] sm:$0xff] }
 0x275   : > { %v1727_v35 = vpop.f32.mrf.mxu2  ;;  %vm16632_vm7 = vcmp.eq.s32.totalorder %v16631_v40, %v16547_v59 }
 0x276   : > { %v11043_v6 = vadd.f32 %v1811_v54, %v1723_v60 }
 0x278   : > { %16626 = vst [vmem:[#allocation43_spill] sm:$0xff] %v11043_v6  ;;  %v16634_v6 = vld [vmem:[#allocation47_spill] sm:$0xff] }
 0x279   : > { %v1635_v17 = vpop.f32.mrf.mxu1  ;;  %v11046_v47 = vpop.f32.mrf.mxu0  ;;  %8168 = vmatmul.msk.bf16.gmra.mxu3 %vm16630_vm11, %v16343_v7 }
 0x27a   : > { %v1636_v44 = vadd.f32 %v1635_v17, %v16627_v18  ;;  %16628 = vst [vmem:[#allocation36_spill] sm:$0xff] %v11046_v47  ;;  %v16640_v17 = vld [vmem:[#allocation14_spill] sm:$0xff]  ;;  %v16645_v47 = vld [vmem:[#allocation51_spill] sm:$0xff] }
 0x27b   : > { %vm16641_vm8 = vcmp.eq.s32.totalorder %v16640_v17, %v16547_v59  ;;  %vm16646_vm4 = vnez %v16645_v47  ;;  %v16654_v47 = vld [vmem:[#allocation54_spill] sm:$0xff] }
 0x27c   : > { %v1725_v36 = vadd.f32 %v1724_v21, %v1636_v44  ;;  %8206 = vmatmul.msk.f32.gmra.mxu0 %vm16632_vm7, %v16563_v15  ;;  %v1816_v56 = vpop.f32.mrf.mxu3  ;;  %v16636_v44 = vld [vmem:[#allocation28_spill] sm:$0xff]  ;;  %vm16655_vm14 = vnez %v16654_v47  ;;  %vm16671_vm7 = vcmp.eq.s32.totalorder %v16508_v33, %v16547_v59 }
 0x27d   : > { %v1729_v54 = vpop.f32.mrf.mxu2  ;;  %vm16637_vm15 = vnez %v16636_v44 }
 0x27e   : > { %v11055_v32 = vadd.f32 %v1813_v57, %v1725_v36 }
 0x280   : > { %16633 = vst [vmem:[#allocation60_spill] sm:$0xff] %v11055_v32  ;;  %v16643_v32 = vld [vmem:[#allocation49_spill] sm:$0xff] }
 0x281   : > { %v1638_v60 = vpop.f32.mrf.mxu1  ;;  %v11058_v18 = vpop.f32.mrf.mxu0 }
 0x282   : > { %v1639_v2 = vadd.f32 %v1638_v60, %v16634_v6  ;;  %16635 = vst [vmem:[#allocation44_spill] sm:$0xff] %v11058_v18  ;;  %8122 = vmatmul.msk.bf16.gmra.mxu2 %vm16639_vm2, %v16343_v7  ;;  %vm16677_vm2 = vcmp.eq.s32.totalorder %v16509_v43, %v16547_v59 }
 0x284   : > { %8072 = vmatmul.msk.bf16.gmra.mxu1 %vm16637_vm15, %v16343_v7  ;;  %v1728_v21 = vadd.f32 %v1727_v35, %v1639_v2  ;;  %8207 = vmatmul.msk.f32.gmra.mxu0 %vm16641_vm8, %v16563_v15  ;;  %v1818_v6 = vpop.f32.mrf.mxu3  ;;  %v16647_v2 = vld [vmem:[#allocation15_spill] sm:$0xff] }
 0x285   : > { %v1732_v36 = vpop.f32.mrf.mxu2  ;;  %vm16648_vm9 = vcmp.eq.s32.totalorder %v16647_v2, %v16547_v59 }
 0x286   : > { %v11070_v57 = vadd.f32 %v1816_v56, %v1728_v21 }
 0x288   : > { %16642 = vst [vmem:[#allocation37_spill] sm:$0xff] %v11070_v57  ;;  %v16650_v57 = vld [vmem:[#allocation17_spill] sm:$0xff] }
 0x289   : > { %v1640_v60 = vpop.f32.mrf.mxu1  ;;  %v11073_v18 = vpop.f32.mrf.mxu0  ;;  %8170 = vmatmul.msk.bf16.gmra.mxu3 %vm16646_vm4, %v16343_v7 }
 0x28a   : > { %v1641_v26 = vadd.f32 %v1640_v60, %v16643_v32  ;;  %16644 = vst [vmem:[#allocation41_spill] sm:$0xff] %v11073_v18  ;;  %v16660_v18 = vld [vmem:[#allocation25_spill] sm:$0xff] }
 0x28b   : > { %vm16661_vm5 = vnez %v16660_v18  ;;  %v16669_v18 = vld [vmem:[#allocation62_spill] sm:$0xff] }
 0x28c   : > { %v1730_v44 = vadd.f32 %v1729_v54, %v1641_v26  ;;  %8208 = vmatmul.msk.f32.gmra.mxu0 %vm16648_vm9, %v16563_v15  ;;  %v1821_v25 = vpop.f32.mrf.mxu3  ;;  %v16652_v26 = vld [vmem:[#allocation53_spill] sm:$0xff]  ;;  %vm16670_vm11 = vnez %v16669_v18  ;;  %vm16685_vm9 = vcmp.eq.s32.totalorder %v16523_v31, %v16547_v59 }
 0x28d   : > { %v1734_v56 = vpop.f32.mrf.mxu2  ;;  %vm16653_vm1 = vnez %v16652_v26 }
 0x28e   : > { %v11082_v35 = vadd.f32 %v1818_v6, %v1730_v44 }
 0x290   : > { %16649 = vst [vmem:[#allocation20_spill] sm:$0xff] %v11082_v35 }
 0x291   : > { %v1643_v21 = vpop.f32.mrf.mxu1  ;;  %v11085_v32 = vpop.f32.mrf.mxu0 }
 0x292   : > { %v1644_v17 = vadd.f32 %v1643_v21, %v16650_v57  ;;  %16651 = vst [vmem:[#allocation21_spill] sm:$0xff] %v11085_v32  ;;  %8124 = vmatmul.msk.bf16.gmra.mxu2 %vm16655_vm14, %v16343_v7  ;;  %v16658_v21 = vld [vmem:[#allocation55_spill] sm:$0xff]  ;;  %vm16691_vm14 = vcmp.eq.s32.totalorder %v16524_v51, %v16547_v59 }
 0x294   : > { %8074 = vmatmul.msk.bf16.gmra.mxu1 %vm16653_vm1, %v16343_v7  ;;  %v1733_v54 = vadd.f32 %v1732_v36, %v1644_v17  ;;  %8209 = vmatmul.msk.f32.gmra.mxu0 %vm16656_vm0, %v16563_v15  ;;  %v1823_v57 = vpop.f32.mrf.mxu3  ;;  %v16662_v17 = vld [vmem:[#allocation23_spill] sm:$0xff] }
 0x295   : > { %v1737_v60 = vpop.f32.mrf.mxu2  ;;  %vm16663_vm13 = vcmp.eq.s32.totalorder %v16662_v17, %v16547_v59 }
 0x296   : > { %v11097_v6 = vadd.f32 %v1821_v25, %v1733_v54 }
 0x298   : > { %16657 = vst [vmem:[#allocation7_spill] sm:$0xff] %v11097_v6  ;;  %v16665_v6 = vld [vmem:[#allocation59_spill] sm:$0xff] }
 0x299   : > { %v1645_v44 = vpop.f32.mrf.mxu1  ;;  %v11100_v32 = vpop.f32.mrf.mxu0  ;;  %8172 = vmatmul.msk.bf16.gmra.mxu3 %vm16661_vm5, %v16343_v7 }
 0x29a   : > { %v1646_v35 = vadd.f32 %v1645_v44, %v16658_v21  ;;  %16659 = vst [vmem:[#allocation45_spill] sm:$0xff] %v11100_v32  ;;  %v16675_v32 = vld [vmem:[#allocation64_spill] sm:$0xff] }
 0x29b   : > { %vm16676_vm15 = vnez %v16675_v32  ;;  %v16683_v32 = vld [vmem:[#allocation67_spill] sm:$0xff] }
 0x29c   : > { %v1735_v26 = vadd.f32 %v1734_v56, %v1646_v35  ;;  %8210 = vmatmul.msk.f32.gmra.mxu0 %vm16663_vm13, %v16563_v15  ;;  %v1826_v47 = vpop.f32.mrf.mxu3  ;;  %v16667_v35 = vld [vmem:[#allocation61_spill] sm:$0xff]  ;;  %vm16684_vm4 = vnez %v16683_v32  ;;  %vm16699_vm13 = vcmp.eq.s32.totalorder %v16540_v5, %v16547_v59 }
 0x29d   : > { %v1739_v25 = vpop.f32.mrf.mxu2  ;;  %vm16668_vm6 = vnez %v16667_v35 }
 0x29e   : > { %v11109_v36 = vadd.f32 %v1823_v57, %v1735_v26 }
 0x2a0   : > { %16664 = vst [vmem:[#allocation9_spill] sm:$0xff] %v11109_v36 }
 0x2a1   : > { %v1648_v54 = vpop.f32.mrf.mxu1  ;;  %v11112_v44 = vpop.f32.mrf.mxu0 }
 0x2a2   : > { %v1649_v16 = vadd.f32 %v1648_v54, %v16665_v6  ;;  %16666 = vst [vmem:[#allocation8_spill] sm:$0xff] %v11112_v44  ;;  %8126 = vmatmul.msk.bf16.gmra.mxu2 %vm16670_vm11, %v16343_v7  ;;  %v16673_v54 = vld [vmem:[#allocation33_spill] sm:$0xff]  ;;  %vm16704_vm11 = vcmp.eq.s32.totalorder %v16541_v0, %v16547_v59 }
 0x2a4   : > { %8076 = vmatmul.msk.bf16.gmra.mxu1 %vm16668_vm6, %v16343_v7  ;;  %v1738_v56 = vadd.f32 %v1737_v60, %v1649_v16  ;;  %8211 = vmatmul.msk.f32.gmra.mxu0 %vm16671_vm7, %v16563_v15  ;;  %v1828_v6 = vpop.f32.mrf.mxu3  ;;  %vm16707_vm7 = vnez %v16511_v42 }
 0x2a5   : > { %v2018_v21 = vpop.f32.mrf.mxu2 }
 0x2a6   : > { %v11124_v57 = vadd.f32 %v1826_v47, %v1738_v56  ;;  %v16679_v56 = vld [vmem:[#allocation46_spill] sm:$0xff] }
 0x2a8   : > { %16672 = vst [vmem:[#allocation47_spill] sm:$0xff] %v11124_v57 }
 0x2a9   : > { %v1650_v26 = vpop.f32.mrf.mxu1  ;;  %v11127_v44 = vpop.f32.mrf.mxu0  ;;  %8174 = vmatmul.msk.bf16.gmra.mxu3 %vm16676_vm15, %v16343_v7  ;;  %vm16708_vm15 = vnez %v16513_v8  ;;  %v16712_v8 = vld [vmem:[#allocation32_spill] sm:$0xff] }
 0x2aa   : > { %v1651_v36 = vadd.f32 %v1650_v26, %v16673_v54  ;;  %16674 = vst [vmem:[#allocation28_spill] sm:$0xff] %v11127_v44  ;;  %v2740_v54 = vld [vmem:[%s15819_s4 + $0x18] sm:$0xff] }
 0x2ab   : > { %2853 = vmatpush.msrb.mxu0 %v2740_v54 }
 0x2ac   : > { %v1740_v35 = vadd.f32 %v1739_v25, %v1651_v36  ;;  %8212 = vmatmul.msk.f32.gmra.mxu0 %vm16677_vm2, %v16563_v15  ;;  %v2107_v47 = vpop.f32.mrf.mxu3  ;;  %v16681_v36 = vld [vmem:[#allocation66_spill] sm:$0xff]  ;;  %vm16709_vm2 = vcmp.eq.s32.totalorder %v16556_v9, %v16547_v59 }
 0x2ad   : > { %v2020_v60 = vpop.f32.mrf.mxu2  ;;  %vm16682_vm8 = vnez %v16681_v36  ;;  %v16687_v36 = vld [vmem:[#allocation48_spill] sm:$0xff] }
 0x2ae   : > { %v11136_v16 = vadd.f32 %v1828_v6, %v1740_v35 }
 0x2b0   : > { %16678 = vst [vmem:[#allocation29_spill] sm:$0xff] %v11136_v16 }
 0x2b1   : > { %v1929_v18 = vpop.f32.mrf.mxu1  ;;  %v11139_v26 = vpop.f32.mrf.mxu0 }
 0x2b2   : > { %v1930_v57 = vadd.f32 %v1929_v18, %v16679_v56  ;;  %16680 = vst [vmem:[#allocation49_spill] sm:$0xff] %v11139_v26  ;;  %8128 = vmatmul.msk.bf16.gmra.mxu2 %vm16684_vm4, %v16343_v7  ;;  %v16693_v26 = vld [vmem:[#allocation50_spill] sm:$0xff]  ;;  %vm16714_vm4 = vcmp.eq.s32.totalorder %v16557_v45, %v16547_v59 }
 0x2b4   : > { %8078 = vmatmul.msk.bf16.gmra.mxu1 %vm16682_vm8, %v16343_v7  ;;  %v2019_v25 = vadd.f32 %v2018_v21, %v1930_v57  ;;  %8213 = vmatmul.msk.f32.gmra.mxu0 %vm16685_vm9, %v16563_v15  ;;  %v2109_v18 = vpop.f32.mrf.mxu3  ;;  %v16689_v21 = vld [vmem:[#allocation69_spill] sm:$0xff]  ;;  %vm16713_vm8 = vnez %v16712_v8 }
 0x2b5   : > { %v2023_v35 = vpop.f32.mrf.mxu2  ;;  %vm16690_vm1 = vnez %v16689_v21  ;;  %v2234_v8 = vld [vmem:[%s10431_s30 + $0x178] sm:$0xff] }
 0x2b6   : > { %v11151_v6 = vadd.f32 %v2107_v47, %v2019_v25  ;;  %2477 = vmatpush.msrb.mxu2 %v2234_v8 }
 0x2b8   : > { %16686 = vst [vmem:[#allocation51_spill] sm:$0xff] %v11151_v6 }
 0x2b9   : > { %v1931_v56 = vpop.f32.mrf.mxu1  ;;  %v11157_v32 = vpop.f32.mrf.mxu0  ;;  %8176 = vmatmul.msk.bf16.gmra.mxu3 %vm16690_vm1, %v16343_v7 }
 0x2ba   : > { %v1932_v16 = vadd.f32 %v1931_v56, %v16687_v36  ;;  %16688 = vst [vmem:[#allocation15_spill] sm:$0xff] %v11157_v32  ;;  %v16702_v32 = vld [vmem:[#allocation75_spill] sm:$0xff] }
 0x2bb   : > { %vm16703_vm6 = vnez %v16702_v32  ;;  %v2738_v32 = vld [vmem:[%s15819_s4 + $0x8] sm:$0xff] }
 0x2bc   : > { %v2021_v57 = vadd.f32 %v2020_v60, %v1932_v16  ;;  %8214 = vmatmul.msk.f32.gmra.mxu0 %vm16691_vm14, %v16563_v15  ;;  %v2112_v6 = vpop.f32.mrf.mxu3  ;;  %v16695_v16 = vld [vmem:[#allocation72_spill] sm:$0xff]  ;;  %v16697_v60 = vld [vmem:[#allocation73_spill] sm:$0xff]  ;;  %vm16722_vm14 = vcmp.eq.s32.totalorder %v16571_v30, %v16547_v59 }
 0x2bd   : > { %v2025_v25 = vpop.f32.mrf.mxu2  ;;  %vm16696_vm0 = vnez %v16695_v16  ;;  %vm16698_vm5 = vnez %v16697_v60  ;;  %v2739_v60 = vld [vmem:[%s15819_s4 + $0x10] sm:$0xff] }
 0x2be   : > { %v11166_v47 = vadd.f32 %v2109_v18, %v2021_v57  ;;  %2854 = vmatpush.msrb.mxu0 %v2739_v60 }
 0x2c0   : > { %16692 = vst [vmem:[#allocation17_spill] sm:$0xff] %v11166_v47  ;;  %2855 = vmatpush.msrb.mxu0 %v2738_v32  ;;  %v16711_v32 = vld [vmem:[#allocation58_spill] sm:$0xff] }
 0x2c1   : > { %v1934_v54 = vpop.f32.mrf.mxu1  ;;  %v11169_v56 = vpop.f32.mrf.mxu0 }
 0x2c2   : > { %v1935_v44 = vadd.f32 %v1934_v54, %v16693_v26  ;;  %16694 = vst [vmem:[#allocation53_spill] sm:$0xff] %v11169_v56  ;;  %8130 = vmatmul.msk.bf16.gmra.mxu2 %vm16698_vm5, %v16343_v7  ;;  %v16701_v54 = vld [vmem:[#allocation52_spill] sm:$0xff]  ;;  %vm16728_vm5 = vcmp.eq.s32.totalorder %v16572_v55, %v16547_v59 }
 0x2c4   : > { %8080 = vmatmul.msk.bf16.gmra.mxu1 %vm16696_vm0, %v16343_v7  ;;  %v2024_v36 = vadd.f32 %v2023_v35, %v1935_v44  ;;  %8215 = vmatmul.msk.f32.gmra.mxu0 %vm16699_vm13, %v16563_v15  ;;  %v2114_v26 = vpop.f32.mrf.mxu3  ;;  %vm2744_vm13 = vcmask 261120  }
 0x2c5   : > { %v2028_v57 = vpop.f32.mrf.mxu2 }
 0x2c6   : > { %v11181_v18 = vadd.f32 %v2112_v6, %v2024_v36 }
 0x2c8   : > { %16700 = vst [vmem:[#allocation54_spill] sm:$0xff] %v11181_v18 }
 0x2c9   : > { %v1936_v21 = vpop.f32.mrf.mxu1  ;;  %v11184_v56 = vpop.f32.mrf.mxu0  ;;  %8178 = vmatmul.msk.bf16.gmra.mxu3 %vm16703_vm6, %v16343_v7  ;;  %vm16732_vm6 = vnez %v16543_v4 }
 0x2ca   : > { %v1937_v47 = vadd.f32 %v1936_v21, %v16701_v54 }
 0x2cc   : > { %v2026_v16 = vadd.f32 %v2025_v25, %v1937_v47  ;;  %8216 = vmatmul.msk.f32.gmra.mxu0 %vm16704_vm11, %v16563_v15  ;;  %v2117_v35 = vpop.f32.mrf.mxu3  ;;  %v16706_v47 = vld [vmem:[#allocation56_spill] sm:$0xff]  ;;  %vm16733_vm11 = vnez %v16545_v37 }
 0x2cd   : > { %v2030_v6 = vpop.f32.mrf.mxu2  ;;  %v2225_v37 = vld [vmem:[%s10431_s30 + $0x130] sm:$0xff] }
 0x2ce   : > { %v11193_v44 = vadd.f32 %v2114_v26, %v2026_v16  ;;  %v2737_v26 = vld [vmem:[%s15819_s4] sm:$0xff] }
 0x2cf   : > { %2856 = vmatpush.msrb.mxu0 %v2737_v26 }
 0x2d0   : > { %16705 = vst [vmem:[#allocation55_spill] sm:$0xff] %v11193_v44 }
 0x2d1   : > { %v1939_v36 = vpop.f32.mrf.mxu1  ;;  %v11199_v21 = vpop.f32.mrf.mxu0 }
 0x2d2   : > { %v1940_v25 = vadd.f32 %v1939_v36, %v16706_v47  ;;  %8132 = vmatmul.msk.bf16.gmra.mxu2 %vm16708_vm15, %v16343_v7  ;;  %vm16741_vm15 = vnez %v16559_v14  ;;  %v2210_v14 = vld [vmem:[%s10431_s30 + $0xb8] sm:$0xff] }
 0x2d4   : > { %8082 = vmatmul.msk.bf16.gmra.mxu1 %vm16707_vm7, %v16343_v7  ;;  %v2029_v54 = vadd.f32 %v2028_v57, %v1940_v25  ;;  %8217 = vmatmul.msk.f32.gmra.mxu0 %vm16709_vm2, %v16563_v15  ;;  %v2119_v36 = vpop.f32.mrf.mxu3  ;;  %vm16742_vm2 = vnez %v16561_v13  ;;  %v2241_v13 = vld [vmem:[%s10431_s30 + $0x1b0] sm:$0xff] }
 0x2d5   : > { %v2033_v60 = vpop.f32.mrf.mxu2 }
 0x2d6   : > { %v11217_v16 = vadd.f32 %v2117_v35, %v2029_v54  ;;  %v16716_v54 = vld [vmem:[#allocation63_spill] sm:$0xff] }
 0x2d8   : > { %16710 = vst [vmem:[#allocation25_spill] sm:$0xff] %v11217_v16 }
 0x2d9   : > { %v1941_v47 = vpop.f32.mrf.mxu1  ;;  %v11220_v42 = vpop.f32.mrf.mxu0  ;;  %8180 = vmatmul.msk.bf16.gmra.mxu3 %vm16713_vm8, %v16343_v7  ;;  %vm16745_vm8 = vnez %v16567_v12  ;;  %v2237_v12 = vld [vmem:[%s10431_s30 + $0x190] sm:$0xff] }
 0x2da   : > { %v1942_v44 = vadd.f32 %v1941_v47, %v16711_v32 }
 0x2dc   : > { %v2031_v18 = vadd.f32 %v2030_v6, %v1942_v44  ;;  %8218 = vmatmul.msk.f32.gmra.mxu0 %vm16714_vm4, %v16563_v15  ;;  %v2122_v25 = vpop.f32.mrf.mxu3  ;;  %v16718_v44 = vld [vmem:[#allocation12_spill] sm:$0xff]  ;;  %v16720_v6 = vld [vmem:[#allocation13_spill] sm:$0xff] }
 0x2dd   : > { %v2035_v35 = vpop.f32.mrf.mxu2  ;;  %vm16719_vm9 = vnez %v16718_v44  ;;  %vm16721_vm1 = vnez %v16720_v6  ;;  %v2233_v44 = vld [vmem:[%s10431_s30 + $0x170] sm:$0xff]  ;;  %v16724_v6 = vld [vmem:[#allocation65_spill] sm:$0xff] }
 0x2de   : > { %v11229_v57 = vadd.f32 %v2119_v36, %v2031_v18  ;;  %2478 = vmatpush.msrb.mxu2 %v2233_v44  ;;  %v2229_v44 = vld [vmem:[%s10431_s30 + $0x150] sm:$0xff] }
 0x2e0   : > { %16715 = vst [vmem:[#allocation23_spill] sm:$0xff] %v11229_v57 }
 0x2e1   : > { %v1944_v26 = vpop.f32.mrf.mxu1  ;;  %v11232_v32 = vpop.f32.mrf.mxu0 }
 0x2e2   : > { %v1945_v47 = vadd.f32 %v1944_v26, %v16716_v54  ;;  %16717 = vst [vmem:[#allocation59_spill] sm:$0xff] %v11232_v32  ;;  %8134 = vmatmul.msk.bf16.gmra.mxu2 %vm16721_vm1, %v16343_v7  ;;  %v2231_v32 = vld [vmem:[%s10431_s30 + $0x160] sm:$0xff] }
 0x2e4   : > { %8084 = vmatmul.msk.bf16.gmra.mxu1 %vm16719_vm9, %v16343_v7  ;;  %v2034_v18 = vadd.f32 %v2033_v60, %v1945_v47  ;;  %8219 = vmatmul.msk.f32.gmra.mxu0 %vm16722_vm14, %v16563_v15  ;;  %v2124_v54 = vpop.f32.mrf.mxu3  ;;  %v2232_v47 = vld [vmem:[%s10431_s30 + $0x168] sm:$0xff] }
 0x2e5   : > { %v2038_v26 = vpop.f32.mrf.mxu2  ;;  %2479 = vmatpush.msrb.mxu2 %v2232_v47 }
 0x2e6   : > { %v11244_v36 = vadd.f32 %v2122_v25, %v2034_v18  ;;  %v16726_v18 = vld [vmem:[#allocation81_spill] sm:$0xff] }
 0x2e7   : > { %vm16727_vm0 = vnez %v16726_v18  ;;  %2480 = vmatpush.msrb.mxu2 %v2231_v32  ;;  %v16730_v32 = vld [vmem:[#allocation68_spill] sm:$0xff]  ;;  %v2227_v18 = vld [vmem:[%s10431_s30 + $0x140] sm:$0xff] }
 0x2e8   : > { %16723 = vst [vmem:[#allocation61_spill] sm:$0xff] %v11244_v36  ;;  %v2217_v36 = vld [vmem:[%s10431_s30 + $0xf0] sm:$0xff] }
 0x2e9   : > { %v1946_v57 = vpop.f32.mrf.mxu1  ;;  %v11249_v60 = vpop.f32.mrf.mxu0  ;;  %8182 = vmatmul.msk.bf16.gmra.mxu3 %vm16727_vm0, %v16343_v7 }
 0x2ea   : > { %v1947_v16 = vadd.f32 %v1946_v57, %v16724_v6  ;;  %16725 = vst [vmem:[#allocation62_spill] sm:$0xff] %v11249_v60  ;;  %v2705_v6 = vld [vmem:[%s11268_s17] sm:$0xff] }
 0x2ec   : > { %v2036_v25 = vadd.f32 %v2035_v35, %v1947_v16  ;;  %8220 = vmatmul.msk.f32.gmra.mxu0 %vm16728_vm5, %v16563_v15  ;;  %v2230_v16 = vld [vmem:[%s10431_s30 + $0x158] sm:$0xff]  ;;  %v2127_v8 = vpop.f32.mrf.mxu3 }
 0x2ed   : > { %v2040_v35 = vpop.f32.mrf.mxu2  ;;  %2481 = vmatpush.msrb.mxu2 %v2230_v16 }
 0x2ee   : > { %v11261_v57 = vadd.f32 %v2124_v54, %v2036_v25  ;;  %v2228_v25 = vld [vmem:[%s10431_s30 + $0x148] sm:$0xff] }
 0x2ef   : > { %2482 = vmatpush.msrb.mxu2 %v2229_v44 }
 0x2f0   : > { %16729 = vst [vmem:[#allocation33_spill] sm:$0xff] %v11261_v57  ;;  %v2250_v57 = vld [vmem:[%s10431_s30 + $0x1f8] sm:$0xff] }
 0x2f1   : > { %v1949_v59 = vpop.f32.mrf.mxu1  ;;  %v11274_v47 = vpop.f32.mrf.mxu0  ;;  %2483 = vmatpush.msrb.mxu2 %v2228_v25  ;;  %2590 = vmatpush.msrb.mxu3 %v2250_v57  ;;  %v2249_v25 = vld [vmem:[%s10431_s30 + $0x1f0] sm:$0xff] }
 0x2f2   : > { %v1950_v54 = vadd.f32 %v1949_v59, %v16730_v32  ;;  %16731 = vst [vmem:[#allocation64_spill] sm:$0xff] %v11274_v47  ;;  %8136 = vmatmul.msk.bf16.gmra.mxu2 %vm16733_vm11, %v16343_v7  ;;  %v2218_v59 = vld [vmem:[%s10431_s30 + $0xf8] sm:$0xff]  ;;  %v2215_v47 = vld [vmem:[%s10431_s30 + $0xe0] sm:$0xff] }
 0x2f3   : > { %2484 = vmatpush.msrb.mxu2 %v2227_v18  ;;  %v2226_v32 = vld [vmem:[%s10431_s30 + $0x138] sm:$0xff]  ;;  %2364 = vmatpush.msrb.mxu1 %v2218_v59  ;;  %v2224_v59 = vld [vmem:[%s10431_s30 + $0x128] sm:$0xff] }
 0x2f4   : > { %8086 = vmatmul.msk.bf16.gmra.mxu1 %vm16732_vm6, %v16343_v7  ;;  %v2039_v16 = vadd.f32 %v2038_v26, %v1950_v54  ;;  %8317 = vmatmul.msk.f32.vlgmr.msrb.gmra.mxu0 %vm2744_vm13, %v2705_v6  ;;  %v2129_v4 = vpop.f32.mrf.mxu3  ;;  %v2248_v26 = vld [vmem:[%s10431_s30 + $0x1e8] sm:$0xff]  ;;  %v16735_v54 = vld [vmem:[#allocation70_spill] sm:$0xff] }
 0x2f5   : > { %v2043_v57 = vpop.f32.mrf.mxu2  ;;  %2485 = vmatpush.msrb.mxu2 %v2226_v32  ;;  %2591 = vmatpush.msrb.mxu3 %v2249_v25  ;;  %v2247_v32 = vld [vmem:[%s10431_s30 + $0x1e0] sm:$0xff] }
 0x2f6   : > { %v11286_v44 = vadd.f32 %v2127_v8, %v2039_v16  ;;  %v2706_v8 = vld [vmem:[%s11268_s17 + $0x8] sm:$0xff]  ;;  %2365 = vmatpush.msrb.mxu1 %v2217_v36  ;;  %v2223_v25 = vld [vmem:[%s10431_s30 + $0x120] sm:$0xff]  ;;  %v16737_v36 = vld [vmem:[#allocation4_spill] sm:$0xff] }
 0x2f7   : > { %2486 = vmatpush.msrb.mxu2 %v2225_v37  ;;  %2592 = vmatpush.msrb.mxu3 %v2248_v26  ;;  %vm16738_vm7 = vnez %v16737_v36  ;;  %v2246_v37 = vld [vmem:[%s10431_s30 + $0x1d8] sm:$0xff]  ;;  %v2221_v36 = vld [vmem:[%s10431_s30 + $0x110] sm:$0xff] }
 0x2f8   : > { %16734 = vst [vmem:[#allocation46_spill] sm:$0xff] %v11286_v44  ;;  %v2216_v44 = vld [vmem:[%s10431_s30 + $0xe8] sm:$0xff] }
 0x2f9   : > { %v1951_v6 = vpop.f32.mrf.mxu1  ;;  %v11296_v16 = vpop.f32.mrf.mxu0  ;;  %2366 = vmatpush.msrb.mxu1 %v2216_v44  ;;  %2487 = vmatpush.msrb.mxu2 %v2224_v59  ;;  %v2214_v44 = vld [vmem:[%s10431_s30 + $0xd8] sm:$0xff] }
 0x2fa   : > { %v1952_v18 = vadd.f32 %v1951_v6, %v16735_v54  ;;  %16736 = vst [vmem:[#allocation66_spill] sm:$0xff] %v11296_v16  ;;  %8184 = vmatmul.msk.bf16.gmra.mxu3 %vm16738_vm7, %v16343_v7  ;;  %v2222_v6 = vld [vmem:[%s10431_s30 + $0x118] sm:$0xff]  ;;  %v2245_v54 = vld [vmem:[%s10431_s30 + $0x1d0] sm:$0xff]  ;;  %v2243_v16 = vld [vmem:[%s10431_s30 + $0x1c0] sm:$0xff] }
 0x2fb   : > { %2593 = vmatpush.msrb.mxu3 %v2247_v32  ;;  %2367 = vmatpush.msrb.mxu1 %v2215_v47  ;;  %v16740_v47 = vld [vmem:[#allocation74_spill] sm:$0xff] }
 0x2fc   : > { %v2041_v60 = vadd.f32 %v2040_v35, %v1952_v18  ;;  %8318 = vmatmul.msk.f32.gmra.mxu0 %vm2744_vm13, %v2706_v8  ;;  %2488 = vmatpush.msrb.mxu2 %v2223_v25  ;;  %v2132_v35 = vpop.f32.mrf.mxu3  ;;  %v2213_v18 = vld [vmem:[%s10431_s30 + $0xd0] sm:$0xff]  ;;  %v2244_v8 = vld [vmem:[%s10431_s30 + $0x1c8] sm:$0xff] }
 0x2fd   : > { %v2045_v59 = vpop.f32.mrf.mxu2  ;;  %2594 = vmatpush.msrb.mxu3 %v2246_v37  ;;  %2368 = vmatpush.msrb.mxu1 %v2214_v44  ;;  %v2707_v25 = vld [vmem:[%s11268_s17 + $0x10] sm:$0xff]  ;;  %v2212_v37 = vld [vmem:[%s10431_s30 + $0xc8] sm:$0xff] }
 0x2fe   : > { %v11308_v26 = vadd.f32 %v2129_v4, %v2041_v60  ;;  %2489 = vmatpush.msrb.mxu2 %v2222_v6  ;;  %v2211_v6 = vld [vmem:[%s10431_s30 + $0xc0] sm:$0xff] }
 0x2ff   : > { %2595 = vmatpush.msrb.mxu3 %v2245_v54  ;;  %2369 = vmatpush.msrb.mxu1 %v2213_v18  ;;  %v2219_v54 = vld [vmem:[%s10431_s30 + $0x100] sm:$0xff]  ;;  %v2242_v18 = vld [vmem:[%s10431_s30 + $0x1b8] sm:$0xff] }
 0x300   : > { %16739 = vst [vmem:[#allocation67_spill] sm:$0xff] %v11308_v26  ;;  %2490 = vmatpush.msrb.mxu2 %v2221_v36  ;;  %v2220_v26 = vld [vmem:[%s10431_s30 + $0x108] sm:$0xff] }
 0x301   : > { %v1954_v60 = vpop.f32.mrf.mxu1  ;;  %v11317_v32 = vpop.f32.mrf.mxu0  ;;  %2596 = vmatpush.msrb.mxu3 %v2244_v8  ;;  %2370 = vmatpush.msrb.mxu1 %v2212_v37  ;;  %v2208_v37 = vld [vmem:[%s10431_s30 + $0xa8] sm:$0xff] }
 0x302   : > { %v1955_v4 = vadd.f32 %v1954_v60, %v16740_v47  ;;  %8138 = vmatmul.msk.bf16.gmra.mxu2 %vm16742_vm2, %v16343_v7 }
 0x303   : > { %2491 = vmatpush.msrb.mxu2 %v2220_v26  ;;  %2597 = vmatpush.msrb.mxu3 %v2243_v16  ;;  %v2708_v26 = vld [vmem:[%s11268_s17 + $0x18] sm:$0xff]  ;;  %v2240_v16 = vld [vmem:[%s10431_s30 + $0x1a8] sm:$0xff] }
 0x304   : > { %8088 = vmatmul.msk.bf16.gmra.mxu1 %vm16741_vm15, %v16343_v7  ;;  %v2044_v44 = vadd.f32 %v2043_v57, %v1955_v4  ;;  %8319 = vmatmul.msk.f32.gmra.mxu0 %vm2744_vm13, %v2707_v25  ;;  %v2134_v60 = vpop.f32.mrf.mxu3  ;;  %v2209_v57 = vld [vmem:[%s10431_s30 + $0xb0] sm:$0xff] }
 0x305   : > { %v2048_v8 = vpop.f32.mrf.mxu2  ;;  %2371 = vmatpush.msrb.mxu1 %v2211_v6  ;;  %2492 = vmatpush.msrb.mxu2 %v2219_v54  ;;  %v16744_v4 = vld [vmem:[#allocation76_spill] sm:$0xff]  ;;  %v2239_v6 = vld [vmem:[%s10431_s30 + $0x1a0] sm:$0xff] }
 0x306   : > { %v11333_v36 = vadd.f32 %v2132_v35, %v2044_v44  ;;  %2598 = vmatpush.msrb.mxu3 %v2242_v18  ;;  %v2207_v54 = vld [vmem:[%s10431_s30 + $0xa0] sm:$0xff] }
 0x307   : > { %2372 = vmatpush.msrb.mxu1 %v2210_v14  ;;  %v2238_v14 = vld [vmem:[%s10431_s30 + $0x198] sm:$0xff] }
 0x308   : > { %16743 = vst [vmem:[#allocation48_spill] sm:$0xff] %v11333_v36  ;;  %2599 = vmatpush.msrb.mxu3 %v2241_v13 }
 0x309   : > { %v1956_v47 = vpop.f32.mrf.mxu1  ;;  %v11339_v25 = vpop.f32.mrf.mxu0  ;;  %2373 = vmatpush.msrb.mxu1 %v2209_v57 }
 0x30a   : > { %v1957_v35 = vadd.f32 %v1956_v47, %v16744_v4  ;;  %8186 = vmatmul.msk.bf16.gmra.mxu3 %vm16745_vm8, %v16343_v7  ;;  %v16747_v4 = vld [vmem:[#allocation30_spill] sm:$0xff] }
 0x30b   : > { %2600 = vmatpush.msrb.mxu3 %v2240_v16  ;;  %2374 = vmatpush.msrb.mxu1 %v2208_v37  ;;  %v2205_v16 = vld [vmem:[%s10431_s30 + $0x90] sm:$0xff]  ;;  %v2236_v37 = vld [vmem:[%s10431_s30 + $0x188] sm:$0xff] }
 0x30c   : > { %v2046_v44 = vadd.f32 %v2045_v59, %v1957_v35  ;;  %8320 = vmatmul.msk.f32.gmra.mxu0 %vm2744_vm13, %v2708_v26  ;;  %v2137_v57 = vpop.f32.mrf.mxu3  ;;  %v2206_v59 = vld [vmem:[%s10431_s30 + $0x98] sm:$0xff] }
 0x30d   : > { %v2050_v13 = vpop.f32.mrf.mxu2  ;;  %2601 = vmatpush.msrb.mxu3 %v2239_v6  ;;  %2375 = vmatpush.msrb.mxu1 %v2207_v54  ;;  %v2204_v6 = vld [vmem:[%s10431_s30 + $0x88] sm:$0xff]  ;;  %v2235_v54 = vld [vmem:[%s10431_s30 + $0x180] sm:$0xff] }
 0x30e   : > { %v11350_v18 = vadd.f32 %v2134_v60, %v2046_v44  ;;  %v2709_v60 = vld [vmem:[%s11268_s17 + $0x20] sm:$0xff] }
 0x30f   : > { %2602 = vmatpush.msrb.mxu3 %v2238_v14  ;;  %2376 = vmatpush.msrb.mxu1 %v2206_v59  ;;  %v2203_v59 = vld [vmem:[%s10431_s30 + $0x80] sm:$0xff] }
 0x310   : > { %16746 = vst [vmem:[#allocation69_spill] sm:$0xff] %v11350_v18 }
 0x311   : > { %v1959_v47 = vpop.f32.mrf.mxu1  ;;  %v11356_v26 = vpop.f32.mrf.mxu0  ;;  %2603 = vmatpush.msrb.mxu3 %v2237_v12  ;;  %2377 = vmatpush.msrb.mxu1 %v2205_v16 }
 0x312   : > { %v1960_v35 = vadd.f32 %v1959_v47, %v16747_v4  ;;  %8140 = vmatmul.msk.bf16.gmra.mxu2 %vm10836_vm10, %v16343_v7  ;;  %vm16751_vm10 = vnez %v16581_v63  ;;  %v16755_v63 = vld [vmem:[#allocation2_spill] sm:$0xff] }
 0x313   : > { %2604 = vmatpush.msrb.mxu3 %v2236_v37  ;;  %2378 = vmatpush.msrb.mxu1 %v2204_v6  ;;  %vm16763_vm4 = vcmp.eq.s32.totalorder %v16755_v63, %v9700_v23 }
 0x314   : > { %8090 = vmatmul.msk.bf16.gmra.mxu1 %vm10826_vm3, %v16343_v7  ;;  %v2049_v44 = vadd.f32 %v2048_v8, %v1960_v35  ;;  %8321 = vmatmul.msk.f32.gmra.mxu0 %vm2744_vm13, %v2709_v60  ;;  %v2139_v47 = vpop.f32.mrf.mxu3  ;;  %v2710_v35 = vld [vmem:[%s11268_s17 + $0x28] sm:$0xff] }
 0x315   : > { %v2053_v12 = vpop.f32.mrf.mxu2  ;;  %2605 = vmatpush.msrb.mxu3 %v2235_v54  ;;  %2379 = vmatpush.msrb.mxu1 %v2203_v59  ;;  %v2711_v59 = vld [vmem:[%s11268_s17 + $0x30] sm:$0xff] }
 0x316   : > { %v11370_v14 = vadd.f32 %v2137_v57, %v2049_v44  ;;  %v16753_v44 = vld [vmem:[#allocation80_spill] sm:$0xff] }
 0x318   : > { %16748 = vst [vmem:[#allocation50_spill] sm:$0xff] %v11370_v14 }
 0x319   : > { %v1961_v62 = vpop.f32.mrf.mxu1  ;;  %v11374_v8 = vpop.f32.mrf.mxu0 }
 0x31a   : > { %v1962_v4 = vadd.f32 %v1961_v62, %v16749_v49  ;;  %16750 = vst [vmem:[#allocation72_spill] sm:$0xff] %v11374_v8  ;;  %8188 = vmatmul.msk.bf16.gmra.mxu3 %vm16751_vm10, %v16343_v7 }
 0x31c   : > { %v2051_v18 = vadd.f32 %v2050_v13, %v1962_v4  ;;  %8322 = vmatmul.msk.f32.gmra.mxu0 %vm2744_vm13, %v2710_v35  ;;  %v2142_v16 = vpop.f32.mrf.mxu3  ;;  %v16756_v13 = vld [vmem:[#allocation39_spill] sm:$0xff]  ;;  %v16759_v35 = vld [vmem:[#allocation82_spill] sm:$0xff] }
 0x31d   : > { %v2055_v60 = vpop.f32.mrf.mxu2  ;;  %vm16757_vm3 = vcmp.eq.s32.totalorder %v16755_v63, %v16756_v13 }
 0x31e   : > { %v11381_v57 = vadd.f32 %v2139_v47, %v2051_v18 }
 0x320   : > { %16752 = vst [vmem:[#allocation73_spill] sm:$0xff] %v11381_v57 }
 0x321   : > { %v1964_v37 = vpop.f32.mrf.mxu1  ;;  %v11384_v54 = vpop.f32.mrf.mxu0 }
 0x322   : > { %v1965_v6 = vadd.f32 %v1964_v37, %v16753_v44  ;;  %16754 = vst [vmem:[#allocation52_spill] sm:$0xff] %v11384_v54  ;;  %8253 = vmatmul.msk.f32.vlgmr.msrb.gmra.mxu2 %vm16757_vm3, %v16563_v15 }
 0x324   : > { %8092 = vmatmul.msk.bf16.gmra.mxu1 %vm10891_vm12, %v16343_v7  ;;  %v2054_v18 = vadd.f32 %v2053_v12, %v1965_v6  ;;  %8323 = vmatmul.msk.f32.gmra.mxu0 %vm2744_vm13, %v2711_v59  ;;  %v2144_v49 = vpop.f32.mrf.mxu3  ;;  %v16761_v7 = vld [vmem:[#allocation3_spill] sm:$0xff] }
 0x325   : > { %v2058_v62 = vpop.f32.mrf.mxu2  ;;  %vm16762_vm12 = vcmp.eq.s32.totalorder %v16761_v7, %v16756_v13  ;;  %vm16771_vm14 = vcmp.eq.s32.totalorder %v16761_v7, %v9700_v23 }
 0x326   : > { %v11395_v47 = vadd.f32 %v2142_v16, %v2054_v18  ;;  %v16765_v18 = vld [vmem:[#allocation18_spill] sm:$0xff] }
 0x328   : > { %16758 = vst [vmem:[#allocation75_spill] sm:$0xff] %v11395_v47  ;;  %v2713_v47 = vld [vmem:[%s11268_s17 + $0x40] sm:$0xff] }
 0x329   : > { %v1966_v4 = vpop.f32.mrf.mxu1  ;;  %v11398_v44 = vpop.f32.mrf.mxu0 }
 0x32a   : > { %v1967_v37 = vadd.f32 %v1966_v4, %v16759_v35  ;;  %16760 = vst [vmem:[#allocation56_spill] sm:$0xff] %v11398_v44  ;;  %8254 = vmatmul.msk.f32.gmra.mxu2 %vm16762_vm12, %v16563_v15  ;;  %8285 = vmatmul.msk.f32.vlgmr.msrb.gmra.mxu3 %vm16763_vm4, %v16563_v15  ;;  %vm16797_vm12 = vcmp.eq.s32.totalorder %v9340_v1, %v16756_v13 }
 0x32c   : > { %v2056_v57 = vadd.f32 %v2055_v60, %v1967_v37  ;;  %8324 = vmatmul.msk.f32.gmra.mxu0 %vm2744_vm13, %v2712_v34  ;;  %v2147_v6 = vpop.f32.mrf.mxu3  ;;  %v16767_v60 = vld [vmem:[#allocation40_spill] sm:$0xff]  ;;  %v16769_v37 = vld [vmem:[#allocation5_spill] sm:$0xff] }
 0x32d   : > { %v2060_v16 = vpop.f32.mrf.mxu2  ;;  %vm16768_vm9 = vcmp.eq.s32.totalorder %v16755_v63, %v16767_v60  ;;  %vm16770_vm1 = vcmp.eq.s32.totalorder %v16769_v37, %v16756_v13  ;;  %vm16775_vm0 = vcmp.eq.s32.totalorder %v16761_v7, %v16767_v60  ;;  %vm16778_vm6 = vcmp.eq.s32.totalorder %v16769_v37, %v9700_v23 }
 0x32e   : > { %v11410_v12 = vadd.f32 %v2144_v49, %v2056_v57  ;;  %vm16782_vm11 = vcmp.eq.s32.totalorder %v16769_v37, %v16767_v60 }
 0x330   : > { %16764 = vst [vmem:[#allocation58_spill] sm:$0xff] %v11410_v12 }
 0x331   : > { %v1969_v59 = vpop.f32.mrf.mxu1  ;;  %v11413_v35 = vpop.f32.mrf.mxu0 }
 0x332   : > { %v1970_v4 = vadd.f32 %v1969_v59, %v16765_v18  ;;  %16766 = vst [vmem:[#allocation32_spill] sm:$0xff] %v11413_v35  ;;  %8255 = vmatmul.msk.f32.gmra.mxu2 %vm16770_vm1, %v16563_v15  ;;  %8286 = vmatmul.msk.f32.gmra.mxu3 %vm16771_vm14, %v16563_v15  ;;  %v16773_v18 = vld [vmem:[#allocation84_spill] sm:$0xff]  ;;  %v2714_v35 = vld [vmem:[%s11268_s17 + $0x48] sm:$0xff]  ;;  %vm16803_vm1 = vcmp.eq.s32.totalorder %v9343_v3, %v16756_v13 }
 0x333   : > { %vm16804_vm14 = vcmp.eq.s32.totalorder %v9340_v1, %v9700_v23 }
 0x334   : > { %8221 = vmatmul.msk.f32.vlgmr.msrb.gmra.mxu1 %vm16768_vm9, %v16563_v15  ;;  %v2059_v57 = vadd.f32 %v2058_v62, %v1970_v4  ;;  %8325 = vmatmul.msk.f32.gmra.mxu0 %vm2744_vm13, %v2713_v47  ;;  %v2149_v59 = vpop.f32.mrf.mxu3  ;;  %v16776_v47 = vld [vmem:[#allocation6_spill] sm:$0xff] }
 0x335   : > { %v2063_v34 = vpop.f32.mrf.mxu2  ;;  %vm16777_vm5 = vcmp.eq.s32.totalorder %v16776_v47, %v16756_v13  ;;  %vm16785_vm15 = vcmp.eq.s32.totalorder %v16776_v47, %v9700_v23  ;;  %vm16789_vm2 = vcmp.eq.s32.totalorder %v16776_v47, %v16767_v60 }
 0x336   : > { %v11429_v49 = vadd.f32 %v2147_v6, %v2059_v57 }
 0x338   : > { %16772 = vst [vmem:[#allocation63_spill] sm:$0xff] %v11429_v49 }
 0x339   : > { %v1971_v63 = vpop.f32.mrf.mxu1  ;;  %v11432_v14 = vpop.f32.mrf.mxu0 }
 0x33a   : > { %v1972_v12 = vadd.f32 %v1971_v63, %v16773_v18  ;;  %16774 = vst [vmem:[#allocation12_spill] sm:$0xff] %v11432_v14  ;;  %8256 = vmatmul.msk.f32.gmra.mxu2 %vm16777_vm5, %v16563_v15  ;;  %8287 = vmatmul.msk.f32.gmra.mxu3 %vm16778_vm6, %v16563_v15  ;;  %v16780_v63 = vld [vmem:[#allocation26_spill] sm:$0xff]  ;;  %v2715_v14 = vld [vmem:[%s11268_s17 + $0x50] sm:$0xff]  ;;  %vm16809_vm5 = vcmp.eq.s32.totalorder %v9253_v52, %v16756_v13 }
 0x33b   : > { %vm16810_vm6 = vcmp.eq.s32.totalorder %v9343_v3, %v9700_v23 }
 0x33c   : > { %8222 = vmatmul.msk.f32.gmra.mxu1 %vm16775_vm0, %v16563_v15  ;;  %v2061_v62 = vadd.f32 %v2060_v16, %v1972_v12  ;;  %8326 = vmatmul.msk.f32.gmra.mxu0 %vm2744_vm13, %v2714_v35  ;;  %v2152_v57 = vpop.f32.mrf.mxu3  ;;  %v16783_v12 = vld [vmem:[#allocation10_spill] sm:$0xff]  ;;  %vm16808_vm0 = vcmp.eq.s32.totalorder %v9340_v1, %v16767_v60 }
 0x33d   : > { %v2065_v4 = vpop.f32.mrf.mxu2  ;;  %vm16784_vm7 = vcmp.eq.s32.totalorder %v16783_v12, %v16756_v13  ;;  %vm16792_vm10 = vcmp.eq.s32.totalorder %v16783_v12, %v9700_v23  ;;  %vm16796_vm3 = vcmp.eq.s32.totalorder %v16783_v12, %v16767_v60 }
 0x33e   : > { %v11448_v6 = vadd.f32 %v2149_v59, %v2061_v62 }
 0x340   : > { %16779 = vst [vmem:[#allocation13_spill] sm:$0xff] %v11448_v6 }
 0x341   : > { %v1974_v7 = vpop.f32.mrf.mxu1  ;;  %v11451_v49 = vpop.f32.mrf.mxu0 }
 0x342   : > { %v1975_v18 = vadd.f32 %v1974_v7, %v16780_v63  ;;  %16781 = vst [vmem:[#allocation65_spill] sm:$0xff] %v11451_v49  ;;  %8257 = vmatmul.msk.f32.gmra.mxu2 %vm16784_vm7, %v16563_v15  ;;  %8288 = vmatmul.msk.f32.gmra.mxu3 %vm16785_vm15, %v16563_v15  ;;  %v16787_v7 = vld [vmem:[#allocation86_spill] sm:$0xff]  ;;  %v2716_v49 = vld [vmem:[%s11268_s17 + $0x58] sm:$0xff]  ;;  %vm16814_vm7 = vcmp.eq.s32.totalorder %v9256_v53, %v16756_v13 }
 0x343   : > { %vm16815_vm15 = vcmp.eq.s32.totalorder %v9253_v52, %v9700_v23 }
 0x344   : > { %8223 = vmatmul.msk.f32.gmra.mxu1 %vm16782_vm11, %v16563_v15  ;;  %v2064_v16 = vadd.f32 %v2063_v34, %v1975_v18  ;;  %8327 = vmatmul.msk.f32.gmra.mxu0 %vm2744_vm13, %v2715_v14  ;;  %v2154_v62 = vpop.f32.mrf.mxu3  ;;  %v16790_v14 = vld [vmem:[#allocation11_spill] sm:$0xff]  ;;  %vm16813_vm11 = vcmp.eq.s32.totalorder %v9343_v3, %v16767_v60 }
 0x345   : > { %v2068_v59 = vpop.f32.mrf.mxu2  ;;  %vm16791_vm8 = vcmp.eq.s32.totalorder %v16790_v14, %v16756_v13  ;;  %vm16798_vm4 = vcmp.eq.s32.totalorder %v16790_v14, %v9700_v23  ;;  %vm16802_vm9 = vcmp.eq.s32.totalorder %v16790_v14, %v16767_v60 }
 0x346   : > { %v11467_v35 = vadd.f32 %v2152_v57, %v2064_v16 }
 0x348   : > { %16786 = vst [vmem:[#allocation81_spill] sm:$0xff] %v11467_v35 }
 0x349   : > { %v1976_v37 = vpop.f32.mrf.mxu1  ;;  %v11470_v6 = vpop.f32.mrf.mxu0 }
 0x34a   : > { %v1977_v63 = vadd.f32 %v1976_v37, %v16787_v7  ;;  %16788 = vst [vmem:[#allocation68_spill] sm:$0xff] %v11470_v6  ;;  %8258 = vmatmul.msk.f32.gmra.mxu2 %vm16791_vm8, %v16563_v15  ;;  %8289 = vmatmul.msk.f32.gmra.mxu3 %vm16792_vm10, %v16563_v15  ;;  %v16794_v37 = vld [vmem:[#allocation34_spill] sm:$0xff]  ;;  %vm16818_vm8 = vcmp.eq.s32.totalorder %v16406_v10, %v16756_v13 }
 0x34b   : > { %v2717_v6 = vld [vmem:[%s11268_s17 + $0x60] sm:$0xff]  ;;  %vm16819_vm10 = vcmp.eq.s32.totalorder %v9256_v53, %v9700_v23 }
 0x34c   : > { %8224 = vmatmul.msk.f32.gmra.mxu1 %vm16789_vm2, %v16563_v15  ;;  %v2066_v34 = vadd.f32 %v2065_v4, %v1977_v63  ;;  %8328 = vmatmul.msk.f32.gmra.mxu0 %vm2744_vm13, %v2716_v49  ;;  %v2157_v16 = vpop.f32.mrf.mxu3  ;;  %vm16817_vm2 = vcmp.eq.s32.totalorder %v9253_v52, %v16767_v60 }
 0x34d   : > { %v2070_v18 = vpop.f32.mrf.mxu2 }
 0x34e   : > { %v11486_v57 = vadd.f32 %v2154_v62, %v2066_v34  ;;  %v16800_v34 = vld [vmem:[#allocation88_spill] sm:$0xff] }
 0x350   : > { %16793 = vst [vmem:[#allocation70_spill] sm:$0xff] %v11486_v57  ;;  %v2718_v57 = vld [vmem:[%s11268_s17 + $0x68] sm:$0xff] }
 0x351   : > { %v1979_v47 = vpop.f32.mrf.mxu1  ;;  %v11489_v35 = vpop.f32.mrf.mxu0 }
 0x352   : > { %v1980_v7 = vadd.f32 %v1979_v47, %v16794_v37  ;;  %16795 = vst [vmem:[#allocation4_spill] sm:$0xff] %v11489_v35  ;;  %8259 = vmatmul.msk.f32.gmra.mxu2 %vm16797_vm12, %v16563_v15  ;;  %8290 = vmatmul.msk.f32.gmra.mxu3 %vm16798_vm4, %v16563_v15  ;;  %vm16822_vm12 = vcmp.eq.s32.totalorder %v16407_v11, %v16756_v13 }
 0x353   : > { %vm16823_vm4 = vcmp.eq.s32.totalorder %v16406_v10, %v9700_v23 }
 0x354   : > { %8225 = vmatmul.msk.f32.gmra.mxu1 %vm16796_vm3, %v16563_v15  ;;  %v2069_v49 = vadd.f32 %v2068_v59, %v1980_v7  ;;  %8329 = vmatmul.msk.f32.gmra.mxu0 %vm2744_vm13, %v2717_v6  ;;  %v2159_v63 = vpop.f32.mrf.mxu3  ;;  %vm16821_vm3 = vcmp.eq.s32.totalorder %v9256_v53, %v16767_v60 }
 0x355   : > { %v2073_v62 = vpop.f32.mrf.mxu2 }
 0x356   : > { %v11505_v4 = vadd.f32 %v2157_v16, %v2069_v49  ;;  %v16806_v49 = vld [vmem:[#allocation90_spill] sm:$0xff] }
 0x358   : > { %16799 = vst [vmem:[#allocation74_spill] sm:$0xff] %v11505_v4  ;;  %v2719_v4 = vld [vmem:[%s11268_s17 + $0x70] sm:$0xff] }
 0x359   : > { %v1981_v12 = vpop.f32.mrf.mxu1  ;;  %v11508_v37 = vpop.f32.mrf.mxu0 }
 0x35a   : > { %v1982_v47 = vadd.f32 %v1981_v12, %v16800_v34  ;;  %16801 = vst [vmem:[#allocation76_spill] sm:$0xff] %v11508_v37  ;;  %8260 = vmatmul.msk.f32.gmra.mxu2 %vm16803_vm1, %v16563_v15  ;;  %8291 = vmatmul.msk.f32.gmra.mxu3 %vm16804_vm14, %v16563_v15  ;;  %vm16826_vm1 = vcmp.eq.s32.totalorder %v16423_v29, %v16756_v13 }
 0x35b   : > { %vm16827_vm14 = vcmp.eq.s32.totalorder %v16407_v11, %v9700_v23 }
 0x35c   : > { %8226 = vmatmul.msk.f32.gmra.mxu1 %vm16802_vm9, %v16563_v15  ;;  %v2071_v6 = vadd.f32 %v2070_v18, %v1982_v47  ;;  %8330 = vmatmul.msk.f32.gmra.mxu0 %vm2744_vm13, %v2718_v57  ;;  %v2162_v7 = vpop.f32.mrf.mxu3  ;;  %vm16825_vm9 = vcmp.eq.s32.totalorder %v16406_v10, %v16767_v60 }
 0x35d   : > { %v2075_v16 = vpop.f32.mrf.mxu2 }
 0x35e   : > { %v11524_v59 = vadd.f32 %v2159_v63, %v2071_v6 }
 0x360   : > { %16805 = vst [vmem:[#allocation30_spill] sm:$0xff] %v11524_v59 }
 0x361   : > { %v1984_v14 = vpop.f32.mrf.mxu1  ;;  %v11527_v34 = vpop.f32.mrf.mxu0 }
 0x362   : > { %v1985_v12 = vadd.f32 %v1984_v14, %v16806_v49  ;;  %16807 = vst [vmem:[#allocation78_spill] sm:$0xff] %v11527_v34  ;;  %8261 = vmatmul.msk.f32.gmra.mxu2 %vm16809_vm5, %v16563_v15  ;;  %8292 = vmatmul.msk.f32.gmra.mxu3 %vm16810_vm6, %v16563_v15  ;;  %v2720_v49 = vld [vmem:[%s11268_s17 + $0x78] sm:$0xff]  ;;  %vm16830_vm5 = vcmp.eq.s32.totalorder %v16424_v39, %v16756_v13 }
 0x363   : > { %vm16831_vm6 = vcmp.eq.s32.totalorder %v16423_v29, %v9700_v23 }
 0x364   : > { %8227 = vmatmul.msk.f32.gmra.mxu1 %vm16808_vm0, %v16563_v15  ;;  %v2074_v57 = vadd.f32 %v2073_v62, %v1985_v12  ;;  %8331 = vmatmul.msk.f32.gmra.mxu0 %vm2744_vm13, %v2719_v4  ;;  %v2164_v47 = vpop.f32.mrf.mxu3  ;;  %vm16829_vm0 = vcmp.eq.s32.totalorder %v16407_v11, %v16767_v60 }
 0x365   : > { %v2078_v63 = vpop.f32.mrf.mxu2 }
 0x366   : > { %v11543_v18 = vadd.f32 %v2162_v7, %v2074_v57 }
 0x368   : > { %16811 = vst [vmem:[#allocation80_spill] sm:$0xff] %v11543_v18 }
 0x369   : > { %v1986_v1 = vpop.f32.mrf.mxu1  ;;  %v11546_v14 = vpop.f32.mrf.mxu0 }
 0x36a   : > { %v1987_v6 = vadd.f32 %v1986_v1, %v10911_v46  ;;  %16812 = vst [vmem:[#allocation2_spill] sm:$0xff] %v11546_v14  ;;  %8262 = vmatmul.msk.f32.gmra.mxu2 %vm16814_vm7, %v16563_v15  ;;  %8293 = vmatmul.msk.f32.gmra.mxu3 %vm16815_vm15, %v16563_v15  ;;  %v2721_v1 = vld [vmem:[%s11268_s17 + $0x80] sm:$0xff]  ;;  %vm16834_vm7 = vcmp.eq.s32.totalorder %v16610_v22, %v16756_v13 }
 0x36b   : > { %vm16835_vm15 = vcmp.eq.s32.totalorder %v16424_v39, %v9700_v23 }
 0x36c   : > { %8228 = vmatmul.msk.f32.gmra.mxu1 %vm16813_vm11, %v16563_v15  ;;  %v2076_v4 = vadd.f32 %v2075_v16, %v1987_v6  ;;  %8332 = vmatmul.msk.f32.gmra.mxu0 %vm2744_vm13, %v2720_v49  ;;  %v2167_v7 = vpop.f32.mrf.mxu3  ;;  %vm16833_vm11 = vcmp.eq.s32.totalorder %v16423_v29, %v16767_v60 }
 0x36d   : > { %v2080_v62 = vpop.f32.mrf.mxu2 }
 0x36e   : > { %v11562_v46 = vadd.f32 %v2164_v47, %v2076_v4 }
 0x370   : > { %16816 = vst [vmem:[#allocation39_spill] sm:$0xff] %v11562_v46 }
 0x371   : > { %v1989_v3 = vpop.f32.mrf.mxu1  ;;  %v11565_v57 = vpop.f32.mrf.mxu0 }
 0x372   : > { %v1990_v12 = vadd.f32 %v1989_v3, %v10923_v27  ;;  %8263 = vmatmul.msk.f32.gmra.mxu2 %vm16818_vm8, %v16563_v15  ;;  %8294 = vmatmul.msk.f32.gmra.mxu3 %vm16819_vm10, %v16563_v15  ;;  %v2722_v3 = vld [vmem:[%s11268_s17 + $0x88] sm:$0xff]  ;;  %vm16838_vm8 = vcmp.eq.s32.totalorder %v16616_v41, %v16756_v13  ;;  %vm16839_vm10 = vcmp.eq.s32.totalorder %v16610_v22, %v9700_v23 }
 0x374   : > { %8229 = vmatmul.msk.f32.gmra.mxu1 %vm16817_vm2, %v16563_v15  ;;  %v2079_v16 = vadd.f32 %v2078_v63, %v1990_v12  ;;  %8333 = vmatmul.msk.f32.gmra.mxu0 %vm2744_vm13, %v2721_v1  ;;  %v2169_v6 = vpop.f32.mrf.mxu3  ;;  %vm16837_vm2 = vcmp.eq.s32.totalorder %v16424_v39, %v16767_v60 }
 0x375   : > { %v2083_v47 = vpop.f32.mrf.mxu2 }
 0x376   : > { %v11581_v27 = vadd.f32 %v2167_v7, %v2079_v16 }
 0x378   : > { %16820 = vst [vmem:[#allocation82_spill] sm:$0xff] %v11581_v27  ;;  %v2735_v27 = vld [vmem:[%s11268_s17 + $0xf0] sm:$0xff] }
 0x379   : > { %v1991_v52 = vpop.f32.mrf.mxu1  ;;  %v11584_v4 = vpop.f32.mrf.mxu0 }
 0x37a   : > { %v1992_v49 = vadd.f32 %v1991_v52, %v10938_v58  ;;  %8264 = vmatmul.msk.f32.gmra.mxu2 %vm16822_vm12, %v16563_v15  ;;  %8295 = vmatmul.msk.f32.gmra.mxu3 %vm16823_vm4, %v16563_v15  ;;  %v2723_v52 = vld [vmem:[%s11268_s17 + $0x90] sm:$0xff]  ;;  %vm16842_vm12 = vcmp.eq.s32.totalorder %v16624_v38, %v16756_v13  ;;  %vm16843_vm4 = vcmp.eq.s32.totalorder %v16616_v41, %v9700_v23 }
 0x37c   : > { %8230 = vmatmul.msk.f32.gmra.mxu1 %vm16821_vm3, %v16563_v15  ;;  %v2081_v63 = vadd.f32 %v2080_v62, %v1992_v49  ;;  %8334 = vmatmul.msk.f32.gmra.mxu0 %vm2744_vm13, %v2722_v3  ;;  %vm16841_vm3 = vcmp.eq.s32.totalorder %v16610_v22, %v16767_v60 }
 0x37d   : > { %v2085_v7 = vpop.f32.mrf.mxu2  ;;  %v2172_v12 = vpop.f32.mrf.mxu3 }
 0x37e   : > { %v11600_v58 = vadd.f32 %v2169_v6, %v2081_v63 }
 0x380   : > { %16824 = vst [vmem:[#allocation3_spill] sm:$0xff] %v11600_v58  ;;  %v2734_v58 = vld [vmem:[%s11268_s17 + $0xe8] sm:$0xff] }
 0x381   : > { %v1994_v53 = vpop.f32.mrf.mxu1  ;;  %v11603_v16 = vpop.f32.mrf.mxu0 }
 0x382   : > { %v1995_v1 = vadd.f32 %v1994_v53, %v10950_v61  ;;  %8265 = vmatmul.msk.f32.gmra.mxu2 %vm16826_vm1, %v16563_v15  ;;  %8296 = vmatmul.msk.f32.gmra.mxu3 %vm16827_vm14, %v16563_v15  ;;  %v2724_v53 = vld [vmem:[%s11268_s17 + $0x98] sm:$0xff]  ;;  %vm16846_vm1 = vcmp.eq.s32.totalorder %v16631_v40, %v16756_v13  ;;  %vm16847_vm14 = vcmp.eq.s32.totalorder %v16624_v38, %v9700_v23 }
 0x384   : > { %8231 = vmatmul.msk.f32.gmra.mxu1 %vm16825_vm9, %v16563_v15  ;;  %v2084_v62 = vadd.f32 %v2083_v47, %v1995_v1  ;;  %8335 = vmatmul.msk.f32.gmra.mxu0 %vm2744_vm13, %v2723_v52  ;;  %vm16845_vm9 = vcmp.eq.s32.totalorder %v16616_v41, %v16767_v60 }
 0x385   : > { %v2088_v6 = vpop.f32.mrf.mxu2  ;;  %v2174_v49 = vpop.f32.mrf.mxu3 }
 0x386   : > { %v11619_v61 = vadd.f32 %v2172_v12, %v2084_v62 }
 0x388   : > { %16828 = vst [vmem:[#allocation18_spill] sm:$0xff] %v11619_v61  ;;  %v2733_v61 = vld [vmem:[%s11268_s17 + $0xe0] sm:$0xff] }
 0x389   : > { %v1996_v10 = vpop.f32.mrf.mxu1  ;;  %v11622_v63 = vpop.f32.mrf.mxu0 }
 0x38a   : > { %v1997_v3 = vadd.f32 %v1996_v10, %v10965_v28  ;;  %8266 = vmatmul.msk.f32.gmra.mxu2 %vm16830_vm5, %v16563_v15  ;;  %8297 = vmatmul.msk.f32.gmra.mxu3 %vm16831_vm6, %v16563_v15  ;;  %v2725_v10 = vld [vmem:[%s11268_s17 + $0xa0] sm:$0xff]  ;;  %vm16852_vm6 = vcmp.eq.s32.totalorder %v16631_v40, %v9700_v23 }
 0x38c   : > { %8232 = vmatmul.msk.f32.gmra.mxu1 %vm16829_vm0, %v16563_v15  ;;  %v2086_v47 = vadd.f32 %v2085_v7, %v1997_v3  ;;  %8336 = vmatmul.msk.f32.gmra.mxu0 %vm2744_vm13, %v2724_v53  ;;  %vm16849_vm0 = vcmp.eq.s32.totalorder %v16624_v38, %v16767_v60 }
 0x38d   : > { %v2090_v12 = vpop.f32.mrf.mxu2  ;;  %v2177_v1 = vpop.f32.mrf.mxu3 }
 0x38e   : > { %v11638_v28 = vadd.f32 %v2174_v49, %v2086_v47 }
 0x390   : > { %16832 = vst [vmem:[#allocation40_spill] sm:$0xff] %v11638_v28  ;;  %v2732_v28 = vld [vmem:[%s11268_s17 + $0xd8] sm:$0xff] }
 0x391   : > { %v1999_v11 = vpop.f32.mrf.mxu1  ;;  %v11641_v62 = vpop.f32.mrf.mxu0 }
 0x392   : > { %v2000_v52 = vadd.f32 %v1999_v11, %v10977_v24  ;;  %8267 = vmatmul.msk.f32.gmra.mxu2 %vm16834_vm7, %v16563_v15  ;;  %8298 = vmatmul.msk.f32.gmra.mxu3 %vm16835_vm15, %v16563_v15  ;;  %v2726_v11 = vld [vmem:[%s11268_s17 + $0xa8] sm:$0xff]  ;;  %vm16856_vm7 = vcmp.eq.s32.totalorder %v16647_v2, %v16756_v13 }
 0x394   : > { %8233 = vmatmul.msk.f32.gmra.mxu1 %vm16833_vm11, %v16563_v15  ;;  %v2089_v7 = vadd.f32 %v2088_v6, %v2000_v52  ;;  %8337 = vmatmul.msk.f32.gmra.mxu0 %vm2744_vm13, %v2725_v10  ;;  %vm16855_vm11 = vcmp.eq.s32.totalorder %v16631_v40, %v16767_v60 }
 0x395   : > { %v2093_v49 = vpop.f32.mrf.mxu2  ;;  %v2179_v3 = vpop.f32.mrf.mxu3 }
 0x396   : > { %v11657_v24 = vadd.f32 %v2177_v1, %v2089_v7 }
 0x398   : > { %16836 = vst [vmem:[#allocation5_spill] sm:$0xff] %v11657_v24 }
 0x399   : > { %v2001_v29 = vpop.f32.mrf.mxu1  ;;  %v11660_v47 = vpop.f32.mrf.mxu0 }
 0x39a   : > { %v2002_v53 = vadd.f32 %v2001_v29, %v10992_v50  ;;  %8268 = vmatmul.msk.f32.gmra.mxu2 %vm16838_vm8, %v16563_v15  ;;  %8299 = vmatmul.msk.f32.gmra.mxu3 %vm16839_vm10, %v16563_v15  ;;  %v2727_v29 = vld [vmem:[%s11268_s17 + $0xb0] sm:$0xff]  ;;  %vm16863_vm10 = vcmp.eq.s32.totalorder %v16647_v2, %v9700_v23 }
 0x39c   : > { %8234 = vmatmul.msk.f32.gmra.mxu1 %vm16837_vm2, %v16563_v15  ;;  %v2091_v6 = vadd.f32 %v2090_v12, %v2002_v53  ;;  %8338 = vmatmul.msk.f32.gmra.mxu0 %vm2744_vm13, %v2726_v11 }
 0x39d   : > { %v2095_v1 = vpop.f32.mrf.mxu2  ;;  %v2182_v52 = vpop.f32.mrf.mxu3 }
 0x39e   : > { %v11676_v50 = vadd.f32 %v2179_v3, %v2091_v6 }
 0x3a0   : > { %16840 = vst [vmem:[#allocation84_spill] sm:$0xff] %v11676_v50  ;;  %v2731_v50 = vld [vmem:[%s11268_s17 + $0xd0] sm:$0xff] }
 0x3a1   : > { %v2004_v39 = vpop.f32.mrf.mxu1  ;;  %v11679_v7 = vpop.f32.mrf.mxu0 }
 0x3a2   : > { %v2005_v10 = vadd.f32 %v2004_v39, %v11004_v19  ;;  %8269 = vmatmul.msk.f32.gmra.mxu2 %vm16842_vm12, %v16563_v15  ;;  %8300 = vmatmul.msk.f32.gmra.mxu3 %vm16843_vm4, %v16563_v15  ;;  %v2728_v39 = vld [vmem:[%s11268_s17 + $0xb8] sm:$0xff]  ;;  %vm16867_vm12 = vcmp.eq.s32.totalorder %v16662_v17, %v16756_v13 }
 0x3a4   : > { %8235 = vmatmul.msk.f32.gmra.mxu1 %vm16841_vm3, %v16563_v15  ;;  %v2094_v12 = vadd.f32 %v2093_v49, %v2005_v10  ;;  %8339 = vmatmul.msk.f32.gmra.mxu0 %vm2744_vm13, %v2727_v29  ;;  %vm16866_vm3 = vcmp.eq.s32.totalorder %v16647_v2, %v16767_v60 }
 0x3a5   : > { %v2494_v3 = vpop.f32.mrf.mxu2  ;;  %v2184_v53 = vpop.f32.mrf.mxu3 }
 0x3a6   : > { %v11695_v19 = vadd.f32 %v2182_v52, %v2094_v12 }
 0x3a8   : > { %16844 = vst [vmem:[#allocation6_spill] sm:$0xff] %v11695_v19  ;;  %v2730_v19 = vld [vmem:[%s11268_s17 + $0xc8] sm:$0xff] }
 0x3a9   : > { %v2006_v22 = vpop.f32.mrf.mxu1  ;;  %v11698_v6 = vpop.f32.mrf.mxu0 }
 0x3aa   : > { %v2007_v11 = vadd.f32 %v2006_v22, %v11019_v48  ;;  %8270 = vmatmul.msk.f32.gmra.mxu2 %vm16846_vm1, %v16563_v15  ;;  %8301 = vmatmul.msk.f32.gmra.mxu3 %vm16847_vm14, %v16563_v15  ;;  %v2729_v22 = vld [vmem:[%s11268_s17 + $0xc0] sm:$0xff]  ;;  %vm16872_vm1 = vcmp.eq.s32.totalorder %v16508_v33, %v16756_v13  ;;  %vm16873_vm14 = vcmp.eq.s32.totalorder %v16662_v17, %v9700_v23 }
 0x3ac   : > { %8236 = vmatmul.msk.f32.gmra.mxu1 %vm16845_vm9, %v16563_v15  ;;  %v2096_v49 = vadd.f32 %v2095_v1, %v2007_v11  ;;  %8340 = vmatmul.msk.f32.gmra.mxu0 %vm2744_vm13, %v2728_v39  ;;  %v16850_v1 = vld [vmem:[#allocation14_spill] sm:$0xff] }
 0x3ad   : > { %v2497_v52 = vpop.f32.mrf.mxu2  ;;  %v2607_v10 = vpop.f32.mrf.mxu3  ;;  %vm16851_vm5 = vcmp.eq.s32.totalorder %v16850_v1, %v16756_v13  ;;  %vm16857_vm15 = vcmp.eq.s32.totalorder %v16850_v1, %v9700_v23  ;;  %vm16860_vm2 = vcmp.eq.s32.totalorder %v16850_v1, %v16767_v60 }
 0x3ae   : > { %v11714_v48 = vadd.f32 %v2184_v53, %v2096_v49  ;;  %v16854_v49 = vld [vmem:[#allocation36_spill] sm:$0xff] }
 0x3b0   : > { %16848 = vst [vmem:[#allocation26_spill] sm:$0xff] %v11714_v48 }
 0x3b1   : > { %v2381_v41 = vpop.f32.mrf.mxu1  ;;  %v11717_v12 = vpop.f32.mrf.mxu0 }
 0x3b2   : > { %v2382_v29 = vadd.f32 %v2381_v41, %v11031_v20  ;;  %8271 = vmatmul.msk.f32.gmra.mxu2 %vm16851_vm5, %v16563_v15  ;;  %8302 = vmatmul.msk.f32.gmra.mxu3 %vm16852_vm6, %v16563_v15  ;;  %vm16877_vm5 = vcmp.eq.s32.totalorder %v16509_v43, %v16756_v13  ;;  %vm16878_vm6 = vcmp.eq.s32.totalorder %v16508_v33, %v9700_v23 }
 0x3b4   : > { %8237 = vmatmul.msk.f32.gmra.mxu1 %vm16849_vm0, %v16563_v15  ;;  %v2495_v53 = vadd.f32 %v2494_v3, %v2382_v29  ;;  %8341 = vmatmul.msk.f32.gmra.mxu0 %vm2744_vm13, %v2729_v22  ;;  %vm16876_vm0 = vcmp.eq.s32.totalorder %v16662_v17, %v16767_v60 }
 0x3b5   : > { %v2500_v11 = vpop.f32.mrf.mxu2  ;;  %v2610_v39 = vpop.f32.mrf.mxu3 }
 0x3b6   : > { %v11733_v20 = vadd.f32 %v2607_v10, %v2495_v53  ;;  %v16859_v53 = vld [vmem:[#allocation44_spill] sm:$0xff] }
 0x3b8   : > { %16853 = vst [vmem:[#allocation10_spill] sm:$0xff] %v11733_v20 }
 0x3b9   : > { %v2384_v38 = vpop.f32.mrf.mxu1  ;;  %v11736_v48 = vpop.f32.mrf.mxu0 }
 0x3ba   : > { %v2385_v41 = vadd.f32 %v2384_v38, %v16854_v49  ;;  %8272 = vmatmul.msk.f32.gmra.mxu2 %vm16856_vm7, %v16563_v15  ;;  %8303 = vmatmul.msk.f32.gmra.mxu3 %vm16857_vm15, %v16563_v15  ;;  %vm16882_vm7 = vcmp.eq.s32.totalorder %v16523_v31, %v16756_v13  ;;  %vm16883_vm15 = vcmp.eq.s32.totalorder %v16509_v43, %v9700_v23 }
 0x3bc   : > { %8238 = vmatmul.msk.f32.gmra.mxu1 %vm16855_vm11, %v16563_v15  ;;  %v2498_v3 = vadd.f32 %v2497_v52, %v2385_v41  ;;  %8342 = vmatmul.msk.f32.gmra.mxu0 %vm2744_vm13, %v2730_v19  ;;  %v16861_v19 = vld [vmem:[#allocation22_spill] sm:$0xff]  ;;  %vm16881_vm11 = vcmp.eq.s32.totalorder %v16508_v33, %v16767_v60  ;;  %v16885_v33 = vld [vmem:[#allocation28_spill] sm:$0xff] }
 0x3bd   : > { %v2503_v29 = vpop.f32.mrf.mxu2  ;;  %v2613_v22 = vpop.f32.mrf.mxu3  ;;  %vm16862_vm8 = vcmp.eq.s32.totalorder %v16861_v19, %v16756_v13  ;;  %vm16868_vm4 = vcmp.eq.s32.totalorder %v16861_v19, %v9700_v23  ;;  %vm16871_vm9 = vcmp.eq.s32.totalorder %v16861_v19, %v16767_v60 }
 0x3be   : > { %v11752_v10 = vadd.f32 %v2610_v39, %v2498_v3 }
 0x3c0   : > { %16858 = vst [vmem:[#allocation86_spill] sm:$0xff] %v11752_v10 }
 0x3c1   : > { %v2387_v40 = vpop.f32.mrf.mxu1  ;;  %v11755_v49 = vpop.f32.mrf.mxu0 }
 0x3c2   : > { %v2388_v38 = vadd.f32 %v2387_v40, %v16859_v53  ;;  %8273 = vmatmul.msk.f32.gmra.mxu2 %vm16862_vm8, %v16563_v15  ;;  %8304 = vmatmul.msk.f32.gmra.mxu3 %vm16863_vm10, %v16563_v15  ;;  %v16865_v40 = vld [vmem:[#allocation41_spill] sm:$0xff]  ;;  %vm16887_vm8 = vcmp.eq.s32.totalorder %v16524_v51, %v16756_v13  ;;  %vm16889_vm10 = vcmp.eq.s32.totalorder %v16523_v31, %v9700_v23 }
 0x3c4   : > { %8239 = vmatmul.msk.f32.gmra.mxu1 %vm16860_vm2, %v16563_v15  ;;  %v2501_v52 = vadd.f32 %v2500_v11, %v2388_v38  ;;  %8343 = vmatmul.msk.f32.gmra.mxu0 %vm2744_vm13, %v2731_v50  ;;  %vm16886_vm2 = vcmp.eq.s32.totalorder %v16509_v43, %v16767_v60 }
 0x3c5   : > { %v2506_v41 = vpop.f32.mrf.mxu2  ;;  %v2616_v3 = vpop.f32.mrf.mxu3 }
 0x3c6   : > { %v11771_v39 = vadd.f32 %v2613_v22, %v2501_v52  ;;  %v16870_v52 = vld [vmem:[#allocation21_spill] sm:$0xff] }
 0x3c8   : > { %16864 = vst [vmem:[#allocation11_spill] sm:$0xff] %v11771_v39 }
 0x3c9   : > { %v2390_v1 = vpop.f32.mrf.mxu1  ;;  %v2891_v24 = vpop.f32.mrf.mxu0 }
 0x3ca   : > { %v2391_v53 = vadd.f32 %v2390_v1, %v16865_v40  ;;  %8274 = vmatmul.msk.f32.gmra.mxu2 %vm16867_vm12, %v16563_v15  ;;  %8305 = vmatmul.msk.f32.gmra.mxu3 %vm16868_vm4, %v16563_v15  ;;  %vm16891_vm12 = vcmp.eq.s32.totalorder %v16540_v5, %v16756_v13  ;;  %vm16892_vm4 = vcmp.eq.s32.totalorder %v16524_v51, %v9700_v23 }
 0x3cc   : > { %8240 = vmatmul.msk.f32.gmra.mxu1 %vm16866_vm3, %v16563_v15  ;;  %v2504_v50 = vadd.f32 %v2503_v29, %v2391_v53  ;;  %8344 = vmatmul.msk.f32.gmra.mxu0 %vm2744_vm13, %v2732_v28  ;;  %vm16890_vm3 = vcmp.eq.s32.totalorder %v16523_v31, %v16767_v60 }
 0x3cd   : > { %v2509_v22 = vpop.f32.mrf.mxu2  ;;  %v2619_v38 = vpop.f32.mrf.mxu3 }
 0x3ce   : > { %v11788_v11 = vadd.f32 %v2616_v3, %v2504_v50  ;;  %v16875_v50 = vld [vmem:[#allocation45_spill] sm:$0xff] }
 0x3d0   : > { %16869 = vst [vmem:[#allocation34_spill] sm:$0xff] %v11788_v11 }
 0x3d1   : > { %v2393_v2 = vpop.f32.mrf.mxu1  ;;  %v2894_v40 = vpop.f32.mrf.mxu0 }
 0x3d2   : > { %v2394_v1 = vadd.f32 %v2393_v2, %v16870_v52  ;;  %8275 = vmatmul.msk.f32.gmra.mxu2 %vm16872_vm1, %v16563_v15  ;;  %8306 = vmatmul.msk.f32.gmra.mxu3 %vm16873_vm14, %v16563_v15  ;;  %vm16894_vm1 = vcmp.eq.s32.totalorder %v16541_v0, %v16756_v13  ;;  %vm16895_vm14 = vcmp.eq.s32.totalorder %v16540_v5, %v9700_v23 }
 0x3d4   : > { %8241 = vmatmul.msk.f32.gmra.mxu1 %vm16871_vm9, %v16563_v15  ;;  %v2507_v28 = vadd.f32 %v2506_v41, %v2394_v1  ;;  %8345 = vmatmul.msk.f32.gmra.mxu0 %vm2744_vm13, %v2733_v61  ;;  %vm16893_vm9 = vcmp.eq.s32.totalorder %v16524_v51, %v16767_v60 }
 0x3d5   : > { %v2512_v3 = vpop.f32.mrf.mxu2  ;;  %v2622_v53 = vpop.f32.mrf.mxu3 }
 0x3d6   : > { %v11805_v29 = vadd.f32 %v2619_v38, %v2507_v28  ;;  %v16880_v28 = vld [vmem:[#allocation8_spill] sm:$0xff] }
 0x3d8   : > { %16874 = vst [vmem:[#allocation88_spill] sm:$0xff] %v11805_v29 }
 0x3d9   : > { %v2396_v19 = vpop.f32.mrf.mxu1  ;;  %v2897_v52 = vpop.f32.mrf.mxu0 }
 0x3da   : > { %v2397_v2 = vadd.f32 %v2396_v19, %v16875_v50  ;;  %8276 = vmatmul.msk.f32.gmra.mxu2 %vm16877_vm5, %v16563_v15  ;;  %8307 = vmatmul.msk.f32.gmra.mxu3 %vm16878_vm6, %v16563_v15  ;;  %vm16897_vm5 = vcmp.eq.s32.totalorder %v16556_v9, %v16756_v13  ;;  %vm16898_vm6 = vcmp.eq.s32.totalorder %v16541_v0, %v9700_v23 }
 0x3dc   : > { %8242 = vmatmul.msk.f32.gmra.mxu1 %vm16876_vm0, %v16563_v15  ;;  %v2510_v61 = vadd.f32 %v2509_v22, %v2397_v2  ;;  %8346 = vmatmul.msk.f32.gmra.mxu0 %vm2744_vm13, %v2734_v58  ;;  %vm16896_vm0 = vcmp.eq.s32.totalorder %v16540_v5, %v16767_v60 }
 0x3dd   : > { %v2515_v38 = vpop.f32.mrf.mxu2  ;;  %v2625_v17 = vpop.f32.mrf.mxu3 }
 0x3de   : > { %v11822_v41 = vadd.f32 %v2622_v53, %v2510_v61 }
 0x3e0   : > { %16879 = vst [vmem:[#allocation90_spill] sm:$0xff] %v11822_v41 }
 0x3e1   : > { %v2399_v1 = vpop.f32.mrf.mxu1  ;;  %v2900_v50 = vpop.f32.mrf.mxu0 }
 0x3e2   : > { %v2400_v19 = vadd.f32 %v2399_v1, %v16880_v28  ;;  %8277 = vmatmul.msk.f32.gmra.mxu2 %vm16882_vm7, %v16563_v15  ;;  %8308 = vmatmul.msk.f32.gmra.mxu3 %vm16883_vm15, %v16563_v15  ;;  %v2736_v28 = vld [vmem:[%s11268_s17 + $0xf8] sm:$0xff]  ;;  %vm16900_vm7 = vcmp.eq.s32.totalorder %v16557_v45, %v16756_v13  ;;  %vm16901_vm15 = vcmp.eq.s32.totalorder %v16556_v9, %v9700_v23 }
 0x3e4   : > { %8243 = vmatmul.msk.f32.gmra.mxu1 %vm16881_vm11, %v16563_v15  ;;  %v2513_v58 = vadd.f32 %v2512_v3, %v2400_v19  ;;  %8347 = vmatmul.msk.f32.gmra.mxu0 %vm2744_vm13, %v2735_v27  ;;  %vm16899_vm11 = vcmp.eq.s32.totalorder %v16541_v0, %v16767_v60 }
 0x3e5   : > { %v11841_v53 = vpop.f32.mrf.mxu2  ;;  %v2628_v46 = vpop.f32.mrf.mxu3 }
 0x3e6   : > { %v11839_v22 = vadd.f32 %v2625_v17, %v2513_v58 }
 0x3e8   : > { %16884 = vst [vmem:[#allocation14_spill] sm:$0xff] %v11839_v22 }
 0x3e9   : > { %v2402_v2 = vpop.f32.mrf.mxu1  ;;  %v2903_v1 = vpop.f32.mrf.mxu0 }
 0x3ea   : > { %v2403_v61 = vadd.f32 %v2402_v2, %v16885_v33  ;;  %3164 = vmatpush.msra.mxu2 %v2903_v1  ;;  %8309 = vmatmul.msk.f32.gmra.mxu3 %vm16889_vm10, %v16563_v15  ;;  %vm16904_vm10 = vcmp.eq.s32.totalorder %v16557_v45, %v9700_v23 }
 0x3eb   : > { %8278 = vmatmul.msk.f32.gmra.mxu2 %vm16887_vm8, %v16563_v15  ;;  %vm16903_vm8 = vcmp.eq.s32.totalorder %v16571_v30, %v16756_v13 }
 0x3ec   : > { %8244 = vmatmul.msk.f32.gmra.mxu1 %vm16886_vm2, %v16563_v15  ;;  %v2516_v27 = vadd.f32 %v2515_v38, %v2403_v61  ;;  %8348 = vmatmul.msk.f32.gmra.mxu0 %vm2744_vm13, %v2736_v28  ;;  %vm16902_vm2 = vcmp.eq.s32.totalorder %v16556_v9, %v16767_v60  ;;  %v16913_v28 = vld [vmem:[#allocation24_spill] sm:$0xff] }
 0x3ed   : > { %3165 = vmatpush.msra.mxu2 %v2900_v50  ;;  %v11860_v17 = vpop.f32.mrf.mxu2  ;;  %v11988_v9 = vpop.f32.mrf.mxu3 }
 0x3ee   : > { %v11854_v3 = vadd.f32 %v2628_v46, %v2516_v27 }
 0x3ef   : > { %3166 = vmatpush.msra.mxu2 %v2897_v52 }
 0x3f0   : > { %16888 = vst [vmem:[#allocation36_spill] sm:$0xff] %v11854_v3 }
 0x3f1   : > { %3167 = vmatpush.msra.mxu2 %v2894_v40  ;;  %v11862_v43 = vpop.f32.mrf.mxu1  ;;  %v11864_v19 = vpop.f32.mrf.mxu0 }
 0x3f2   : > { %8310 = vmatmul.msk.f32.gmra.mxu3 %vm16892_vm4, %v16563_v15  ;;  %vm16907_vm4 = vcmp.eq.s32.totalorder %v16571_v30, %v9700_v23 }
 0x3f3   : > { %3168 = vmatpush.msra.mxu2 %v2891_v24 }
 0x3f4   : > { %8245 = vmatmul.msk.f32.gmra.mxu1 %vm16890_vm3, %v16563_v15  ;;  %8279 = vmatmul.msk.f32.gmra.mxu2 %vm16891_vm12, %v16563_v15  ;;  %vm16905_vm3 = vcmp.eq.s32.totalorder %v16557_v45, %v16767_v60  ;;  %vm16906_vm12 = vcmp.eq.s32.totalorder %v16572_v55, %v16756_v13  ;;  %v16909_v45 = vld [vmem:[#allocation16_spill] sm:$0xff] }
 0x3f5   : > { %3169 = vmatpush.msra.mxu2 %v11755_v49  ;;  %v11880_v46 = vpop.f32.mrf.mxu2  ;;  %v12005_v13 = vpop.f32.mrf.mxu3 }
 0x3f7   : > { %3170 = vmatpush.msra.mxu2 %v11736_v48 }
 0x3f9   : > { %3171 = vmatpush.msra.mxu2 %v11717_v12  ;;  %v11883_v31 = vpop.f32.mrf.mxu1  ;;  %v11885_v24 = vpop.f32.mrf.mxu0 }
 0x3fa   : > { %8311 = vmatmul.msk.f32.gmra.mxu3 %vm16895_vm14, %v16563_v15  ;;  %vm16911_vm14 = vcmp.eq.s32.totalorder %v16572_v55, %v16767_v60 }
 0x3fb   : > { %3172 = vmatpush.msra.mxu2 %v11698_v6 }
 0x3fc   : > { %8246 = vmatmul.msk.f32.gmra.mxu1 %vm16893_vm9, %v16563_v15  ;;  %8280 = vmatmul.msk.f32.gmra.mxu2 %vm16894_vm1, %v16563_v15  ;;  %vm16908_vm9 = vcmp.eq.s32.totalorder %v16571_v30, %v16767_v60  ;;  %vm16910_vm1 = vcmp.eq.s32.totalorder %v16572_v55, %v9700_v23  ;;  %v16912_v30 = vld [vmem:[#allocation71_spill] sm:$0xff]  ;;  %v16914_v55 = vld [vmem:[#allocation77_spill] sm:$0xff] }
 0x3fd   : > { %3173 = vmatpush.msra.mxu2 %v11679_v7  ;;  %v11902_v6 = vpop.f32.mrf.mxu2  ;;  %v2741_v7 = vld [vmem:[%s15819_s4 + $0x60] sm:$0xff]  ;;  %v12020_v1 = vpop.f32.mrf.mxu3 }
 0x3ff   : > { %3174 = vmatpush.msra.mxu2 %v11660_v47  ;;  %v2742_v47 = vld [vmem:[%s15819_s4 + $0x68] sm:$0xff] }
 0x401   : > { %3175 = vmatpush.msra.mxu2 %v11641_v62  ;;  %v11905_v51 = vpop.f32.mrf.mxu1  ;;  %v11907_v48 = vpop.f32.mrf.mxu0 }
 0x402   : > { %8312 = vmatmul.msk.f32.gmra.mxu3 %vm16898_vm6, %v16563_v15 }
 0x403   : > { %3176 = vmatpush.msra.mxu2 %v11622_v63 }
 0x404   : > { %8247 = vmatmul.msk.f32.gmra.mxu1 %vm16896_vm0, %v16563_v15  ;;  %8281 = vmatmul.msk.f32.gmra.mxu2 %vm16897_vm5, %v16563_v15  ;;  %vm2954_vm0 = vcmask 195584  }
 0x405   : > { %3177 = vmatpush.msra.mxu2 %v11603_v16  ;;  %v11924_v63 = vpop.f32.mrf.mxu2  ;;  %v12032_v60 = vpop.f32.mrf.mxu3 }
 0x407   : > { %3178 = vmatpush.msra.mxu2 %v11584_v4  ;;  %v2743_v4 = vld [vmem:[%s15819_s4 + $0x70] sm:$0xff] }
 0x408   : > { %3064 = vmatpush.msra.mxu1 %v2743_v4 }
 0x409   : > { %3179 = vmatpush.msra.mxu2 %v11565_v57  ;;  %v11927_v5 = vpop.f32.mrf.mxu1  ;;  %v11929_v62 = vpop.f32.mrf.mxu0 }
 0x40a   : > { %8313 = vmatmul.msk.f32.gmra.mxu3 %vm16901_vm15, %v16563_v15  ;;  %3065 = vmatpush.msra.mxu1 %v2742_v47 }
 0x40c   : > { %8248 = vmatmul.msk.f32.gmra.mxu1 %vm16899_vm11, %v16563_v15  ;;  %8282 = vmatmul.msk.f32.gmra.mxu2 %vm16900_vm7, %v16563_v15 }
 0x40d   : > { %v11943_v57 = vpop.f32.mrf.mxu2  ;;  %3066 = vmatpush.msra.mxu1 %v2741_v7 }
 0x411   : > { %v11948_v16 = vpop.f32.mrf.mxu1  ;;  %v11950_v0 = vpop.f32.mrf.mxu0 }
 0x412   : > { %8314 = vmatmul.msk.f32.gmra.mxu3 %vm16904_vm10, %v16563_v15 }
 0x414   : > { %8249 = vmatmul.msk.f32.gmra.mxu1 %vm16902_vm2, %v16563_v15  ;;  %8283 = vmatmul.msk.f32.gmra.mxu2 %vm16903_vm8, %v16563_v15 }
 0x415   : > { %v11970_v12 = vpop.f32.mrf.mxu2 }
 0x419   : > { %v11972_v49 = vpop.f32.mrf.mxu1  ;;  %v11974_v40 = vpop.f32.mrf.mxu0 }
 0x41a   : > { %8315 = vmatmul.msk.f32.gmra.mxu3 %vm16907_vm4, %v16563_v15 }
 0x41c   : > { %8250 = vmatmul.msk.f32.gmra.mxu1 %vm16905_vm3, %v16563_v15  ;;  %8284 = vmatmul.msk.f32.gmra.mxu2 %vm16906_vm12, %v16563_v15 }
 0x41d   : > { %v11994_v50 = vpop.f32.mrf.mxu2 }
 0x421   : > { %v11990_v52 = vpop.f32.mrf.mxu1  ;;  %v11992_v38 = vpop.f32.mrf.mxu0 }
 0x422   : > { %8316 = vmatmul.msk.f32.gmra.mxu3 %vm16910_vm1, %v16563_v15 }
 0x424   : > { %8251 = vmatmul.msk.f32.gmra.mxu1 %vm16908_vm9, %v16563_v15  ;;  %3180 = vmatmul.f32.vlgmr.msra.gmra.mxu2 %v16909_v45  ;;  %v12041_v45 = vpop.f32.mrf.mxu3 }
 0x425   : > { %v12016_v33 = vpop.f32.mrf.mxu2 }
 0x429   : > { %v12007_v58 = vpop.f32.mrf.mxu1  ;;  %v12009_v2 = vpop.f32.mrf.mxu0 }
 0x42c   : > { %8252 = vmatmul.msk.f32.gmra.mxu1 %vm16911_vm14, %v16563_v15  ;;  %3183 = vmatmul.f32.gmra.mxu2 %v16912_v30  ;;  %v12050_v59 = vpop.f32.mrf.mxu3 }
 0x42d   : > { %v12025_v27 = vpop.f32.mrf.mxu2 }
 0x431   : > { %v12018_v61 = vpop.f32.mrf.mxu1  ;;  %v2930_v23 = vpop.f32.mrf.mxu0 }
 0x434   : > { %8349 = vmatmul.msk.f32.vlgmr.msra.gmra.mxu1 %vm2954_vm0, %v11733_v20  ;;  %3186 = vmatmul.f32.gmra.mxu2 %v16913_v28  ;;  %v16915_v28 = vld [vmem:[#allocation31_spill] sm:$0xff]  ;;  %v12061_v44 = vpop.f32.mrf.mxu3 }
 0x435   : > { %v12034_v47 = vpop.f32.mrf.mxu2 }
 0x439   : > { %v12027_v4 = vpop.f32.mrf.mxu1  ;;  %v2933_v15 = vpop.f32.mrf.mxu0 }
 0x43c   : > { %8350 = vmatmul.msk.f32.gmra.mxu1 %vm2954_vm0, %v11752_v10  ;;  %3189 = vmatmul.f32.gmra.mxu2 %v16914_v55  ;;  %v16916_v55 = vld [vmem:[#allocation79_spill] sm:$0xff] }
 0x43d   : > { %v12045_v10 = vpop.f32.mrf.mxu2 }
 0x441   : > { %v12036_v7 = vpop.f32.mrf.mxu1  ;;  %v2936_v30 = vpop.f32.mrf.mxu0 }
 0x444   : > { %8351 = vmatmul.msk.f32.gmra.mxu1 %vm2954_vm0, %v11771_v39  ;;  %3192 = vmatmul.f32.gmra.mxu2 %v16915_v28  ;;  %v16917_v28 = vld [vmem:[#allocation38_spill] sm:$0xff] }
 0x445   : > { %v12057_v39 = vpop.f32.mrf.mxu2 }
 0x446   : > { %16918 = vst [vmem:[#allocation44_spill] sm:$0xff] %v12057_v39  ;;  %v16925_v39 = vld [vmem:[#allocation49_spill] sm:$0xff] }
 0x449   : > { %v12043_v18 = vpop.f32.mrf.mxu1  ;;  %v2939_v20 = vpop.f32.mrf.mxu0 }
 0x44c   : > { %8352 = vmatmul.msk.f32.gmra.mxu1 %vm2954_vm0, %v11788_v11  ;;  %3195 = vmatmul.f32.gmra.mxu2 %v16916_v55  ;;  %v16920_v55 = vld [vmem:[#allocation83_spill] sm:$0xff] }
 0x44d   : > { %v12066_v11 = vpop.f32.mrf.mxu2 }
 0x451   : > { %v12052_v14 = vpop.f32.mrf.mxu1  ;;  %v2942_v34 = vpop.f32.mrf.mxu0 }
 0x454   : > { %8353 = vmatmul.msk.f32.gmra.mxu1 %vm2954_vm0, %v11805_v29  ;;  %3198 = vmatmul.f32.gmra.mxu2 %v16917_v28  ;;  %v16922_v28 = vld [vmem:[#allocation19_spill] sm:$0xff]  ;;  %v12073_v29 = vpop.f32.mrf.mxu3 }
 0x459   : > { %v12059_v37 = vpop.f32.mrf.mxu1  ;;  %v2945_v35 = vpop.f32.mrf.mxu0 }
 0x45a   : > { %16919 = vst [vmem:[#allocation22_spill] sm:$0xff] %v12059_v37  ;;  %v12075_v37 = vpop.f32.mrf.mxu2 }
 0x45b   : > { %16923 = vst [vmem:[#allocation21_spill] sm:$0xff] %v12075_v37 }
 0x45c   : > { %8354 = vmatmul.msk.f32.gmra.mxu1 %vm2954_vm0, %v11822_v41  ;;  %3201 = vmatmul.f32.gmra.mxu2 %v16920_v55  ;;  %v2406_v41 = vadd.f32 %v11862_v43, %v16925_v39  ;;  %v16928_v39 = vld [vmem:[#allocation15_spill] sm:$0xff] }
 0x45d   : > { %v2409_v43 = vadd.f32 %v11883_v31, %v16928_v39  ;;  %v16932_v31 = vld [vmem:[#allocation87_spill] sm:$0xff] }
 0x461   : > { %v12068_v36 = vpop.f32.mrf.mxu1  ;;  %v2948_v54 = vpop.f32.mrf.mxu0 }
 0x462   : > { %16921 = vst [vmem:[#allocation41_spill] sm:$0xff] %v12068_v36  ;;  %v16926_v36 = vld [vmem:[#allocation85_spill] sm:$0xff] }
 0x464   : > { %8355 = vmatmul.msk.f32.gmra.mxu1 %vm2954_vm0, %v11839_v22  ;;  %3204 = vmatmul.f32.gmra.mxu2 %v16922_v28  ;;  %v2519_v22 = vadd.f32 %v11841_v53, %v2406_v41  ;;  %v12085_v28 = vpop.f32.mrf.mxu3  ;;  %v16931_v53 = vld [vmem:[#allocation53_spill] sm:$0xff] }
 0x469   : > { %v12077_v8 = vpop.f32.mrf.mxu1  ;;  %v2951_v55 = vpop.f32.mrf.mxu0 }
 0x46a   : > { %16924 = vst [vmem:[#allocation45_spill] sm:$0xff] %v12077_v8  ;;  %3277 = vmatpush.msra.mxu3 %v2951_v55  ;;  %v12090_v8 = vadd.f32 %v11988_v9, %v2519_v22  ;;  %v12094_v55 = vpop.f32.mrf.mxu2 }
 0x46c   : > { %8356 = vmatmul.msk.f32.gmra.mxu1 %vm2954_vm0, %v11854_v3  ;;  %3207 = vmatmul.f32.gmra.mxu2 %v16926_v36  ;;  %16927 = vst [vmem:[#allocation8_spill] sm:$0xff] %v12090_v8 }
 0x46d   : > { %3278 = vmatpush.msra.mxu3 %v2948_v54  ;;  %v16929_v54 = vld [vmem:[#allocation27_spill] sm:$0xff] }
 0x46f   : > { %3279 = vmatpush.msra.mxu3 %v2945_v35  ;;  %v2522_v35 = vadd.f32 %v11860_v17, %v2409_v43 }
 0x471   : > { %3280 = vmatpush.msra.mxu3 %v2942_v34  ;;  %v12087_v37 = vpop.f32.mrf.mxu1  ;;  %v12100_v34 = vpop.f32.mrf.mxu3  ;;  %v12105_v22 = vadd.f32 %v12005_v13, %v2522_v35 }
 0x472   : > { %v12113_v17 = vpop.f32.mrf.mxu2 }
 0x473   : > { %3281 = vmatpush.msra.mxu3 %v2939_v20  ;;  %16930 = vst [vmem:[#allocation28_spill] sm:$0xff] %v12105_v22  ;;  %v2412_v20 = vadd.f32 %v11905_v51, %v16931_v53  ;;  %v16943_v53 = vld [vmem:[#allocation54_spill] sm:$0xff] }
 0x474   : > { %8357 = vmatmul.msk.f32.gmra.mxu1 %vm2954_vm0, %v12090_v8  ;;  %3210 = vmatmul.f32.gmra.mxu2 %v16929_v54  ;;  %v8783_v54 = vld [vmem:[%s11268_s17] sm:$0xff] }
 0x475   : > { %3282 = vmatpush.msra.mxu3 %v2936_v30  ;;  %v2525_v9 = vadd.f32 %v11880_v46, %v2412_v20  ;;  %v16934_v46 = vld [vmem:[#allocation35_spill] sm:$0xff] }
 0x477   : > { %3283 = vmatpush.msra.mxu3 %v2933_v15  ;;  %v12122_v51 = vadd.f32 %v12020_v1, %v2525_v9  ;;  %v16940_v15 = vld [vmem:[#allocation91_spill] sm:$0xff] }
 0x479   : > { %3284 = vmatpush.msra.mxu3 %v2930_v23  ;;  %v12102_v41 = vpop.f32.mrf.mxu1  ;;  %16933 = vst [vmem:[#allocation49_spill] sm:$0xff] %v12122_v51  ;;  %v12126_v30 = vpop.f32.mrf.mxu3 }
 0x47b   : > { %3285 = vmatpush.msra.mxu3 %v12009_v2  ;;  %v2415_v2 = vadd.f32 %v11927_v5, %v11184_v56 }
 0x47c   : > { %8358 = vmatmul.msk.f32.gmra.mxu1 %vm2954_vm0, %v12105_v22  ;;  %3213 = vmatmul.f32.gmra.mxu2 %v16932_v31 }
 0x47d   : > { %3286 = vmatpush.msra.mxu3 %v11992_v38  ;;  %v16936_v38 = vld [vmem:[#allocation51_spill] sm:$0xff] }
 0x47f   : > { %3287 = vmatpush.msra.mxu3 %v11974_v40  ;;  %v12134_v40 = vpop.f32.mrf.mxu2 }
 0x481   : > { %3288 = vmatpush.msra.mxu3 %v11950_v0  ;;  %v12119_v13 = vpop.f32.mrf.mxu1  ;;  %v2528_v0 = vadd.f32 %v11902_v6, %v2415_v2  ;;  %v16937_v6 = vld [vmem:[#allocation89_spill] sm:$0xff]  ;;  %v16946_v2 = vld [vmem:[#allocation62_spill] sm:$0xff] }
 0x483   : > { %3289 = vmatpush.msra.mxu3 %v11929_v62  ;;  %v12141_v5 = vadd.f32 %v12032_v60, %v2528_v0  ;;  %v2418_v62 = vadd.f32 %v11948_v16, %v11199_v21  ;;  %v2421_v21 = vadd.f32 %v11972_v49, %v11220_v42  ;;  %v16939_v16 = vld [vmem:[#allocation17_spill] sm:$0xff]  ;;  %v16944_v49 = vld [vmem:[#allocation92_spill] sm:$0xff]  ;;  %v16947_v0 = vld [vmem:[#allocation55_spill] sm:$0xff] }
 0x484   : > { %8359 = vmatmul.msk.f32.gmra.mxu1 %vm2954_vm0, %v12122_v51  ;;  %3216 = vmatmul.f32.gmra.mxu2 %v16934_v46  ;;  %v16982_v46 = vld [vmem:[#allocation75_spill] sm:$0xff] }
 0x485   : > { %3290 = vmatpush.msra.mxu3 %v11907_v48  ;;  %16935 = vst [vmem:[#allocation15_spill] sm:$0xff] %v12141_v5  ;;  %v12149_v48 = vpop.f32.mrf.mxu3  ;;  %v2534_v60 = vadd.f32 %v11943_v57, %v2421_v21 }
 0x487   : > { %3291 = vmatpush.msra.mxu3 %v11885_v24  ;;  %v2531_v24 = vadd.f32 %v11924_v63, %v2418_v62  ;;  %v12169_v43 = vadd.f32 %v12050_v59, %v2534_v60  ;;  %v16948_v62 = vld [vmem:[#allocation93_spill] sm:$0xff] }
 0x489   : > { %3292 = vmatpush.msra.mxu3 %v11864_v19  ;;  %v12138_v56 = vpop.f32.mrf.mxu1  ;;  %v12152_v19 = vpop.f32.mrf.mxu2  ;;  %v12157_v1 = vadd.f32 %v12041_v45, %v2531_v24  ;;  %16941 = vst [vmem:[#allocation99_spill] sm:$0xff] %v12169_v43  ;;  %v16942_v45 = vld [vmem:[#allocation59_spill] sm:$0xff] }
 0x48a   : > { %3293 = vmatmul.f32.vlgmr.msra.gmra.mxu3 %v16936_v38  ;;  %v2424_v35 = vadd.f32 %v11990_v52, %v16942_v45  ;;  %v2427_v52 = vadd.f32 %v12007_v58, %v16946_v2  ;;  %v16950_v58 = vld [vmem:[#allocation25_spill] sm:$0xff] }
 0x48b   : > { %16938 = vst [vmem:[#allocation53_spill] sm:$0xff] %v12157_v1 }
 0x48c   : > { %8360 = vmatmul.msk.f32.gmra.mxu1 %vm2954_vm0, %v12141_v5  ;;  %3219 = vmatmul.f32.gmra.mxu2 %v16937_v6  ;;  %v2537_v57 = vadd.f32 %v11970_v12, %v2424_v35  ;;  %v2540_v12 = vadd.f32 %v11994_v50, %v2427_v52  ;;  %v16952_v52 = vld [vmem:[#allocation66_spill] sm:$0xff]  ;;  %v16975_v6 = vld [vmem:[#allocation32_spill] sm:$0xff] }
 0x48d   : > { %v2667_v63 = vpop.f32.mrf.mxu3 }
 0x48e   : > { %v12183_v59 = vadd.f32 %v12061_v44, %v2537_v57  ;;  %v12197_v60 = vadd.f32 %v12073_v29, %v2540_v12  ;;  %v16949_v44 = vld [vmem:[#allocation64_spill] sm:$0xff]  ;;  %v16951_v57 = vld [vmem:[#allocation94_spill] sm:$0xff]  ;;  %v16953_v12 = vld [vmem:[#allocation23_spill] sm:$0xff] }
 0x48f   : > { %v2430_v45 = vadd.f32 %v12018_v61, %v16949_v44  ;;  %v2433_v61 = vadd.f32 %v12027_v4, %v16952_v52  ;;  %v16954_v44 = vld [vmem:[#allocation95_spill] sm:$0xff]  ;;  %v2436_v4 = vadd.f32 %v12036_v7, %v11317_v32  ;;  %v16956_v52 = vld [vmem:[#allocation96_spill] sm:$0xff]  ;;  %v16958_v7 = vld [vmem:[#allocation97_spill] sm:$0xff] }
 0x490   : > { %16945 = vst [vmem:[#allocation59_spill] sm:$0xff] %v12183_v59 }
 0x491   : > { %v12154_v23 = vpop.f32.mrf.mxu1  ;;  %v12174_v42 = vpop.f32.mrf.mxu2  ;;  %v2543_v2 = vadd.f32 %v12016_v33, %v2430_v45  ;;  %v2546_v33 = vadd.f32 %v12025_v27, %v2433_v61 }
 0x492   : > { %3296 = vmatmul.f32.gmra.mxu3 %v16939_v16 }
 0x493   : > { %v12211_v29 = vadd.f32 %v12085_v28, %v2543_v2  ;;  %v12225_v28 = vadd.f32 %v12100_v34, %v2546_v33  ;;  %v16955_v2 = vld [vmem:[#allocation61_spill] sm:$0xff]  ;;  %v2439_v34 = vadd.f32 %v12043_v18, %v11339_v25  ;;  %v2442_v25 = vadd.f32 %v12052_v14, %v11356_v26  ;;  %v16959_v18 = vld [vmem:[#allocation46_spill] sm:$0xff] }
 0x494   : > { %8361 = vmatmul.msk.f32.gmra.mxu1 %vm2954_vm0, %v12157_v1  ;;  %3222 = vmatmul.f32.gmra.mxu2 %v16940_v15  ;;  %v16957_v33 = vld [vmem:[#allocation33_spill] sm:$0xff] }
 0x495   : > { %v2670_v20 = vpop.f32.mrf.mxu3  ;;  %v16965_v14 = vld [vmem:[#allocation57_spill] sm:$0xff] }
 0x499   : > { %v12166_v39 = vpop.f32.mrf.mxu1  ;;  %v12191_v24 = vpop.f32.mrf.mxu2 }
 0x49a   : > { %3299 = vmatmul.f32.gmra.mxu3 %v16943_v53 }
 0x49c   : > { %8362 = vmatmul.msk.f32.gmra.mxu1 %vm2954_vm0, %v12169_v43  ;;  %3225 = vmatmul.f32.gmra.mxu2 %v16944_v49 }
 0x49d   : > { %v2673_v35 = vpop.f32.mrf.mxu3 }
 0x4a1   : > { %v12180_v9 = vpop.f32.mrf.mxu1 }
 0x4a2   : > { %3302 = vmatmul.f32.gmra.mxu3 %v16947_v0  ;;  %v12206_v0 = vpop.f32.mrf.mxu2 }
 0x4a4   : > { %8363 = vmatmul.msk.f32.gmra.mxu1 %vm2954_vm0, %v12183_v59  ;;  %3228 = vmatmul.f32.gmra.mxu2 %v16948_v62 }
 0x4a9   : > { %v12194_v21 = vpop.f32.mrf.mxu1 }
 0x4aa   : > { %3305 = vmatmul.f32.gmra.mxu3 %v16950_v58  ;;  %v2676_v58 = vpop.f32.mrf.mxu3  ;;  %v12220_v45 = vpop.f32.mrf.mxu2 }
 0x4ac   : > { %8364 = vmatmul.msk.f32.gmra.mxu1 %vm2954_vm0, %v12197_v60  ;;  %3231 = vmatmul.f32.gmra.mxu2 %v16951_v57  ;;  %v16964_v57 = vld [vmem:[#allocation67_spill] sm:$0xff] }
 0x4b1   : > { %v12208_v50 = vpop.f32.mrf.mxu1 }
 0x4b2   : > { %3308 = vmatmul.f32.gmra.mxu3 %v16953_v12  ;;  %v2549_v12 = vadd.f32 %v12034_v47, %v2436_v4  ;;  %v2679_v27 = vpop.f32.mrf.mxu3  ;;  %v12242_v32 = vpop.f32.mrf.mxu2  ;;  %v2552_v47 = vadd.f32 %v12045_v10, %v2439_v34 }
 0x4b4   : > { %8365 = vmatmul.msk.f32.gmra.mxu1 %vm2954_vm0, %v12211_v29  ;;  %3234 = vmatmul.f32.gmra.mxu2 %v16954_v44  ;;  %v12237_v44 = vadd.f32 %v12126_v30, %v2549_v12  ;;  %v12251_v30 = vadd.f32 %v12149_v48, %v2552_v47  ;;  %v16960_v12 = vld [vmem:[#allocation98_spill] sm:$0xff]  ;;  %v16962_v48 = vld [vmem:[#allocation72_spill] sm:$0xff] }
 0x4b5   : > { %v16963_v47 = vld [vmem:[#allocation22_spill] sm:$0xff] }
 0x4b6   : > { %v2445_v16 = vadd.f32 %v16963_v47, %v16962_v48  ;;  %v16968_v48 = vld [vmem:[#allocation48_spill] sm:$0xff]  ;;  %v16969_v47 = vld [vmem:[#allocation42_spill] sm:$0xff] }
 0x4b9   : > { %v12222_v53 = vpop.f32.mrf.mxu1 }
 0x4ba   : > { %3311 = vmatmul.f32.gmra.mxu3 %v16955_v2  ;;  %v2682_v4 = vpop.f32.mrf.mxu3 }
 0x4bc   : > { %8366 = vmatmul.msk.f32.gmra.mxu1 %vm2954_vm0, %v12225_v28  ;;  %3237 = vmatmul.f32.gmra.mxu2 %v16956_v52 }
 0x4c1   : > { %v12234_v61 = vpop.f32.mrf.mxu1 }
 0x4c2   : > { %3314 = vmatmul.f32.gmra.mxu3 %v16957_v33  ;;  %v12259_v33 = vpop.f32.mrf.mxu2  ;;  %v2685_v26 = vpop.f32.mrf.mxu3 }
 0x4c4   : > { %8367 = vmatmul.msk.f32.gmra.mxu1 %vm2954_vm0, %v12237_v44  ;;  %3240 = vmatmul.f32.gmra.mxu2 %v16958_v7  ;;  %v16961_v7 = vld [vmem:[#allocation44_spill] sm:$0xff] }
 0x4c5   : > { %v2555_v10 = vadd.f32 %v16961_v7, %v2442_v25 }
 0x4c7   : > { %v12264_v52 = vadd.f32 %v2667_v63, %v2555_v10  ;;  %v16966_v63 = vld [vmem:[#allocation52_spill] sm:$0xff]  ;;  %v16967_v10 = vld [vmem:[#allocation41_spill] sm:$0xff] }
 0x4c8   : > { %v2448_v38 = vadd.f32 %v16967_v10, %v16966_v63  ;;  %v16973_v63 = vld [vmem:[#allocation69_spill] sm:$0xff]  ;;  %v16974_v10 = vld [vmem:[#allocation43_spill] sm:$0xff] }
 0x4c9   : > { %v12248_v2 = vpop.f32.mrf.mxu1 }
 0x4ca   : > { %3317 = vmatmul.f32.gmra.mxu3 %v16959_v18  ;;  %v2558_v18 = vadd.f32 %v12066_v11, %v2445_v16 }
 0x4cc   : > { %8368 = vmatmul.msk.f32.gmra.mxu1 %vm2954_vm0, %v12251_v30  ;;  %3243 = vmatmul.f32.gmra.mxu2 %v16960_v12  ;;  %v12273_v12 = vpop.f32.mrf.mxu2  ;;  %v12277_v25 = vadd.f32 %v2670_v20, %v2558_v18  ;;  %v16971_v20 = vld [vmem:[#allocation56_spill] sm:$0xff]  ;;  %v16972_v18 = vld [vmem:[#allocation45_spill] sm:$0xff] }
 0x4cd   : > { %v2451_v15 = vadd.f32 %v16972_v18, %v16971_v20  ;;  %v16977_v18 = vld [vmem:[#allocation60_spill] sm:$0xff] }
 0x4d1   : > { %v12262_v34 = vpop.f32.mrf.mxu1 }
 0x4d2   : > { %3320 = vmatmul.f32.gmra.mxu3 %v16964_v57  ;;  %v2688_v57 = vpop.f32.mrf.mxu3 }
 0x4d4   : > { %8369 = vmatmul.msk.f32.gmra.mxu1 %vm2954_vm0, %v12264_v52  ;;  %3246 = vmatmul.f32.gmra.mxu2 %v16965_v14  ;;  %v16970_v14 = vld [vmem:[#allocation21_spill] sm:$0xff]  ;;  %v12286_v11 = vpop.f32.mrf.mxu2 }
 0x4d5   : > { %v2561_v62 = vadd.f32 %v16970_v14, %v2448_v38 }
 0x4d7   : > { %v12290_v49 = vadd.f32 %v2673_v35, %v2561_v62  ;;  %v2454_v62 = vadd.f32 %v12087_v37, %v16975_v6  ;;  %v16976_v35 = vld [vmem:[#allocation50_spill] sm:$0xff]  ;;  %v16979_v6 = vld [vmem:[#allocation73_spill] sm:$0xff] }
 0x4d9   : > { %v12275_v7 = vpop.f32.mrf.mxu1 }
 0x4da   : > { %3323 = vmatmul.f32.gmra.mxu3 %v16968_v48  ;;  %v2564_v48 = vadd.f32 %v12094_v55, %v2451_v15 }
 0x4dc   : > { %8370 = vmatmul.msk.f32.gmra.mxu1 %vm2954_vm0, %v12277_v25  ;;  %3249 = vmatmul.f32.gmra.mxu2 %v16969_v47  ;;  %v2691_v47 = vpop.f32.mrf.mxu3  ;;  %v12301_v14 = vadd.f32 %v2676_v58, %v2564_v48  ;;  %v12306_v20 = vpop.f32.mrf.mxu2  ;;  %v16978_v48 = vld [vmem:[#allocation12_spill] sm:$0xff] }
 0x4dd   : > { %v2457_v37 = vadd.f32 %v12102_v41, %v16978_v48  ;;  %v16983_v48 = vld [vmem:[#allocation20_spill] sm:$0xff] }
 0x4e1   : > { %v12288_v16 = vpop.f32.mrf.mxu1 }
 0x4e2   : > { %3326 = vmatmul.f32.gmra.mxu3 %v16973_v63  ;;  %v2567_v63 = vadd.f32 %v12113_v17, %v2454_v62  ;;  %v2570_v17 = vadd.f32 %v12134_v40, %v2457_v37  ;;  %v16984_v37 = vld [vmem:[#allocation68_spill] sm:$0xff] }
 0x4e4   : > { %8371 = vmatmul.msk.f32.gmra.mxu1 %vm2954_vm0, %v12290_v49  ;;  %3252 = vmatmul.f32.gmra.mxu2 %v16974_v10  ;;  %v12312_v55 = vpop.f32.mrf.mxu3  ;;  %v12316_v58 = vadd.f32 %v2679_v27, %v2567_v63  ;;  %v12324_v10 = vpop.f32.mrf.mxu2  ;;  %v16981_v27 = vld [vmem:[#allocation65_spill] sm:$0xff] }
 0x4e5   : > { %v2460_v63 = vadd.f32 %v12119_v13, %v16981_v27  ;;  %v2463_v13 = vadd.f32 %v12138_v56, %v16984_v37  ;;  %v16986_v27 = vld [vmem:[#allocation7_spill] sm:$0xff] }
 0x4e6   : > { %v16989_v37 = vld [vmem:[#allocation63_spill] sm:$0xff] }
 0x4e9   : > { %v12299_v38 = vpop.f32.mrf.mxu1 }
 0x4ea   : > { %3329 = vmatmul.f32.gmra.mxu3 %v16976_v35  ;;  %v16980_v35 = vld [vmem:[#allocation37_spill] sm:$0xff] }
 0x4ec   : > { %8372 = vmatmul.msk.f32.gmra.mxu1 %vm2954_vm0, %v12301_v14  ;;  %3255 = vmatmul.f32.gmra.mxu2 %v16977_v18  ;;  %v12329_v18 = vadd.f32 %v2682_v4, %v2570_v17  ;;  %v12334_v41 = vpop.f32.mrf.mxu3  ;;  %v16985_v17 = vld [vmem:[#allocation58_spill] sm:$0xff] }
 0x4f1   : > { %v12314_v15 = vpop.f32.mrf.mxu1 }
 0x4f2   : > { %3332 = vmatmul.f32.gmra.mxu3 %v16979_v6  ;;  %v2573_v6 = vadd.f32 %v12152_v19, %v2460_v63  ;;  %v2576_v19 = vadd.f32 %v12174_v42, %v2463_v13 }
 0x4f4   : > { %8373 = vmatmul.msk.f32.gmra.mxu1 %vm2954_vm0, %v12316_v58  ;;  %3258 = vmatmul.f32.gmra.mxu2 %v16980_v35  ;;  %v12340_v35 = vpop.f32.mrf.mxu2  ;;  %v12344_v4 = vadd.f32 %v2685_v26, %v2573_v6  ;;  %v12359_v26 = vadd.f32 %v2688_v57, %v2576_v19  ;;  %v16988_v6 = vld [vmem:[#allocation4_spill] sm:$0xff] }
 0x4f5   : > { %v2466_v56 = vadd.f32 %v12154_v23, %v16988_v6  ;;  %v4301_v23 = vld [vmem:[%s15819_s4 + $0x88] sm:$0xff] }
 0x4f6   : > { %16987 = vst [vmem:[#allocation62_spill] sm:$0xff] %v12359_v26  ;;  %4524 = vmatpush.msrb.mxu1 %v4301_v23 }
 0x4f7   : > { %v2579_v13 = vadd.f32 %v12191_v24, %v2466_v56  ;;  %v16994_v56 = vld [vmem:[#allocation47_spill] sm:$0xff] }
 0x4f9   : > { %v12327_v62 = vpop.f32.mrf.mxu1 }
 0x4fa   : > { %3335 = vmatmul.f32.gmra.mxu3 %v16982_v46  ;;  %v12352_v46 = vpop.f32.mrf.mxu3 }
 0x4fc   : > { %8374 = vmatmul.msk.f32.gmra.mxu1 %vm2954_vm0, %v12329_v18  ;;  %3261 = vmatmul.f32.gmra.mxu2 %v16983_v48  ;;  %v12355_v63 = vpop.f32.mrf.mxu2 }
 0x501   : > { %v12342_v40 = vpop.f32.mrf.mxu1 }
 0x502   : > { %3338 = vmatmul.f32.gmra.mxu3 %v16985_v17  ;;  %v3182_v17 = vadd.f32 %v12259_v33, %v12208_v50  ;;  %v12378_v50 = vadd.f32 %v2691_v47, %v2579_v13  ;;  %v16992_v33 = vld [vmem:[#allocation76_spill] sm:$0xff]  ;;  %v3185_v47 = vadd.f32 %v12273_v12, %v12222_v53  ;;  %v16996_v12 = vld [vmem:[#allocation78_spill] sm:$0xff] }
 0x503   : > { %v2469_v6 = vadd.f32 %v12166_v39, %v16992_v33  ;;  %v4299_v39 = vld [vmem:[%s15819_s4 + $0x78] sm:$0xff] }
 0x504   : > { %8375 = vmatmul.msk.f32.gmra.mxu1 %vm2954_vm0, %v12344_v4  ;;  %3264 = vmatmul.f32.gmra.mxu2 %v16986_v27  ;;  %v16990_v27 = vld [vmem:[#allocation9_spill] sm:$0xff]  ;;  %16991 = vst [vmem:[#allocation64_spill] sm:$0xff] %v12378_v50 }
 0x505   : > { %v2582_v23 = vadd.f32 %v12206_v0, %v2469_v6  ;;  %v3188_v6 = vadd.f32 %v12286_v11, %v12234_v61  ;;  %v17000_v11 = vld [vmem:[#allocation2_spill] sm:$0xff] }
 0x507   : > { %v12408_v53 = vadd.f32 %v12312_v55, %v2582_v23  ;;  %v16998_v55 = vld [vmem:[#allocation29_spill] sm:$0xff]  ;;  %v8785_v23 = vld [vmem:[%s11268_s17 + $0x10] sm:$0xff] }
 0x509   : > { %v12357_v48 = vpop.f32.mrf.mxu1  ;;  %16995 = vst [vmem:[#allocation66_spill] sm:$0xff] %v12408_v53 }
 0x50a   : > { %3341 = vmatmul.f32.gmra.mxu3 %v16989_v37  ;;  %v16993_v37 = vld [vmem:[#allocation13_spill] sm:$0xff] }
 0x50c   : > { %8376 = vmatmul.msk.f32.gmra.mxu1 %vm2954_vm0, %v12359_v26  ;;  %3267 = vmatmul.f32.gmra.mxu2 %v16990_v27  ;;  %v16997_v27 = vld [vmem:[#allocation81_spill] sm:$0xff] }
 0x50d   : > { %v3294_v42 = vpop.f32.mrf.mxu3 }
 0x50e   : > { %v3295_v31 = vadd.f32 %v3294_v42, %v3182_v17  ;;  %v12390_v17 = vpop.f32.mrf.mxu2 }
 0x510   : > { %v12371_v57 = vadd.f32 %v8783_v54, %v3295_v31  ;;  %v4300_v31 = vld [vmem:[%s15819_s4 + $0x80] sm:$0xff] }
 0x511   : > { %v12376_v19 = vpop.f32.mrf.mxu1  ;;  %4525 = vmatpush.msrb.mxu1 %v4300_v31 }
 0x512   : > { %3344 = vmatmul.f32.gmra.mxu3 %v16993_v37  ;;  %v3422_v24 = vsel %vm2744_vm13, %v12371_v57, 0.0  ;;  %v3557_v54 = vmul.f32 %v12371_v57, %v12371_v57 }
 0x513   : > { %3423 = vadd.xlane.f32.xlu1 %v3422_v24  ;;  %4526 = vmatpush.msrb.mxu1 %v4299_v39  ;;  %v8784_v24 = vld [vmem:[%s11268_s17 + $0x8] sm:$0xff] }
 0x514   : > { %8377 = vmatmul.msk.f32.gmra.mxu1 %vm2954_vm0, %v12378_v50  ;;  %3270 = vmatmul.f32.gmra.mxu2 %v16994_v56  ;;  %v3589_v42 = vsel %vm2744_vm13, %v3557_v54, 0.0  ;;  %v2472_v56 = vadd.f32 %v12180_v9, %v16996_v12  ;;  %v2475_v12 = vadd.f32 %v12194_v21, %v17000_v11 }
 0x515   : > { %v3297_v13 = vpop.f32.mrf.mxu3  ;;  %3590 = vadd.xlane.f32.xlu2 %v3589_v42 }
 0x516   : > { %v3298_v33 = vadd.f32 %v3297_v13, %v3185_v47  ;;  %v12423_v9 = vpop.f32.mrf.mxu2  ;;  %v2585_v42 = vadd.f32 %v12220_v45, %v2472_v56  ;;  %v3191_v56 = vadd.f32 %v12306_v20, %v12248_v2  ;;  %v2588_v21 = vadd.f32 %v12242_v32, %v2475_v12  ;;  %v17003_v20 = vld [vmem:[#allocation74_spill] sm:$0xff] }
 0x517   : > { %v3194_v12 = vadd.f32 %v12324_v10, %v12262_v34 }
 0x518   : > { %v12403_v31 = vadd.f32 %v8784_v24, %v3298_v33  ;;  %v12432_v61 = vadd.f32 %v12334_v41, %v2585_v42  ;;  %v8786_v42 = vld [vmem:[%s11268_s17 + $0x18] sm:$0xff]  ;;  %v12455_v2 = vadd.f32 %v12352_v46, %v2588_v21 }
 0x519   : > { %v12405_v37 = vpop.f32.mrf.mxu1 }
 0x51a   : > { %3347 = vmatmul.f32.gmra.mxu3 %v16997_v27  ;;  %v3425_v54 = vsel %vm2744_vm13, %v12403_v31, 0.0  ;;  %v3558_v0 = vmul.f32 %v12403_v31, %v12403_v31  ;;  %16999 = vst [vmem:[#allocation44_spill] sm:$0xff] %v12432_v61 }
 0x51b   : > { %3426 = vadd.xlane.f32.xlu0 %v3425_v54  ;;  %v17001_v54 = vld [vmem:[#allocation70_spill] sm:$0xff]  ;;  %17002 = vst [vmem:[#allocation72_spill] sm:$0xff] %v12455_v2 }
 0x51c   : > { %8378 = vmatmul.msk.f32.gmra.mxu1 %vm2954_vm0, %v12408_v53  ;;  %3273 = vmatmul.f32.gmra.mxu2 %v16998_v55  ;;  %v3592_v39 = vsel %vm2744_vm13, %v3558_v0, 0.0 }
 0x51d   : > { %v3300_v47 = vpop.f32.mrf.mxu3  ;;  %3593 = vadd.xlane.f32.xlu2 %v3592_v39 }
 0x51e   : > { %v3301_v13 = vadd.f32 %v3300_v47, %v3188_v6  ;;  %v12447_v47 = vpop.f32.mrf.mxu2 }
 0x520   : > { %v12427_v33 = vadd.f32 %v8785_v23, %v3301_v13 }
 0x521   : > { %v12429_v24 = vpop.f32.mrf.mxu1 }
 0x522   : > { %3350 = vmatmul.f32.gmra.mxu3 %v17001_v54  ;;  %v3428_v0 = vsel %vm2744_vm13, %v12427_v33, 0.0  ;;  %v3559_v45 = vmul.f32 %v12427_v33, %v12427_v33  ;;  %v17008_v54 = vld [vmem:[#allocation39_spill] sm:$0xff] }
 0x523   : > { %3429 = vadd.xlane.f32.xlu1 %v3428_v0 }
 0x524   : > { %8379 = vmatmul.msk.f32.gmra.mxu1 %vm2954_vm0, %v12432_v61  ;;  %v3595_v41 = vsel %vm2744_vm13, %v3559_v45, 0.0  ;;  %v17020_v61 = vld [vmem:[#allocation6_spill] sm:$0xff] }
 0x525   : > { %v3303_v6 = vpop.f32.mrf.mxu3  ;;  %3596 = vadd.xlane.f32.xlu2 %v3595_v41 }
 0x526   : > { %v3304_v39 = vadd.f32 %v3303_v6, %v3191_v56  ;;  %v8787_v56 = vld [vmem:[%s11268_s17 + $0x20] sm:$0xff]  ;;  %v12470_v6 = vpop.f32.mrf.mxu2 }
 0x528   : > { %v12450_v13 = vadd.f32 %v8786_v42, %v3304_v39  ;;  %v17004_v39 = vld [vmem:[#allocation30_spill] sm:$0xff]  ;;  %v3197_v42 = vadd.f32 %v12340_v35, %v12275_v7 }
 0x529   : > { %v12452_v23 = vpop.f32.mrf.mxu1 }
 0x52a   : > { %3353 = vmatmul.f32.gmra.mxu3 %v17003_v20  ;;  %v3431_v11 = vsel %vm2744_vm13, %v12450_v13, 0.0  ;;  %v3560_v32 = vmul.f32 %v12450_v13, %v12450_v13 }
 0x52b   : > { %3432 = vadd.xlane.f32.xlu0 %v3431_v11  ;;  %v17005_v11 = vld [vmem:[#allocation10_spill] sm:$0xff] }
 0x52c   : > { %8380 = vmatmul.msk.f32.gmra.mxu1 %vm2954_vm0, %v12455_v2  ;;  %v3598_v0 = vsel %vm2744_vm13, %v3560_v32, 0.0 }
 0x52d   : > { %v3306_v45 = vpop.f32.mrf.mxu3  ;;  %3599 = vadd.xlane.f32.xlu1 %v3598_v0 }
 0x52e   : > { %v3307_v46 = vadd.f32 %v3306_v45, %v3194_v12  ;;  %v8788_v45 = vld [vmem:[%s11268_s17 + $0x28] sm:$0xff]  ;;  %v12494_v35 = vpop.f32.mrf.mxu2 }
 0x530   : > { %v12468_v41 = vadd.f32 %v8787_v56, %v3307_v46 }
 0x531   : > { %v12472_v21 = vpop.f32.mrf.mxu1 }
 0x532   : > { %3356 = vmatmul.f32.gmra.mxu3 %v17004_v39  ;;  %v3434_v34 = vsel %vm2744_vm13, %v12468_v41, 0.0  ;;  %v3561_v10 = vmul.f32 %v12468_v41, %v12468_v41  ;;  %v17006_v39 = vld [vmem:[#allocation80_spill] sm:$0xff] }
 0x533   : > { %3435 = vadd.xlane.f32.xlu2 %v3434_v34 }
 0x534   : > { %8413 = vmatmul.msk.f32.vlgmr.msrb.gmra.mxu1 %vm2954_vm0, %v17005_v11  ;;  %v3601_v32 = vsel %vm2744_vm13, %v3561_v10, 0.0  ;;  %v3200_v10 = vadd.f32 %v12355_v63, %v12288_v16  ;;  %v3203_v63 = vadd.f32 %v12390_v17, %v12299_v38  ;;  %v17018_v11 = vld [vmem:[#allocation5_spill] sm:$0xff] }
 0x535   : > { %v3309_v12 = vpop.f32.mrf.mxu3  ;;  %3602 = vadd.xlane.f32.xlu0 %v3601_v32 }
 0x536   : > { %v3310_v0 = vadd.f32 %v3309_v12, %v3197_v42  ;;  %v17007_v42 = vld [vmem:[#allocation86_spill] sm:$0xff] }
 0x538   : > { %v12485_v46 = vadd.f32 %v8788_v45, %v3310_v0  ;;  %v8789_v45 = vld [vmem:[%s11268_s17 + $0x30] sm:$0xff] }
 0x539   : > { %v12487_v56 = vpop.f32.mrf.mxu1 }
 0x53a   : > { %3359 = vmatmul.f32.gmra.mxu3 %v17006_v39  ;;  %v3437_v34 = vsel %vm2744_vm13, %v12485_v46, 0.0  ;;  %v3562_v7 = vmul.f32 %v12485_v46, %v12485_v46 }
 0x53b   : > { %3438 = vadd.xlane.f32.xlu1 %v3437_v34 }
 0x53c   : > { %8414 = vmatmul.msk.f32.gmra.mxu1 %vm2954_vm0, %v17007_v42  ;;  %v3604_v32 = vsel %vm2744_vm13, %v3562_v7, 0.0  ;;  %v17009_v7 = vld [vmem:[#allocation11_spill] sm:$0xff]  ;;  %v17016_v42 = vld [vmem:[#allocation40_spill] sm:$0xff] }
 0x53d   : > { %v3312_v12 = vpop.f32.mrf.mxu3  ;;  %3605 = vadd.xlane.f32.xlu2 %v3604_v32  ;;  %v12516_v32 = vpop.f32.mrf.mxu2 }
 0x53e   : > { %v3313_v0 = vadd.f32 %v3312_v12, %v3200_v10 }
 0x540   : > { %v12502_v39 = vadd.f32 %v8789_v45, %v3313_v0  ;;  %v8790_v45 = vld [vmem:[%s11268_s17 + $0x38] sm:$0xff] }
 0x541   : > { %v12504_v20 = vpop.f32.mrf.mxu1 }
 0x542   : > { %3362 = vmatmul.f32.gmra.mxu3 %v17008_v54  ;;  %v3440_v34 = vsel %vm2744_vm13, %v12502_v39, 0.0  ;;  %v3563_v16 = vmul.f32 %v12502_v39, %v12502_v39 }
 0x543   : > { %3441 = vadd.xlane.f32.xlu0 %v3440_v34  ;;  %v17010_v34 = vld [vmem:[#allocation82_spill] sm:$0xff] }
 0x544   : > { %8415 = vmatmul.msk.f32.gmra.mxu1 %vm2954_vm0, %v17009_v7  ;;  %v3607_v10 = vsel %vm2744_vm13, %v3563_v16, 0.0  ;;  %v3206_v16 = vadd.f32 %v12423_v9, %v12314_v15 }
 0x545   : > { %v3315_v12 = vpop.f32.mrf.mxu3  ;;  %3608 = vadd.xlane.f32.xlu1 %v3607_v10  ;;  %v17011_v10 = vld [vmem:[#allocation34_spill] sm:$0xff] }
 0x546   : > { %v3316_v0 = vadd.f32 %v3315_v12, %v3203_v63 }
 0x548   : > { %v12519_v54 = vadd.f32 %v8790_v45, %v3316_v0  ;;  %v12533_v45 = vpop.f32.mrf.mxu2 }
 0x549   : > { %v12521_v27 = vpop.f32.mrf.mxu1 }
 0x54a   : > { %3365 = vmatmul.f32.gmra.mxu3 %v17010_v34  ;;  %v3443_v38 = vsel %vm2744_vm13, %v12519_v54, 0.0  ;;  %v3564_v17 = vmul.f32 %v12519_v54, %v12519_v54  ;;  %v8791_v34 = vld [vmem:[%s11268_s17 + $0x40] sm:$0xff] }
 0x54b   : > { %3444 = vadd.xlane.f32.xlu2 %v3443_v38  ;;  %v17012_v38 = vld [vmem:[#allocation3_spill] sm:$0xff] }
 0x54c   : > { %8416 = vmatmul.msk.f32.gmra.mxu1 %vm2954_vm0, %v17011_v10  ;;  %v3610_v63 = vsel %vm2744_vm13, %v3564_v17, 0.0  ;;  %v3209_v17 = vadd.f32 %v12447_v47, %v12327_v62 }
 0x54d   : > { %v3318_v12 = vpop.f32.mrf.mxu3  ;;  %3611 = vadd.xlane.f32.xlu0 %v3610_v63 }
 0x54e   : > { %v3319_v0 = vadd.f32 %v3318_v12, %v3206_v16  ;;  %v17013_v16 = vld [vmem:[#allocation88_spill] sm:$0xff] }
 0x550   : > { %v12536_v55 = vadd.f32 %v8791_v34, %v3319_v0  ;;  %v8792_v0 = vld [vmem:[%s11268_s17 + $0x48] sm:$0xff]  ;;  %v12553_v10 = vpop.f32.mrf.mxu2 }
 0x551   : > { %v12538_v36 = vpop.f32.mrf.mxu1 }
 0x552   : > { %3368 = vmatmul.f32.gmra.mxu3 %v17012_v38  ;;  %v3446_v15 = vsel %vm2744_vm13, %v12536_v55, 0.0  ;;  %v3565_v9 = vmul.f32 %v12536_v55, %v12536_v55 }
 0x553   : > { %3447 = vadd.xlane.f32.xlu1 %v3446_v15  ;;  %v17014_v15 = vld [vmem:[#allocation18_spill] sm:$0xff] }
 0x554   : > { %8417 = vmatmul.msk.f32.gmra.mxu1 %vm2954_vm0, %v17013_v16  ;;  %v3613_v34 = vsel %vm2744_vm13, %v3565_v9, 0.0  ;;  %v3212_v9 = vadd.f32 %v12470_v6, %v12342_v40 }
 0x555   : > { %v3321_v63 = vpop.f32.mrf.mxu3  ;;  %3614 = vadd.xlane.f32.xlu2 %v3613_v34 }
 0x556   : > { %v3322_v12 = vadd.f32 %v3321_v63, %v3209_v17  ;;  %v17015_v17 = vld [vmem:[#allocation90_spill] sm:$0xff] }
 0x558   : > { %v12551_v38 = vadd.f32 %v8792_v0, %v3322_v12  ;;  %v8793_v0 = vld [vmem:[%s11268_s17 + $0x50] sm:$0xff]  ;;  %v12577_v6 = vpop.f32.mrf.mxu2 }
 0x559   : > { %v12555_v7 = vpop.f32.mrf.mxu1 }
 0x55a   : > { %3371 = vmatmul.f32.gmra.mxu3 %v17014_v15  ;;  %v3449_v62 = vsel %vm2744_vm13, %v12551_v38, 0.0  ;;  %v3566_v47 = vmul.f32 %v12551_v38, %v12551_v38 }
 0x55b   : > { %3450 = vadd.xlane.f32.xlu0 %v3449_v62 }
 0x55c   : > { %8418 = vmatmul.msk.f32.gmra.mxu1 %vm2954_vm0, %v17015_v17  ;;  %v3616_v34 = vsel %vm2744_vm13, %v3566_v47, 0.0  ;;  %v3215_v47 = vadd.f32 %v12494_v35, %v12357_v48  ;;  %v8836_v35 = vmov 32.0  }
 0x55d   : > { %v3324_v63 = vpop.f32.mrf.mxu3  ;;  %3617 = vadd.xlane.f32.xlu1 %v3616_v34  ;;  %8589 = vrcp.f32 %v8836_v35  ;;  %v17019_v35 = vld [vmem:[#allocation84_spill] sm:$0xff] }
 0x55e   : > { %v3325_v12 = vadd.f32 %v3324_v63, %v3212_v9  ;;  %v17017_v9 = vld [vmem:[#allocation14_spill] sm:$0xff] }
 0x560   : > { %v12568_v15 = vadd.f32 %v8793_v0, %v3325_v12  ;;  %v8794_v0 = vld [vmem:[%s11268_s17 + $0x58] sm:$0xff] }
 0x561   : > { %v12570_v16 = vpop.f32.mrf.mxu1 }
 0x562   : > { %3374 = vmatmul.f32.gmra.mxu3 %v17016_v42  ;;  %v3452_v62 = vsel %vm2744_vm13, %v12568_v15, 0.0  ;;  %v3567_v40 = vmul.f32 %v12568_v15, %v12568_v15 }
 0x563   : > { %3453 = vadd.xlane.f32.xlu2 %v3452_v62 }
 0x564   : > { %8419 = vmatmul.msk.f32.gmra.mxu1 %vm2954_vm0, %v17017_v9  ;;  %v3619_v34 = vsel %vm2744_vm13, %v3567_v40, 0.0  ;;  %v3218_v40 = vadd.f32 %v12516_v32, %v12376_v19 }
 0x565   : > { %v3327_v63 = vpop.f32.mrf.mxu3  ;;  %3620 = vadd.xlane.f32.xlu0 %v3619_v34  ;;  %v12599_v34 = vpop.f32.mrf.mxu2 }
 0x566   : > { %v3328_v12 = vadd.f32 %v3327_v63, %v3215_v47 }
 0x568   : > { %v12585_v42 = vadd.f32 %v8794_v0, %v3328_v12  ;;  %v8795_v0 = vld [vmem:[%s11268_s17 + $0x60] sm:$0xff] }
 0x569   : > { %v12587_v17 = vpop.f32.mrf.mxu1 }
 0x56a   : > { %3377 = vmatmul.f32.gmra.mxu3 %v17018_v11  ;;  %v3455_v62 = vsel %vm2744_vm13, %v12585_v42, 0.0  ;;  %v3568_v48 = vmul.f32 %v12585_v42, %v12585_v42 }
 0x56b   : > { %3456 = vadd.xlane.f32.xlu1 %v3455_v62  ;;  %v8590_v62 = vpop.eup %8589 }
 0x56c   : > { %8420 = vmatmul.msk.f32.gmra.mxu1 %vm2954_vm0, %v11854_v3  ;;  %v3622_v47 = vsel %vm2744_vm13, %v3568_v48, 0.0  ;;  %v3221_v48 = vadd.f32 %v12533_v45, %v12405_v37  ;;  %vm3523_vm5 = vweird.f32 %v8590_v62 }
 0x56d   : > { %v3330_v63 = vpop.f32.mrf.mxu3  ;;  %3623 = vadd.xlane.f32.xlu2 %v3622_v47  ;;  %v3519_v47 = vmul.f32 32.0, %v8590_v62 }
 0x56e   : > { %v3331_v12 = vadd.f32 %v3330_v63, %v3218_v40 }
 0x56f   : > { %v3520_v2 = vsub.f32 1.0, %v3519_v47 }
 0x570   : > { %v12602_v11 = vadd.f32 %v8795_v0, %v3331_v12  ;;  %v12616_v0 = vpop.f32.mrf.mxu2 }
 0x571   : > { %v12604_v9 = vpop.f32.mrf.mxu1 }
 0x572   : > { %3380 = vmatmul.f32.gmra.mxu3 %v17019_v35  ;;  %v3458_v19 = vsel %vm2744_vm13, %v12602_v11, 0.0  ;;  %v3569_v32 = vmul.f32 %v12602_v11, %v12602_v11  ;;  %v8796_v35 = vld [vmem:[%s11268_s17 + $0x68] sm:$0xff] }
 0x573   : > { %3459 = vadd.xlane.f32.xlu0 %v3458_v19 }
 0x574   : > { %8421 = vmatmul.msk.f32.gmra.mxu1 %vm2954_vm0, %v12090_v8  ;;  %v3625_v40 = vsel %vm2744_vm13, %v3569_v32, 0.0  ;;  %v3224_v32 = vadd.f32 %v12553_v10, %v12429_v24  ;;  %v4298_v10 = vld [vmem:[%s15819_s4 + $0x38] sm:$0xff] }
 0x575   : > { %v3333_v63 = vpop.f32.mrf.mxu3  ;;  %3626 = vadd.xlane.f32.xlu1 %v3625_v40  ;;  %4410 = vmatpush.msra.mxu0 %v4298_v10 }
 0x576   : > { %v3334_v12 = vadd.f32 %v3333_v63, %v3221_v48  ;;  %v3521_v48 = vmul.f32 %v8590_v62, %v3520_v2  ;;  %v8797_v63 = vld [vmem:[%s11268_s17 + $0x70] sm:$0xff] }
 0x578   : > { %v12619_v3 = vadd.f32 %v8796_v35, %v3334_v12  ;;  %v12636_v8 = vpop.f32.mrf.mxu2 }
 0x579   : > { %v12621_v19 = vpop.f32.mrf.mxu1 }
 0x57a   : > { %3383 = vmatmul.f32.gmra.mxu3 %v17020_v61  ;;  %v3461_v37 = vsel %vm2744_vm13, %v12619_v3, 0.0  ;;  %v3570_v45 = vmul.f32 %v12619_v3, %v12619_v3  ;;  %v3522_v61 = vadd.f32 %v8590_v62, %v3521_v48  ;;  %v4297_v48 = vld [vmem:[%s15819_s4 + $0x30] sm:$0xff] }
 0x57b   : > { %3462 = vadd.xlane.f32.xlu2 %v3461_v37  ;;  %v17022_v37 = vld [vmem:[#allocation26_spill] sm:$0xff]  ;;  %4411 = vmatpush.msra.mxu0 %v4297_v48 }
 0x57c   : > { %8422 = vmatmul.msk.f32.gmra.mxu1 %vm2954_vm0, %v12105_v22  ;;  %v3628_v35 = vsel %vm2744_vm13, %v3570_v45, 0.0  ;;  %v3227_v45 = vadd.f32 %v12577_v6, %v12452_v23  ;;  %v4296_v23 = vld [vmem:[%s15819_s4 + $0x28] sm:$0xff] }
 0x57d   : > { %v3336_v40 = vpop.f32.mrf.mxu3  ;;  %3629 = vadd.xlane.f32.xlu0 %v3628_v35  ;;  %v12653_v35 = vsel %vm3523_vm5, %v8590_v62, %v3522_v61  ;;  %4412 = vmatpush.msra.mxu0 %v4296_v23  ;;  %v3230_v23 = vadd.f32 %v12599_v34, %v12472_v21 }
 0x57e   : > { %v3337_v47 = vadd.f32 %v3336_v40, %v3224_v32 }
 0x580   : > { %v12634_v12 = vadd.f32 %v8797_v63, %v3337_v47 }
 0x581   : > { %v12638_v53 = vpop.f32.mrf.mxu1 }
 0x582   : > { %17021 = vst [vmem:[#allocation22_spill] sm:$0xff] %v12634_v12  ;;  %3386 = vmatmul.f32.gmra.mxu3 %v17022_v37  ;;  %v3464_v24 = vsel %vm2744_vm13, %v12634_v12, 0.0  ;;  %v3571_v2 = vmul.f32 %v12634_v12, %v12634_v12 }
 0x583   : > { %3465 = vadd.xlane.f32.xlu1 %v3464_v24  ;;  %v8798_v24 = vld [vmem:[%s11268_s17 + $0x78] sm:$0xff] }
 0x584   : > { %8423 = vmatmul.msk.f32.gmra.mxu1 %vm2954_vm0, %v12122_v51  ;;  %v3631_v32 = vsel %vm2744_vm13, %v3571_v2, 0.0  ;;  %v4295_v2 = vld [vmem:[%s15819_s4 + $0x20] sm:$0xff] }
 0x585   : > { %v3339_v40 = vpop.f32.mrf.mxu3  ;;  %3632 = vadd.xlane.f32.xlu2 %v3631_v32  ;;  %4413 = vmatpush.msra.mxu0 %v4295_v2 }
 0x586   : > { %v3340_v47 = vadd.f32 %v3339_v40, %v3227_v45  ;;  %v3424_v63 = vpop.xlane.xlu1 %3423 }
 0x587   : > { %v12662_v6 = vmul.f32 %v12653_v35, %v3424_v63 }
 0x588   : > { %v12665_v61 = vadd.f32 %v8798_v24, %v3340_v47  ;;  %v3591_v62 = vpop.xlane.xlu2 %3590  ;;  %v12679_v47 = vpop.f32.mrf.mxu2 }
 0x589   : > { %v3717_v10 = vmul.f32 %v12662_v6, %v12662_v6  ;;  %v3685_v45 = vmul.f32 %v3591_v62, %v12653_v35  ;;  %v12673_v32 = vpop.f32.mrf.mxu1 }
 0x58a   : > { %17023 = vst [vmem:[#allocation52_spill] sm:$0xff] %v12665_v61  ;;  %v3467_v48 = vsel %vm2744_vm13, %v12665_v61, 0.0  ;;  %v3572_v40 = vmul.f32 %v12665_v61, %v12665_v61  ;;  %v8799_v61 = vld [vmem:[%s11268_s17 + $0x80] sm:$0xff] }
 0x58b   : > { %v3749_v63 = vsub.f32 %v3685_v45, %v3717_v10  ;;  %3468 = vadd.xlane.f32.xlu0 %v3467_v48 }
 0x58c   : > { %8424 = vmatmul.msk.f32.gmra.mxu1 %vm2954_vm0, %v12141_v5  ;;  %v3634_v24 = vsel %vm2744_vm13, %v3572_v40, 0.0 }
 0x58d   : > { %v3813_v62 = vadd.f32 1e-05, %v3749_v63  ;;  %v3342_v2 = vpop.f32.mrf.mxu3  ;;  %3635 = vadd.xlane.f32.xlu1 %v3634_v24 }
 0x58e   : > { %v3343_v37 = vadd.f32 %v3342_v2, %v3230_v23  ;;  %v3427_v51 = vpop.xlane.xlu0 %3426 }
 0x58f   : > { %8591 = vrsqrt.f32 %v3813_v62  ;;  %v12687_v22 = vmul.f32 %v12653_v35, %v3427_v51  ;;  %v3233_v51 = vadd.f32 %v12616_v0, %v12487_v56  ;;  %v8800_v0 = vld [vmem:[%s11268_s17 + $0x88] sm:$0xff]  ;;  %vm3851_vm11 = vweird.f32 %v3813_v62 }
 0x590   : > { %v12690_v10 = vadd.f32 %v8799_v61, %v3343_v37  ;;  %v3594_v45 = vpop.xlane.xlu2 %3593  ;;  %v12706_v24 = vpop.f32.mrf.mxu2 }
 0x591   : > { %v3718_v21 = vmul.f32 %v12687_v22, %v12687_v22  ;;  %v3686_v34 = vmul.f32 %v3594_v45, %v12653_v35  ;;  %v12695_v48 = vpop.f32.mrf.mxu1 }
 0x592   : > { %17024 = vst [vmem:[#allocation41_spill] sm:$0xff] %v12690_v10  ;;  %v3470_v40 = vsel %vm2744_vm13, %v12690_v10, 0.0  ;;  %v3573_v63 = vmul.f32 %v12690_v10, %v12690_v10 }
 0x593   : > { %v3750_v23 = vsub.f32 %v3686_v34, %v3718_v21  ;;  %3471 = vadd.xlane.f32.xlu2 %v3470_v40 }
 0x594   : > { %8425 = vmatmul.msk.f32.gmra.mxu1 %vm2954_vm0, %v12157_v1  ;;  %v3637_v37 = vsel %vm2744_vm13, %v3573_v63, 0.0 }
 0x595   : > { %v8592_v61 = vpop.eup %8591  ;;  %v12708_v2 = vadd.f32 1e-05, %v3750_v23  ;;  %v3345_v45 = vpop.f32.mrf.mxu3  ;;  %3638 = vadd.xlane.f32.xlu0 %v3637_v37 }
 0x596   : > { %v3846_v5 = vmul.f32 %v8592_v61, %v3813_v62  ;;  %v3346_v10 = vadd.f32 %v3345_v45, %v3233_v51  ;;  %v3430_v21 = vpop.xlane.xlu1 %3429  ;;  %vm3852_vm6 = vweird.f32 %v8592_v61 }
 0x597   : > { %8593 = vrsqrt.f32 %v12708_v2  ;;  %v12712_v34 = vmul.f32 %v12653_v35, %v3430_v21  ;;  %vm3853_vm7 = vmor %vm3851_vm11, %vm3852_vm6  ;;  %vm3861_vm2 = vweird.f32 %v12708_v2 }
 0x598   : > { %v3847_v56 = vmul.f32 %v8592_v61, %v3846_v5  ;;  %v12715_v40 = vadd.f32 %v8800_v0, %v3346_v10  ;;  %v3597_v63 = vpop.xlane.xlu2 %3596  ;;  %v3236_v5 = vadd.f32 %v12636_v8, %v12504_v20  ;;  %v12734_v8 = vpop.f32.mrf.mxu2  ;;  %v3781_v20 = vsub.f32 %v12371_v57, %v12662_v6  ;;  %v12754_v57 = vld [vmem:[%s15819_s4 + $0xd0] ss:$0 sm:$0xff] }
 0x599   : > { %v3719_v1 = vmul.f32 %v12712_v34, %v12712_v34  ;;  %v3687_v23 = vmul.f32 %v3597_v63, %v12653_v35  ;;  %v12720_v50 = vpop.f32.mrf.mxu1 }
 0x59a   : > { %17025 = vst [vmem:[#allocation21_spill] sm:$0xff] %v12715_v40  ;;  %v3848_v37 = vmul.f32 0.5, %v3847_v56  ;;  %v3473_v51 = vsel %vm2744_vm13, %v12715_v40, 0.0  ;;  %v3574_v45 = vmul.f32 %v12715_v40, %v12715_v40 }
 0x59b   : > { %v3751_v21 = vsub.f32 %v3687_v23, %v3719_v1  ;;  %3474 = vadd.xlane.f32.xlu1 %v3473_v51 }
 0x59c   : > { %v3849_v10 = vsub.f32 1.5, %v3848_v37  ;;  %8426 = vmatmul.msk.f32.gmra.mxu1 %vm2954_vm0, %v12169_v43  ;;  %v3640_v0 = vsel %vm2744_vm13, %v3574_v45, 0.0  ;;  %v12741_v37 = vld [vmem:[%s15819_s4 + $0xc8] ss:$0 sm:$0xff] }
 0x59d   : > { %v8594_v63 = vpop.eup %8593  ;;  %v12731_v56 = vadd.f32 1e-05, %v3751_v21  ;;  %v3348_v12 = vpop.f32.mrf.mxu3  ;;  %3641 = vadd.xlane.f32.xlu2 %v3640_v0  ;;  %v8801_v21 = vld [vmem:[%s11268_s17 + $0x90] sm:$0xff] }
 0x59e   : > { %v3850_v26 = vmul.f32 %v8592_v61, %v3849_v10  ;;  %v3856_v1 = vmul.f32 %v8594_v63, %v12708_v2  ;;  %v3349_v23 = vadd.f32 %v3348_v12, %v3236_v5  ;;  %v3433_v51 = vpop.xlane.xlu0 %3432  ;;  %vm3862_vm15 = vweird.f32 %v8594_v63 }
 0x59f   : > { %8595 = vrsqrt.f32 %v12731_v56  ;;  %v12746_v62 = vmul.f32 %v12653_v35, %v3433_v51  ;;  %vm3863_vm8 = vmor %vm3861_vm2, %vm3862_vm15  ;;  %vm3871_vm3 = vweird.f32 %v12731_v56 }
 0x5a0   : > { %v3854_v45 = vsel %vm3853_vm7, %v8592_v61, %v3850_v26  ;;  %v3857_v12 = vmul.f32 %v8594_v63, %v3856_v1  ;;  %v12749_v5 = vadd.f32 %v8801_v21, %v3349_v23  ;;  %v3600_v10 = vpop.xlane.xlu1 %3599 }
 0x5a1   : > { %v4165_v6 = vmul.f32 %v3854_v45, %v3781_v20  ;;  %v3720_v0 = vmul.f32 %v12746_v62, %v12746_v62  ;;  %v3688_v43 = vmul.f32 %v3600_v10, %v12653_v35  ;;  %v12759_v40 = vpop.f32.mrf.mxu1  ;;  %v3239_v20 = vadd.f32 %v12679_v47, %v12521_v27 }
 0x5a2   : > { %17026 = vst [vmem:[#allocation56_spill] sm:$0xff] %v12749_v5  ;;  %v3858_v51 = vmul.f32 0.5, %v3857_v12  ;;  %v3476_v26 = vsel %vm2744_vm13, %v12749_v5, 0.0  ;;  %v3575_v61 = vmul.f32 %v12749_v5, %v12749_v5 }
 0x5a3   : > { %v4198_v1 = vmul.f32 %v12741_v37, %v4165_v6  ;;  %v3752_v23 = vsub.f32 %v3688_v43, %v3720_v0  ;;  %3477 = vadd.xlane.f32.xlu0 %v3476_v26 }
 0x5a4   : > { %v3859_v45 = vsub.f32 1.5, %v3858_v51  ;;  %8427 = vmatmul.msk.f32.gmra.mxu1 %vm2954_vm0, %v12183_v59  ;;  %v3643_v12 = vsel %vm2744_vm13, %v3575_v61, 0.0  ;;  %v3782_v51 = vsub.f32 %v12403_v31, %v12687_v22  ;;  %v12788_v59 = vpop.f32.mrf.mxu2 }
 0x5a5   : > { %v8596_v21 = vpop.eup %8595  ;;  %v12772_v10 = vadd.f32 %v12754_v57, %v4198_v1  ;;  %v12774_v5 = vadd.f32 1e-05, %v3752_v23  ;;  %v3351_v6 = vpop.f32.mrf.mxu3  ;;  %3644 = vadd.xlane.f32.xlu1 %v3643_v12 }
 0x5a6   : > { %v3860_v43 = vmul.f32 %v8594_v63, %v3859_v45  ;;  %v3866_v27 = vmul.f32 %v8596_v21, %v12731_v56  ;;  %v3352_v47 = vadd.f32 %v3351_v6, %v3239_v20  ;;  %v3436_v0 = vpop.xlane.xlu2 %3435  ;;  %v8802_v45 = vld [vmem:[%s11268_s17 + $0x98] sm:$0xff]  ;;  %vm3872_vm10 = vweird.f32 %v8596_v21 }
 0x5a7   : > { %8597 = vrsqrt.f32 %v12774_v5  ;;  %v12782_v26 = vmul.f32 %v12653_v35, %v3436_v0  ;;  %v16197_v61 = vmax.f32 %v12772_v10, 0.0  ;;  %vm3873_vm12 = vmor %vm3871_vm3, %vm3872_vm10  ;;  %vm3881_vm9 = vweird.f32 %v12774_v5 }
 0x5a8   : > { %v3864_v1 = vsel %vm3863_vm8, %v8594_v63, %v3860_v43  ;;  %v3867_v23 = vmul.f32 %v8596_v21, %v3866_v27  ;;  %v12786_v12 = vadd.f32 %v8802_v45, %v3352_v47  ;;  %v3603_v2 = vpop.xlane.xlu0 %3602  ;;  %v3242_v45 = vadd.f32 %v12706_v24, %v12538_v36 }
 0x5a9   : > { %v3721_v20 = vmul.f32 %v12782_v26, %v12782_v26  ;;  %v3689_v22 = vmul.f32 %v3603_v2, %v12653_v35  ;;  %8381 = vmatmul.msk.f32.vlgmr.msra.gmra.mxu0 %vm2744_vm13, %v16197_v61  ;;  %v12796_v31 = vpop.f32.mrf.mxu1  ;;  %v4166_v6 = vmul.f32 %v3864_v1, %v3782_v51 }
 0x5aa   : > { %v3868_v63 = vmul.f32 0.5, %v3867_v23  ;;  %v3479_v43 = vsel %vm2744_vm13, %v12786_v12, 0.0  ;;  %v3576_v27 = vmul.f32 %v12786_v12, %v12786_v12 }
 0x5ab   : > { %v3753_v47 = vsub.f32 %v3689_v22, %v3721_v20  ;;  %3480 = vadd.xlane.f32.xlu2 %v3479_v43  ;;  %v4199_v0 = vmul.f32 %v12741_v37, %v4166_v6 }
 0x5ac   : > { %v3869_v2 = vsub.f32 1.5, %v3868_v63  ;;  %8428 = vmatmul.msk.f32.gmra.mxu1 %vm2954_vm0, %v12197_v60  ;;  %v3646_v51 = vsel %vm2744_vm13, %v3576_v27, 0.0  ;;  %v3783_v63 = vsub.f32 %v12427_v33, %v12712_v34 }
 0x5ad   : > { %v8598_v1 = vpop.eup %8597  ;;  %v12808_v23 = vadd.f32 1e-05, %v3753_v47  ;;  %v3354_v61 = vpop.f32.mrf.mxu3  ;;  %3647 = vadd.xlane.f32.xlu0 %v3646_v51  ;;  %v12811_v20 = vadd.f32 %v12754_v57, %v4199_v0 }
 0x5ae   : > { %v3870_v22 = vmul.f32 %v8596_v21, %v3869_v2  ;;  %v3876_v36 = vmul.f32 %v8598_v1, %v12774_v5  ;;  %v3355_v24 = vadd.f32 %v3354_v61, %v3242_v45  ;;  %v3439_v6 = vpop.xlane.xlu1 %3438  ;;  %v8803_v2 = vld [vmem:[%s11268_s17 + $0xa0] sm:$0xff]  ;;  %vm3882_vm4 = vweird.f32 %v8598_v1 }
 0x5af   : > { %17027 = vst [vmem:[#allocation45_spill] sm:$0xff] %v12811_v20  ;;  %8599 = vrsqrt.f32 %v12808_v23  ;;  %v12819_v43 = vmul.f32 %v12653_v35, %v3439_v6  ;;  %v16198_v27 = vmax.f32 %v12811_v20, 0.0  ;;  %vm3883_vm1 = vmor %vm3881_vm9, %vm3882_vm4  ;;  %vm3891_vm5 = vweird.f32 %v12808_v23 }
 0x5b0   : > { %v3874_v47 = vsel %vm3873_vm12, %v8596_v21, %v3870_v22  ;;  %v3877_v0 = vmul.f32 %v8598_v1, %v3876_v36  ;;  %v12823_v51 = vadd.f32 %v8803_v2, %v3355_v24  ;;  %v3606_v56 = vpop.xlane.xlu2 %3605  ;;  %v12837_v36 = vpop.f32.mrf.mxu2 }
 0x5b1   : > { %v3722_v61 = vmul.f32 %v12819_v43, %v12819_v43  ;;  %v3690_v45 = vmul.f32 %v3606_v56, %v12653_v35  ;;  %8382 = vmatmul.msk.f32.gmra.mxu0 %vm2744_vm13, %v16198_v27  ;;  %v12831_v33 = vpop.f32.mrf.mxu1  ;;  %v4167_v34 = vmul.f32 %v3874_v47, %v3783_v63  ;;  %v3245_v56 = vadd.f32 %v12734_v8, %v12555_v7 }
 0x5b2   : > { %v3878_v6 = vmul.f32 0.5, %v3877_v0  ;;  %v3482_v21 = vsel %vm2744_vm13, %v12823_v51, 0.0  ;;  %v3577_v22 = vmul.f32 %v12823_v51, %v12823_v51 }
 0x5b3   : > { %v3754_v24 = vsub.f32 %v3690_v45, %v3722_v61  ;;  %3483 = vadd.xlane.f32.xlu1 %v3482_v21  ;;  %v4200_v2 = vmul.f32 %v12741_v37, %v4167_v34 }
 0x5b4   : > { %v3879_v27 = vsub.f32 1.5, %v3878_v6  ;;  %8429 = vmatmul.msk.f32.gmra.mxu1 %vm2954_vm0, %v12211_v29  ;;  %v3649_v63 = vsel %vm2744_vm13, %v3577_v22, 0.0  ;;  %v3784_v6 = vsub.f32 %v12450_v13, %v12746_v62 }
 0x5b5   : > { %v8600_v47 = vpop.eup %8599  ;;  %v12845_v0 = vadd.f32 1e-05, %v3754_v24  ;;  %v3357_v20 = vpop.f32.mrf.mxu3  ;;  %3650 = vadd.xlane.f32.xlu2 %v3649_v63  ;;  %v12848_v61 = vadd.f32 %v12754_v57, %v4200_v2 }
 0x5b6   : > { %v3880_v45 = vmul.f32 %v8598_v1, %v3879_v27  ;;  %v3886_v7 = vmul.f32 %v8600_v47, %v12808_v23  ;;  %v3358_v8 = vadd.f32 %v3357_v20, %v3245_v56  ;;  %v3442_v34 = vpop.xlane.xlu0 %3441  ;;  %v8804_v27 = vld [vmem:[%s11268_s17 + $0xa8] sm:$0xff]  ;;  %vm3892_vm14 = vweird.f32 %v8600_v47 }
 0x5b7   : > { %17028 = vst [vmem:[#allocation32_spill] sm:$0xff] %v12848_v61  ;;  %8601 = vrsqrt.f32 %v12845_v0  ;;  %v12856_v21 = vmul.f32 %v12653_v35, %v3442_v34  ;;  %v16200_v22 = vmax.f32 %v12848_v61, 0.0  ;;  %vm3893_vm6 = vmor %vm3891_vm5, %vm3892_vm14  ;;  %vm3901_vm7 = vweird.f32 %v12845_v0 }
 0x5b8   : > { %v3884_v24 = vsel %vm3883_vm1, %v8598_v1, %v3880_v45  ;;  %v3887_v2 = vmul.f32 %v8600_v47, %v3886_v7  ;;  %v12860_v63 = vadd.f32 %v8804_v27, %v3358_v8  ;;  %v3609_v5 = vpop.xlane.xlu1 %3608  ;;  %v3248_v27 = vadd.f32 %v12788_v59, %v12570_v16 }
 0x5b9   : > { %v3723_v20 = vmul.f32 %v12856_v21, %v12856_v21  ;;  %v3691_v56 = vmul.f32 %v3609_v5, %v12653_v35  ;;  %8383 = vmatmul.msk.f32.gmra.mxu0 %vm2744_vm13, %v16200_v22  ;;  %v12868_v13 = vpop.f32.mrf.mxu1  ;;  %v4168_v62 = vmul.f32 %v3884_v24, %v3784_v6 }
 0x5ba   : > { %v3888_v34 = vmul.f32 0.5, %v3887_v2  ;;  %v3485_v1 = vsel %vm2744_vm13, %v12860_v63, 0.0  ;;  %v3578_v45 = vmul.f32 %v12860_v63, %v12860_v63  ;;  %v12882_v2 = vpop.f32.mrf.mxu2 }
 0x5bb   : > { %v3755_v7 = vsub.f32 %v3691_v56, %v3723_v20  ;;  %3486 = vadd.xlane.f32.xlu0 %v3485_v1  ;;  %v4201_v8 = vmul.f32 %v12741_v37, %v4168_v62  ;;  %v3785_v1 = vsub.f32 %v12468_v41, %v12782_v26 }
 0x5bc   : > { %v3889_v5 = vsub.f32 1.5, %v3888_v34  ;;  %8430 = vmatmul.msk.f32.gmra.mxu1 %vm2954_vm0, %v12225_v28  ;;  %v3652_v6 = vsel %vm2744_vm13, %v3578_v45, 0.0 }
 0x5bd   : > { %v12880_v24 = vpop.eup %8601  ;;  %v12884_v22 = vadd.f32 1e-05, %v3755_v7  ;;  %v3360_v20 = vpop.f32.mrf.mxu3  ;;  %3653 = vadd.xlane.f32.xlu1 %v3652_v6  ;;  %v12887_v56 = vadd.f32 %v12754_v57, %v4201_v8 }
 0x5be   : > { %v3890_v59 = vmul.f32 %v8600_v47, %v3889_v5  ;;  %v3896_v16 = vmul.f32 %v12880_v24, %v12845_v0  ;;  %v3361_v62 = vadd.f32 %v3360_v20, %v3248_v27  ;;  %v3445_v34 = vpop.xlane.xlu2 %3444  ;;  %v8805_v5 = vld [vmem:[%s11268_s17 + $0xb0] sm:$0xff]  ;;  %vm3902_vm11 = vweird.f32 %v12880_v24 }
 0x5bf   : > { %17029 = vst [vmem:[#allocation12_spill] sm:$0xff] %v12887_v56  ;;  %8603 = vrsqrt.f32 %v12884_v22  ;;  %v12897_v45 = vmul.f32 %v12653_v35, %v3445_v34  ;;  %v16202_v7 = vmax.f32 %v12887_v56, 0.0  ;;  %vm3903_vm15 = vmor %vm3901_vm7, %vm3902_vm11  ;;  %vm3911_vm8 = vweird.f32 %v12884_v22 }
 0x5c0   : > { %v3894_v8 = vsel %vm3893_vm6, %v8600_v47, %v3890_v59  ;;  %v3897_v23 = vmul.f32 %v12880_v24, %v3896_v16  ;;  %v12902_v6 = vadd.f32 %v8805_v5, %v3361_v62  ;;  %v3612_v27 = vpop.xlane.xlu0 %3611  ;;  %v3251_v5 = vadd.f32 %v12837_v36, %v12587_v17 }
 0x5c1   : > { %v3724_v20 = vmul.f32 %v12897_v45, %v12897_v45  ;;  %v3692_v41 = vmul.f32 %v3612_v27, %v12653_v35  ;;  %8384 = vmatmul.msk.f32.gmra.mxu0 %vm2744_vm13, %v16202_v7  ;;  %v12910_v26 = vpop.f32.mrf.mxu1  ;;  %v4169_v34 = vmul.f32 %v3894_v8, %v3785_v1 }
 0x5c2   : > { %v3898_v61 = vmul.f32 0.5, %v3897_v23  ;;  %v3488_v47 = vsel %vm2744_vm13, %v12902_v6, 0.0  ;;  %v3579_v59 = vmul.f32 %v12902_v6, %v12902_v6 }
 0x5c3   : > { %v3756_v16 = vsub.f32 %v3692_v41, %v3724_v20  ;;  %3489 = vadd.xlane.f32.xlu2 %v3488_v47  ;;  %v4202_v62 = vmul.f32 %v12741_v37, %v4169_v34  ;;  %v3256_v34 = vpop.f32.mrf.mxu2  ;;  %v3786_v47 = vsub.f32 %v12485_v46, %v12819_v43 }
 0x5c4   : > { %v3899_v27 = vsub.f32 1.5, %v3898_v61  ;;  %8431 = vmatmul.msk.f32.gmra.mxu1 %vm2954_vm0, %v12237_v44  ;;  %v3655_v1 = vsel %vm2744_vm13, %v3579_v59, 0.0 }
 0x5c5   : > { %v12923_v8 = vpop.eup %8603  ;;  %v12925_v23 = vadd.f32 1e-05, %v3756_v16  ;;  %v3363_v7 = vpop.f32.mrf.mxu3  ;;  %3656 = vadd.xlane.f32.xlu0 %v3655_v1  ;;  %v12928_v20 = vadd.f32 %v12754_v57, %v4202_v62 }
 0x5c6   : > { %v3900_v17 = vmul.f32 %v12880_v24, %v3899_v27  ;;  %v3906_v36 = vmul.f32 %v12923_v8, %v12884_v22  ;;  %v3364_v61 = vadd.f32 %v3363_v7, %v3251_v5  ;;  %v3448_v41 = vpop.xlane.xlu1 %3447  ;;  %v8806_v7 = vld [vmem:[%s11268_s17 + $0xb8] sm:$0xff]  ;;  %vm3912_vm2 = vweird.f32 %v12923_v8 }
 0x5c7   : > { %17030 = vst [vmem:[#allocation65_spill] sm:$0xff] %v12928_v20  ;;  %8605 = vrsqrt.f32 %v12925_v23  ;;  %v12940_v59 = vmul.f32 %v12653_v35, %v3448_v41  ;;  %v16204_v16 = vmax.f32 %v12928_v20, 0.0  ;;  %vm3913_vm10 = vmor %vm3911_vm8, %vm3912_vm2  ;;  %vm3921_vm12 = vweird.f32 %v12925_v23 }
 0x5c8   : > { %v3904_v0 = vsel %vm3903_vm15, %v12880_v24, %v3900_v17  ;;  %v3907_v62 = vmul.f32 %v12923_v8, %v3906_v36  ;;  %v12946_v5 = vadd.f32 %v8806_v7, %v3364_v61  ;;  %v3615_v27 = vpop.xlane.xlu2 %3614  ;;  %v3254_v7 = vadd.f32 %v12882_v2, %v12604_v9 }
 0x5c9   : > { %v3725_v46 = vmul.f32 %v12940_v59, %v12940_v59  ;;  %v3693_v43 = vmul.f32 %v3615_v27, %v12653_v35  ;;  %8385 = vmatmul.msk.f32.gmra.mxu0 %vm2744_vm13, %v16204_v16  ;;  %v12954_v1 = vpop.f32.mrf.mxu1  ;;  %v4170_v41 = vmul.f32 %v3904_v0, %v3786_v47 }
 0x5ca   : > { %v3908_v56 = vmul.f32 0.5, %v3907_v62  ;;  %v3491_v24 = vsel %vm2744_vm13, %v12946_v5, 0.0  ;;  %v3580_v17 = vmul.f32 %v12946_v5, %v12946_v5 }
 0x5cb   : > { %v3757_v36 = vsub.f32 %v3693_v43, %v3725_v46  ;;  %3492 = vadd.xlane.f32.xlu1 %v3491_v24  ;;  %v4203_v61 = vmul.f32 %v12741_v37, %v4170_v41  ;;  %v3787_v41 = vsub.f32 %v12502_v39, %v12856_v21 }
 0x5cc   : > { %v3909_v27 = vsub.f32 1.5, %v3908_v56  ;;  %8432 = vmatmul.msk.f32.gmra.mxu1 %vm2954_vm0, %v12251_v30  ;;  %v3658_v47 = vsel %vm2744_vm13, %v3580_v17, 0.0 }
 0x5cd   : > { %v8606_v0 = vpop.eup %8605  ;;  %v12967_v62 = vadd.f32 1e-05, %v3757_v36  ;;  %v3366_v16 = vpop.f32.mrf.mxu3  ;;  %3659 = vadd.xlane.f32.xlu2 %v3658_v47  ;;  %v12970_v46 = vadd.f32 %v12754_v57, %v4203_v61 }
 0x5ce   : > { %v3910_v43 = vmul.f32 %v12923_v8, %v3909_v27  ;;  %v3916_v9 = vmul.f32 %v8606_v0, %v12925_v23  ;;  %v3367_v2 = vadd.f32 %v3366_v16, %v3254_v7  ;;  %v3451_v56 = vpop.xlane.xlu0 %3450  ;;  %v8807_v27 = vld [vmem:[%s11268_s17 + $0xc0] sm:$0xff]  ;;  %v3259_v16 = vpop.f32.mrf.mxu2  ;;  %vm3922_vm3 = vweird.f32 %v8606_v0 }
 0x5cf   : > { %17031 = vst [vmem:[#allocation68_spill] sm:$0xff] %v12970_v46  ;;  %8607 = vrsqrt.f32 %v12967_v62  ;;  %v12979_v24 = vmul.f32 %v12653_v35, %v3451_v56  ;;  %v16206_v17 = vmax.f32 %v12970_v46, 0.0  ;;  %vm3923_vm4 = vmor %vm3921_vm12, %vm3922_vm3  ;;  %vm3931_vm1 = vweird.f32 %v12967_v62 }
 0x5d0   : > { %v3914_v36 = vsel %vm3913_vm10, %v12923_v8, %v3910_v43  ;;  %v3917_v61 = vmul.f32 %v8606_v0, %v3916_v9  ;;  %v12984_v22 = vadd.f32 %v8807_v27, %v3367_v2  ;;  %v3618_v47 = vpop.xlane.xlu1 %3617  ;;  %v3257_v27 = vadd.f32 %v3256_v34, %v12621_v19 }
 0x5d1   : > { %v3726_v7 = vmul.f32 %v12979_v24, %v12979_v24  ;;  %v3694_v39 = vmul.f32 %v3618_v47, %v12653_v35  ;;  %8386 = vmatmul.msk.f32.gmra.mxu0 %vm2744_vm13, %v16206_v17  ;;  %v12992_v21 = vpop.f32.mrf.mxu1  ;;  %v4171_v56 = vmul.f32 %v3914_v36, %v3787_v41 }
 0x5d2   : > { %17032 = vst [vmem:[#allocation4_spill] sm:$0xff] %v12992_v21  ;;  %v3918_v20 = vmul.f32 0.5, %v3917_v61  ;;  %v3494_v8 = vsel %vm2744_vm13, %v12984_v22, 0.0  ;;  %v3581_v43 = vmul.f32 %v12984_v22, %v12984_v22 }
 0x5d3   : > { %v3758_v9 = vsub.f32 %v3694_v39, %v3726_v7  ;;  %3495 = vadd.xlane.f32.xlu0 %v3494_v8  ;;  %v4204_v2 = vmul.f32 %v12741_v37, %v4171_v56  ;;  %v3788_v56 = vsub.f32 %v12519_v54, %v12897_v45 }
 0x5d4   : > { %v3919_v47 = vsub.f32 1.5, %v3918_v20  ;;  %8433 = vmatmul.msk.f32.gmra.mxu1 %vm2954_vm0, %v12264_v52  ;;  %v3661_v41 = vsel %vm2744_vm13, %v3581_v43, 0.0 }
 0x5d5   : > { %v8608_v36 = vpop.eup %8607  ;;  %v13003_v61 = vadd.f32 1e-05, %v3758_v9  ;;  %v3369_v17 = vpop.f32.mrf.mxu3  ;;  %3662 = vadd.xlane.f32.xlu1 %v3661_v41  ;;  %v13006_v7 = vadd.f32 %v12754_v57, %v4204_v2 }
 0x5d6   : > { %v3920_v39 = vmul.f32 %v8606_v0, %v3919_v47  ;;  %v3926_v19 = vmul.f32 %v8608_v36, %v12967_v62  ;;  %v3370_v20 = vadd.f32 %v3369_v17, %v3257_v27  ;;  %v3454_v34 = vpop.xlane.xlu2 %3453  ;;  %v8808_v47 = vld [vmem:[%s11268_s17 + $0xc8] sm:$0xff]  ;;  %vm3932_vm9 = vweird.f32 %v8608_v36 }
 0x5d7   : > { %17033 = vst [vmem:[#allocation76_spill] sm:$0xff] %v13006_v7  ;;  %8609 = vrsqrt.f32 %v13003_v61  ;;  %v13014_v8 = vmul.f32 %v12653_v35, %v3454_v34  ;;  %v16208_v43 = vmax.f32 %v13006_v7, 0.0  ;;  %vm3933_vm14 = vmor %vm3931_vm1, %vm3932_vm9  ;;  %vm3941_vm6 = vweird.f32 %v13003_v61 }
 0x5d8   : > { %v3924_v9 = vsel %vm3923_vm4, %v8606_v0, %v3920_v39  ;;  %v3927_v2 = vmul.f32 %v8608_v36, %v3926_v19  ;;  %v13018_v41 = vadd.f32 %v8808_v47, %v3370_v20  ;;  %v3621_v23 = vpop.xlane.xlu0 %3620  ;;  %v3262_v19 = vpop.f32.mrf.mxu2 }
 0x5d9   : > { %v3727_v17 = vmul.f32 %v13014_v8, %v13014_v8  ;;  %v3695_v27 = vmul.f32 %v3621_v23, %v12653_v35  ;;  %8387 = vmatmul.msk.f32.gmra.mxu0 %vm2744_vm13, %v16208_v43  ;;  %v13026_v54 = vpop.f32.mrf.mxu1  ;;  %v4172_v45 = vmul.f32 %v3924_v9, %v3788_v56  ;;  %v3260_v23 = vadd.f32 %v3259_v16, %v12638_v53 }
 0x5da   : > { %17034 = vst [vmem:[#allocation78_spill] sm:$0xff] %v13026_v54  ;;  %v3928_v34 = vmul.f32 0.5, %v3927_v2  ;;  %v3497_v0 = vsel %vm2744_vm13, %v13018_v41, 0.0  ;;  %v3582_v39 = vmul.f32 %v13018_v41, %v13018_v41 }
 0x5db   : > { %v3759_v20 = vsub.f32 %v3695_v27, %v3727_v17  ;;  %3498 = vadd.xlane.f32.xlu2 %v3497_v0  ;;  %v4205_v47 = vmul.f32 %v12741_v37, %v4172_v45 }
 0x5dc   : > { %v3929_v7 = vsub.f32 1.5, %v3928_v34  ;;  %8434 = vmatmul.msk.f32.gmra.mxu1 %vm2954_vm0, %v12277_v25  ;;  %v3664_v56 = vsel %vm2744_vm13, %v3582_v39, 0.0  ;;  %v3789_v34 = vsub.f32 %v12536_v55, %v12940_v59 }
 0x5dd   : > { %v8610_v9 = vpop.eup %8609  ;;  %v13037_v2 = vadd.f32 1e-05, %v3759_v20  ;;  %v3372_v43 = vpop.f32.mrf.mxu3  ;;  %3665 = vadd.xlane.f32.xlu0 %v3664_v56  ;;  %v13040_v17 = vadd.f32 %v12754_v57, %v4205_v47 }
 0x5de   : > { %v3930_v27 = vmul.f32 %v8608_v36, %v3929_v7  ;;  %v3936_v53 = vmul.f32 %v8610_v9, %v13003_v61  ;;  %v3373_v16 = vadd.f32 %v3372_v43, %v3260_v23  ;;  %v3457_v45 = vpop.xlane.xlu1 %3456  ;;  %v8809_v7 = vld [vmem:[%s11268_s17 + $0xd0] sm:$0xff]  ;;  %vm3942_vm5 = vweird.f32 %v8610_v9 }
 0x5df   : > { %17035 = vst [vmem:[#allocation2_spill] sm:$0xff] %v13040_v17  ;;  %8611 = vrsqrt.f32 %v13037_v2  ;;  %v13048_v0 = vmul.f32 %v12653_v35, %v3457_v45  ;;  %v16209_v39 = vmax.f32 %v13040_v17, 0.0  ;;  %vm3943_vm11 = vmor %vm3941_vm6, %vm3942_vm5  ;;  %vm3951_vm15 = vweird.f32 %v13037_v2 }
 0x5e0   : > { %v3934_v20 = vsel %vm3933_vm14, %v8608_v36, %v3930_v27  ;;  %v3937_v47 = vmul.f32 %v8610_v9, %v3936_v53  ;;  %v13052_v56 = vadd.f32 %v8809_v7, %v3373_v16  ;;  %v3624_v62 = vpop.xlane.xlu2 %3623  ;;  %v3263_v7 = vadd.f32 %v3262_v19, %v12673_v32 }
 0x5e1   : > { %v3728_v43 = vmul.f32 %v13048_v0, %v13048_v0  ;;  %v3696_v23 = vmul.f32 %v3624_v62, %v12653_v35  ;;  %8388 = vmatmul.msk.f32.gmra.mxu0 %vm2744_vm13, %v16209_v39  ;;  %v13060_v55 = vpop.f32.mrf.mxu1  ;;  %v4173_v59 = vmul.f32 %v3934_v20, %v3789_v34 }
 0x5e2   : > { %17036 = vst [vmem:[#allocation100_spill] sm:$0xff] %v13060_v55  ;;  %v3938_v45 = vmul.f32 0.5, %v3937_v47  ;;  %v3500_v36 = vsel %vm2744_vm13, %v13052_v56, 0.0  ;;  %v3583_v27 = vmul.f32 %v13052_v56, %v13052_v56  ;;  %v3265_v47 = vpop.f32.mrf.mxu2  ;;  %v17061_v55 = vld [vmem:[#allocation72_spill] sm:$0xff] }
 0x5e3   : > { %v3760_v53 = vsub.f32 %v3696_v23, %v3728_v43  ;;  %3501 = vadd.xlane.f32.xlu1 %v3500_v36  ;;  %v4206_v16 = vmul.f32 %v12741_v37, %v4173_v59 }
 0x5e4   : > { %v3939_v62 = vsub.f32 1.5, %v3938_v45  ;;  %8435 = vmatmul.msk.f32.gmra.mxu1 %vm2954_vm0, %v12290_v49  ;;  %v3667_v34 = vsel %vm2744_vm13, %v3583_v27, 0.0  ;;  %v3790_v45 = vsub.f32 %v12551_v38, %v12979_v24 }
 0x5e5   : > { %v8612_v20 = vpop.eup %8611  ;;  %v13071_v39 = vadd.f32 1e-05, %v3760_v53  ;;  %v3375_v17 = vpop.f32.mrf.mxu3  ;;  %3668 = vadd.xlane.f32.xlu2 %v3667_v34  ;;  %v13074_v43 = vadd.f32 %v12754_v57, %v4206_v16 }
 0x5e6   : > { %v3940_v23 = vmul.f32 %v8610_v9, %v3939_v62  ;;  %v3946_v32 = vmul.f32 %v8612_v20, %v13037_v2  ;;  %v3376_v19 = vadd.f32 %v3375_v17, %v3263_v7  ;;  %v3460_v59 = vpop.xlane.xlu0 %3459  ;;  %v8810_v62 = vld [vmem:[%s11268_s17 + $0xd8] sm:$0xff]  ;;  %vm3952_vm7 = vweird.f32 %v8612_v20  ;;  %v8811_v2 = vld [vmem:[%s11268_s17 + $0xe0] sm:$0xff] }
 0x5e7   : > { %17037 = vst [vmem:[#allocation101_spill] sm:$0xff] %v13074_v43  ;;  %8613 = vrsqrt.f32 %v13071_v39  ;;  %v13083_v36 = vmul.f32 %v12653_v35, %v3460_v59  ;;  %v16211_v27 = vmax.f32 %v13074_v43, 0.0  ;;  %vm3953_vm2 = vmor %vm3951_vm15, %vm3952_vm7  ;;  %vm3961_vm10 = vweird.f32 %v13071_v39 }
 0x5e8   : > { %v3944_v53 = vsel %vm3943_vm11, %v8610_v9, %v3940_v23  ;;  %v3947_v16 = vmul.f32 %v8612_v20, %v3946_v32  ;;  %v13087_v61 = vadd.f32 %v8810_v62, %v3376_v19  ;;  %v3627_v34 = vpop.xlane.xlu1 %3626  ;;  %v3266_v62 = vadd.f32 %v3265_v47, %v12695_v48 }
 0x5e9   : > { %v3729_v17 = vmul.f32 %v13083_v36, %v13083_v36  ;;  %v3697_v38 = vmul.f32 %v3627_v34, %v12653_v35  ;;  %8389 = vmatmul.msk.f32.gmra.mxu0 %vm2744_vm13, %v16211_v27  ;;  %v4174_v24 = vmul.f32 %v3944_v53, %v3790_v45  ;;  %v13099_v32 = vpop.f32.mrf.mxu1 }
 0x5ea   : > { %v3948_v7 = vmul.f32 0.5, %v3947_v16  ;;  %v3503_v59 = vsel %vm2744_vm13, %v13087_v61, 0.0  ;;  %v3584_v9 = vmul.f32 %v13087_v61, %v13087_v61  ;;  %17038 = vst [vmem:[#allocation102_spill] sm:$0xff] %v13099_v32 }
 0x5eb   : > { %v3761_v23 = vsub.f32 %v3697_v38, %v3729_v17  ;;  %3504 = vadd.xlane.f32.xlu0 %v3503_v59  ;;  %v4207_v19 = vmul.f32 %v12741_v37, %v4174_v24  ;;  %v3791_v59 = vsub.f32 %v12568_v15, %v13014_v8 }
 0x5ec   : > { %v3949_v34 = vsub.f32 1.5, %v3948_v7  ;;  %8436 = vmatmul.msk.f32.gmra.mxu1 %vm2954_vm0, %v12301_v14  ;;  %v3670_v45 = vsel %vm2744_vm13, %v3584_v9, 0.0  ;;  %v3268_v7 = vpop.f32.mrf.mxu2 }
 0x5ed   : > { %v8614_v53 = vpop.eup %8613  ;;  %v13106_v16 = vadd.f32 1e-05, %v3761_v23  ;;  %v3378_v27 = vpop.f32.mrf.mxu3  ;;  %3671 = vadd.xlane.f32.xlu1 %v3670_v45  ;;  %v13109_v17 = vadd.f32 %v12754_v57, %v4207_v19 }
 0x5ee   : > { %v3950_v38 = vmul.f32 %v8612_v20, %v3949_v34  ;;  %v3956_v48 = vmul.f32 %v8614_v53, %v13071_v39  ;;  %v3379_v47 = vadd.f32 %v3378_v27, %v3266_v62  ;;  %v3463_v24 = vpop.xlane.xlu2 %3462  ;;  %vm3962_vm8 = vweird.f32 %v8614_v53 }
 0x5ef   : > { %17039 = vst [vmem:[#allocation103_spill] sm:$0xff] %v13109_v17  ;;  %8615 = vrsqrt.f32 %v13106_v16  ;;  %v13118_v9 = vmul.f32 %v12653_v35, %v3463_v24  ;;  %v16213_v23 = vmax.f32 %v13109_v17, 0.0  ;;  %vm3963_vm3 = vmor %vm3961_vm10, %vm3962_vm8  ;;  %vm3971_vm4 = vweird.f32 %v13106_v16 }
 0x5f0   : > { %v3954_v19 = vsel %vm3953_vm2, %v8612_v20, %v3950_v38  ;;  %v3957_v34 = vmul.f32 %v8614_v53, %v3956_v48  ;;  %v13122_v45 = vadd.f32 %v8811_v2, %v3379_v47  ;;  %v3630_v27 = vpop.xlane.xlu0 %3629  ;;  %v3269_v47 = vadd.f32 %v3268_v7, %v12720_v50 }
 0x5f1   : > { %v3730_v62 = vmul.f32 %v13118_v9, %v13118_v9  ;;  %v3698_v15 = vmul.f32 %v3630_v27, %v12653_v35  ;;  %8390 = vmatmul.msk.f32.gmra.mxu0 %vm2744_vm13, %v16213_v23  ;;  %v4175_v8 = vmul.f32 %v3954_v19, %v3791_v59  ;;  %v13141_v27 = vpop.f32.mrf.mxu1 }
 0x5f2   : > { %v3958_v24 = vmul.f32 0.5, %v3957_v34  ;;  %v3506_v43 = vsel %vm2744_vm13, %v13122_v45, 0.0  ;;  %v3585_v20 = vmul.f32 %v13122_v45, %v13122_v45  ;;  %17040 = vst [vmem:[#allocation104_spill] sm:$0xff] %v13141_v27  ;;  %v17057_v27 = vld [vmem:[#allocation44_spill] sm:$0xff] }
 0x5f3   : > { %v3762_v38 = vsub.f32 %v3698_v15, %v3730_v62  ;;  %3507 = vadd.xlane.f32.xlu2 %v3506_v43  ;;  %v4208_v48 = vmul.f32 %v12741_v37, %v4175_v8  ;;  %v3792_v8 = vsub.f32 %v12585_v42, %v13048_v0 }
 0x5f4   : > { %v3959_v2 = vsub.f32 1.5, %v3958_v24  ;;  %8437 = vmatmul.msk.f32.gmra.mxu1 %vm2954_vm0, %v12316_v58  ;;  %v3673_v59 = vsel %vm2744_vm13, %v3585_v20, 0.0 }
 0x5f5   : > { %v8616_v19 = vpop.eup %8615  ;;  %v13139_v34 = vadd.f32 1e-05, %v3762_v38  ;;  %v3381_v23 = vpop.f32.mrf.mxu3  ;;  %3674 = vadd.xlane.f32.xlu0 %v3673_v59  ;;  %v13144_v43 = vadd.f32 %v12754_v57, %v4208_v48 }
 0x5f6   : > { %v3960_v62 = vmul.f32 %v8614_v53, %v3959_v2  ;;  %v3966_v50 = vmul.f32 %v8616_v19, %v13106_v16  ;;  %v3382_v7 = vadd.f32 %v3381_v23, %v3269_v47  ;;  %v3466_v15 = vpop.xlane.xlu1 %3465  ;;  %v8812_v2 = vld [vmem:[%s11268_s17 + $0xe8] sm:$0xff]  ;;  %v3271_v23 = vpop.f32.mrf.mxu2  ;;  %vm3972_vm12 = vweird.f32 %v8616_v19  ;;  %v8813_v16 = vld [vmem:[%s11268_s17 + $0xf0] sm:$0xff] }
 0x5f7   : > { %17041 = vst [vmem:[#allocation105_spill] sm:$0xff] %v13144_v43  ;;  %8617 = vrsqrt.f32 %v13139_v34  ;;  %v13153_v24 = vmul.f32 %v12653_v35, %v3466_v15  ;;  %v16215_v20 = vmax.f32 %v13144_v43, 0.0  ;;  %vm3973_vm9 = vmor %vm3971_vm4, %vm3972_vm12  ;;  %vm3981_vm14 = vweird.f32 %v13139_v34 }
 0x5f8   : > { %v3964_v38 = vsel %vm3963_vm3, %v8614_v53, %v3960_v62  ;;  %v3967_v48 = vmul.f32 %v8616_v19, %v3966_v50  ;;  %v13157_v39 = vadd.f32 %v8812_v2, %v3382_v7  ;;  %v3633_v59 = vpop.xlane.xlu2 %3632  ;;  %v3272_v2 = vadd.f32 %v3271_v23, %v12759_v40 }
 0x5f9   : > { %v3731_v47 = vmul.f32 %v13153_v24, %v13153_v24  ;;  %v3699_v42 = vmul.f32 %v3633_v59, %v12653_v35  ;;  %8391 = vmatmul.msk.f32.gmra.mxu0 %vm2744_vm13, %v16215_v20  ;;  %v4176_v0 = vmul.f32 %v3964_v38, %v3792_v8 }
 0x5fa   : > { %v3968_v15 = vmul.f32 0.5, %v3967_v48  ;;  %v3509_v53 = vsel %vm2744_vm13, %v13157_v39, 0.0  ;;  %v3586_v62 = vmul.f32 %v13157_v39, %v13157_v39 }
 0x5fb   : > { %v3763_v50 = vsub.f32 %v3699_v42, %v3731_v47  ;;  %3510 = vadd.xlane.f32.xlu1 %v3509_v53  ;;  %v4209_v7 = vmul.f32 %v12741_v37, %v4176_v0  ;;  %v13184_v53 = vpop.f32.mrf.mxu1 }
 0x5fc   : > { %v3969_v17 = vsub.f32 1.5, %v3968_v15  ;;  %8438 = vmatmul.msk.f32.gmra.mxu1 %vm2954_vm0, %v12329_v18  ;;  %v3676_v8 = vsel %vm2744_vm13, %v3586_v62, 0.0  ;;  %v3793_v15 = vsub.f32 %v12602_v11, %v13083_v36  ;;  %17043 = vst [vmem:[#allocation107_spill] sm:$0xff] %v13184_v53 }
 0x5fd   : > { %v8618_v38 = vpop.eup %8617  ;;  %v13174_v48 = vadd.f32 1e-05, %v3763_v50  ;;  %v3384_v59 = vpop.f32.mrf.mxu3  ;;  %3677 = vadd.xlane.f32.xlu2 %v3676_v8  ;;  %v13177_v47 = vadd.f32 %v12754_v57, %v4209_v7 }
 0x5fe   : > { %v3970_v42 = vmul.f32 %v8616_v19, %v3969_v17  ;;  %v3976_v40 = vmul.f32 %v8618_v38, %v13139_v34  ;;  %v3385_v23 = vadd.f32 %v3384_v59, %v3272_v2  ;;  %v3469_v0 = vpop.xlane.xlu0 %3468  ;;  %vm3982_vm1 = vweird.f32 %v8618_v38 }
 0x5ff   : > { %17042 = vst [vmem:[#allocation106_spill] sm:$0xff] %v13177_v47  ;;  %8619 = vrsqrt.f32 %v13174_v48  ;;  %v13187_v62 = vmul.f32 %v12653_v35, %v3469_v0  ;;  %v16216_v50 = vmax.f32 %v13177_v47, 0.0  ;;  %vm3983_vm5 = vmor %vm3981_vm14, %vm3982_vm1  ;;  %vm3991_vm11 = vweird.f32 %v13174_v48 }
 0x600   : > { %v3974_v17 = vsel %vm3973_vm9, %v8616_v19, %v3970_v42  ;;  %v3977_v7 = vmul.f32 %v8618_v38, %v3976_v40  ;;  %v13191_v8 = vadd.f32 %v8813_v16, %v3385_v23  ;;  %v3636_v2 = vpop.xlane.xlu1 %3635  ;;  %v3274_v42 = vpop.f32.mrf.mxu2 }
 0x601   : > { %v3732_v59 = vmul.f32 %v13187_v62, %v13187_v62  ;;  %v3700_v11 = vmul.f32 %v3636_v2, %v12653_v35  ;;  %8392 = vmatmul.msk.f32.gmra.mxu0 %vm2744_vm13, %v16216_v50  ;;  %v4177_v36 = vmul.f32 %v3974_v17, %v3793_v15  ;;  %v3275_v16 = vadd.f32 %v3274_v42, %v12796_v31 }
 0x602   : > { %v3978_v0 = vmul.f32 0.5, %v3977_v7  ;;  %v3512_v20 = vsel %vm2744_vm13, %v13191_v8, 0.0  ;;  %v3587_v19 = vmul.f32 %v13191_v8, %v13191_v8 }
 0x603   : > { %v3764_v40 = vsub.f32 %v3700_v11, %v3732_v59  ;;  %3513 = vadd.xlane.f32.xlu0 %v3512_v20  ;;  %v4210_v23 = vmul.f32 %v12741_v37, %v4177_v36  ;;  %v13225_v47 = vpop.f32.mrf.mxu1 }
 0x604   : > { %v3979_v2 = vsub.f32 1.5, %v3978_v0  ;;  %8439 = vmatmul.msk.f32.gmra.mxu1 %vm2954_vm0, %v12344_v4  ;;  %v3679_v15 = vsel %vm2744_vm13, %v3587_v19, 0.0  ;;  %v3794_v0 = vsub.f32 %v12619_v3, %v13118_v9  ;;  %17045 = vst [vmem:[#allocation109_spill] sm:$0xff] %v13225_v47 }
 0x605   : > { %v8620_v17 = vpop.eup %8619  ;;  %v13208_v7 = vadd.f32 1e-05, %v3764_v40  ;;  %v3387_v50 = vpop.f32.mrf.mxu3  ;;  %3680 = vadd.xlane.f32.xlu1 %v3679_v15  ;;  %v13211_v59 = vadd.f32 %v12754_v57, %v4210_v23 }
 0x606   : > { %v3980_v20 = vmul.f32 %v8618_v38, %v3979_v2  ;;  %v3986_v31 = vmul.f32 %v8620_v17, %v13174_v48  ;;  %v3388_v11 = vadd.f32 %v3387_v50, %v3275_v16  ;;  %v3472_v36 = vpop.xlane.xlu2 %3471  ;;  %v8814_v2 = vld [vmem:[%s11268_s17 + $0xf8] sm:$0xff]  ;;  %vm3992_vm6 = vweird.f32 %v8620_v17  ;;  %v5752_v48 = vld [vmem:[%s15819_s4 + $0xa0] sm:$0xff] }
 0x607   : > { %17044 = vst [vmem:[#allocation108_spill] sm:$0xff] %v13211_v59  ;;  %8621 = vrsqrt.f32 %v13208_v7  ;;  %v13219_v19 = vmul.f32 %v12653_v35, %v3472_v36  ;;  %v16218_v42 = vmax.f32 %v13211_v59, 0.0  ;;  %vm3993_vm7 = vmor %vm3991_vm11, %vm3992_vm6  ;;  %5975 = vmatpush.msra.mxu1 %v5752_v48  ;;  %v13283_v48 = vld [vmem:[%s15819_s4 + $0xd0] ss:$0 sm:$0xff]  ;;  %vm4001_vm2 = vweird.f32 %v13208_v7 }
 0x608   : > { %v3984_v40 = vsel %vm3983_vm5, %v8618_v38, %v3980_v20  ;;  %v3987_v23 = vmul.f32 %v8620_v17, %v3986_v31  ;;  %v13223_v15 = vadd.f32 %v8814_v2, %v3388_v11  ;;  %v3639_v34 = vpop.xlane.xlu0 %3638  ;;  %v17046_v2 = vld [vmem:[#allocation62_spill] sm:$0xff] }
 0x609   : > { %v3733_v50 = vmul.f32 %v13219_v19, %v13219_v19  ;;  %v3701_v3 = vmul.f32 %v3639_v34, %v12653_v35  ;;  %8393 = vmatmul.msk.f32.gmra.mxu0 %vm2744_vm13, %v16218_v42  ;;  %v4178_v9 = vmul.f32 %v3984_v40, %v3794_v0 }
 0x60a   : > { %v3988_v16 = vmul.f32 0.5, %v3987_v23  ;;  %v3515_v38 = vsel %vm2744_vm13, %v13223_v15, 0.0  ;;  %v3588_v20 = vmul.f32 %v13223_v15, %v13223_v15 }
 0x60b   : > { %v3765_v31 = vsub.f32 %v3701_v3, %v3733_v50  ;;  %3516 = vadd.xlane.f32.xlu2 %v3515_v38  ;;  %v4211_v11 = vmul.f32 %v12741_v37, %v4178_v9  ;;  %v17048_v3 = vld [vmem:[#allocation22_spill] sm:$0xff] }
 0x60c   : > { %v3989_v36 = vsub.f32 1.5, %v3988_v16  ;;  %8440 = vmatmul.msk.f32.gmra.mxu1 %vm2954_vm0, %v17046_v2  ;;  %v3682_v34 = vsel %vm2744_vm13, %v3588_v20, 0.0  ;;  %v3795_v9 = vsub.f32 %v17048_v3, %v13153_v24 }
 0x60d   : > { %v8622_v42 = vpop.eup %8621  ;;  %v13241_v0 = vadd.f32 1e-05, %v3765_v31  ;;  %3683 = vadd.xlane.f32.xlu0 %v3682_v34  ;;  %v13244_v40 = vadd.f32 %v12754_v57, %v4211_v11 }
 0x60e   : > { %v3990_v23 = vmul.f32 %v8620_v17, %v3989_v36  ;;  %v3996_v50 = vmul.f32 %v8622_v42, %v13208_v7  ;;  %v3475_v37 = vpop.xlane.xlu1 %3474  ;;  %vm4002_vm15 = vweird.f32 %v8622_v42 }
 0x60f   : > { %17047 = vst [vmem:[#allocation62_spill] sm:$0xff] %v13244_v40  ;;  %8623 = vrsqrt.f32 %v13241_v0  ;;  %v13252_v16 = vmul.f32 %v12653_v35, %v3475_v37  ;;  %v16219_v38 = vmax.f32 %v13244_v40, 0.0  ;;  %v13272_v37 = vld [vmem:[%s15819_s4 + $0xc8] ss:$0 sm:$0xff]  ;;  %v17052_v40 = vld [vmem:[#allocation52_spill] sm:$0xff]  ;;  %vm4003_vm8 = vmor %vm4001_vm2, %vm4002_vm15  ;;  %vm4011_vm3 = vweird.f32 %v13241_v0 }
 0x610   : > { %v3994_v20 = vsel %vm3993_vm7, %v8620_v17, %v3990_v23  ;;  %v3997_v57 = vmul.f32 %v8622_v42, %v3996_v50  ;;  %v3642_v31 = vpop.xlane.xlu2 %3641  ;;  %v5751_v17 = vld [vmem:[%s15819_s4 + $0x98] sm:$0xff]  ;;  %v13267_v23 = vpop.f32.mrf.mxu1  ;;  %v3796_v59 = vsub.f32 %v17052_v40, %v13187_v62 }
 0x611   : > { %v3734_v11 = vmul.f32 %v13252_v16, %v13252_v16  ;;  %v3702_v24 = vmul.f32 %v3642_v31, %v12653_v35  ;;  %8394 = vmatmul.msk.f32.gmra.mxu0 %vm2744_vm13, %v16219_v38  ;;  %v4179_v36 = vmul.f32 %v3994_v20, %v3795_v9  ;;  %17049 = vst [vmem:[#allocation22_spill] sm:$0xff] %v13267_v23  ;;  %v17050_v38 = vld [vmem:[#allocation64_spill] sm:$0xff] }
 0x612   : > { %v3998_v34 = vmul.f32 0.5, %v3997_v57  ;;  %v5750_v9 = vld [vmem:[%s15819_s4 + $0x90] sm:$0xff]  ;;  %5976 = vmatpush.msra.mxu1 %v5751_v17 }
 0x613   : > { %v3766_v50 = vsub.f32 %v3702_v24, %v3734_v11  ;;  %v4212_v3 = vmul.f32 %v13272_v37, %v4179_v36 }
 0x614   : > { %v3999_v31 = vsub.f32 1.5, %v3998_v34  ;;  %8441 = vmatmul.msk.f32.gmra.mxu1 %vm2954_vm0, %v17050_v38 }
 0x615   : > { %v8624_v20 = vpop.eup %8623  ;;  %v3830_v57 = vadd.f32 1e-05, %v3766_v50  ;;  %v13286_v11 = vadd.f32 %v13283_v48, %v4212_v3  ;;  %5977 = vmatpush.msra.mxu1 %v5750_v9  ;;  %v17053_v9 = vld [vmem:[#allocation66_spill] sm:$0xff] }
 0x616   : > { %v4000_v24 = vmul.f32 %v8622_v42, %v3999_v31  ;;  %v4006_v36 = vmul.f32 %v8624_v20, %v13241_v0  ;;  %v3478_v34 = vpop.xlane.xlu0 %3477  ;;  %vm4012_vm10 = vweird.f32 %v8624_v20 }
 0x617   : > { %17051 = vst [vmem:[#allocation64_spill] sm:$0xff] %v13286_v11  ;;  %8625 = vrsqrt.f32 %v3830_v57  ;;  %v13293_v50 = vmul.f32 %v12653_v35, %v3478_v34  ;;  %v16224_v23 = vmax.f32 %v13286_v11, 0.0  ;;  %vm4013_vm12 = vmor %vm4011_vm3, %vm4012_vm10  ;;  %vm4021_vm9 = vweird.f32 %v3830_v57 }
 0x618   : > { %v4004_v3 = vsel %vm4003_vm8, %v8622_v42, %v4000_v24  ;;  %v4007_v43 = vmul.f32 %v8624_v20, %v4006_v36  ;;  %v3645_v17 = vpop.xlane.xlu1 %3644  ;;  %v13305_v24 = vpop.f32.mrf.mxu1 }
 0x619   : > { %v3735_v7 = vmul.f32 %v13293_v50, %v13293_v50  ;;  %v3703_v31 = vmul.f32 %v3645_v17, %v12653_v35  ;;  %8395 = vmatmul.msk.f32.gmra.mxu0 %vm2744_vm13, %v16224_v23  ;;  %v4180_v62 = vmul.f32 %v4004_v3, %v3796_v59  ;;  %17054 = vst [vmem:[#allocation52_spill] sm:$0xff] %v13305_v24  ;;  %v17056_v3 = vld [vmem:[#allocation41_spill] sm:$0xff] }
 0x61a   : > { %v4008_v40 = vmul.f32 0.5, %v4007_v43 }
 0x61b   : > { %v3767_v47 = vsub.f32 %v3703_v31, %v3735_v7  ;;  %v4213_v34 = vmul.f32 %v13272_v37, %v4180_v62  ;;  %v3797_v7 = vsub.f32 %v17056_v3, %v13219_v19 }
 0x61c   : > { %v4009_v53 = vsub.f32 1.5, %v4008_v40  ;;  %8442 = vmatmul.msk.f32.gmra.mxu1 %vm2954_vm0, %v17053_v9 }
 0x61d   : > { %v8626_v42 = vpop.eup %8625  ;;  %v3831_v36 = vadd.f32 1e-05, %v3767_v47  ;;  %v13308_v17 = vadd.f32 %v13283_v48, %v4213_v34 }
 0x61e   : > { %v4010_v11 = vmul.f32 %v8624_v20, %v4009_v53  ;;  %v4016_v59 = vmul.f32 %v8626_v42, %v3830_v57  ;;  %v3481_v43 = vpop.xlane.xlu2 %3480  ;;  %vm4022_vm4 = vweird.f32 %v8626_v42 }
 0x61f   : > { %17055 = vst [vmem:[#allocation66_spill] sm:$0xff] %v13308_v17  ;;  %8627 = vrsqrt.f32 %v3831_v36  ;;  %v13314_v31 = vmul.f32 %v12653_v35, %v3481_v43  ;;  %v16226_v62 = vmax.f32 %v13308_v17, 0.0  ;;  %vm4023_vm1 = vmor %vm4021_vm9, %vm4022_vm4  ;;  %vm4031_vm5 = vweird.f32 %v3831_v36 }
 0x620   : > { %v4014_v40 = vsel %vm4013_vm12, %v8624_v20, %v4010_v11  ;;  %v4017_v47 = vmul.f32 %v8626_v42, %v4016_v59  ;;  %v3648_v23 = vpop.xlane.xlu0 %3647 }
 0x621   : > { %v3736_v53 = vmul.f32 %v13314_v31, %v13314_v31  ;;  %v3704_v0 = vmul.f32 %v3648_v23, %v12653_v35  ;;  %8396 = vmatmul.msk.f32.gmra.mxu0 %vm2744_vm13, %v16226_v62  ;;  %v4181_v19 = vmul.f32 %v4014_v40, %v3797_v7  ;;  %v17059_v40 = vld [vmem:[#allocation21_spill] sm:$0xff] }
 0x622   : > { %v4018_v34 = vmul.f32 0.5, %v4017_v47  ;;  %v3798_v47 = vsub.f32 %v17059_v40, %v13252_v16 }
 0x623   : > { %v3768_v3 = vsub.f32 %v3704_v0, %v3736_v53  ;;  %v4214_v43 = vmul.f32 %v13272_v37, %v4181_v19  ;;  %v13333_v53 = vpop.f32.mrf.mxu1 }
 0x624   : > { %v4019_v24 = vsub.f32 1.5, %v4018_v34  ;;  %8443 = vmatmul.msk.f32.gmra.mxu1 %vm2954_vm0, %v17057_v27  ;;  %17060 = vst [vmem:[#allocation44_spill] sm:$0xff] %v13333_v53 }
 0x625   : > { %v8628_v20 = vpop.eup %8627  ;;  %v3832_v11 = vadd.f32 1e-05, %v3768_v3  ;;  %v13327_v59 = vadd.f32 %v13283_v48, %v4214_v43 }
 0x626   : > { %v4020_v23 = vmul.f32 %v8626_v42, %v4019_v24  ;;  %v4026_v17 = vmul.f32 %v8628_v20, %v3831_v36  ;;  %v13329_v32 = vpop.f32.mrf.mxu0  ;;  %v3484_v7 = vpop.xlane.xlu1 %3483  ;;  %vm4032_vm14 = vweird.f32 %v8628_v20 }
 0x627   : > { %17058 = vst [vmem:[#allocation41_spill] sm:$0xff] %v13327_v59  ;;  %8629 = vrsqrt.f32 %v3832_v11  ;;  %v13336_v0 = vmul.f32 %v12653_v35, %v3484_v7  ;;  %v16229_v19 = vmax.f32 %v13327_v59, 0.0  ;;  %vm4033_vm6 = vmor %vm4031_vm5, %vm4032_vm14  ;;  %vm4041_vm7 = vweird.f32 %v3832_v11 }
 0x628   : > { %v4024_v34 = vsel %vm4023_vm1, %v8626_v42, %v4020_v23  ;;  %v4027_v3 = vmul.f32 %v8628_v20, %v4026_v17  ;;  %v3651_v24 = vpop.xlane.xlu2 %3650 }
 0x629   : > { %v3737_v57 = vmul.f32 %v13336_v0, %v13336_v0  ;;  %v3705_v43 = vmul.f32 %v3651_v24, %v12653_v35  ;;  %8397 = vmatmul.msk.f32.gmra.mxu0 %vm2744_vm13, %v16229_v19  ;;  %v4182_v16 = vmul.f32 %v4024_v34, %v3798_v47  ;;  %v17063_v47 = vld [vmem:[#allocation56_spill] sm:$0xff] }
 0x62a   : > { %v4028_v40 = vmul.f32 0.5, %v4027_v3  ;;  %v3799_v34 = vsub.f32 %v17063_v47, %v13293_v50 }
 0x62b   : > { %v3769_v62 = vsub.f32 %v3705_v43, %v3737_v57  ;;  %v4215_v7 = vmul.f32 %v13272_v37, %v4182_v16 }
 0x62c   : > { %v4029_v53 = vsub.f32 1.5, %v4028_v40  ;;  %8444 = vmatmul.msk.f32.gmra.mxu1 %vm2954_vm0, %v17061_v55  ;;  %v13359_v40 = vpop.f32.mrf.mxu1 }
 0x62d   : > { %v8630_v42 = vpop.eup %8629  ;;  %v3833_v17 = vadd.f32 1e-05, %v3769_v62  ;;  %v13349_v23 = vadd.f32 %v13283_v48, %v4215_v7  ;;  %17064 = vst [vmem:[#allocation72_spill] sm:$0xff] %v13359_v40 }
 0x62e   : > { %v4030_v24 = vmul.f32 %v8628_v20, %v4029_v53  ;;  %v4036_v59 = vmul.f32 %v8630_v42, %v3832_v11  ;;  %v3487_v46 = vpop.xlane.xlu0 %3486  ;;  %v13351_v19 = vpop.f32.mrf.mxu0  ;;  %vm4042_vm11 = vweird.f32 %v8630_v42 }
 0x62f   : > { %17062 = vst [vmem:[#allocation21_spill] sm:$0xff] %v13349_v23  ;;  %8631 = vrsqrt.f32 %v3833_v17  ;;  %v13356_v3 = vmul.f32 %v12653_v35, %v3487_v46  ;;  %v16231_v57 = vmax.f32 %v13349_v23, 0.0  ;;  %vm4043_vm15 = vmor %vm4041_vm7, %vm4042_vm11  ;;  %vm4051_vm8 = vweird.f32 %v3833_v17 }
 0x630   : > { %v4034_v62 = vsel %vm4033_vm6, %v8628_v20, %v4030_v24  ;;  %v4037_v43 = vmul.f32 %v8630_v42, %v4036_v59  ;;  %v3654_v16 = vpop.xlane.xlu1 %3653  ;;  %v17065_v20 = vld [vmem:[#allocation10_spill] sm:$0xff] }
 0x631   : > { %v3738_v36 = vmul.f32 %v13356_v3, %v13356_v3  ;;  %v3706_v53 = vmul.f32 %v3654_v16, %v12653_v35  ;;  %8398 = vmatmul.msk.f32.gmra.mxu0 %vm2744_vm13, %v16231_v57  ;;  %v4183_v50 = vmul.f32 %v4034_v62, %v3799_v34  ;;  %v3800_v34 = vsub.f32 %v12786_v12, %v13314_v31 }
 0x632   : > { %v4038_v7 = vmul.f32 0.5, %v4037_v43 }
 0x633   : > { %v3770_v46 = vsub.f32 %v3706_v53, %v3738_v36  ;;  %v4216_v47 = vmul.f32 %v13272_v37, %v4183_v50 }
 0x634   : > { %v4039_v54 = vsub.f32 1.5, %v4038_v7  ;;  %8477 = vmatmul.msk.f32.vlgmr.msra.gmra.mxu1 %vm2954_vm0, %v17065_v20  ;;  %v13387_v7 = vpop.f32.mrf.mxu1 }
 0x635   : > { %v8632_v59 = vpop.eup %8631  ;;  %v3834_v24 = vadd.f32 1e-05, %v3770_v46  ;;  %v13371_v40 = vadd.f32 %v13283_v48, %v4216_v47  ;;  %17067 = vst [vmem:[#allocation10_spill] sm:$0xff] %v13387_v7 }
 0x636   : > { %v4040_v16 = vmul.f32 %v8630_v42, %v4039_v54  ;;  %v4046_v23 = vmul.f32 %v8632_v59, %v3833_v17  ;;  %v3490_v21 = vpop.xlane.xlu2 %3489  ;;  %v13373_v57 = vpop.f32.mrf.mxu0  ;;  %vm4052_vm2 = vweird.f32 %v8632_v59 }
 0x637   : > { %17066 = vst [vmem:[#allocation56_spill] sm:$0xff] %v13371_v40  ;;  %8633 = vrsqrt.f32 %v3834_v24  ;;  %v13378_v62 = vmul.f32 %v12653_v35, %v3490_v21  ;;  %v16232_v43 = vmax.f32 %v13371_v40, 0.0  ;;  %vm4053_vm10 = vmor %vm4051_vm8, %vm4052_vm2  ;;  %v17070_v40 = vld [vmem:[#allocation11_spill] sm:$0xff]  ;;  %vm4061_vm12 = vweird.f32 %v3834_v24 }
 0x638   : > { %v4044_v36 = vsel %vm4043_vm15, %v8630_v42, %v4040_v16  ;;  %v4047_v53 = vmul.f32 %v8632_v59, %v4046_v23  ;;  %v3657_v50 = vpop.xlane.xlu0 %3656  ;;  %v17068_v42 = vld [vmem:[#allocation86_spill] sm:$0xff] }
 0x639   : > { %v3739_v54 = vmul.f32 %v13378_v62, %v13378_v62  ;;  %v3707_v11 = vmul.f32 %v3657_v50, %v12653_v35  ;;  %8399 = vmatmul.msk.f32.gmra.mxu0 %vm2744_vm13, %v16232_v43  ;;  %v4184_v12 = vmul.f32 %v4044_v36, %v3800_v34 }
 0x63a   : > { %v4048_v31 = vmul.f32 0.5, %v4047_v53  ;;  %v3801_v53 = vsub.f32 %v12823_v51, %v13336_v0 }
 0x63b   : > { %v3771_v21 = vsub.f32 %v3707_v11, %v3739_v54  ;;  %v4217_v46 = vmul.f32 %v13272_v37, %v4184_v12 }
 0x63c   : > { %v4049_v47 = vsub.f32 1.5, %v4048_v31  ;;  %8478 = vmatmul.msk.f32.gmra.mxu1 %vm2954_vm0, %v17068_v42 }
 0x63d   : > { %v8634_v23 = vpop.eup %8633  ;;  %v3835_v20 = vadd.f32 1e-05, %v3771_v21  ;;  %v13393_v16 = vadd.f32 %v13283_v48, %v4217_v46 }
 0x63e   : > { %v4050_v50 = vmul.f32 %v8632_v59, %v4049_v47  ;;  %v4056_v43 = vmul.f32 %v8634_v23, %v3834_v24  ;;  %v13395_v34 = vpop.f32.mrf.mxu0  ;;  %v3493_v36 = vpop.xlane.xlu1 %3492  ;;  %vm4062_vm3 = vweird.f32 %v8634_v23 }
 0x63f   : > { %17069 = vst [vmem:[#allocation86_spill] sm:$0xff] %v13393_v16  ;;  %8635 = vrsqrt.f32 %v3835_v20  ;;  %v13400_v54 = vmul.f32 %v12653_v35, %v3493_v36  ;;  %v16235_v11 = vmax.f32 %v13393_v16, 0.0  ;;  %vm4063_vm4 = vmor %vm4061_vm12, %vm4062_vm3  ;;  %vm4071_vm1 = vweird.f32 %v3835_v20 }
 0x640   : > { %v4054_v12 = vsel %vm4053_vm10, %v8632_v59, %v4050_v50  ;;  %v4057_v31 = vmul.f32 %v8634_v23, %v4056_v43  ;;  %v3660_v21 = vpop.xlane.xlu2 %3659  ;;  %v13412_v43 = vpop.f32.mrf.mxu1 }
 0x641   : > { %v3740_v17 = vmul.f32 %v13400_v54, %v13400_v54  ;;  %v3708_v46 = vmul.f32 %v3660_v21, %v12653_v35  ;;  %8400 = vmatmul.msk.f32.gmra.mxu0 %vm2744_vm13, %v16235_v11  ;;  %v4185_v51 = vmul.f32 %v4054_v12, %v3801_v53  ;;  %17071 = vst [vmem:[#allocation11_spill] sm:$0xff] %v13412_v43  ;;  %v17073_v43 = vld [vmem:[#allocation34_spill] sm:$0xff] }
 0x642   : > { %v4058_v0 = vmul.f32 0.5, %v4057_v31  ;;  %v3802_v31 = vsub.f32 %v12860_v63, %v13356_v3 }
 0x643   : > { %v3772_v47 = vsub.f32 %v3708_v46, %v3740_v17  ;;  %v4218_v42 = vmul.f32 %v13272_v37, %v4185_v51 }
 0x644   : > { %v4059_v36 = vsub.f32 1.5, %v4058_v0  ;;  %8479 = vmatmul.msk.f32.gmra.mxu1 %vm2954_vm0, %v17070_v40 }
 0x645   : > { %v8636_v59 = vpop.eup %8635  ;;  %v3836_v50 = vadd.f32 1e-05, %v3772_v47  ;;  %v13415_v21 = vadd.f32 %v13283_v48, %v4218_v42 }
 0x646   : > { %v4060_v16 = vmul.f32 %v8634_v23, %v4059_v36  ;;  %v4066_v11 = vmul.f32 %v8636_v59, %v3835_v20  ;;  %v3496_v53 = vpop.xlane.xlu0 %3495  ;;  %v13417_v12 = vpop.f32.mrf.mxu0  ;;  %vm4072_vm9 = vweird.f32 %v8636_v59 }
 0x647   : > { %17072 = vst [vmem:[#allocation110_spill] sm:$0xff] %v13415_v21  ;;  %8637 = vrsqrt.f32 %v3836_v50  ;;  %v13422_v40 = vmul.f32 %v12653_v35, %v3496_v53  ;;  %v16237_v17 = vmax.f32 %v13415_v21, 0.0  ;;  %vm4073_vm14 = vmor %vm4071_vm1, %vm4072_vm9  ;;  %vm4081_vm6 = vweird.f32 %v3836_v50 }
 0x648   : > { %v4064_v46 = vsel %vm4063_vm4, %v8634_v23, %v4060_v16  ;;  %v4067_v51 = vmul.f32 %v8636_v59, %v4066_v11  ;;  %v3663_v0 = vpop.xlane.xlu1 %3662 }
 0x649   : > { %v3741_v24 = vmul.f32 %v13422_v40, %v13422_v40  ;;  %v3709_v47 = vmul.f32 %v3663_v0, %v12653_v35  ;;  %8401 = vmatmul.msk.f32.gmra.mxu0 %vm2744_vm13, %v16237_v17  ;;  %v4186_v63 = vmul.f32 %v4064_v46, %v3802_v31  ;;  %v3803_v31 = vsub.f32 %v12902_v6, %v13378_v62  ;;  %v13441_v46 = vpop.f32.mrf.mxu1 }
 0x64a   : > { %v4068_v3 = vmul.f32 0.5, %v4067_v51 }
 0x64b   : > { %v3773_v42 = vsub.f32 %v3709_v47, %v3741_v24  ;;  %v4219_v36 = vmul.f32 %v13272_v37, %v4186_v63 }
 0x64c   : > { %v4069_v53 = vsub.f32 1.5, %v4068_v3  ;;  %8480 = vmatmul.msk.f32.gmra.mxu1 %vm2954_vm0, %v17073_v43 }
 0x64d   : > { %v8638_v23 = vpop.eup %8637  ;;  %v3837_v16 = vadd.f32 1e-05, %v3773_v42  ;;  %v13435_v11 = vadd.f32 %v13283_v48, %v4219_v36 }
 0x64e   : > { %v4070_v0 = vmul.f32 %v8636_v59, %v4069_v53  ;;  %v4076_v21 = vmul.f32 %v8638_v23, %v3836_v50  ;;  %v3499_v7 = vpop.xlane.xlu2 %3498  ;;  %v13437_v17 = vpop.f32.mrf.mxu0  ;;  %vm4082_vm5 = vweird.f32 %v8638_v23  ;;  %v17075_v53 = vld [vmem:[#allocation88_spill] sm:$0xff] }
 0x64f   : > { %17074 = vst [vmem:[#allocation34_spill] sm:$0xff] %v13435_v11  ;;  %8639 = vrsqrt.f32 %v3837_v16  ;;  %v13444_v43 = vmul.f32 %v12653_v35, %v3499_v7  ;;  %v16238_v51 = vmax.f32 %v13435_v11, 0.0  ;;  %vm4083_vm11 = vmor %vm4081_vm6, %vm4082_vm5  ;;  %vm4091_vm15 = vweird.f32 %v3837_v16 }
 0x650   : > { %v4074_v24 = vsel %vm4073_vm14, %v8636_v59, %v4070_v0  ;;  %v4077_v47 = vmul.f32 %v8638_v23, %v4076_v21  ;;  %v3666_v63 = vpop.xlane.xlu0 %3665 }
 0x651   : > { %v4187_v20 = vmul.f32 %v4074_v24, %v3803_v31  ;;  %v3742_v3 = vmul.f32 %v13444_v43, %v13444_v43  ;;  %v3710_v42 = vmul.f32 %v3666_v63, %v12653_v35  ;;  %8402 = vmatmul.msk.f32.gmra.mxu0 %vm2744_vm13, %v16238_v51 }
 0x652   : > { %v4078_v6 = vmul.f32 0.5, %v4077_v47  ;;  %v3804_v47 = vsub.f32 %v12946_v5, %v13400_v54 }
 0x653   : > { %v3774_v62 = vsub.f32 %v3710_v42, %v3742_v3  ;;  %v4220_v7 = vmul.f32 %v13272_v37, %v4187_v20 }
 0x654   : > { %v4079_v36 = vsub.f32 1.5, %v4078_v6  ;;  %8481 = vmatmul.msk.f32.gmra.mxu1 %vm2954_vm0, %v17075_v53 }
 0x655   : > { %v8640_v59 = vpop.eup %8639  ;;  %v3838_v21 = vadd.f32 1e-05, %v3774_v62  ;;  %v13457_v0 = vadd.f32 %v13283_v48, %v4220_v7 }
 0x656   : > { %v4080_v31 = vmul.f32 %v8638_v23, %v4079_v36  ;;  %v4086_v24 = vmul.f32 %v8640_v59, %v3837_v16  ;;  %v13459_v63 = vpop.f32.mrf.mxu0  ;;  %v3502_v51 = vpop.xlane.xlu1 %3501  ;;  %vm4092_vm7 = vweird.f32 %v8640_v59 }
 0x657   : > { %17076 = vst [vmem:[#allocation88_spill] sm:$0xff] %v13457_v0  ;;  %8641 = vrsqrt.f32 %v3838_v21  ;;  %v13464_v20 = vmul.f32 %v12653_v35, %v3502_v51  ;;  %v16241_v3 = vmax.f32 %v13457_v0, 0.0  ;;  %v13467_v36 = vpop.f32.mrf.mxu1  ;;  %vm4093_vm2 = vmor %vm4091_vm15, %vm4092_vm7  ;;  %vm4101_vm10 = vweird.f32 %v3838_v21 }
 0x658   : > { %v4084_v42 = vsel %vm4083_vm11, %v8638_v23, %v4080_v31  ;;  %v4087_v6 = vmul.f32 %v8640_v59, %v4086_v24  ;;  %v3669_v62 = vpop.xlane.xlu2 %3668  ;;  %17077 = vst [vmem:[#allocation111_spill] sm:$0xff] %v13467_v36  ;;  %v17078_v23 = vld [vmem:[#allocation90_spill] sm:$0xff] }
 0x659   : > { %v4188_v7 = vmul.f32 %v4084_v42, %v3804_v47  ;;  %v3743_v50 = vmul.f32 %v13464_v20, %v13464_v20  ;;  %v3711_v53 = vmul.f32 %v3669_v62, %v12653_v35  ;;  %8403 = vmatmul.msk.f32.gmra.mxu0 %vm2744_vm13, %v16241_v3 }
 0x65a   : > { %v4088_v5 = vmul.f32 0.5, %v4087_v6  ;;  %v3805_v6 = vsub.f32 %v12984_v22, %v13422_v40 }
 0x65b   : > { %v3775_v54 = vsub.f32 %v3711_v53, %v3743_v50  ;;  %v4221_v51 = vmul.f32 %v13272_v37, %v4188_v7 }
 0x65c   : > { %v4089_v11 = vsub.f32 1.5, %v4088_v5  ;;  %8482 = vmatmul.msk.f32.gmra.mxu1 %vm2954_vm0, %v17078_v23 }
 0x65d   : > { %v8642_v31 = vpop.eup %8641  ;;  %v3839_v24 = vadd.f32 1e-05, %v3775_v54  ;;  %v13479_v47 = vadd.f32 %v13283_v48, %v4221_v51 }
 0x65e   : > { %v4090_v42 = vmul.f32 %v8640_v59, %v4089_v11  ;;  %v4096_v62 = vmul.f32 %v8642_v31, %v3838_v21  ;;  %v3505_v0 = vpop.xlane.xlu0 %3504  ;;  %v13481_v36 = vpop.f32.mrf.mxu0  ;;  %vm4102_vm8 = vweird.f32 %v8642_v31 }
 0x65f   : > { %17079 = vst [vmem:[#allocation90_spill] sm:$0xff] %v13479_v47  ;;  %8643 = vrsqrt.f32 %v3839_v24  ;;  %v13486_v7 = vmul.f32 %v12653_v35, %v3505_v0  ;;  %v16242_v50 = vmax.f32 %v13479_v47, 0.0  ;;  %v13495_v40 = vpop.f32.mrf.mxu1  ;;  %vm4103_vm3 = vmor %vm4101_vm10, %vm4102_vm8  ;;  %vm4111_vm4 = vweird.f32 %v3839_v24 }
 0x660   : > { %v4094_v53 = vsel %vm4093_vm2, %v8640_v59, %v4090_v42  ;;  %v4097_v5 = vmul.f32 %v8642_v31, %v4096_v62  ;;  %v3672_v54 = vpop.xlane.xlu1 %3671  ;;  %17080 = vst [vmem:[#allocation112_spill] sm:$0xff] %v13495_v40  ;;  %v17081_v59 = vld [vmem:[#allocation14_spill] sm:$0xff]  ;;  %v17083_v40 = vld [vmem:[#allocation36_spill] sm:$0xff] }
 0x661   : > { %v4189_v51 = vmul.f32 %v4094_v53, %v3805_v6  ;;  %v3744_v16 = vmul.f32 %v13486_v7, %v13486_v7  ;;  %v3712_v11 = vmul.f32 %v3672_v54, %v12653_v35  ;;  %8404 = vmatmul.msk.f32.gmra.mxu0 %vm2744_vm13, %v16242_v50 }
 0x662   : > { %v4098_v22 = vmul.f32 0.5, %v4097_v5 }
 0x663   : > { %v3776_v0 = vsub.f32 %v3712_v11, %v3744_v16  ;;  %v4222_v23 = vmul.f32 %v13272_v37, %v4189_v51  ;;  %v3806_v16 = vsub.f32 %v13018_v41, %v13444_v43 }
 0x664   : > { %v4099_v3 = vsub.f32 1.5, %v4098_v22  ;;  %8483 = vmatmul.msk.f32.gmra.mxu1 %vm2954_vm0, %v17081_v59 }
 0x665   : > { %v8644_v42 = vpop.eup %8643  ;;  %v3840_v62 = vadd.f32 1e-05, %v3776_v0  ;;  %v13501_v6 = vadd.f32 %v13283_v48, %v4222_v23 }
 0x666   : > { %v4100_v53 = vmul.f32 %v8642_v31, %v4099_v3  ;;  %v4106_v54 = vmul.f32 %v8644_v42, %v3839_v24  ;;  %v3508_v50 = vpop.xlane.xlu2 %3507  ;;  %v13503_v5 = vpop.f32.mrf.mxu0  ;;  %vm4112_vm12 = vweird.f32 %v8644_v42 }
 0x667   : > { %17082 = vst [vmem:[#allocation14_spill] sm:$0xff] %v13501_v6  ;;  %8645 = vrsqrt.f32 %v3840_v62  ;;  %v13508_v51 = vmul.f32 %v12653_v35, %v3508_v50  ;;  %v16244_v11 = vmax.f32 %v13501_v6, 0.0  ;;  %vm4113_vm9 = vmor %vm4111_vm4, %vm4112_vm12  ;;  %vm4121_vm14 = vweird.f32 %v3840_v62 }
 0x668   : > { %v4104_v22 = vsel %vm4103_vm3, %v8642_v31, %v4100_v53  ;;  %v4107_v0 = vmul.f32 %v8644_v42, %v4106_v54  ;;  %v3675_v23 = vpop.xlane.xlu0 %3674  ;;  %v13520_v53 = vpop.f32.mrf.mxu1 }
 0x669   : > { %v4190_v59 = vmul.f32 %v4104_v22, %v3806_v16  ;;  %v3745_v21 = vmul.f32 %v13508_v51, %v13508_v51  ;;  %v3713_v3 = vmul.f32 %v3675_v23, %v12653_v35  ;;  %8405 = vmatmul.msk.f32.gmra.mxu0 %vm2744_vm13, %v16244_v11  ;;  %17084 = vst [vmem:[#allocation36_spill] sm:$0xff] %v13520_v53  ;;  %v17086_v53 = vld [vmem:[#allocation8_spill] sm:$0xff] }
 0x66a   : > { %v4108_v41 = vmul.f32 0.5, %v4107_v0 }
 0x66b   : > { %v3777_v43 = vsub.f32 %v3713_v3, %v3745_v21  ;;  %v4223_v50 = vmul.f32 %v13272_v37, %v4190_v59  ;;  %v3807_v59 = vsub.f32 %v13052_v56, %v13464_v20 }
 0x66c   : > { %v4109_v47 = vsub.f32 1.5, %v4108_v41  ;;  %8484 = vmatmul.msk.f32.gmra.mxu1 %vm2954_vm0, %v17083_v40 }
 0x66d   : > { %v8646_v31 = vpop.eup %8645  ;;  %v3841_v54 = vadd.f32 1e-05, %v3777_v43  ;;  %v13523_v16 = vadd.f32 %v13283_v48, %v4223_v50 }
 0x66e   : > { %v4110_v22 = vmul.f32 %v8644_v42, %v4109_v47  ;;  %v4116_v23 = vmul.f32 %v8646_v31, %v3840_v62  ;;  %v13525_v11 = vpop.f32.mrf.mxu0  ;;  %v3511_v0 = vpop.xlane.xlu1 %3510  ;;  %vm4122_vm1 = vweird.f32 %v8646_v31 }
 0x66f   : > { %17085 = vst [vmem:[#allocation113_spill] sm:$0xff] %v13523_v16  ;;  %8647 = vrsqrt.f32 %v3841_v54  ;;  %v13530_v40 = vmul.f32 %v12653_v35, %v3511_v0  ;;  %v16247_v21 = vmax.f32 %v13523_v16, 0.0  ;;  %vm4123_vm5 = vmor %vm4121_vm14, %vm4122_vm1  ;;  %vm4131_vm11 = vweird.f32 %v3841_v54 }
 0x670   : > { %v4114_v3 = vsel %vm4113_vm9, %v8644_v42, %v4110_v22  ;;  %v4117_v41 = vmul.f32 %v8646_v31, %v4116_v23  ;;  %v3678_v43 = vpop.xlane.xlu2 %3677 }
 0x671   : > { %v4191_v50 = vmul.f32 %v4114_v3, %v3807_v59  ;;  %v3746_v24 = vmul.f32 %v13530_v40, %v13530_v40  ;;  %v3714_v47 = vmul.f32 %v3678_v43, %v12653_v35  ;;  %8406 = vmatmul.msk.f32.gmra.mxu0 %vm2744_vm13, %v16247_v21 }
 0x672   : > { %v4118_v56 = vmul.f32 0.5, %v4117_v41  ;;  %v3808_v41 = vsub.f32 %v13087_v61, %v13486_v7 }
 0x673   : > { %v3778_v20 = vsub.f32 %v3714_v47, %v3746_v24  ;;  %v4224_v0 = vmul.f32 %v13272_v37, %v4191_v50  ;;  %v13553_v24 = vpop.f32.mrf.mxu1 }
 0x674   : > { %v4119_v6 = vsub.f32 1.5, %v4118_v56  ;;  %8485 = vmatmul.msk.f32.gmra.mxu1 %vm2954_vm0, %v17086_v53  ;;  %17088 = vst [vmem:[#allocation114_spill] sm:$0xff] %v13553_v24  ;;  %v17089_v24 = vld [vmem:[#allocation28_spill] sm:$0xff] }
 0x675   : > { %v8648_v42 = vpop.eup %8647  ;;  %v3842_v22 = vadd.f32 1e-05, %v3778_v20  ;;  %v13543_v23 = vadd.f32 %v13283_v48, %v4224_v0 }
 0x676   : > { %v4120_v59 = vmul.f32 %v8646_v31, %v4119_v6  ;;  %v4126_v3 = vmul.f32 %v8648_v42, %v3841_v54  ;;  %v3514_v43 = vpop.xlane.xlu0 %3513  ;;  %v13545_v16 = vpop.f32.mrf.mxu0  ;;  %vm4132_vm6 = vweird.f32 %v8648_v42 }
 0x677   : > { %17087 = vst [vmem:[#allocation8_spill] sm:$0xff] %v13543_v23  ;;  %8649 = vrsqrt.f32 %v3842_v22  ;;  %v13550_v50 = vmul.f32 %v12653_v35, %v3514_v43  ;;  %v16249_v53 = vmax.f32 %v13543_v23, 0.0  ;;  %vm4133_vm7 = vmor %vm4131_vm11, %vm4132_vm6  ;;  %vm4141_vm2 = vweird.f32 %v3842_v22 }
 0x678   : > { %v4124_v47 = vsel %vm4123_vm5, %v8646_v31, %v4120_v59  ;;  %v4127_v56 = vmul.f32 %v8648_v42, %v4126_v3  ;;  %v3681_v6 = vpop.xlane.xlu1 %3680 }
 0x679   : > { %v4192_v62 = vmul.f32 %v4124_v47, %v3808_v41  ;;  %v3747_v20 = vmul.f32 %v13550_v50, %v13550_v50  ;;  %v3715_v0 = vmul.f32 %v3681_v6, %v12653_v35  ;;  %8407 = vmatmul.msk.f32.gmra.mxu0 %vm2744_vm13, %v16249_v53 }
 0x67a   : > { %v4128_v61 = vmul.f32 0.5, %v4127_v56  ;;  %v3809_v56 = vsub.f32 %v13122_v45, %v13508_v51 }
 0x67b   : > { %v3779_v7 = vsub.f32 %v3715_v0, %v3747_v20  ;;  %v4225_v43 = vmul.f32 %v13272_v37, %v4192_v62  ;;  %v13581_v45 = vpop.f32.mrf.mxu1 }
 0x67c   : > { %v4129_v21 = vsub.f32 1.5, %v4128_v61  ;;  %8486 = vmatmul.msk.f32.gmra.mxu1 %vm2954_vm0, %v17089_v24 }
 0x67d   : > { %v8650_v31 = vpop.eup %8649  ;;  %v3843_v59 = vadd.f32 1e-05, %v3779_v7  ;;  %v13565_v3 = vadd.f32 %v13283_v48, %v4225_v43 }
 0x67e   : > { %v4130_v41 = vmul.f32 %v8648_v42, %v4129_v21  ;;  %v4136_v47 = vmul.f32 %v8650_v31, %v3842_v22  ;;  %v3517_v6 = vpop.xlane.xlu2 %3516  ;;  %v13567_v23 = vpop.f32.mrf.mxu0  ;;  %vm4142_vm15 = vweird.f32 %v8650_v31 }
 0x67f   : > { %8651 = vrsqrt.f32 %v3843_v59  ;;  %v13572_v62 = vmul.f32 %v12653_v35, %v3517_v6  ;;  %v16250_v24 = vmax.f32 %v13565_v3, 0.0  ;;  %vm4143_vm8 = vmor %vm4141_vm2, %vm4142_vm15  ;;  %vm4151_vm3 = vweird.f32 %v3843_v59 }
 0x680   : > { %v4134_v20 = vsel %vm4133_vm7, %v8648_v42, %v4130_v41  ;;  %v4137_v0 = vmul.f32 %v8650_v31, %v4136_v47  ;;  %v3684_v61 = vpop.xlane.xlu0 %3683  ;;  %v17090_v42 = vld [vmem:[#allocation49_spill] sm:$0xff] }
 0x681   : > { %v4193_v7 = vmul.f32 %v4134_v20, %v3809_v56  ;;  %v3748_v54 = vmul.f32 %v13572_v62, %v13572_v62  ;;  %v3716_v21 = vmul.f32 %v3684_v61, %v12653_v35  ;;  %8408 = vmatmul.msk.f32.gmra.mxu0 %vm2744_vm13, %v16250_v24 }
 0x682   : > { %v4138_v51 = vmul.f32 0.5, %v4137_v0  ;;  %v3810_v0 = vsub.f32 %v13157_v39, %v13530_v40 }
 0x683   : > { %v3780_v43 = vsub.f32 %v3716_v21, %v3748_v54  ;;  %v4226_v6 = vmul.f32 %v13272_v37, %v4193_v7  ;;  %v13596_v22 = vpop.f32.mrf.mxu1 }
 0x684   : > { %v4139_v53 = vsub.f32 1.5, %v4138_v51  ;;  %8487 = vmatmul.msk.f32.gmra.mxu1 %vm2954_vm0, %v17090_v42  ;;  %v17091_v42 = vld [vmem:[#allocation15_spill] sm:$0xff] }
 0x685   : > { %v8652_v41 = vpop.eup %8651  ;;  %v3844_v47 = vadd.f32 1e-05, %v3780_v43  ;;  %v13587_v56 = vadd.f32 %v13283_v48, %v4226_v6 }
 0x686   : > { %v4140_v20 = vmul.f32 %v8650_v31, %v4139_v53  ;;  %v4146_v61 = vmul.f32 %v8652_v41, %v3843_v59  ;;  %v4451_v24 = vpop.f32.mrf.mxu0  ;;  %vm4152_vm10 = vweird.f32 %v8652_v41  ;;  %v17092_v59 = vld [vmem:[#allocation53_spill] sm:$0xff] }
 0x687   : > { %8653 = vrsqrt.f32 %v3844_v47  ;;  %v16254_v7 = vmax.f32 %v13587_v56, 0.0  ;;  %vm4153_vm12 = vmor %vm4151_vm3, %vm4152_vm10  ;;  %vm4161_vm9 = vweird.f32 %v3844_v47 }
 0x688   : > { %v4144_v54 = vsel %vm4143_vm8, %v8650_v31, %v4140_v20  ;;  %v4147_v21 = vmul.f32 %v8652_v41, %v4146_v61 }
 0x689   : > { %v4194_v51 = vmul.f32 %v4144_v54, %v3810_v0  ;;  %8409 = vmatmul.msk.f32.gmra.mxu0 %vm2744_vm13, %v16254_v7  ;;  %v3811_v0 = vsub.f32 %v13191_v8, %v13550_v50 }
 0x68a   : > { %v4148_v43 = vmul.f32 0.5, %v4147_v21 }
 0x68b   : > { %v4227_v53 = vmul.f32 %v13272_v37, %v4194_v51  ;;  %v13615_v50 = vpop.f32.mrf.mxu1 }
 0x68c   : > { %v4149_v6 = vsub.f32 1.5, %v4148_v43  ;;  %8488 = vmatmul.msk.f32.gmra.mxu1 %vm2954_vm0, %v17091_v42 }
 0x68d   : > { %v8654_v39 = vpop.eup %8653  ;;  %v13601_v40 = vadd.f32 %v13283_v48, %v4227_v53 }
 0x68e   : > { %v4150_v31 = vmul.f32 %v8652_v41, %v4149_v6  ;;  %v4156_v20 = vmul.f32 %v8654_v39, %v3844_v47  ;;  %v4454_v61 = vpop.f32.mrf.mxu0  ;;  %vm4162_vm4 = vweird.f32 %v8654_v39 }
 0x68f   : > { %v16253_v54 = vmax.f32 %v13601_v40, 0.0  ;;  %vm4163_vm1 = vmor %vm4161_vm9, %vm4162_vm4 }
 0x690   : > { %v4154_v21 = vsel %vm4153_vm12, %v8652_v41, %v4150_v31  ;;  %v4157_v51 = vmul.f32 %v8654_v39, %v4156_v20  ;;  %v3812_v20 = vsub.f32 %v13223_v15, %v13572_v62 }
 0x691   : > { %v4195_v43 = vmul.f32 %v4154_v21, %v3811_v0  ;;  %8410 = vmatmul.msk.f32.gmra.mxu0 %vm2744_vm13, %v16253_v54 }
 0x692   : > { %v4158_v42 = vmul.f32 0.5, %v4157_v51 }
 0x693   : > { %v4228_v53 = vmul.f32 %v13272_v37, %v4195_v43  ;;  %v13630_v62 = vpop.f32.mrf.mxu1 }
 0x694   : > { %v4159_v6 = vsub.f32 1.5, %v4158_v42  ;;  %8489 = vmatmul.msk.f32.gmra.mxu1 %vm2954_vm0, %v17092_v59  ;;  %v17093_v42 = vld [vmem:[#allocation99_spill] sm:$0xff]  ;;  %v17102_v59 = vld [vmem:[#allocation38_spill] sm:$0xff] }
 0x695   : > { %v13613_v8 = vadd.f32 %v13283_v48, %v4228_v53 }
 0x696   : > { %v4160_v41 = vmul.f32 %v8654_v39, %v4159_v6  ;;  %v4457_v31 = vpop.f32.mrf.mxu0  ;;  %v17101_v6 = vld [vmem:[#allocation79_spill] sm:$0xff] }
 0x697   : > { %v16252_v0 = vmax.f32 %v13613_v8, 0.0 }
 0x698   : > { %v4164_v21 = vsel %vm4163_vm1, %v8654_v39, %v4160_v41  ;;  %v17094_v39 = vld [vmem:[#allocation59_spill] sm:$0xff] }
 0x699   : > { %v4196_v51 = vmul.f32 %v4164_v21, %v3812_v20  ;;  %8411 = vmatmul.msk.f32.gmra.mxu0 %vm2744_vm13, %v16252_v0  ;;  %v17106_v21 = vld [vmem:[#allocation19_spill] sm:$0xff] }
 0x69a   : > { %v17113_v0 = vld [vmem:[#allocation35_spill] sm:$0xff] }
 0x69b   : > { %v4229_v43 = vmul.f32 %v13272_v37, %v4196_v51 }
 0x69c   : > { %8490 = vmatmul.msk.f32.gmra.mxu1 %vm2954_vm0, %v17093_v42 }
 0x69d   : > { %v13627_v47 = vadd.f32 %v13283_v48, %v4229_v43  ;;  %v13641_v48 = vpop.f32.mrf.mxu1  ;;  %v17108_v43 = vld [vmem:[#allocation85_spill] sm:$0xff] }
 0x69e   : > { %v4460_v53 = vpop.f32.mrf.mxu0 }
 0x69f   : > { %4624 = vmatpush.msrb.mxu2 %v4460_v53  ;;  %v16251_v15 = vmax.f32 %v13627_v47, 0.0  ;;  %v17110_v53 = vld [vmem:[#allocation27_spill] sm:$0xff] }
 0x6a1   : > { %8412 = vmatmul.msk.f32.gmra.mxu0 %vm2744_vm13, %v16251_v15  ;;  %4625 = vmatpush.msrb.mxu2 %v4457_v31  ;;  %v17104_v31 = vld [vmem:[#allocation83_spill] sm:$0xff] }
 0x6a3   : > { %4626 = vmatpush.msrb.mxu2 %v4454_v61 }
 0x6a4   : > { %8491 = vmatmul.msk.f32.gmra.mxu1 %vm2954_vm0, %v17094_v39  ;;  %v17111_v39 = vld [vmem:[#allocation87_spill] sm:$0xff] }
 0x6a5   : > { %4627 = vmatpush.msrb.mxu2 %v4451_v24 }
 0x6a6   : > { %v13637_v37 = vpop.f32.mrf.mxu0 }
 0x6a7   : > { %4628 = vmatpush.msrb.mxu2 %v13567_v23  ;;  %v13652_v23 = vpop.f32.mrf.mxu1 }
 0x6a9   : > { %4629 = vmatpush.msrb.mxu2 %v13545_v16  ;;  %v17099_v16 = vld [vmem:[#allocation31_spill] sm:$0xff] }
 0x6ab   : > { %4630 = vmatpush.msrb.mxu2 %v13525_v11 }
 0x6ac   : > { %8492 = vmatmul.msk.f32.gmra.mxu1 %vm2954_vm0, %v12197_v60 }
 0x6ad   : > { %4631 = vmatpush.msrb.mxu2 %v13503_v5 }
 0x6ae   : > { %v13647_v61 = vpop.f32.mrf.mxu0 }
 0x6af   : > { %4632 = vmatpush.msrb.mxu2 %v13481_v36  ;;  %v13665_v60 = vpop.f32.mrf.mxu1  ;;  %v17098_v36 = vld [vmem:[#allocation77_spill] sm:$0xff] }
 0x6b1   : > { %4633 = vmatpush.msrb.mxu2 %v13459_v63 }
 0x6b3   : > { %4634 = vmatpush.msrb.mxu2 %v13437_v17 }
 0x6b4   : > { %8493 = vmatmul.msk.f32.gmra.mxu1 %vm2954_vm0, %v12211_v29  ;;  %v17095_v29 = vld [vmem:[#allocation16_spill] sm:$0xff] }
 0x6b5   : > { %4635 = vmatpush.msrb.mxu2 %v13417_v12 }
 0x6b6   : > { %v13657_v11 = vpop.f32.mrf.mxu0 }
 0x6b7   : > { %4636 = vmatpush.msrb.mxu2 %v13395_v34  ;;  %v17096_v34 = vld [vmem:[#allocation71_spill] sm:$0xff] }
 0x6b9   : > { %4637 = vmatpush.msrb.mxu2 %v13373_v57  ;;  %v13673_v57 = vpop.f32.mrf.mxu1 }
 0x6bb   : > { %4638 = vmatpush.msrb.mxu2 %v13351_v19  ;;  %v17097_v19 = vld [vmem:[#allocation24_spill] sm:$0xff] }
 0x6bc   : > { %8494 = vmatmul.msk.f32.gmra.mxu1 %vm2954_vm0, %v12225_v28 }
 0x6bd   : > { %4639 = vmatpush.msrb.mxu2 %v13329_v32 }
 0x6be   : > { %v13667_v17 = vpop.f32.mrf.mxu0  ;;  %4640 = vmatmul.f32.vlgmr.msrb.gmra.mxu2 %v17095_v29 }
 0x6c1   : > { %v13678_v32 = vpop.f32.mrf.mxu1 }
 0x6c4   : > { %8495 = vmatmul.msk.f32.gmra.mxu1 %vm2954_vm0, %v12237_v44 }
 0x6c6   : > { %v4475_v12 = vpop.f32.mrf.mxu0  ;;  %4643 = vmatmul.f32.gmra.mxu2 %v17096_v34 }
 0x6c9   : > { %v13683_v44 = vpop.f32.mrf.mxu1 }
 0x6cc   : > { %8496 = vmatmul.msk.f32.gmra.mxu1 %vm2954_vm0, %v12251_v30 }
 0x6ce   : > { %v4478_v28 = vpop.f32.mrf.mxu0  ;;  %4646 = vmatmul.f32.gmra.mxu2 %v17097_v19 }
 0x6d1   : > { %v13690_v30 = vpop.f32.mrf.mxu1 }
 0x6d2   : > { %17100 = vst [vmem:[#allocation28_spill] sm:$0xff] %v13690_v30  ;;  %v17140_v30 = vld [vmem:[#allocation48_spill] sm:$0xff] }
 0x6d4   : > { %8497 = vmatmul.msk.f32.gmra.mxu1 %vm2954_vm0, %v12264_v52 }
 0x6d6   : > { %v4481_v63 = vpop.f32.mrf.mxu0  ;;  %4649 = vmatmul.f32.gmra.mxu2 %v17098_v36 }
 0x6d9   : > { %v13696_v41 = vpop.f32.mrf.mxu1 }
 0x6da   : > { %17103 = vst [vmem:[#allocation49_spill] sm:$0xff] %v13696_v41  ;;  %v17139_v41 = vld [vmem:[#allocation37_spill] sm:$0xff] }
 0x6dc   : > { %8498 = vmatmul.msk.f32.gmra.mxu1 %vm2954_vm0, %v12277_v25 }
 0x6de   : > { %v4484_v5 = vpop.f32.mrf.mxu0  ;;  %4652 = vmatmul.f32.gmra.mxu2 %v17099_v16 }
 0x6e4   : > { %8499 = vmatmul.msk.f32.gmra.mxu1 %vm2954_vm0, %v12290_v49  ;;  %v13701_v49 = vpop.f32.mrf.mxu1 }
 0x6e5   : > { %17105 = vst [vmem:[#allocation15_spill] sm:$0xff] %v13701_v49 }
 0x6e6   : > { %v4487_v24 = vpop.f32.mrf.mxu0  ;;  %4655 = vmatmul.f32.gmra.mxu2 %v17101_v6 }
 0x6ec   : > { %8500 = vmatmul.msk.f32.gmra.mxu1 %vm2954_vm0, %v12301_v14  ;;  %v13706_v14 = vpop.f32.mrf.mxu1 }
 0x6ed   : > { %17107 = vst [vmem:[#allocation53_spill] sm:$0xff] %v13706_v14  ;;  %v17138_v14 = vld [vmem:[#allocation67_spill] sm:$0xff] }
 0x6ee   : > { %v4490_v52 = vpop.f32.mrf.mxu0  ;;  %4658 = vmatmul.f32.gmra.mxu2 %v17102_v59 }
 0x6f4   : > { %8501 = vmatmul.msk.f32.gmra.mxu1 %vm2954_vm0, %v12316_v58  ;;  %v13713_v58 = vpop.f32.mrf.mxu1 }
 0x6f5   : > { %17109 = vst [vmem:[#allocation99_spill] sm:$0xff] %v13713_v58  ;;  %v17137_v58 = vld [vmem:[#allocation60_spill] sm:$0xff] }
 0x6f6   : > { %v4493_v25 = vpop.f32.mrf.mxu0  ;;  %4661 = vmatmul.f32.gmra.mxu2 %v17104_v31 }
 0x6fc   : > { %8502 = vmatmul.msk.f32.gmra.mxu1 %vm2954_vm0, %v12329_v18  ;;  %v13719_v15 = vpop.f32.mrf.mxu1 }
 0x6fd   : > { %17112 = vst [vmem:[#allocation59_spill] sm:$0xff] %v13719_v15 }
 0x6fe   : > { %v4496_v20 = vpop.f32.mrf.mxu0  ;;  %4664 = vmatmul.f32.gmra.mxu2 %v17106_v21 }
 0x704   : > { %8503 = vmatmul.msk.f32.gmra.mxu1 %vm2954_vm0, %v12344_v4 }
 0x706   : > { %v4499_v51 = vpop.f32.mrf.mxu0  ;;  %4667 = vmatmul.f32.gmra.mxu2 %v17108_v43 }
 0x70c   : > { %8504 = vmatmul.msk.f32.gmra.mxu1 %vm2954_vm0, %v17046_v2  ;;  %v13724_v2 = vpop.f32.mrf.mxu1 }
 0x70d   : > { %17114 = vst [vmem:[#allocation16_spill] sm:$0xff] %v13724_v2  ;;  %v17136_v2 = vld [vmem:[#allocation46_spill] sm:$0xff] }
 0x70e   : > { %v4502_v42 = vpop.f32.mrf.mxu0  ;;  %4670 = vmatmul.f32.gmra.mxu2 %v17110_v53 }
 0x714   : > { %8505 = vmatmul.msk.f32.gmra.mxu1 %vm2954_vm0, %v17050_v38  ;;  %v17115_v38 = vld [vmem:[#allocation89_spill] sm:$0xff]  ;;  %v13729_v54 = vpop.f32.mrf.mxu1 }
 0x715   : > { %17116 = vst [vmem:[#allocation71_spill] sm:$0xff] %v13729_v54  ;;  %v17135_v54 = vld [vmem:[#allocation43_spill] sm:$0xff] }
 0x716   : > { %v4505_v18 = vpop.f32.mrf.mxu0  ;;  %4673 = vmatmul.f32.gmra.mxu2 %v17111_v39 }
 0x71c   : > { %8506 = vmatmul.msk.f32.gmra.mxu1 %vm2954_vm0, %v17053_v9  ;;  %v17117_v9 = vld [vmem:[#allocation91_spill] sm:$0xff] }
 0x71e   : > { %v4508_v4 = vpop.f32.mrf.mxu0  ;;  %4676 = vmatmul.f32.gmra.mxu2 %v17113_v0 }
 0x71f   : > { %4737 = vmatpush.msrb.mxu3 %v4508_v4  ;;  %v17134_v4 = vld [vmem:[#allocation33_spill] sm:$0xff] }
 0x721   : > { %4738 = vmatpush.msrb.mxu3 %v4505_v18  ;;  %v17133_v18 = vld [vmem:[#allocation42_spill] sm:$0xff] }
 0x723   : > { %4739 = vmatpush.msrb.mxu3 %v4502_v42  ;;  %v17118_v42 = vld [vmem:[#allocation92_spill] sm:$0xff] }
 0x724   : > { %8507 = vmatmul.msk.f32.gmra.mxu1 %vm2954_vm0, %v17057_v27  ;;  %v17119_v27 = vld [vmem:[#allocation93_spill] sm:$0xff] }
 0x725   : > { %4740 = vmatpush.msrb.mxu3 %v4499_v51 }
 0x726   : > { %4679 = vmatmul.f32.gmra.mxu2 %v17115_v38 }
 0x727   : > { %4741 = vmatpush.msrb.mxu3 %v4496_v20  ;;  %v17132_v20 = vld [vmem:[#allocation61_spill] sm:$0xff] }
 0x729   : > { %4742 = vmatpush.msrb.mxu3 %v4493_v25  ;;  %v17131_v25 = vld [vmem:[#allocation57_spill] sm:$0xff] }
 0x72b   : > { %4743 = vmatpush.msrb.mxu3 %v4490_v52  ;;  %v17130_v52 = vld [vmem:[#allocation23_spill] sm:$0xff] }
 0x72c   : > { %8508 = vmatmul.msk.f32.gmra.mxu1 %vm2954_vm0, %v17061_v55  ;;  %v17120_v55 = vld [vmem:[#allocation51_spill] sm:$0xff] }
 0x72d   : > { %4744 = vmatpush.msrb.mxu3 %v4487_v24  ;;  %v17121_v24 = vld [vmem:[#allocation94_spill] sm:$0xff] }
 0x72e   : > { %4682 = vmatmul.f32.gmra.mxu2 %v17117_v9 }
 0x72f   : > { %4745 = vmatpush.msrb.mxu3 %v4484_v5  ;;  %v17122_v5 = vld [vmem:[#allocation17_spill] sm:$0xff] }
 0x731   : > { %4746 = vmatpush.msrb.mxu3 %v4481_v63  ;;  %v17125_v63 = vld [vmem:[#allocation96_spill] sm:$0xff] }
 0x733   : > { %4747 = vmatpush.msrb.mxu3 %v4478_v28  ;;  %v17123_v28 = vld [vmem:[#allocation95_spill] sm:$0xff] }
 0x735   : > { %4748 = vmatpush.msrb.mxu3 %v4475_v12  ;;  %v17124_v12 = vld [vmem:[#allocation54_spill] sm:$0xff] }
 0x736   : > { %4685 = vmatmul.f32.gmra.mxu2 %v17118_v42 }
 0x737   : > { %4749 = vmatpush.msrb.mxu3 %v13667_v17  ;;  %v17126_v17 = vld [vmem:[#allocation55_spill] sm:$0xff] }
 0x739   : > { %4750 = vmatpush.msrb.mxu3 %v13657_v11  ;;  %v17127_v11 = vld [vmem:[#allocation97_spill] sm:$0xff] }
 0x73b   : > { %4751 = vmatpush.msrb.mxu3 %v13647_v61  ;;  %v17128_v61 = vld [vmem:[#allocation25_spill] sm:$0xff] }
 0x73d   : > { %4752 = vmatpush.msrb.mxu3 %v13637_v37  ;;  %v17129_v37 = vld [vmem:[#allocation98_spill] sm:$0xff] }
 0x73e   : > { %4688 = vmatmul.f32.gmra.mxu2 %v17119_v27  ;;  %4753 = vmatmul.f32.vlgmr.msrb.gmra.mxu3 %v17120_v55 }
 0x741   : > { %v4641_v51 = vpop.f32.mrf.mxu2 }
 0x746   : > { %4691 = vmatmul.f32.gmra.mxu2 %v17121_v24  ;;  %4756 = vmatmul.f32.gmra.mxu3 %v17122_v5 }
 0x749   : > { %v4644_v7 = vpop.f32.mrf.mxu2 }
 0x74e   : > { %4694 = vmatmul.f32.gmra.mxu2 %v17123_v28  ;;  %4759 = vmatmul.f32.gmra.mxu3 %v17124_v12  ;;  %v17179_v12 = vld [vmem:[#allocation104_spill] sm:$0xff] }
 0x751   : > { %v4647_v15 = vpop.f32.mrf.mxu2 }
 0x756   : > { %4697 = vmatmul.f32.gmra.mxu2 %v17125_v63  ;;  %4762 = vmatmul.f32.gmra.mxu3 %v17126_v17  ;;  %v17153_v17 = vld [vmem:[#allocation13_spill] sm:$0xff] }
 0x759   : > { %v4650_v49 = vpop.f32.mrf.mxu2 }
 0x75e   : > { %4700 = vmatmul.f32.gmra.mxu2 %v17127_v11  ;;  %4765 = vmatmul.f32.gmra.mxu3 %v17128_v61 }
 0x766   : > { %4703 = vmatmul.f32.gmra.mxu2 %v17129_v37  ;;  %4768 = vmatmul.f32.gmra.mxu3 %v17130_v52  ;;  %v17145_v52 = vld [vmem:[#allocation9_spill] sm:$0xff]  ;;  %v17147_v37 = vld [vmem:[#allocation47_spill] sm:$0xff] }
 0x76e   : > { %4706 = vmatmul.f32.gmra.mxu2 %v17131_v25  ;;  %4771 = vmatmul.f32.gmra.mxu3 %v17132_v20  ;;  %v17141_v20 = vld [vmem:[#allocation20_spill] sm:$0xff]  ;;  %v17143_v25 = vld [vmem:[#allocation7_spill] sm:$0xff] }
 0x776   : > { %4709 = vmatmul.f32.gmra.mxu2 %v17133_v18  ;;  %4774 = vmatmul.f32.gmra.mxu3 %v17134_v4  ;;  %v17142_v18 = vld [vmem:[#allocation69_spill] sm:$0xff]  ;;  %v4653_v4 = vpop.f32.mrf.mxu2 }
 0x77e   : > { %4712 = vmatmul.f32.gmra.mxu2 %v17135_v54  ;;  %4777 = vmatmul.f32.gmra.mxu3 %v17136_v2  ;;  %v17144_v54 = vld [vmem:[#allocation50_spill] sm:$0xff]  ;;  %v4656_v2 = vpop.f32.mrf.mxu2 }
 0x786   : > { %4715 = vmatmul.f32.gmra.mxu2 %v17137_v58  ;;  %4780 = vmatmul.f32.gmra.mxu3 %v17138_v14  ;;  %v17146_v58 = vld [vmem:[#allocation73_spill] sm:$0xff]  ;;  %v13767_v14 = vpop.f32.mrf.mxu2 }
 0x78e   : > { %4718 = vmatmul.f32.gmra.mxu2 %v17139_v41  ;;  %4783 = vmatmul.f32.gmra.mxu3 %v17140_v30  ;;  %v17148_v41 = vld [vmem:[#allocation75_spill] sm:$0xff]  ;;  %v13771_v30 = vpop.f32.mrf.mxu2 }
 0x796   : > { %4721 = vmatmul.f32.gmra.mxu2 %v17141_v20  ;;  %4786 = vmatmul.f32.gmra.mxu3 %v17142_v18  ;;  %v17149_v20 = vld [vmem:[#allocation29_spill] sm:$0xff]  ;;  %v17150_v18 = vld [vmem:[#allocation58_spill] sm:$0xff] }
 0x79e   : > { %4724 = vmatmul.f32.gmra.mxu2 %v17143_v25  ;;  %4789 = vmatmul.f32.gmra.mxu3 %v17144_v54  ;;  %v17151_v25 = vld [vmem:[#allocation63_spill] sm:$0xff]  ;;  %v4642_v54 = vadd.f32 %v4641_v51, %v12831_v33 }
 0x7a6   : > { %4727 = vmatmul.f32.gmra.mxu2 %v17145_v52  ;;  %4792 = vmatmul.f32.gmra.mxu3 %v17146_v58  ;;  %v17152_v58 = vmax.f32 %v12772_v10, 0.0 }
 0x7ae   : > { %4730 = vmatmul.f32.gmra.mxu2 %v17147_v37  ;;  %4795 = vmatmul.f32.gmra.mxu3 %v17148_v41 }
 0x7b6   : > { %4733 = vmatmul.f32.gmra.mxu2 %v17149_v20  ;;  %4798 = vmatmul.f32.gmra.mxu3 %v17150_v18  ;;  %v4645_v18 = vadd.f32 %v4644_v7, %v12868_v13  ;;  %v4648_v13 = vadd.f32 %v4647_v15, %v12910_v26  ;;  %v4651_v26 = vadd.f32 %v4650_v49, %v12954_v1  ;;  %v17163_v1 = vld [vmem:[#allocation4_spill] sm:$0xff] }
 0x7b7   : > { %v4654_v49 = vadd.f32 %v4653_v4, %v17163_v1  ;;  %v17167_v4 = vld [vmem:[#allocation78_spill] sm:$0xff] }
 0x7b8   : > { %v4657_v1 = vadd.f32 %v4656_v2, %v17167_v4  ;;  %v17171_v2 = vld [vmem:[#allocation100_spill] sm:$0xff] }
 0x7be   : > { %4801 = vmatmul.f32.gmra.mxu3 %v17151_v25 }
 0x7c1   : > { %v4754_v61 = vpop.f32.mrf.mxu3 }
 0x7c2   : > { %v4755_v52 = vadd.f32 %v4754_v61, %v4642_v54  ;;  %v17154_v61 = vld [vmem:[#allocation45_spill] sm:$0xff] }
 0x7c3   : > { %v17155_v10 = vmax.f32 %v17154_v61, 0.0  ;;  %v17159_v61 = vld [vmem:[#allocation70_spill] sm:$0xff] }
 0x7c4   : > { %v13779_v11 = vadd.f32 %v4755_v52, %v17152_v58  ;;  %v17156_v52 = vld [vmem:[#allocation81_spill] sm:$0xff] }
 0x7c6   : > { %4804 = vmatmul.f32.gmra.mxu3 %v17153_v17  ;;  %v4882_v41 = vsel %vm2744_vm13, %v13779_v11, 0.0  ;;  %v5010_v20 = vmul.f32 %v13779_v11, %v13779_v11 }
 0x7c7   : > { %4883 = vadd.xlane.f32.xlu1 %v4882_v41  ;;  %v13797_v41 = vpop.f32.mrf.mxu2 }
 0x7c8   : > { %v5042_v25 = vsel %vm2744_vm13, %v5010_v20, 0.0 }
 0x7c9   : > { %v4757_v33 = vpop.f32.mrf.mxu3  ;;  %5043 = vadd.xlane.f32.xlu2 %v5042_v25 }
 0x7ca   : > { %v4758_v54 = vadd.f32 %v4757_v33, %v4645_v18  ;;  %v17157_v18 = vld [vmem:[#allocation32_spill] sm:$0xff] }
 0x7cb   : > { %v17158_v33 = vmax.f32 %v17157_v18, 0.0  ;;  %v17162_v18 = vld [vmem:[#allocation74_spill] sm:$0xff] }
 0x7cc   : > { %v13790_v58 = vadd.f32 %v4758_v54, %v17155_v10 }
 0x7ce   : > { %4807 = vmatmul.f32.gmra.mxu3 %v17156_v52  ;;  %v4885_v51 = vsel %vm2744_vm13, %v13790_v58, 0.0  ;;  %v5011_v17 = vmul.f32 %v13790_v58, %v13790_v58 }
 0x7cf   : > { %4886 = vadd.xlane.f32.xlu0 %v4885_v51 }
 0x7d0   : > { %v5045_v7 = vsel %vm2744_vm13, %v5011_v17, 0.0  ;;  %v13812_v17 = vpop.f32.mrf.mxu2 }
 0x7d1   : > { %v4760_v25 = vpop.f32.mrf.mxu3  ;;  %5046 = vadd.xlane.f32.xlu1 %v5045_v7  ;;  %v17160_v7 = vld [vmem:[#allocation12_spill] sm:$0xff] }
 0x7d2   : > { %v4761_v20 = vadd.f32 %v4760_v25, %v4648_v13  ;;  %v17161_v25 = vmax.f32 %v17160_v7, 0.0 }
 0x7d4   : > { %v13803_v54 = vadd.f32 %v4761_v20, %v17158_v33 }
 0x7d6   : > { %4810 = vmatmul.f32.gmra.mxu3 %v17159_v61  ;;  %v4888_v10 = vsel %vm2744_vm13, %v13803_v54, 0.0  ;;  %v5012_v52 = vmul.f32 %v13803_v54, %v13803_v54 }
 0x7d7   : > { %4889 = vadd.xlane.f32.xlu2 %v4888_v10 }
 0x7d8   : > { %v5048_v15 = vsel %vm2744_vm13, %v5012_v52, 0.0 }
 0x7d9   : > { %v4763_v51 = vpop.f32.mrf.mxu3  ;;  %5049 = vadd.xlane.f32.xlu0 %v5048_v15  ;;  %v4671_v15 = vpop.f32.mrf.mxu2 }
 0x7da   : > { %v4764_v13 = vadd.f32 %v4763_v51, %v4651_v26  ;;  %v17164_v51 = vld [vmem:[#allocation65_spill] sm:$0xff] }
 0x7dc   : > { %v13816_v20 = vadd.f32 %v4764_v13, %v17161_v25  ;;  %v17165_v13 = vmax.f32 %v17164_v51, 0.0  ;;  %v17166_v25 = vld [vmem:[#allocation30_spill] sm:$0xff] }
 0x7de   : > { %4813 = vmatmul.f32.gmra.mxu3 %v17162_v18  ;;  %v4891_v33 = vsel %vm2744_vm13, %v13816_v20, 0.0  ;;  %v5013_v10 = vmul.f32 %v13816_v20, %v13816_v20 }
 0x7df   : > { %4892 = vadd.xlane.f32.xlu1 %v4891_v33 }
 0x7e0   : > { %v5051_v52 = vsel %vm2744_vm13, %v5013_v10, 0.0 }
 0x7e1   : > { %v4766_v61 = vpop.f32.mrf.mxu3  ;;  %5052 = vadd.xlane.f32.xlu2 %v5051_v52 }
 0x7e2   : > { %v4767_v26 = vadd.f32 %v4766_v61, %v4654_v49  ;;  %v17168_v49 = vld [vmem:[#allocation68_spill] sm:$0xff] }
 0x7e3   : > { %v17169_v51 = vmax.f32 %v17168_v49, 0.0 }
 0x7e4   : > { %v13827_v7 = vadd.f32 %v4767_v26, %v17165_v13  ;;  %v4674_v13 = vpop.f32.mrf.mxu2 }
 0x7e6   : > { %4816 = vmatmul.f32.gmra.mxu3 %v17166_v25  ;;  %v4894_v18 = vsel %vm2744_vm13, %v13827_v7, 0.0  ;;  %v5014_v33 = vmul.f32 %v13827_v7, %v13827_v7  ;;  %v17170_v25 = vld [vmem:[#allocation80_spill] sm:$0xff] }
 0x7e7   : > { %4895 = vadd.xlane.f32.xlu0 %v4894_v18 }
 0x7e8   : > { %v5054_v10 = vsel %vm2744_vm13, %v5014_v33, 0.0  ;;  %v4660_v33 = vadd.f32 %v13767_v14, %v17171_v2  ;;  %v17175_v14 = vld [vmem:[#allocation102_spill] sm:$0xff] }
 0x7e9   : > { %v4769_v52 = vpop.f32.mrf.mxu3  ;;  %5055 = vadd.xlane.f32.xlu1 %v5054_v10 }
 0x7ea   : > { %v4770_v61 = vadd.f32 %v4769_v52, %v4657_v1  ;;  %v17172_v52 = vld [vmem:[#allocation76_spill] sm:$0xff] }
 0x7ec   : > { %v13838_v26 = vadd.f32 %v4770_v61, %v17169_v51  ;;  %v17173_v61 = vmax.f32 %v17172_v52, 0.0  ;;  %v17174_v51 = vld [vmem:[#allocation39_spill] sm:$0xff]  ;;  %v4677_v63 = vpop.f32.mrf.mxu2 }
 0x7ee   : > { %4819 = vmatmul.f32.gmra.mxu3 %v17170_v25  ;;  %v4897_v37 = vsel %vm2744_vm13, %v13838_v26, 0.0  ;;  %v5015_v18 = vmul.f32 %v13838_v26, %v13838_v26 }
 0x7ef   : > { %4898 = vadd.xlane.f32.xlu2 %v4897_v37 }
 0x7f0   : > { %v5057_v4 = vsel %vm2744_vm13, %v5015_v18, 0.0  ;;  %v4663_v18 = vadd.f32 %v13771_v30, %v17175_v14  ;;  %v4666_v30 = vadd.f32 %v13797_v41, %v17179_v12  ;;  %v17183_v12 = vld [vmem:[#allocation107_spill] sm:$0xff] }
 0x7f1   : > { %v4772_v1 = vpop.f32.mrf.mxu3  ;;  %5058 = vadd.xlane.f32.xlu0 %v5057_v4  ;;  %v4669_v41 = vadd.f32 %v13812_v17, %v17183_v12  ;;  %v17187_v17 = vld [vmem:[#allocation109_spill] sm:$0xff] }
 0x7f2   : > { %v4773_v10 = vadd.f32 %v4772_v1, %v4660_v33  ;;  %v17176_v1 = vld [vmem:[#allocation2_spill] sm:$0xff]  ;;  %v4672_v12 = vadd.f32 %v4671_v15, %v17187_v17 }
 0x7f3   : > { %v17191_v15 = vld [vmem:[#allocation22_spill] sm:$0xff] }
 0x7f4   : > { %v13850_v49 = vadd.f32 %v4773_v10, %v17173_v61  ;;  %v17177_v10 = vmax.f32 %v17176_v1, 0.0  ;;  %v17178_v61 = vld [vmem:[#allocation82_spill] sm:$0xff]  ;;  %v4680_v14 = vpop.f32.mrf.mxu2  ;;  %v4675_v17 = vadd.f32 %v4674_v13, %v17191_v15  ;;  %v17195_v13 = vld [vmem:[#allocation52_spill] sm:$0xff] }
 0x7f5   : > { %v4678_v15 = vadd.f32 %v4677_v63, %v17195_v13 }
 0x7f6   : > { %4822 = vmatmul.f32.gmra.mxu3 %v17174_v51  ;;  %v4900_v25 = vsel %vm2744_vm13, %v13850_v49, 0.0  ;;  %v5016_v37 = vmul.f32 %v13850_v49, %v13850_v49 }
 0x7f7   : > { %4901 = vadd.xlane.f32.xlu1 %v4900_v25 }
 0x7f8   : > { %v5060_v2 = vsel %vm2744_vm13, %v5016_v37, 0.0 }
 0x7f9   : > { %v4775_v33 = vpop.f32.mrf.mxu3  ;;  %5061 = vadd.xlane.f32.xlu2 %v5060_v2 }
 0x7fa   : > { %v4776_v4 = vadd.f32 %v4775_v33, %v4663_v18  ;;  %v17180_v33 = vld [vmem:[#allocation101_spill] sm:$0xff] }
 0x7fc   : > { %v13862_v52 = vadd.f32 %v4776_v4, %v17177_v10  ;;  %v17181_v4 = vmax.f32 %v17180_v33, 0.0  ;;  %v17182_v10 = vld [vmem:[#allocation3_spill] sm:$0xff] }
 0x7fe   : > { %4825 = vmatmul.f32.gmra.mxu3 %v17178_v61  ;;  %v4903_v51 = vsel %vm2744_vm13, %v13862_v52, 0.0  ;;  %v5017_v25 = vmul.f32 %v13862_v52, %v13862_v52 }
 0x7ff   : > { %4904 = vadd.xlane.f32.xlu0 %v4903_v51 }
 0x800   : > { %v5063_v37 = vsel %vm2744_vm13, %v5017_v25, 0.0 }
 0x801   : > { %v4778_v18 = vpop.f32.mrf.mxu3  ;;  %5064 = vadd.xlane.f32.xlu1 %v5063_v37 }
 0x802   : > { %v4779_v2 = vadd.f32 %v4778_v18, %v4666_v30  ;;  %v4683_v18 = vpop.f32.mrf.mxu2 }
 0x804   : > { %v13874_v1 = vadd.f32 %v4779_v2, %v17181_v4  ;;  %v17184_v2 = vld [vmem:[#allocation103_spill] sm:$0xff] }
 0x805   : > { %v17185_v33 = vmax.f32 %v17184_v2, 0.0 }
 0x806   : > { %4828 = vmatmul.f32.gmra.mxu3 %v17182_v10  ;;  %v4906_v61 = vsel %vm2744_vm13, %v13874_v1, 0.0  ;;  %v5018_v51 = vmul.f32 %v13874_v1, %v13874_v1  ;;  %v17186_v10 = vld [vmem:[#allocation18_spill] sm:$0xff] }
 0x807   : > { %4907 = vadd.xlane.f32.xlu2 %v4906_v61 }
 0x808   : > { %v5066_v25 = vsel %vm2744_vm13, %v5018_v51, 0.0 }
 0x809   : > { %v4781_v37 = vpop.f32.mrf.mxu3  ;;  %5067 = vadd.xlane.f32.xlu0 %v5066_v25 }
 0x80a   : > { %v4782_v30 = vadd.f32 %v4781_v37, %v4669_v41  ;;  %v17188_v37 = vld [vmem:[#allocation105_spill] sm:$0xff] }
 0x80b   : > { %v17189_v2 = vmax.f32 %v17188_v37, 0.0 }
 0x80c   : > { %v13886_v4 = vadd.f32 %v4782_v30, %v17185_v33  ;;  %v4686_v33 = vpop.f32.mrf.mxu2 }
 0x80e   : > { %4831 = vmatmul.f32.gmra.mxu3 %v17186_v10  ;;  %v4909_v28 = vsel %vm2744_vm13, %v13886_v4, 0.0  ;;  %v5019_v61 = vmul.f32 %v13886_v4, %v13886_v4  ;;  %v17190_v10 = vld [vmem:[#allocation40_spill] sm:$0xff] }
 0x80f   : > { %4910 = vadd.xlane.f32.xlu1 %v4909_v28 }
 0x810   : > { %v5069_v51 = vsel %vm2744_vm13, %v5019_v61, 0.0 }
 0x811   : > { %v4784_v25 = vpop.f32.mrf.mxu3  ;;  %5070 = vadd.xlane.f32.xlu2 %v5069_v51 }
 0x812   : > { %v4785_v41 = vadd.f32 %v4784_v25, %v4672_v12  ;;  %v17192_v25 = vld [vmem:[#allocation106_spill] sm:$0xff] }
 0x814   : > { %v13897_v30 = vadd.f32 %v4785_v41, %v17189_v2  ;;  %v17193_v41 = vmax.f32 %v17192_v25, 0.0  ;;  %v17194_v2 = vld [vmem:[#allocation5_spill] sm:$0xff] }
 0x816   : > { %4834 = vmatmul.f32.gmra.mxu3 %v17190_v10  ;;  %v4912_v5 = vsel %vm2744_vm13, %v13897_v30, 0.0  ;;  %v5020_v28 = vmul.f32 %v13897_v30, %v13897_v30 }
 0x817   : > { %4913 = vadd.xlane.f32.xlu0 %v4912_v5  ;;  %v4689_v5 = vpop.f32.mrf.mxu2 }
 0x818   : > { %v5072_v61 = vsel %vm2744_vm13, %v5020_v28, 0.0 }
 0x819   : > { %v4787_v51 = vpop.f32.mrf.mxu3  ;;  %5073 = vadd.xlane.f32.xlu1 %v5072_v61 }
 0x81a   : > { %v4788_v12 = vadd.f32 %v4787_v51, %v4675_v17  ;;  %v17196_v51 = vld [vmem:[#allocation108_spill] sm:$0xff] }
 0x81c   : > { %v13908_v37 = vadd.f32 %v4788_v12, %v17193_v41  ;;  %v17197_v12 = vmax.f32 %v17196_v51, 0.0  ;;  %v17198_v41 = vld [vmem:[#allocation84_spill] sm:$0xff] }
 0x81e   : > { %4837 = vmatmul.f32.gmra.mxu3 %v17194_v2  ;;  %v4915_v10 = vsel %vm2744_vm13, %v13908_v37, 0.0  ;;  %v5021_v24 = vmul.f32 %v13908_v37, %v13908_v37 }
 0x81f   : > { %4916 = vadd.xlane.f32.xlu2 %v4915_v10  ;;  %v17199_v10 = vld [vmem:[#allocation44_spill] sm:$0xff]  ;;  %v4692_v13 = vpop.f32.mrf.mxu2 }
 0x820   : > { %v5075_v28 = vsel %vm2744_vm13, %v5021_v24, 0.0  ;;  %v4681_v63 = vadd.f32 %v4680_v14, %v17199_v10  ;;  %v17203_v14 = vld [vmem:[#allocation72_spill] sm:$0xff] }
 0x821   : > { %v4790_v61 = vpop.f32.mrf.mxu3  ;;  %5076 = vadd.xlane.f32.xlu0 %v5075_v28  ;;  %v4684_v10 = vadd.f32 %v4683_v18, %v17203_v14  ;;  %v5749_v18 = vld [vmem:[%s15819_s4 + $0x58] sm:$0xff] }
 0x822   : > { %v4791_v17 = vadd.f32 %v4790_v61, %v4678_v15  ;;  %v17200_v61 = vld [vmem:[#allocation62_spill] sm:$0xff]  ;;  %5861 = vmatpush.msrb.mxu0 %v5749_v18 }
 0x824   : > { %v13919_v25 = vadd.f32 %v4791_v17, %v17197_v12  ;;  %v17201_v17 = vmax.f32 %v17200_v61, 0.0  ;;  %v17202_v12 = vld [vmem:[#allocation6_spill] sm:$0xff] }
 0x826   : > { %4840 = vmatmul.f32.gmra.mxu3 %v17198_v41  ;;  %v4918_v2 = vsel %vm2744_vm13, %v13919_v25, 0.0  ;;  %v5022_v55 = vmul.f32 %v13919_v25, %v13919_v25 }
 0x827   : > { %4919 = vadd.xlane.f32.xlu1 %v4918_v2 }
 0x828   : > { %v5078_v24 = vsel %vm2744_vm13, %v5022_v55, 0.0 }
 0x829   : > { %v4793_v28 = vpop.f32.mrf.mxu3  ;;  %5079 = vadd.xlane.f32.xlu2 %v5078_v24  ;;  %v13939_v24 = vpop.f32.mrf.mxu2 }
 0x82a   : > { %v4794_v15 = vadd.f32 %v4793_v28, %v4681_v63  ;;  %v17204_v28 = vld [vmem:[#allocation64_spill] sm:$0xff] }
 0x82c   : > { %v13930_v51 = vadd.f32 %v4794_v15, %v17201_v17  ;;  %v17205_v15 = vmax.f32 %v17204_v28, 0.0  ;;  %v17206_v17 = vld [vmem:[#allocation26_spill] sm:$0xff] }
 0x82e   : > { %4843 = vmatmul.f32.gmra.mxu3 %v17202_v12  ;;  %v4921_v41 = vsel %vm2744_vm13, %v13930_v51, 0.0  ;;  %v5023_v2 = vmul.f32 %v13930_v51, %v13930_v51 }
 0x82f   : > { %4922 = vadd.xlane.f32.xlu0 %v4921_v41 }
 0x830   : > { %v5081_v55 = vsel %vm2744_vm13, %v5023_v2, 0.0 }
 0x831   : > { %v4796_v27 = vpop.f32.mrf.mxu3  ;;  %5082 = vadd.xlane.f32.xlu1 %v5081_v55 }
 0x832   : > { %v4797_v63 = vadd.f32 %v4796_v27, %v4684_v10  ;;  %v17207_v27 = vld [vmem:[#allocation10_spill] sm:$0xff]  ;;  %v5748_v10 = vld [vmem:[%s15819_s4 + $0x50] sm:$0xff] }
 0x833   : > { %v4687_v2 = vadd.f32 %v4686_v33, %v17207_v27  ;;  %5862 = vmatpush.msrb.mxu0 %v5748_v10  ;;  %v17208_v33 = vld [vmem:[#allocation66_spill] sm:$0xff]  ;;  %v13971_v10 = vpop.f32.mrf.mxu2 }
 0x834   : > { %v13943_v61 = vadd.f32 %v4797_v63, %v17205_v15  ;;  %v5747_v15 = vld [vmem:[%s15819_s4 + $0x48] sm:$0xff]  ;;  %v17209_v18 = vmax.f32 %v17208_v33, 0.0 }
 0x835   : > { %5863 = vmatpush.msrb.mxu0 %v5747_v15  ;;  %v17210_v33 = vld [vmem:[#allocation11_spill] sm:$0xff] }
 0x836   : > { %4846 = vmatmul.f32.gmra.mxu3 %v17206_v17  ;;  %v4924_v12 = vsel %vm2744_vm13, %v13943_v61, 0.0  ;;  %v5024_v41 = vmul.f32 %v13943_v61, %v13943_v61 }
 0x837   : > { %4925 = vadd.xlane.f32.xlu2 %v4924_v12 }
 0x838   : > { %v5084_v14 = vsel %vm2744_vm13, %v5024_v41, 0.0 }
 0x839   : > { %v4799_v55 = vpop.f32.mrf.mxu3  ;;  %5085 = vadd.xlane.f32.xlu0 %v5084_v14  ;;  %v5746_v14 = vld [vmem:[%s15819_s4 + $0x40] sm:$0xff] }
 0x83a   : > { %v4800_v63 = vadd.f32 %v4799_v55, %v4687_v2  ;;  %v4884_v28 = vpop.xlane.xlu1 %4883  ;;  %5864 = vmatpush.msrb.mxu0 %v5746_v14  ;;  %v17211_v14 = vld [vmem:[#allocation41_spill] sm:$0xff] }
 0x83b   : > { %v13962_v12 = vmul.f32 %v4884_v28, %v12653_v35  ;;  %v17212_v39 = vmax.f32 %v17211_v14, 0.0 }
 0x83c   : > { %v13966_v41 = vadd.f32 %v4800_v63, %v17209_v18  ;;  %v5044_v27 = vpop.xlane.xlu2 %5043  ;;  %v4690_v18 = vadd.f32 %v4689_v5, %v17210_v33 }
 0x83d   : > { %v5170_v2 = vmul.f32 %v13962_v12, %v13962_v12  ;;  %v5138_v55 = vmul.f32 %v5044_v27, %v12653_v35 }
 0x83e   : > { %v4927_v28 = vsel %vm2744_vm13, %v13966_v41, 0.0  ;;  %v5025_v63 = vmul.f32 %v13966_v41, %v13966_v41 }
 0x83f   : > { %v5202_v15 = vsub.f32 %v5138_v55, %v5170_v2  ;;  %4928 = vadd.xlane.f32.xlu1 %v4927_v28  ;;  %v4693_v28 = vadd.f32 %v4692_v13, %v13441_v46 }
 0x840   : > { %v5087_v17 = vsel %vm2744_vm13, %v5025_v63, 0.0 }
 0x841   : > { %v5266_v42 = vadd.f32 1e-05, %v5202_v15  ;;  %v4802_v9 = vpop.f32.mrf.mxu3  ;;  %5088 = vadd.xlane.f32.xlu2 %v5087_v17  ;;  %v13996_v17 = vpop.f32.mrf.mxu2 }
 0x842   : > { %v4803_v38 = vadd.f32 %v4802_v9, %v4690_v18  ;;  %v4887_v0 = vpop.xlane.xlu0 %4886 }
 0x843   : > { %8655 = vrsqrt.f32 %v5266_v42  ;;  %v13983_v27 = vmul.f32 %v4887_v0, %v12653_v35  ;;  %vm5304_vm14 = vweird.f32 %v5266_v42 }
 0x844   : > { %v13987_v53 = vadd.f32 %v4803_v38, %v17212_v39  ;;  %v5047_v43 = vpop.xlane.xlu1 %5046 }
 0x845   : > { %v5171_v2 = vmul.f32 %v13983_v27, %v13983_v27  ;;  %v5139_v5 = vmul.f32 %v5047_v43, %v12653_v35 }
 0x846   : > { %v4930_v55 = vsel %vm2744_vm13, %v13987_v53, 0.0  ;;  %v5026_v9 = vmul.f32 %v13987_v53, %v13987_v53 }
 0x847   : > { %v5203_v0 = vsub.f32 %v5139_v5, %v5171_v2  ;;  %4931 = vadd.xlane.f32.xlu0 %v4930_v55  ;;  %v17213_v2 = vld [vmem:[#allocation21_spill] sm:$0xff] }
 0x848   : > { %v5090_v39 = vsel %vm2744_vm13, %v5026_v9, 0.0  ;;  %v17214_v5 = vmax.f32 %v17213_v2, 0.0 }
 0x849   : > { %v8656_v38 = vpop.eup %8655  ;;  %v14000_v63 = vadd.f32 1e-05, %v5203_v0  ;;  %v4805_v15 = vpop.f32.mrf.mxu3  ;;  %5091 = vadd.xlane.f32.xlu1 %v5090_v39 }
 0x84a   : > { %v5299_v43 = vmul.f32 %v8656_v38, %v5266_v42  ;;  %v4806_v33 = vadd.f32 %v4805_v15, %v4693_v28  ;;  %v4890_v18 = vpop.xlane.xlu2 %4889  ;;  %vm5305_vm0 = vweird.f32 %v8656_v38  ;;  %v14020_v31 = vpop.f32.mrf.mxu2 }
 0x84b   : > { %8657 = vrsqrt.f32 %v14000_v63  ;;  %v14004_v14 = vmul.f32 %v4890_v18, %v12653_v35  ;;  %vm5306_vm5 = vmor %vm5304_vm14, %vm5305_vm0  ;;  %vm5314_vm11 = vweird.f32 %v14000_v63 }
 0x84c   : > { %v5300_v21 = vmul.f32 %v8656_v38, %v5299_v43  ;;  %v14008_v55 = vadd.f32 %v4806_v33, %v17214_v5  ;;  %v5050_v46 = vpop.xlane.xlu0 %5049  ;;  %v17215_v43 = vld [vmem:[#allocation111_spill] sm:$0xff] }
 0x84d   : > { %v5172_v13 = vmul.f32 %v14004_v14, %v14004_v14  ;;  %v5140_v9 = vmul.f32 %v5050_v46, %v12653_v35  ;;  %v4696_v18 = vadd.f32 %v13939_v24, %v17215_v43  ;;  %v5234_v24 = vsub.f32 %v13779_v11, %v13962_v12 }
 0x84e   : > { %v5301_v0 = vmul.f32 0.5, %v5300_v21  ;;  %v4933_v28 = vsel %vm2744_vm13, %v14008_v55, 0.0  ;;  %v5027_v39 = vmul.f32 %v14008_v55, %v14008_v55 }
 0x84f   : > { %v5204_v15 = vsub.f32 %v5140_v9, %v5172_v13  ;;  %4934 = vadd.xlane.f32.xlu2 %v4933_v28 }
 0x850   : > { %v5302_v33 = vsub.f32 1.5, %v5301_v0  ;;  %v5093_v2 = vsel %vm2744_vm13, %v5027_v39, 0.0 }
 0x851   : > { %v8658_v5 = vpop.eup %8657  ;;  %v14022_v46 = vadd.f32 1e-05, %v5204_v15  ;;  %v4808_v21 = vpop.f32.mrf.mxu3  ;;  %5094 = vadd.xlane.f32.xlu0 %v5093_v2  ;;  %v17216_v15 = vld [vmem:[#allocation56_spill] sm:$0xff] }
 0x852   : > { %v5303_v59 = vmul.f32 %v8656_v38, %v5302_v33  ;;  %v5309_v6 = vmul.f32 %v8658_v5, %v14000_v63  ;;  %v4809_v13 = vadd.f32 %v4808_v21, %v4696_v18  ;;  %v4893_v9 = vpop.xlane.xlu1 %4892  ;;  %v17217_v43 = vmax.f32 %v17216_v15, 0.0 }
 0x853   : > { %8659 = vrsqrt.f32 %v14022_v46  ;;  %v14029_v0 = vmul.f32 %v4893_v9, %v12653_v35  ;;  %vm5315_vm6 = vweird.f32 %v8658_v5  ;;  %vm5324_vm2 = vweird.f32 %v14022_v46 }
 0x854   : > { %v5307_v28 = vsel %vm5306_vm5, %v8656_v38, %v5303_v59  ;;  %v5310_v39 = vmul.f32 %v8658_v5, %v5309_v6  ;;  %v14033_v2 = vadd.f32 %v4809_v13, %v17217_v43  ;;  %v5053_v42 = vpop.xlane.xlu2 %5052  ;;  %v14045_v6 = vld [vmem:[%s15819_s4 + $0xc8] ss:$0 sm:$0xff]  ;;  %v17218_v13 = vld [vmem:[#allocation112_spill] sm:$0xff]  ;;  %vm5316_vm7 = vmor %vm5314_vm11, %vm5315_vm6 }
 0x855   : > { %v5618_v33 = vmul.f32 %v5307_v28, %v5234_v24  ;;  %v5173_v18 = vmul.f32 %v14029_v0, %v14029_v0  ;;  %v5141_v21 = vmul.f32 %v5053_v42, %v12653_v35  ;;  %v4699_v24 = vadd.f32 %v13971_v10, %v17218_v13  ;;  %v14054_v43 = vld [vmem:[%s15819_s4 + $0xd0] ss:$0 sm:$0xff] }
 0x856   : > { %v5311_v11 = vmul.f32 0.5, %v5310_v39  ;;  %v4936_v12 = vsel %vm2744_vm13, %v14033_v2, 0.0  ;;  %v5028_v9 = vmul.f32 %v14033_v2, %v14033_v2  ;;  %v5235_v13 = vsub.f32 %v13790_v58, %v13983_v27 }
 0x857   : > { %v5650_v59 = vmul.f32 %v14045_v6, %v5618_v33  ;;  %v5205_v38 = vsub.f32 %v5141_v21, %v5173_v18  ;;  %4937 = vadd.xlane.f32.xlu1 %v4936_v12  ;;  %v14063_v12 = vpop.f32.mrf.mxu2 }
 0x858   : > { %v5312_v28 = vsub.f32 1.5, %v5311_v11  ;;  %v5096_v39 = vsel %vm2744_vm13, %v5028_v9, 0.0 }
 0x859   : > { %v8660_v15 = vpop.eup %8659  ;;  %v14057_v42 = vadd.f32 %v14054_v43, %v5650_v59  ;;  %v14059_v16 = vadd.f32 1e-05, %v5205_v38  ;;  %v4811_v33 = vpop.f32.mrf.mxu3  ;;  %5097 = vadd.xlane.f32.xlu2 %v5096_v39 }
 0x85a   : > { %v5313_v18 = vmul.f32 %v8658_v5, %v5312_v28  ;;  %v5319_v10 = vmul.f32 %v8660_v15, %v14022_v46  ;;  %v4812_v21 = vadd.f32 %v4811_v33, %v4699_v24  ;;  %v4896_v11 = vpop.xlane.xlu0 %4895  ;;  %v17220_v28 = vld [vmem:[#allocation86_spill] sm:$0xff]  ;;  %vm5325_vm15 = vweird.f32 %v8660_v15 }
 0x85b   : > { %17219 = vst [vmem:[#allocation45_spill] sm:$0xff] %v14057_v42  ;;  %8661 = vrsqrt.f32 %v14059_v16  ;;  %v14071_v59 = vmul.f32 %v4896_v11, %v12653_v35  ;;  %v17221_v39 = vmax.f32 %v17220_v28, 0.0  ;;  %v17222_v27 = vmax.f32 %v14057_v42, 0.0  ;;  %v17223_v11 = vld [vmem:[#allocation36_spill] sm:$0xff]  ;;  %vm5326_vm8 = vmor %vm5324_vm2, %vm5325_vm15 }
 0x85c   : > { %v5317_v38 = vsel %vm5316_vm7, %v8658_v5, %v5313_v18  ;;  %v5320_v63 = vmul.f32 %v8660_v15, %v5319_v10  ;;  %v5056_v33 = vpop.xlane.xlu1 %5055  ;;  %vm5334_vm3 = vweird.f32 %v14059_v16 }
 0x85d   : > { %v14075_v24 = vadd.f32 %v4812_v21, %v17221_v39  ;;  %v5619_v36 = vmul.f32 %v5317_v38, %v5235_v13  ;;  %v5174_v9 = vmul.f32 %v14071_v59, %v14071_v59  ;;  %v5142_v58 = vmul.f32 %v5056_v33, %v12653_v35  ;;  %8445 = vmatmul.msk.f32.vlgmr.msrb.gmra.mxu0 %vm2744_vm13, %v17222_v27 }
 0x85e   : > { %v5321_v19 = vmul.f32 0.5, %v5320_v63  ;;  %v4702_v13 = vadd.f32 %v13996_v17, %v17223_v11 }
 0x85f   : > { %v4939_v5 = vsel %vm2744_vm13, %v14075_v24, 0.0  ;;  %v5029_v18 = vmul.f32 %v14075_v24, %v14075_v24  ;;  %v5206_v10 = vsub.f32 %v5142_v58, %v5174_v9  ;;  %v5651_v21 = vmul.f32 %v14045_v6, %v5619_v36 }
 0x860   : > { %4940 = vadd.xlane.f32.xlu0 %v4939_v5  ;;  %v5322_v38 = vsub.f32 1.5, %v5321_v19  ;;  %v5236_v19 = vsub.f32 %v13803_v54, %v14004_v14 }
 0x861   : > { %v5099_v28 = vsel %vm2744_vm13, %v5029_v18, 0.0  ;;  %v8662_v39 = vpop.eup %8661  ;;  %v14091_v33 = vadd.f32 1e-05, %v5206_v10  ;;  %v4814_v63 = vpop.f32.mrf.mxu3  ;;  %v14094_v27 = vadd.f32 %v14054_v43, %v5651_v21  ;;  %v17225_v21 = vld [vmem:[#allocation110_spill] sm:$0xff] }
 0x862   : > { %5100 = vadd.xlane.f32.xlu1 %v5099_v28  ;;  %v5323_v42 = vmul.f32 %v8660_v15, %v5322_v38  ;;  %v5329_v36 = vmul.f32 %v8662_v39, %v14059_v16  ;;  %v4815_v9 = vadd.f32 %v4814_v63, %v4702_v13  ;;  %v4899_v58 = vpop.xlane.xlu2 %4898  ;;  %v17226_v11 = vmax.f32 %v17225_v21, 0.0  ;;  %v14109_v13 = vpop.f32.mrf.mxu2 }
 0x863   : > { %17224 = vst [vmem:[#allocation32_spill] sm:$0xff] %v14094_v27  ;;  %8663 = vrsqrt.f32 %v14091_v33  ;;  %v14102_v17 = vmul.f32 %v4899_v58, %v12653_v35  ;;  %v16256_v5 = vmax.f32 %v14094_v27, 0.0  ;;  %v17227_v58 = vld [vmem:[#allocation114_spill] sm:$0xff]  ;;  %vm5335_vm10 = vweird.f32 %v8662_v39 }
 0x864   : > { %v5327_v18 = vsel %vm5326_vm8, %v8660_v15, %v5323_v42  ;;  %v5330_v10 = vmul.f32 %v8662_v39, %v5329_v36  ;;  %v14107_v46 = vadd.f32 %v4815_v9, %v17226_v11  ;;  %v5059_v38 = vpop.xlane.xlu0 %5058  ;;  %vm5336_vm12 = vmor %vm5334_vm3, %vm5335_vm10  ;;  %vm5344_vm9 = vweird.f32 %v14091_v33 }
 0x865   : > { %v5620_v28 = vmul.f32 %v5327_v18, %v5236_v19  ;;  %v5175_v54 = vmul.f32 %v14102_v17, %v14102_v17  ;;  %v5143_v14 = vmul.f32 %v5059_v38, %v12653_v35  ;;  %8446 = vmatmul.msk.f32.gmra.mxu0 %vm2744_vm13, %v16256_v5  ;;  %v4705_v19 = vadd.f32 %v14020_v31, %v17227_v58 }
 0x866   : > { %v5331_v63 = vmul.f32 0.5, %v5330_v10  ;;  %v4942_v15 = vsel %vm2744_vm13, %v14107_v46, 0.0  ;;  %v5030_v42 = vmul.f32 %v14107_v46, %v14107_v46  ;;  %v5237_v31 = vsub.f32 %v13816_v20, %v14029_v0 }
 0x867   : > { %v5207_v36 = vsub.f32 %v5143_v14, %v5175_v54  ;;  %4943 = vadd.xlane.f32.xlu2 %v4942_v15  ;;  %v5652_v9 = vmul.f32 %v14045_v6, %v5620_v28 }
 0x868   : > { %v5332_v18 = vsub.f32 1.5, %v5331_v63  ;;  %v5102_v21 = vsel %vm2744_vm13, %v5030_v42, 0.0 }
 0x869   : > { %v8664_v11 = vpop.eup %8663  ;;  %v14125_v38 = vadd.f32 1e-05, %v5207_v36  ;;  %v4817_v10 = vpop.f32.mrf.mxu3  ;;  %5103 = vadd.xlane.f32.xlu0 %v5102_v21  ;;  %v14128_v5 = vadd.f32 %v14054_v43, %v5652_v9  ;;  %v17228_v9 = vld [vmem:[#allocation34_spill] sm:$0xff] }
 0x86a   : > { %v5333_v27 = vmul.f32 %v8662_v39, %v5332_v18  ;;  %v5339_v28 = vmul.f32 %v8664_v11, %v14091_v33  ;;  %v4818_v54 = vadd.f32 %v4817_v10, %v4705_v19  ;;  %v4902_v14 = vpop.xlane.xlu1 %4901  ;;  %v17229_v58 = vmax.f32 %v17228_v9, 0.0  ;;  %v14153_v10 = vpop.f32.mrf.mxu2 }
 0x86b   : > { %8665 = vrsqrt.f32 %v14125_v38  ;;  %v14136_v63 = vmul.f32 %v4902_v14, %v12653_v35  ;;  %v16258_v15 = vmax.f32 %v14128_v5, 0.0  ;;  %v4708_v14 = vadd.f32 %v14063_v12, %v13581_v45 }
 0x86c   : > { %v5337_v42 = vsel %vm5336_vm12, %v8662_v39, %v5333_v27  ;;  %v5340_v36 = vmul.f32 %v8664_v11, %v5339_v28  ;;  %v14141_v16 = vadd.f32 %v4818_v54, %v17229_v58  ;;  %v5062_v18 = vpop.xlane.xlu2 %5061  ;;  %vm5345_vm4 = vweird.f32 %v8664_v11 }
 0x86d   : > { %v5621_v19 = vmul.f32 %v5337_v42, %v5237_v31  ;;  %v5176_v21 = vmul.f32 %v14136_v63, %v14136_v63  ;;  %v5144_v20 = vmul.f32 %v5062_v18, %v12653_v35  ;;  %8447 = vmatmul.msk.f32.gmra.mxu0 %vm2744_vm13, %v16258_v15  ;;  %v5238_v45 = vsub.f32 %v13827_v7, %v14071_v59  ;;  %vm5346_vm1 = vmor %vm5344_vm9, %vm5345_vm4 }
 0x86e   : > { %v5341_v0 = vmul.f32 0.5, %v5340_v36  ;;  %v4945_v39 = vsel %vm2744_vm13, %v14141_v16, 0.0  ;;  %v5031_v27 = vmul.f32 %v14141_v16, %v14141_v16  ;;  %vm5354_vm14 = vweird.f32 %v14125_v38 }
 0x86f   : > { %v5208_v28 = vsub.f32 %v5144_v20, %v5176_v21  ;;  %4946 = vadd.xlane.f32.xlu1 %v4945_v39  ;;  %v5653_v54 = vmul.f32 %v14045_v6, %v5621_v19 }
 0x870   : > { %v5342_v31 = vsub.f32 1.5, %v5341_v0  ;;  %v5105_v42 = vsel %vm2744_vm13, %v5031_v27, 0.0 }
 0x871   : > { %v8666_v36 = vpop.eup %8665  ;;  %v14159_v9 = vadd.f32 1e-05, %v5208_v28  ;;  %v4820_v58 = vpop.f32.mrf.mxu3  ;;  %5106 = vadd.xlane.f32.xlu2 %v5105_v42  ;;  %v14162_v18 = vadd.f32 %v14054_v43, %v5653_v54  ;;  %v17230_v28 = vld [vmem:[#allocation88_spill] sm:$0xff] }
 0x872   : > { %v5343_v15 = vmul.f32 %v8664_v11, %v5342_v31  ;;  %v5349_v19 = vmul.f32 %v8666_v36, %v14125_v38  ;;  %v4821_v21 = vadd.f32 %v4820_v58, %v4708_v14  ;;  %v4905_v20 = vpop.xlane.xlu0 %4904  ;;  %v17231_v54 = vmax.f32 %v17230_v28, 0.0  ;;  %v14191_v28 = vpop.f32.mrf.mxu2 }
 0x873   : > { %8667 = vrsqrt.f32 %v14159_v9  ;;  %v14170_v12 = vmul.f32 %v4905_v20, %v12653_v35  ;;  %v16278_v0 = vmax.f32 %v14162_v18, 0.0  ;;  %vm5355_vm0 = vweird.f32 %v8666_v36 }
 0x874   : > { %v5347_v39 = vsel %vm5346_vm1, %v8664_v11, %v5343_v15  ;;  %v5350_v27 = vmul.f32 %v8666_v36, %v5349_v19  ;;  %v14175_v33 = vadd.f32 %v4821_v21, %v17231_v54  ;;  %v5065_v31 = vpop.xlane.xlu1 %5064  ;;  %v4711_v21 = vadd.f32 %v14109_v13, %v13596_v22  ;;  %vm5356_vm5 = vmor %vm5354_vm14, %vm5355_vm0 }
 0x875   : > { %v5622_v14 = vmul.f32 %v5347_v39, %v5238_v45  ;;  %v5177_v42 = vmul.f32 %v14170_v12, %v14170_v12  ;;  %v5145_v7 = vmul.f32 %v5065_v31, %v12653_v35  ;;  %8448 = vmatmul.msk.f32.gmra.mxu0 %vm2744_vm13, %v16278_v0  ;;  %vm5364_vm11 = vweird.f32 %v14159_v9 }
 0x876   : > { %v5351_v59 = vmul.f32 0.5, %v5350_v27  ;;  %v4948_v11 = vsel %vm2744_vm13, %v14175_v33, 0.0  ;;  %v5032_v15 = vmul.f32 %v14175_v33, %v14175_v33 }
 0x877   : > { %v5209_v58 = vsub.f32 %v5145_v7, %v5177_v42  ;;  %4949 = vadd.xlane.f32.xlu0 %v4948_v11  ;;  %v5654_v19 = vmul.f32 %v14045_v6, %v5622_v14  ;;  %v5239_v7 = vsub.f32 %v13838_v26, %v14102_v17 }
 0x878   : > { %v5352_v20 = vsub.f32 1.5, %v5351_v59  ;;  %v5108_v45 = vsel %vm2744_vm13, %v5032_v15, 0.0 }
 0x879   : > { %v8668_v39 = vpop.eup %8667  ;;  %v14193_v27 = vadd.f32 1e-05, %v5209_v58  ;;  %v4823_v54 = vpop.f32.mrf.mxu3  ;;  %5109 = vadd.xlane.f32.xlu1 %v5108_v45  ;;  %v14196_v31 = vadd.f32 %v14054_v43, %v5654_v19  ;;  %v17232_v19 = vld [vmem:[#allocation90_spill] sm:$0xff] }
 0x87a   : > { %v5353_v42 = vmul.f32 %v8666_v36, %v5352_v20  ;;  %v5359_v14 = vmul.f32 %v8668_v39, %v14159_v9  ;;  %v4824_v22 = vadd.f32 %v4823_v54, %v4711_v21  ;;  %v4908_v13 = vpop.xlane.xlu2 %4907  ;;  %v17233_v20 = vmax.f32 %v17232_v19, 0.0 }
 0x87b   : > { %8669 = vrsqrt.f32 %v14193_v27  ;;  %v14204_v59 = vmul.f32 %v4908_v13, %v12653_v35  ;;  %v16259_v11 = vmax.f32 %v14196_v31, 0.0  ;;  %v4714_v13 = vadd.f32 %v14153_v10, %v13615_v50  ;;  %v4719_v50 = vpop.f32.mrf.mxu2 }
 0x87c   : > { %v5357_v15 = vsel %vm5356_vm5, %v8666_v36, %v5353_v42  ;;  %v5360_v58 = vmul.f32 %v8668_v39, %v5359_v14  ;;  %v14209_v38 = vadd.f32 %v4824_v22, %v17233_v20  ;;  %v5068_v45 = vpop.xlane.xlu0 %5067  ;;  %vm5365_vm6 = vweird.f32 %v8668_v39 }
 0x87d   : > { %v5623_v21 = vmul.f32 %v5357_v15, %v5239_v7  ;;  %v5178_v54 = vmul.f32 %v14204_v59, %v14204_v59  ;;  %v5146_v26 = vmul.f32 %v5068_v45, %v12653_v35  ;;  %8449 = vmatmul.msk.f32.gmra.mxu0 %vm2744_vm13, %v16259_v11  ;;  %v5240_v10 = vsub.f32 %v13850_v49, %v14136_v63  ;;  %vm5366_vm7 = vmor %vm5364_vm11, %vm5365_vm6 }
 0x87e   : > { %v5361_v17 = vmul.f32 0.5, %v5360_v58  ;;  %v4951_v36 = vsel %vm2744_vm13, %v14209_v38, 0.0  ;;  %v5033_v42 = vmul.f32 %v14209_v38, %v14209_v38  ;;  %vm5374_vm2 = vweird.f32 %v14193_v27 }
 0x87f   : > { %v5210_v14 = vsub.f32 %v5146_v26, %v5178_v54  ;;  %4952 = vadd.xlane.f32.xlu2 %v4951_v36  ;;  %v5655_v22 = vmul.f32 %v14045_v6, %v5623_v21 }
 0x880   : > { %v5362_v7 = vsub.f32 1.5, %v5361_v17  ;;  %v5111_v15 = vsel %vm2744_vm13, %v5033_v42, 0.0 }
 0x881   : > { %v8670_v19 = vpop.eup %8669  ;;  %v14225_v20 = vadd.f32 1e-05, %v5210_v14  ;;  %v4826_v58 = vpop.f32.mrf.mxu3  ;;  %5112 = vadd.xlane.f32.xlu0 %v5111_v15  ;;  %v14228_v45 = vadd.f32 %v14054_v43, %v5655_v22  ;;  %v17234_v22 = vld [vmem:[#allocation14_spill] sm:$0xff] }
 0x882   : > { %v5363_v11 = vmul.f32 %v8668_v39, %v5362_v7  ;;  %v5369_v21 = vmul.f32 %v8670_v19, %v14193_v27  ;;  %v4827_v54 = vadd.f32 %v4826_v58, %v4714_v13  ;;  %v4911_v26 = vpop.xlane.xlu1 %4910  ;;  %v17235_v9 = vmax.f32 %v17234_v22, 0.0 }
 0x883   : > { %8671 = vrsqrt.f32 %v14225_v20  ;;  %v14236_v17 = vmul.f32 %v4911_v26, %v12653_v35  ;;  %v16260_v36 = vmax.f32 %v14228_v45, 0.0  ;;  %v4717_v26 = vadd.f32 %v14191_v28, %v13630_v62 }
 0x884   : > { %v5367_v42 = vsel %vm5366_vm7, %v8668_v39, %v5363_v11  ;;  %v5370_v14 = vmul.f32 %v8670_v19, %v5369_v21  ;;  %v14241_v7 = vadd.f32 %v4827_v54, %v17235_v9  ;;  %v5071_v13 = vpop.xlane.xlu2 %5070  ;;  %vm5375_vm15 = vweird.f32 %v8670_v19 }
 0x885   : > { %v5624_v15 = vmul.f32 %v5367_v42, %v5240_v10  ;;  %v5179_v58 = vmul.f32 %v14236_v17, %v14236_v17  ;;  %v5147_v49 = vmul.f32 %v5071_v13, %v12653_v35  ;;  %8450 = vmatmul.msk.f32.gmra.mxu0 %vm2744_vm13, %v16260_v36  ;;  %v5241_v62 = vsub.f32 %v13862_v52, %v14170_v12  ;;  %vm5376_vm8 = vmor %vm5374_vm2, %vm5375_vm15 }
 0x886   : > { %v5371_v63 = vmul.f32 0.5, %v5370_v14  ;;  %v4954_v39 = vsel %vm2744_vm13, %v14241_v7, 0.0  ;;  %v5034_v11 = vmul.f32 %v14241_v7, %v14241_v7  ;;  %vm5384_vm3 = vweird.f32 %v14225_v20 }
 0x887   : > { %v5211_v21 = vsub.f32 %v5147_v49, %v5179_v58  ;;  %4955 = vadd.xlane.f32.xlu1 %v4954_v39  ;;  %v5656_v54 = vmul.f32 %v14045_v6, %v5624_v15 }
 0x888   : > { %v5372_v10 = vsub.f32 1.5, %v5371_v63  ;;  %v5114_v42 = vsel %vm2744_vm13, %v5034_v11, 0.0 }
 0x889   : > { %v8672_v22 = vpop.eup %8671  ;;  %v14257_v9 = vadd.f32 1e-05, %v5211_v21  ;;  %v4829_v14 = vpop.f32.mrf.mxu3  ;;  %5115 = vadd.xlane.f32.xlu2 %v5114_v42  ;;  %v14260_v13 = vadd.f32 %v14054_v43, %v5656_v54  ;;  %v17236_v21 = vld [vmem:[#allocation113_spill] sm:$0xff] }
 0x88a   : > { %v5373_v36 = vmul.f32 %v8670_v19, %v5372_v10  ;;  %v5379_v15 = vmul.f32 %v8672_v22, %v14225_v20  ;;  %v4830_v58 = vadd.f32 %v4829_v14, %v4717_v26  ;;  %v4914_v49 = vpop.xlane.xlu0 %4913  ;;  %v17237_v54 = vmax.f32 %v17236_v21, 0.0  ;;  %v4722_v26 = vpop.f32.mrf.mxu2 }
 0x88b   : > { %8673 = vrsqrt.f32 %v14257_v9  ;;  %v14268_v28 = vmul.f32 %v4914_v49, %v12653_v35  ;;  %v16261_v63 = vmax.f32 %v14260_v13, 0.0  ;;  %v4720_v49 = vadd.f32 %v4719_v50, %v13641_v48 }
 0x88c   : > { %v5377_v39 = vsel %vm5376_vm8, %v8670_v19, %v5373_v36  ;;  %v5380_v11 = vmul.f32 %v8672_v22, %v5379_v15  ;;  %v14273_v27 = vadd.f32 %v4830_v58, %v17237_v54  ;;  %v5074_v10 = vpop.xlane.xlu1 %5073  ;;  %vm5385_vm10 = vweird.f32 %v8672_v22 }
 0x88d   : > { %v5625_v42 = vmul.f32 %v5377_v39, %v5241_v62  ;;  %v5180_v52 = vmul.f32 %v14268_v28, %v14268_v28  ;;  %v5148_v12 = vmul.f32 %v5074_v10, %v12653_v35  ;;  %8451 = vmatmul.msk.f32.gmra.mxu0 %vm2744_vm13, %v16261_v63  ;;  %v5242_v48 = vsub.f32 %v13874_v1, %v14204_v59  ;;  %vm5386_vm12 = vmor %vm5384_vm3, %vm5385_vm10 }
 0x88e   : > { %v5381_v14 = vmul.f32 0.5, %v5380_v11  ;;  %v4957_v19 = vsel %vm2744_vm13, %v14273_v27, 0.0  ;;  %v5035_v36 = vmul.f32 %v14273_v27, %v14273_v27  ;;  %vm5394_vm9 = vweird.f32 %v14257_v9 }
 0x88f   : > { %v5212_v15 = vsub.f32 %v5148_v12, %v5180_v52  ;;  %4958 = vadd.xlane.f32.xlu0 %v4957_v19  ;;  %v5657_v58 = vmul.f32 %v14045_v6, %v5625_v42 }
 0x890   : > { %v5382_v62 = vsub.f32 1.5, %v5381_v14  ;;  %v5117_v39 = vsel %vm2744_vm13, %v5035_v36, 0.0 }
 0x891   : > { %v8674_v21 = vpop.eup %8673  ;;  %v14288_v54 = vadd.f32 1e-05, %v5212_v15  ;;  %v4832_v11 = vpop.f32.mrf.mxu3  ;;  %5118 = vadd.xlane.f32.xlu1 %v5117_v39  ;;  %v14291_v10 = vadd.f32 %v14054_v43, %v5657_v58  ;;  %v17238_v15 = vld [vmem:[#allocation8_spill] sm:$0xff] }
 0x892   : > { %v5383_v63 = vmul.f32 %v8672_v22, %v5382_v62  ;;  %v5389_v52 = vmul.f32 %v8674_v21, %v14257_v9  ;;  %v4833_v42 = vadd.f32 %v4832_v11, %v4720_v49  ;;  %v4917_v12 = vpop.xlane.xlu2 %4916  ;;  %v17239_v58 = vmax.f32 %v17238_v15, 0.0  ;;  %v4725_v11 = vpop.f32.mrf.mxu2 }
 0x893   : > { %8675 = vrsqrt.f32 %v14288_v54  ;;  %v14299_v50 = vmul.f32 %v4917_v12, %v12653_v35  ;;  %v16262_v14 = vmax.f32 %v14291_v10, 0.0  ;;  %v4723_v12 = vadd.f32 %v4722_v26, %v13652_v23 }
 0x894   : > { %v5387_v19 = vsel %vm5386_vm12, %v8672_v22, %v5383_v63  ;;  %v5390_v36 = vmul.f32 %v8674_v21, %v5389_v52  ;;  %v14304_v20 = vadd.f32 %v4833_v42, %v17239_v58  ;;  %v5077_v62 = vpop.xlane.xlu0 %5076  ;;  %vm5395_vm4 = vweird.f32 %v8674_v21 }
 0x895   : > { %v5626_v49 = vmul.f32 %v5387_v19, %v5242_v48  ;;  %v5181_v39 = vmul.f32 %v14299_v50, %v14299_v50  ;;  %v5149_v1 = vmul.f32 %v5077_v62, %v12653_v35  ;;  %8452 = vmatmul.msk.f32.gmra.mxu0 %vm2744_vm13, %v16262_v14  ;;  %v5243_v23 = vsub.f32 %v13886_v4, %v14236_v17  ;;  %vm5396_vm1 = vmor %vm5394_vm9, %vm5395_vm4 }
 0x896   : > { %v5391_v59 = vmul.f32 0.5, %v5390_v36  ;;  %v4960_v22 = vsel %vm2744_vm13, %v14304_v20, 0.0  ;;  %v5036_v63 = vmul.f32 %v14304_v20, %v14304_v20  ;;  %vm5404_vm14 = vweird.f32 %v14288_v54 }
 0x897   : > { %v5213_v52 = vsub.f32 %v5149_v1, %v5181_v39  ;;  %4961 = vadd.xlane.f32.xlu2 %v4960_v22  ;;  %v5658_v42 = vmul.f32 %v14045_v6, %v5626_v49 }
 0x898   : > { %v5392_v48 = vsub.f32 1.5, %v5391_v59  ;;  %v5120_v19 = vsel %vm2744_vm13, %v5036_v63, 0.0 }
 0x899   : > { %v8676_v15 = vpop.eup %8675  ;;  %v14319_v58 = vadd.f32 1e-05, %v5213_v52  ;;  %v4835_v36 = vpop.f32.mrf.mxu3  ;;  %5121 = vadd.xlane.f32.xlu0 %v5120_v19  ;;  %v14322_v62 = vadd.f32 %v14054_v43, %v5658_v42  ;;  %v17240_v52 = vmax.f32 %v13565_v3, 0.0 }
 0x89a   : > { %v5393_v14 = vmul.f32 %v8674_v21, %v5392_v48  ;;  %v5399_v39 = vmul.f32 %v8676_v15, %v14288_v54  ;;  %v4836_v49 = vadd.f32 %v4835_v36, %v4723_v12  ;;  %v4920_v1 = vpop.xlane.xlu1 %4919  ;;  %v4726_v36 = vadd.f32 %v4725_v11, %v13665_v60 }
 0x89b   : > { %8677 = vrsqrt.f32 %v14319_v58  ;;  %v14330_v26 = vmul.f32 %v4920_v1, %v12653_v35  ;;  %v16276_v59 = vmax.f32 %v14322_v62, 0.0  ;;  %vm5405_vm0 = vweird.f32 %v8676_v15 }
 0x89c   : > { %v5397_v22 = vsel %vm5396_vm1, %v8674_v21, %v5393_v14  ;;  %v5400_v63 = vmul.f32 %v8676_v15, %v5399_v39  ;;  %v14335_v9 = vadd.f32 %v4836_v49, %v17240_v52  ;;  %v5080_v42 = vpop.xlane.xlu2 %5079  ;;  %v5244_v11 = vsub.f32 %v13897_v30, %v14268_v28  ;;  %vm5406_vm5 = vmor %vm5404_vm14, %vm5405_vm0 }
 0x89d   : > { %v5627_v12 = vmul.f32 %v5397_v22, %v5243_v23  ;;  %v5182_v48 = vmul.f32 %v14330_v26, %v14330_v26  ;;  %v5150_v4 = vmul.f32 %v5080_v42, %v12653_v35  ;;  %8453 = vmatmul.msk.f32.gmra.mxu0 %vm2744_vm13, %v16276_v59  ;;  %v4728_v23 = vpop.f32.mrf.mxu2  ;;  %vm5414_vm11 = vweird.f32 %v14319_v58 }
 0x89e   : > { %v5401_v17 = vmul.f32 0.5, %v5400_v63  ;;  %v4963_v21 = vsel %vm2744_vm13, %v14335_v9, 0.0  ;;  %v5037_v3 = vmul.f32 %v14335_v9, %v14335_v9 }
 0x89f   : > { %v5214_v14 = vsub.f32 %v5150_v4, %v5182_v48  ;;  %4964 = vadd.xlane.f32.xlu1 %v4963_v21  ;;  %v5659_v19 = vmul.f32 %v14045_v6, %v5627_v12 }
 0x8a0   : > { %v5402_v39 = vsub.f32 1.5, %v5401_v17  ;;  %v5123_v49 = vsel %vm2744_vm13, %v5037_v3, 0.0 }
 0x8a1   : > { %v8678_v1 = vpop.eup %8677  ;;  %v14350_v22 = vadd.f32 1e-05, %v5214_v14  ;;  %v4838_v63 = vpop.f32.mrf.mxu3  ;;  %5124 = vadd.xlane.f32.xlu2 %v5123_v49  ;;  %v14353_v52 = vadd.f32 %v14054_v43, %v5659_v19  ;;  %v17241_v14 = vmax.f32 %v13587_v56, 0.0 }
 0x8a2   : > { %v5403_v42 = vmul.f32 %v8676_v15, %v5402_v39  ;;  %v5409_v12 = vmul.f32 %v8678_v1, %v14319_v58  ;;  %v4839_v48 = vadd.f32 %v4838_v63, %v4726_v36  ;;  %v4923_v60 = vpop.xlane.xlu0 %4922  ;;  %vm5415_vm6 = vweird.f32 %v8678_v1 }
 0x8a3   : > { %8679 = vrsqrt.f32 %v14350_v22  ;;  %v14361_v4 = vmul.f32 %v4923_v60, %v12653_v35  ;;  %v16274_v17 = vmax.f32 %v14353_v52, 0.0  ;;  %vm5416_vm7 = vmor %vm5414_vm11, %vm5415_vm6  ;;  %v17242_v58 = vmax.f32 %v13601_v40, 0.0 }
 0x8a4   : > { %v5407_v21 = vsel %vm5406_vm5, %v8676_v15, %v5403_v42  ;;  %v5410_v3 = vmul.f32 %v8678_v1, %v5409_v12  ;;  %v14366_v54 = vadd.f32 %v4839_v48, %v17241_v14  ;;  %v5083_v19 = vpop.xlane.xlu1 %5082  ;;  %v4729_v42 = vadd.f32 %v4728_v23, %v13673_v57 }
 0x8a5   : > { %v5628_v36 = vmul.f32 %v5407_v21, %v5244_v11  ;;  %v5183_v39 = vmul.f32 %v14361_v4, %v14361_v4  ;;  %v5151_v30 = vmul.f32 %v5083_v19, %v12653_v35  ;;  %8454 = vmatmul.msk.f32.gmra.mxu0 %vm2744_vm13, %v16274_v17  ;;  %v4731_v57 = vpop.f32.mrf.mxu2  ;;  %v5245_v23 = vsub.f32 %v13908_v37, %v14299_v50 }
 0x8a6   : > { %v5411_v28 = vmul.f32 0.5, %v5410_v3  ;;  %v4966_v15 = vsel %vm2744_vm13, %v14366_v54, 0.0  ;;  %v5038_v56 = vmul.f32 %v14366_v54, %v14366_v54  ;;  %vm5424_vm2 = vweird.f32 %v14350_v22 }
 0x8a7   : > { %v5215_v49 = vsub.f32 %v5151_v30, %v5183_v39  ;;  %4967 = vadd.xlane.f32.xlu0 %v4966_v15  ;;  %v5660_v63 = vmul.f32 %v14045_v6, %v5628_v36 }
 0x8a8   : > { %v5412_v12 = vsub.f32 1.5, %v5411_v28  ;;  %v5126_v48 = vsel %vm2744_vm13, %v5038_v56, 0.0 }
 0x8a9   : > { %v8680_v60 = vpop.eup %8679  ;;  %v14381_v11 = vadd.f32 1e-05, %v5215_v49  ;;  %v4841_v21 = vpop.f32.mrf.mxu3  ;;  %5127 = vadd.xlane.f32.xlu1 %v5126_v48  ;;  %v14384_v3 = vadd.f32 %v14054_v43, %v5660_v63 }
 0x8aa   : > { %v5413_v14 = vmul.f32 %v8678_v1, %v5412_v12  ;;  %v5419_v19 = vmul.f32 %v8680_v60, %v14350_v22  ;;  %v4842_v36 = vadd.f32 %v4841_v21, %v4729_v42  ;;  %v4926_v39 = vpop.xlane.xlu2 %4925  ;;  %vm5425_vm15 = vweird.f32 %v8680_v60 }
 0x8ab   : > { %8681 = vrsqrt.f32 %v14381_v11  ;;  %v14392_v30 = vmul.f32 %v4926_v39, %v12653_v35  ;;  %v16272_v28 = vmax.f32 %v14384_v3, 0.0  ;;  %vm5426_vm8 = vmor %vm5424_vm2, %vm5425_vm15  ;;  %vm5434_vm3 = vweird.f32 %v14381_v11 }
 0x8ac   : > { %v5417_v15 = vsel %vm5416_vm7, %v8678_v1, %v5413_v14  ;;  %v5420_v56 = vmul.f32 %v8680_v60, %v5419_v19  ;;  %v14397_v49 = vadd.f32 %v4842_v36, %v17242_v58  ;;  %v5086_v63 = vpop.xlane.xlu0 %5085  ;;  %v4732_v14 = vadd.f32 %v4731_v57, %v13678_v32 }
 0x8ad   : > { %v5629_v42 = vmul.f32 %v5417_v15, %v5245_v23  ;;  %v5184_v12 = vmul.f32 %v14392_v30, %v14392_v30  ;;  %v5152_v37 = vmul.f32 %v5086_v63, %v12653_v35  ;;  %8455 = vmatmul.msk.f32.gmra.mxu0 %vm2744_vm13, %v16272_v28  ;;  %v5246_v32 = vsub.f32 %v13919_v25, %v14330_v26 }
 0x8ae   : > { %v5421_v50 = vmul.f32 0.5, %v5420_v56  ;;  %v4969_v1 = vsel %vm2744_vm13, %v14397_v49, 0.0  ;;  %v5039_v40 = vmul.f32 %v14397_v49, %v14397_v49 }
 0x8af   : > { %v5216_v48 = vsub.f32 %v5152_v37, %v5184_v12  ;;  %4970 = vadd.xlane.f32.xlu2 %v4969_v1  ;;  %v5661_v21 = vmul.f32 %v14045_v6, %v5629_v42 }
 0x8b0   : > { %v5422_v19 = vsub.f32 1.5, %v5421_v50  ;;  %v5129_v36 = vsel %vm2744_vm13, %v5039_v40, 0.0  ;;  %v17243_v40 = vmax.f32 %v13613_v8, 0.0 }
 0x8b1   : > { %v8682_v39 = vpop.eup %8681  ;;  %v14412_v23 = vadd.f32 1e-05, %v5216_v48  ;;  %v4844_v15 = vpop.f32.mrf.mxu3  ;;  %5130 = vadd.xlane.f32.xlu0 %v5129_v36  ;;  %v14415_v56 = vadd.f32 %v14054_v43, %v5661_v21 }
 0x8b2   : > { %v5423_v58 = vmul.f32 %v8680_v60, %v5422_v19  ;;  %v5429_v63 = vmul.f32 %v8682_v39, %v14381_v11  ;;  %v4845_v42 = vadd.f32 %v4844_v15, %v4732_v14  ;;  %v4929_v12 = vpop.xlane.xlu1 %4928  ;;  %v4734_v21 = vpop.f32.mrf.mxu2  ;;  %vm5435_vm10 = vweird.f32 %v8682_v39 }
 0x8b3   : > { %8683 = vrsqrt.f32 %v14412_v23  ;;  %v14423_v57 = vmul.f32 %v4929_v12, %v12653_v35  ;;  %v16270_v37 = vmax.f32 %v14415_v56, 0.0  ;;  %vm5436_vm12 = vmor %vm5434_vm3, %vm5435_vm10  ;;  %vm5444_vm9 = vweird.f32 %v14412_v23 }
 0x8b4   : > { %v5427_v50 = vsel %vm5426_vm8, %v8680_v60, %v5423_v58  ;;  %v5430_v1 = vmul.f32 %v8682_v39, %v5429_v63  ;;  %v14428_v22 = vadd.f32 %v4845_v42, %v17243_v40  ;;  %v5089_v48 = vpop.xlane.xlu2 %5088  ;;  %v4735_v58 = vadd.f32 %v4734_v21, %v13683_v44 }
 0x8b5   : > { %v5630_v14 = vmul.f32 %v5427_v50, %v5246_v32  ;;  %v5185_v25 = vmul.f32 %v14423_v57, %v14423_v57  ;;  %v5153_v26 = vmul.f32 %v5089_v48, %v12653_v35  ;;  %8456 = vmatmul.msk.f32.gmra.mxu0 %vm2744_vm13, %v16270_v37  ;;  %v5247_v44 = vsub.f32 %v13930_v51, %v14361_v4 }
 0x8b6   : > { %v5431_v19 = vmul.f32 0.5, %v5430_v1  ;;  %v4972_v60 = vsel %vm2744_vm13, %v14428_v22, 0.0  ;;  %v5040_v8 = vmul.f32 %v14428_v22, %v14428_v22 }
 0x8b7   : > { %v5217_v36 = vsub.f32 %v5153_v26, %v5185_v25  ;;  %4973 = vadd.xlane.f32.xlu1 %v4972_v60  ;;  %v5662_v15 = vmul.f32 %v14045_v6, %v5630_v14 }
 0x8b8   : > { %v5432_v63 = vsub.f32 1.5, %v5431_v19  ;;  %v5132_v42 = vsel %vm2744_vm13, %v5040_v8, 0.0  ;;  %v17244_v8 = vmax.f32 %v13627_v47, 0.0 }
 0x8b9   : > { %v8684_v12 = vpop.eup %8683  ;;  %v14443_v32 = vadd.f32 1e-05, %v5217_v36  ;;  %v4847_v50 = vpop.f32.mrf.mxu3  ;;  %5133 = vadd.xlane.f32.xlu2 %v5132_v42  ;;  %v14446_v1 = vadd.f32 %v14054_v43, %v5662_v15 }
 0x8ba   : > { %v5433_v40 = vmul.f32 %v8682_v39, %v5432_v63  ;;  %v5439_v48 = vmul.f32 %v8684_v12, %v14412_v23  ;;  %v4848_v14 = vadd.f32 %v4847_v50, %v4735_v58  ;;  %v4932_v25 = vpop.xlane.xlu0 %4931  ;;  %vm5445_vm4 = vweird.f32 %v8684_v12 }
 0x8bb   : > { %8685 = vrsqrt.f32 %v14443_v32  ;;  %v14454_v21 = vmul.f32 %v4932_v25, %v12653_v35  ;;  %v16268_v26 = vmax.f32 %v14446_v1, 0.0  ;;  %vm5446_vm1 = vmor %vm5444_vm9, %vm5445_vm4  ;;  %vm5454_vm14 = vweird.f32 %v14443_v32 }
 0x8bc   : > { %v5437_v19 = vsel %vm5436_vm12, %v8682_v39, %v5433_v40  ;;  %v5440_v60 = vmul.f32 %v8684_v12, %v5439_v48  ;;  %v14459_v11 = vadd.f32 %v4848_v14, %v17244_v8  ;;  %v5092_v36 = vpop.xlane.xlu1 %5091  ;;  %v5248_v8 = vsub.f32 %v13943_v61, %v14392_v30 }
 0x8bd   : > { %v5631_v15 = vmul.f32 %v5437_v19, %v5247_v44  ;;  %v5186_v58 = vmul.f32 %v14454_v21, %v14454_v21  ;;  %v5154_v51 = vmul.f32 %v5092_v36, %v12653_v35  ;;  %8457 = vmatmul.msk.f32.gmra.mxu0 %vm2744_vm13, %v16268_v26 }
 0x8be   : > { %v5441_v4 = vmul.f32 0.5, %v5440_v60  ;;  %v4975_v39 = vsel %vm2744_vm13, %v14459_v11, 0.0  ;;  %v5041_v47 = vmul.f32 %v14459_v11, %v14459_v11 }
 0x8bf   : > { %v5218_v63 = vsub.f32 %v5154_v51, %v5186_v58  ;;  %4976 = vadd.xlane.f32.xlu0 %v4975_v39  ;;  %v5663_v42 = vmul.f32 %v14045_v6, %v5631_v15 }
 0x8c0   : > { %v5442_v50 = vsub.f32 1.5, %v5441_v4  ;;  %v5135_v40 = vsel %vm2744_vm13, %v5041_v47, 0.0 }
 0x8c1   : > { %v8686_v48 = vpop.eup %8685  ;;  %v5282_v14 = vadd.f32 1e-05, %v5218_v63  ;;  %5136 = vadd.xlane.f32.xlu1 %v5135_v40  ;;  %v14474_v25 = vadd.f32 %v14054_v43, %v5663_v42 }
 0x8c2   : > { %v5443_v44 = vmul.f32 %v8684_v12, %v5442_v50  ;;  %v5449_v19 = vmul.f32 %v8686_v48, %v14443_v32  ;;  %v4935_v60 = vpop.xlane.xlu2 %4934  ;;  %vm5455_vm0 = vweird.f32 %v8686_v48 }
 0x8c3   : > { %8687 = vrsqrt.f32 %v5282_v14  ;;  %v14481_v36 = vmul.f32 %v4935_v60, %v12653_v35  ;;  %v16266_v15 = vmax.f32 %v14474_v25, 0.0  ;;  %vm5456_vm5 = vmor %vm5454_vm14, %vm5455_vm0  ;;  %vm5464_vm11 = vweird.f32 %v5282_v14 }
 0x8c4   : > { %v5447_v58 = vsel %vm5446_vm1, %v8684_v12, %v5443_v44  ;;  %v5450_v51 = vmul.f32 %v8686_v48, %v5449_v19  ;;  %v5095_v4 = vpop.xlane.xlu0 %5094 }
 0x8c5   : > { %v5632_v39 = vmul.f32 %v5447_v58, %v5248_v8  ;;  %v5187_v23 = vmul.f32 %v14481_v36, %v14481_v36  ;;  %v5155_v47 = vmul.f32 %v5095_v4, %v12653_v35  ;;  %8458 = vmatmul.msk.f32.gmra.mxu0 %vm2744_vm13, %v16266_v15  ;;  %v5249_v8 = vsub.f32 %v13966_v41, %v14423_v57 }
 0x8c6   : > { %v5451_v61 = vmul.f32 0.5, %v5450_v51 }
 0x8c7   : > { %v5219_v30 = vsub.f32 %v5155_v47, %v5187_v23  ;;  %v5664_v63 = vmul.f32 %v14045_v6, %v5632_v39 }
 0x8c8   : > { %v5452_v42 = vsub.f32 1.5, %v5451_v61 }
 0x8c9   : > { %v8688_v50 = vpop.eup %8687  ;;  %v5283_v12 = vadd.f32 1e-05, %v5219_v30  ;;  %v14492_v40 = vadd.f32 %v14054_v43, %v5664_v63 }
 0x8ca   : > { %v5453_v44 = vmul.f32 %v8686_v48, %v5452_v42  ;;  %v5459_v19 = vmul.f32 %v8688_v50, %v5282_v14  ;;  %v4938_v60 = vpop.xlane.xlu1 %4937  ;;  %vm5465_vm6 = vweird.f32 %v8688_v50 }
 0x8cb   : > { %8689 = vrsqrt.f32 %v5283_v12  ;;  %v14498_v58 = vmul.f32 %v4938_v60, %v12653_v35  ;;  %v16264_v51 = vmax.f32 %v14492_v40, 0.0  ;;  %vm5466_vm7 = vmor %vm5464_vm11, %vm5465_vm6  ;;  %vm5474_vm2 = vweird.f32 %v5283_v12 }
 0x8cc   : > { %v5457_v4 = vsel %vm5456_vm5, %v8686_v48, %v5453_v44  ;;  %v5460_v39 = vmul.f32 %v8688_v50, %v5459_v19  ;;  %v5098_v23 = vpop.xlane.xlu2 %5097 }
 0x8cd   : > { %v5633_v47 = vmul.f32 %v5457_v4, %v5249_v8  ;;  %v5188_v61 = vmul.f32 %v14498_v58, %v14498_v58  ;;  %v5156_v32 = vmul.f32 %v5098_v23, %v12653_v35  ;;  %8459 = vmatmul.msk.f32.gmra.mxu0 %vm2744_vm13, %v16264_v51  ;;  %v5250_v4 = vsub.f32 %v13987_v53, %v14454_v21 }
 0x8ce   : > { %v5461_v41 = vmul.f32 0.5, %v5460_v39 }
 0x8cf   : > { %v5220_v57 = vsub.f32 %v5156_v32, %v5188_v61  ;;  %v5665_v30 = vmul.f32 %v14045_v6, %v5633_v47 }
 0x8d0   : > { %v5462_v63 = vsub.f32 1.5, %v5461_v41  ;;  %v14526_v41 = vld [vmem:[%s15819_s4 + $0xc8] ss:$0 sm:$0xff] }
 0x8d1   : > { %v8690_v42 = vpop.eup %8689  ;;  %v5284_v48 = vadd.f32 1e-05, %v5220_v57  ;;  %v14509_v44 = vadd.f32 %v14054_v43, %v5665_v30 }
 0x8d2   : > { %v5463_v19 = vmul.f32 %v8688_v50, %v5462_v63  ;;  %v5469_v60 = vmul.f32 %v8690_v42, %v5283_v12  ;;  %vm5475_vm15 = vweird.f32 %v8690_v42 }
 0x8d3   : > { %v4941_v8 = vpop.xlane.xlu0 %4940  ;;  %8691 = vrsqrt.f32 %v5284_v48  ;;  %v16263_v6 = vmax.f32 %v14509_v44, 0.0  ;;  %vm5476_vm8 = vmor %vm5474_vm2, %vm5475_vm15  ;;  %vm5484_vm3 = vweird.f32 %v5284_v48 }
 0x8d4   : > { %v14514_v39 = vmul.f32 %v4941_v8, %v12653_v35  ;;  %v5467_v23 = vsel %vm5466_vm7, %v8688_v50, %v5463_v19  ;;  %v5470_v47 = vmul.f32 %v8690_v42, %v5469_v60  ;;  %v14532_v19 = vld [vmem:[%s15819_s4 + $0xd0] ss:$0 sm:$0xff] }
 0x8d5   : > { %v5101_v61 = vpop.xlane.xlu1 %5100  ;;  %v5634_v32 = vmul.f32 %v5467_v23, %v5250_v4  ;;  %8460 = vmatmul.msk.f32.gmra.mxu0 %vm2744_vm13, %v16263_v6 }
 0x8d6   : > { %v5189_v43 = vmul.f32 %v14514_v39, %v14514_v39  ;;  %v5157_v14 = vmul.f32 %v5101_v61, %v12653_v35  ;;  %v5471_v53 = vmul.f32 0.5, %v5470_v47  ;;  %v5251_v61 = vsub.f32 %v14008_v55, %v14481_v36 }
 0x8d7   : > { %v5666_v50 = vmul.f32 %v14526_v41, %v5634_v32 }
 0x8d8   : > { %v5221_v21 = vsub.f32 %v5157_v14, %v5189_v43  ;;  %v5472_v57 = vsub.f32 1.5, %v5471_v53 }
 0x8d9   : > { %v8692_v30 = vpop.eup %8691  ;;  %v14535_v60 = vadd.f32 %v14532_v19, %v5666_v50 }
 0x8da   : > { %v5285_v63 = vadd.f32 1e-05, %v5221_v21  ;;  %v5473_v8 = vmul.f32 %v8690_v42, %v5472_v57  ;;  %v5479_v4 = vmul.f32 %v8692_v30, %v5284_v48  ;;  %v4944_v23 = vpop.xlane.xlu2 %4943  ;;  %v14537_v47 = vpop.f32.mrf.mxu0  ;;  %vm5485_vm10 = vweird.f32 %v8692_v30 }
 0x8db   : > { %v14542_v32 = vmul.f32 %v4944_v23, %v12653_v35  ;;  %v16265_v43 = vmax.f32 %v14535_v60, 0.0  ;;  %vm5486_vm12 = vmor %vm5484_vm3, %vm5485_vm10 }
 0x8dc   : > { %8693 = vrsqrt.f32 %v5285_v63  ;;  %v5477_v14 = vsel %vm5476_vm8, %v8690_v42, %v5473_v8  ;;  %v5480_v53 = vmul.f32 %v8692_v30, %v5479_v4  ;;  %v5104_v21 = vpop.xlane.xlu0 %5103  ;;  %vm5494_vm9 = vweird.f32 %v5285_v63 }
 0x8dd   : > { %v5635_v50 = vmul.f32 %v5477_v14, %v5251_v61  ;;  %v5190_v12 = vmul.f32 %v14542_v32, %v14542_v32  ;;  %v5158_v57 = vmul.f32 %v5104_v21, %v12653_v35  ;;  %8461 = vmatmul.msk.f32.gmra.mxu0 %vm2744_vm13, %v16265_v43  ;;  %v5252_v43 = vsub.f32 %v14033_v2, %v14498_v58 }
 0x8de   : > { %v5481_v55 = vmul.f32 0.5, %v5480_v53 }
 0x8df   : > { %v5222_v36 = vsub.f32 %v5158_v57, %v5190_v12  ;;  %v5667_v23 = vmul.f32 %v14526_v41, %v5635_v50 }
 0x8e0   : > { %v5482_v6 = vsub.f32 1.5, %v5481_v55 }
 0x8e1   : > { %v5286_v42 = vadd.f32 1e-05, %v5222_v36  ;;  %v14553_v8 = vadd.f32 %v14532_v19, %v5667_v23 }
 0x8e2   : > { %v8694_v51 = vpop.eup %8693  ;;  %v5483_v4 = vmul.f32 %v8692_v30, %v5482_v6  ;;  %v14555_v14 = vpop.f32.mrf.mxu0 }
 0x8e3   : > { %v5489_v61 = vmul.f32 %v8694_v51, %v5285_v63  ;;  %v4947_v21 = vpop.xlane.xlu1 %4946  ;;  %8695 = vrsqrt.f32 %v5286_v42  ;;  %v16267_v50 = vmax.f32 %v14553_v8, 0.0  ;;  %vm5495_vm4 = vweird.f32 %v8694_v51 }
 0x8e4   : > { %v14560_v53 = vmul.f32 %v4947_v21, %v12653_v35  ;;  %v5487_v12 = vsel %vm5486_vm12, %v8692_v30, %v5483_v4  ;;  %v5107_v55 = vpop.xlane.xlu2 %5106  ;;  %vm5496_vm1 = vmor %vm5494_vm9, %vm5495_vm4  ;;  %vm5504_vm14 = vweird.f32 %v5286_v42 }
 0x8e5   : > { %v5490_v57 = vmul.f32 %v8694_v51, %v5489_v61  ;;  %v5636_v36 = vmul.f32 %v5487_v12, %v5252_v43  ;;  %v5159_v6 = vmul.f32 %v5107_v55, %v12653_v35  ;;  %8462 = vmatmul.msk.f32.gmra.mxu0 %vm2744_vm13, %v16267_v50  ;;  %v5253_v50 = vsub.f32 %v14075_v24, %v14514_v39 }
 0x8e6   : > { %v5191_v48 = vmul.f32 %v14560_v53, %v14560_v53 }
 0x8e7   : > { %v5491_v2 = vmul.f32 0.5, %v5490_v57  ;;  %v5668_v23 = vmul.f32 %v14526_v41, %v5636_v36 }
 0x8e8   : > { %v5223_v58 = vsub.f32 %v5159_v6, %v5191_v48 }
 0x8e9   : > { %v5492_v21 = vsub.f32 1.5, %v5491_v2  ;;  %v8696_v15 = vpop.eup %8695  ;;  %v14571_v4 = vadd.f32 %v14532_v19, %v5668_v23 }
 0x8ea   : > { %v5287_v30 = vadd.f32 1e-05, %v5223_v58  ;;  %v5499_v61 = vmul.f32 %v8696_v15, %v5286_v42  ;;  %v4950_v12 = vpop.xlane.xlu0 %4949  ;;  %v14573_v55 = vpop.f32.mrf.mxu0  ;;  %vm5505_vm0 = vweird.f32 %v8696_v15 }
 0x8eb   : > { %v5493_v43 = vmul.f32 %v8694_v51, %v5492_v21  ;;  %v14578_v57 = vmul.f32 %v4950_v12, %v12653_v35  ;;  %v16269_v36 = vmax.f32 %v14571_v4, 0.0  ;;  %vm5506_vm5 = vmor %vm5504_vm14, %vm5505_vm0 }
 0x8ec   : > { %8697 = vrsqrt.f32 %v5287_v30  ;;  %v5500_v6 = vmul.f32 %v8696_v15, %v5499_v61  ;;  %v5110_v2 = vpop.xlane.xlu1 %5109  ;;  %vm5514_vm11 = vweird.f32 %v5287_v30 }
 0x8ed   : > { %v5497_v48 = vsel %vm5496_vm1, %v8694_v51, %v5493_v43  ;;  %v5192_v63 = vmul.f32 %v14578_v57, %v14578_v57  ;;  %v5160_v23 = vmul.f32 %v5110_v2, %v12653_v35  ;;  %8463 = vmatmul.msk.f32.gmra.mxu0 %vm2744_vm13, %v16269_v36  ;;  %v5254_v36 = vsub.f32 %v14107_v46, %v14542_v32 }
 0x8ee   : > { %v5637_v58 = vmul.f32 %v5497_v48, %v5253_v50  ;;  %v5501_v24 = vmul.f32 0.5, %v5500_v6 }
 0x8ef   : > { %v5224_v39 = vsub.f32 %v5160_v23, %v5192_v63 }
 0x8f0   : > { %v5669_v21 = vmul.f32 %v14526_v41, %v5637_v58  ;;  %v5502_v12 = vsub.f32 1.5, %v5501_v24 }
 0x8f1   : > { %v5288_v51 = vadd.f32 1e-05, %v5224_v39 }
 0x8f2   : > { %v8698_v26 = vpop.eup %8697  ;;  %v14589_v43 = vadd.f32 %v14532_v19, %v5669_v21  ;;  %v5503_v50 = vmul.f32 %v8696_v15, %v5502_v12  ;;  %v4953_v48 = vpop.xlane.xlu2 %4952 }
 0x8f3   : > { %v5509_v61 = vmul.f32 %v8698_v26, %v5287_v30  ;;  %v14591_v2 = vpop.f32.mrf.mxu0  ;;  %8699 = vrsqrt.f32 %v5288_v51  ;;  %v14596_v6 = vmul.f32 %v4953_v48, %v12653_v35  ;;  %vm5515_vm6 = vweird.f32 %v8698_v26 }
 0x8f4   : > { %v16271_v58 = vmax.f32 %v14589_v43, 0.0  ;;  %v5507_v63 = vsel %vm5506_vm5, %v8696_v15, %v5503_v50  ;;  %v5113_v24 = vpop.xlane.xlu0 %5112  ;;  %vm5516_vm7 = vmor %vm5514_vm11, %vm5515_vm6  ;;  %vm5524_vm2 = vweird.f32 %v5288_v51 }
 0x8f5   : > { %v5510_v23 = vmul.f32 %v8698_v26, %v5509_v61  ;;  %v5638_v39 = vmul.f32 %v5507_v63, %v5254_v36  ;;  %v5193_v42 = vmul.f32 %v14596_v6, %v14596_v6  ;;  %v5161_v21 = vmul.f32 %v5113_v24, %v12653_v35 }
 0x8f6   : > { %8464 = vmatmul.msk.f32.gmra.mxu0 %vm2744_vm13, %v16271_v58  ;;  %v5255_v58 = vsub.f32 %v14141_v16, %v14560_v53 }
 0x8f7   : > { %v5511_v46 = vmul.f32 0.5, %v5510_v23  ;;  %v5225_v32 = vsub.f32 %v5161_v21, %v5193_v42  ;;  %v5670_v12 = vmul.f32 %v14526_v41, %v5638_v39 }
 0x8f9   : > { %v5512_v48 = vsub.f32 1.5, %v5511_v46  ;;  %v8700_v37 = vpop.eup %8699  ;;  %v5289_v15 = vadd.f32 1e-05, %v5225_v32  ;;  %v14607_v50 = vadd.f32 %v14532_v19, %v5670_v12 }
 0x8fa   : > { %v5519_v61 = vmul.f32 %v8700_v37, %v5288_v51  ;;  %v4956_v24 = vpop.xlane.xlu1 %4955  ;;  %vm5525_vm15 = vweird.f32 %v8700_v37 }
 0x8fb   : > { %v5513_v36 = vmul.f32 %v8698_v26, %v5512_v48  ;;  %v14609_v63 = vpop.f32.mrf.mxu0  ;;  %8701 = vrsqrt.f32 %v5289_v15  ;;  %v14614_v23 = vmul.f32 %v4956_v24, %v12653_v35  ;;  %v16273_v39 = vmax.f32 %v14607_v50, 0.0  ;;  %vm5526_vm8 = vmor %vm5524_vm2, %vm5525_vm15 }
 0x8fc   : > { %v5520_v21 = vmul.f32 %v8700_v37, %v5519_v61  ;;  %v5116_v46 = vpop.xlane.xlu2 %5115  ;;  %vm5534_vm3 = vweird.f32 %v5289_v15 }
 0x8fd   : > { %v5517_v42 = vsel %vm5516_vm7, %v8698_v26, %v5513_v36  ;;  %v5194_v30 = vmul.f32 %v14614_v23, %v14614_v23  ;;  %v5162_v12 = vmul.f32 %v5116_v46, %v12653_v35 }
 0x8fe   : > { %v5639_v32 = vmul.f32 %v5517_v42, %v5255_v58  ;;  %8465 = vmatmul.msk.f32.gmra.mxu0 %vm2744_vm13, %v16273_v39  ;;  %v5521_v16 = vmul.f32 0.5, %v5520_v21  ;;  %v5256_v39 = vsub.f32 %v14175_v33, %v14578_v57 }
 0x8ff   : > { %v5226_v53 = vsub.f32 %v5162_v12, %v5194_v30 }
 0x900   : > { %v5671_v48 = vmul.f32 %v14526_v41, %v5639_v32  ;;  %v5522_v24 = vsub.f32 1.5, %v5521_v16 }
 0x901   : > { %v8702_v28 = vpop.eup %8701  ;;  %v5290_v26 = vadd.f32 1e-05, %v5226_v53 }
 0x902   : > { %v14625_v36 = vadd.f32 %v14532_v19, %v5671_v48  ;;  %v5523_v58 = vmul.f32 %v8700_v37, %v5522_v24  ;;  %v5529_v61 = vmul.f32 %v8702_v28, %v5289_v15  ;;  %v4959_v42 = vpop.xlane.xlu0 %4958  ;;  %vm5535_vm10 = vweird.f32 %v8702_v28 }
 0x903   : > { %v14627_v46 = vpop.f32.mrf.mxu0  ;;  %8703 = vrsqrt.f32 %v5290_v26  ;;  %v14632_v21 = vmul.f32 %v4959_v42, %v12653_v35  ;;  %vm5536_vm12 = vmor %vm5534_vm3, %vm5535_vm10  ;;  %vm5544_vm9 = vweird.f32 %v5290_v26 }
 0x904   : > { %v16275_v32 = vmax.f32 %v14625_v36, 0.0  ;;  %v5527_v30 = vsel %vm5526_vm8, %v8700_v37, %v5523_v58  ;;  %v5530_v12 = vmul.f32 %v8702_v28, %v5529_v61  ;;  %v5119_v16 = vpop.xlane.xlu1 %5118 }
 0x905   : > { %v5640_v53 = vmul.f32 %v5527_v30, %v5256_v39  ;;  %v5195_v51 = vmul.f32 %v14632_v21, %v14632_v21  ;;  %v5163_v48 = vmul.f32 %v5119_v16, %v12653_v35 }
 0x906   : > { %8466 = vmatmul.msk.f32.gmra.mxu0 %vm2744_vm13, %v16275_v32  ;;  %v5531_v33 = vmul.f32 0.5, %v5530_v12  ;;  %v5257_v32 = vsub.f32 %v14209_v38, %v14596_v6 }
 0x907   : > { %v5227_v57 = vsub.f32 %v5163_v48, %v5195_v51  ;;  %v5672_v24 = vmul.f32 %v14526_v41, %v5640_v53 }
 0x908   : > { %v5532_v42 = vsub.f32 1.5, %v5531_v33 }
 0x909   : > { %v8704_v17 = vpop.eup %8703  ;;  %v5291_v37 = vadd.f32 1e-05, %v5227_v57  ;;  %v14643_v58 = vadd.f32 %v14532_v19, %v5672_v24 }
 0x90a   : > { %v5533_v39 = vmul.f32 %v8702_v28, %v5532_v42  ;;  %v5539_v61 = vmul.f32 %v8704_v17, %v5290_v26  ;;  %v4962_v30 = vpop.xlane.xlu2 %4961  ;;  %vm5545_vm4 = vweird.f32 %v8704_v17 }
 0x90b   : > { %17245 = vst [vmem:[#allocation12_spill] sm:$0xff] %v14643_v58  ;;  %v14645_v16 = vpop.f32.mrf.mxu0  ;;  %8705 = vrsqrt.f32 %v5291_v37  ;;  %v14650_v12 = vmul.f32 %v4962_v30, %v12653_v35  ;;  %v16277_v53 = vmax.f32 %v14643_v58, 0.0  ;;  %vm5546_vm1 = vmor %vm5544_vm9, %vm5545_vm4  ;;  %vm5554_vm14 = vweird.f32 %v5291_v37 }
 0x90c   : > { %v5537_v51 = vsel %vm5536_vm12, %v8702_v28, %v5533_v39  ;;  %v5540_v48 = vmul.f32 %v8704_v17, %v5539_v61  ;;  %v5122_v33 = vpop.xlane.xlu0 %5121 }
 0x90d   : > { %v5641_v57 = vmul.f32 %v5537_v51, %v5257_v32  ;;  %v5196_v15 = vmul.f32 %v14650_v12, %v14650_v12  ;;  %v5164_v24 = vmul.f32 %v5122_v33, %v12653_v35 }
 0x90e   : > { %8467 = vmatmul.msk.f32.gmra.mxu0 %vm2744_vm13, %v16277_v53  ;;  %v5541_v38 = vmul.f32 0.5, %v5540_v48  ;;  %v5258_v53 = vsub.f32 %v14241_v7, %v14614_v23 }
 0x90f   : > { %v5228_v6 = vsub.f32 %v5164_v24, %v5196_v15  ;;  %v5673_v42 = vmul.f32 %v14526_v41, %v5641_v57 }
 0x910   : > { %v5542_v30 = vsub.f32 1.5, %v5541_v38 }
 0x911   : > { %v8706_v59 = vpop.eup %8705  ;;  %v5292_v28 = vadd.f32 1e-05, %v5228_v6  ;;  %v14661_v39 = vadd.f32 %v14532_v19, %v5673_v42 }
 0x912   : > { %v5543_v32 = vmul.f32 %v8704_v17, %v5542_v30  ;;  %v5549_v61 = vmul.f32 %v8706_v59, %v5291_v37  ;;  %v4965_v33 = vpop.xlane.xlu1 %4964  ;;  %vm5555_vm0 = vweird.f32 %v8706_v59 }
 0x913   : > { %17246 = vst [vmem:[#allocation4_spill] sm:$0xff] %v14661_v39  ;;  %v14663_v51 = vpop.f32.mrf.mxu0  ;;  %8707 = vrsqrt.f32 %v5292_v28  ;;  %v14668_v48 = vmul.f32 %v4965_v33, %v12653_v35  ;;  %v16279_v57 = vmax.f32 %v14661_v39, 0.0  ;;  %vm5556_vm5 = vmor %vm5554_vm14, %vm5555_vm0  ;;  %vm5564_vm11 = vweird.f32 %v5292_v28 }
 0x914   : > { %v5547_v15 = vsel %vm5546_vm1, %v8704_v17, %v5543_v32  ;;  %v5550_v24 = vmul.f32 %v8706_v59, %v5549_v61  ;;  %v5125_v38 = vpop.xlane.xlu2 %5124 }
 0x915   : > { %v5642_v6 = vmul.f32 %v5547_v15, %v5258_v53  ;;  %v5197_v26 = vmul.f32 %v14668_v48, %v14668_v48  ;;  %v5165_v42 = vmul.f32 %v5125_v38, %v12653_v35 }
 0x916   : > { %8468 = vmatmul.msk.f32.gmra.mxu0 %vm2744_vm13, %v16279_v57  ;;  %v5551_v7 = vmul.f32 0.5, %v5550_v24  ;;  %v5259_v57 = vsub.f32 %v14273_v27, %v14632_v21 }
 0x917   : > { %v5229_v23 = vsub.f32 %v5165_v42, %v5197_v26  ;;  %v5674_v30 = vmul.f32 %v14526_v41, %v5642_v6 }
 0x918   : > { %v5552_v33 = vsub.f32 1.5, %v5551_v7 }
 0x919   : > { %v8708_v0 = vpop.eup %8707  ;;  %v5293_v17 = vadd.f32 1e-05, %v5229_v23  ;;  %v14679_v32 = vadd.f32 %v14532_v19, %v5674_v30 }
 0x91a   : > { %v5553_v53 = vmul.f32 %v8706_v59, %v5552_v33  ;;  %v5559_v61 = vmul.f32 %v8708_v0, %v5292_v28  ;;  %v4968_v15 = vpop.xlane.xlu0 %4967  ;;  %vm5565_vm6 = vweird.f32 %v8708_v0 }
 0x91b   : > { %17247 = vst [vmem:[#allocation65_spill] sm:$0xff] %v14679_v32  ;;  %v14681_v38 = vpop.f32.mrf.mxu0  ;;  %8709 = vrsqrt.f32 %v5293_v17  ;;  %v14686_v24 = vmul.f32 %v4968_v15, %v12653_v35  ;;  %v16281_v6 = vmax.f32 %v14679_v32, 0.0  ;;  %vm5566_vm7 = vmor %vm5564_vm11, %vm5565_vm6  ;;  %vm5574_vm2 = vweird.f32 %v5293_v17 }
 0x91c   : > { %v5557_v26 = vsel %vm5556_vm5, %v8706_v59, %v5553_v53  ;;  %v5560_v42 = vmul.f32 %v8708_v0, %v5559_v61  ;;  %v5128_v7 = vpop.xlane.xlu1 %5127 }
 0x91d   : > { %v5643_v23 = vmul.f32 %v5557_v26, %v5259_v57  ;;  %v5198_v37 = vmul.f32 %v14686_v24, %v14686_v24  ;;  %v5166_v30 = vmul.f32 %v5128_v7, %v12653_v35 }
 0x91e   : > { %8469 = vmatmul.msk.f32.gmra.mxu0 %vm2744_vm13, %v16281_v6  ;;  %v5561_v27 = vmul.f32 0.5, %v5560_v42  ;;  %v5260_v6 = vsub.f32 %v14304_v20, %v14650_v12 }
 0x91f   : > { %v5230_v21 = vsub.f32 %v5166_v30, %v5198_v37  ;;  %v5675_v33 = vmul.f32 %v14526_v41, %v5643_v23 }
 0x920   : > { %v5562_v15 = vsub.f32 1.5, %v5561_v27 }
 0x921   : > { %v8710_v39 = vpop.eup %8709  ;;  %v5294_v59 = vadd.f32 1e-05, %v5230_v21  ;;  %v14697_v53 = vadd.f32 %v14532_v19, %v5675_v33 }
 0x922   : > { %v5563_v57 = vmul.f32 %v8708_v0, %v5562_v15  ;;  %v5569_v61 = vmul.f32 %v8710_v39, %v5293_v17  ;;  %v4971_v26 = vpop.xlane.xlu2 %4970  ;;  %vm5575_vm15 = vweird.f32 %v8710_v39 }
 0x923   : > { %17248 = vst [vmem:[#allocation78_spill] sm:$0xff] %v14697_v53  ;;  %v14699_v7 = vpop.f32.mrf.mxu0  ;;  %8711 = vrsqrt.f32 %v5294_v59  ;;  %v14704_v42 = vmul.f32 %v4971_v26, %v12653_v35  ;;  %v16283_v23 = vmax.f32 %v14697_v53, 0.0  ;;  %vm5576_vm8 = vmor %vm5574_vm2, %vm5575_vm15  ;;  %vm5584_vm3 = vweird.f32 %v5294_v59 }
 0x924   : > { %v5567_v37 = vsel %vm5566_vm7, %v8708_v0, %v5563_v57  ;;  %v5570_v30 = vmul.f32 %v8710_v39, %v5569_v61  ;;  %v5131_v27 = vpop.xlane.xlu0 %5130 }
 0x925   : > { %v5644_v21 = vmul.f32 %v5567_v37, %v5260_v6  ;;  %v5199_v28 = vmul.f32 %v14704_v42, %v14704_v42  ;;  %v5167_v33 = vmul.f32 %v5131_v27, %v12653_v35 }
 0x926   : > { %8470 = vmatmul.msk.f32.gmra.mxu0 %vm2744_vm13, %v16283_v23  ;;  %v5571_v20 = vmul.f32 0.5, %v5570_v30  ;;  %v5261_v23 = vsub.f32 %v14335_v9, %v14668_v48 }
 0x927   : > { %v5231_v12 = vsub.f32 %v5167_v33, %v5199_v28  ;;  %v5676_v15 = vmul.f32 %v14526_v41, %v5644_v21 }
 0x928   : > { %v5572_v26 = vsub.f32 1.5, %v5571_v20 }
 0x929   : > { %v8712_v32 = vpop.eup %8711  ;;  %v5295_v0 = vadd.f32 1e-05, %v5231_v12  ;;  %v14715_v57 = vadd.f32 %v14532_v19, %v5676_v15 }
 0x92a   : > { %v5573_v6 = vmul.f32 %v8710_v39, %v5572_v26  ;;  %v5579_v61 = vmul.f32 %v8712_v32, %v5294_v59  ;;  %v4974_v27 = vpop.xlane.xlu1 %4973  ;;  %vm5585_vm10 = vweird.f32 %v8712_v32 }
 0x92b   : > { %17249 = vst [vmem:[#allocation68_spill] sm:$0xff] %v14715_v57  ;;  %v14717_v37 = vpop.f32.mrf.mxu0  ;;  %8713 = vrsqrt.f32 %v5295_v0  ;;  %v14722_v30 = vmul.f32 %v4974_v27, %v12653_v35  ;;  %v16285_v21 = vmax.f32 %v14715_v57, 0.0  ;;  %vm5586_vm12 = vmor %vm5584_vm3, %vm5585_vm10  ;;  %vm5594_vm9 = vweird.f32 %v5295_v0 }
 0x92c   : > { %v5577_v28 = vsel %vm5576_vm8, %v8710_v39, %v5573_v6  ;;  %v5580_v33 = vmul.f32 %v8712_v32, %v5579_v61  ;;  %v5134_v20 = vpop.xlane.xlu2 %5133 }
 0x92d   : > { %v5645_v12 = vmul.f32 %v5577_v28, %v5261_v23  ;;  %v5200_v17 = vmul.f32 %v14722_v30, %v14722_v30  ;;  %v5168_v15 = vmul.f32 %v5134_v20, %v12653_v35 }
 0x92e   : > { %8471 = vmatmul.msk.f32.gmra.mxu0 %vm2744_vm13, %v16285_v21  ;;  %v5581_v9 = vmul.f32 0.5, %v5580_v33  ;;  %v5262_v21 = vsub.f32 %v14366_v54, %v14686_v24 }
 0x92f   : > { %v5232_v48 = vsub.f32 %v5168_v15, %v5200_v17  ;;  %v5677_v26 = vmul.f32 %v14526_v41, %v5645_v12 }
 0x930   : > { %v5582_v27 = vsub.f32 1.5, %v5581_v9 }
 0x931   : > { %v8714_v53 = vpop.eup %8713  ;;  %v5296_v39 = vadd.f32 1e-05, %v5232_v48  ;;  %v14733_v6 = vadd.f32 %v14532_v19, %v5677_v26 }
 0x932   : > { %v5583_v23 = vmul.f32 %v8712_v32, %v5582_v27  ;;  %v5589_v61 = vmul.f32 %v8714_v53, %v5295_v0  ;;  %v4977_v28 = vpop.xlane.xlu0 %4976  ;;  %vm5595_vm4 = vweird.f32 %v8714_v53 }
 0x933   : > { %v14735_v20 = vpop.f32.mrf.mxu0  ;;  %8715 = vrsqrt.f32 %v5296_v39  ;;  %v5009_v33 = vmul.f32 %v4977_v28, %v12653_v35  ;;  %v5741_v12 = vmax.f32 %v14733_v6, 0.0  ;;  %vm5596_vm1 = vmor %vm5594_vm9, %vm5595_vm4  ;;  %vm5604_vm14 = vweird.f32 %v5296_v39 }
 0x934   : > { %v5587_v17 = vsel %vm5586_vm12, %v8712_v32, %v5583_v23  ;;  %v5590_v15 = vmul.f32 %v8714_v53, %v5589_v61  ;;  %v5137_v9 = vpop.xlane.xlu1 %5136 }
 0x935   : > { %v5646_v48 = vmul.f32 %v5587_v17, %v5262_v21  ;;  %v5201_v26 = vmul.f32 %v5009_v33, %v5009_v33  ;;  %v5169_v59 = vmul.f32 %v5137_v9, %v12653_v35  ;;  %v5263_v17 = vsub.f32 %v14397_v49, %v14704_v42 }
 0x936   : > { %8472 = vmatmul.msk.f32.gmra.mxu0 %vm2744_vm13, %v5741_v12  ;;  %v5591_v27 = vmul.f32 0.5, %v5590_v15 }
 0x937   : > { %v5233_v57 = vsub.f32 %v5169_v59, %v5201_v26  ;;  %v5678_v54 = vmul.f32 %v14526_v41, %v5646_v48 }
 0x938   : > { %v5592_v24 = vsub.f32 1.5, %v5591_v27 }
 0x939   : > { %v8716_v28 = vpop.eup %8715  ;;  %v5297_v58 = vadd.f32 1e-05, %v5233_v57  ;;  %v14747_v32 = vadd.f32 %v14532_v19, %v5678_v54 }
 0x93a   : > { %v5593_v23 = vmul.f32 %v8714_v53, %v5592_v24  ;;  %v5599_v21 = vmul.f32 %v8716_v28, %v5296_v39  ;;  %vm5605_vm0 = vweird.f32 %v8716_v28 }
 0x93b   : > { %v5902_v61 = vpop.f32.mrf.mxu0  ;;  %8717 = vrsqrt.f32 %v5297_v58  ;;  %v5742_v15 = vmax.f32 %v14747_v32, 0.0  ;;  %vm5606_vm5 = vmor %vm5604_vm14, %vm5605_vm0  ;;  %vm5614_vm11 = vweird.f32 %v5297_v58 }
 0x93c   : > { %v5597_v9 = vsel %vm5596_vm1, %v8714_v53, %v5593_v23  ;;  %v5600_v48 = vmul.f32 %v8716_v28, %v5599_v21  ;;  %v5264_v53 = vsub.f32 %v14428_v22, %v14722_v30  ;;  %v5265_v30 = vsub.f32 %v14459_v11, %v5009_v33 }
 0x93d   : > { %v5647_v26 = vmul.f32 %v5597_v9, %v5263_v17 }
 0x93e   : > { %8473 = vmatmul.msk.f32.gmra.mxu0 %vm2744_vm13, %v5742_v15  ;;  %v5601_v57 = vmul.f32 0.5, %v5600_v48 }
 0x93f   : > { %v5679_v59 = vmul.f32 %v14526_v41, %v5647_v26 }
 0x940   : > { %v5602_v0 = vsub.f32 1.5, %v5601_v57 }
 0x941   : > { %v8718_v27 = vpop.eup %8717  ;;  %v14757_v54 = vadd.f32 %v14532_v19, %v5679_v59 }
 0x942   : > { %v5603_v49 = vmul.f32 %v8716_v28, %v5602_v0  ;;  %v5609_v42 = vmul.f32 %v8718_v27, %v5297_v58  ;;  %vm5615_vm6 = vweird.f32 %v8718_v27 }
 0x943   : > { %v5905_v24 = vpop.f32.mrf.mxu0  ;;  %v5743_v23 = vmax.f32 %v14757_v54, 0.0  ;;  %vm5616_vm7 = vmor %vm5614_vm11, %vm5615_vm6 }
 0x944   : > { %v5607_v21 = vsel %vm5606_vm5, %v8716_v28, %v5603_v49  ;;  %v5610_v17 = vmul.f32 %v8718_v27, %v5609_v42 }
 0x945   : > { %v5648_v9 = vmul.f32 %v5607_v21, %v5264_v53 }
 0x946   : > { %8474 = vmatmul.msk.f32.gmra.mxu0 %vm2744_vm13, %v5743_v23  ;;  %v5611_v48 = vmul.f32 0.5, %v5610_v17 }
 0x947   : > { %v5680_v26 = vmul.f32 %v14526_v41, %v5648_v9  ;;  %v17258_v9 = vld [vmem:[#allocation27_spill] sm:$0xff] }
 0x948   : > { %v5612_v57 = vsub.f32 1.5, %v5611_v48 }
 0x949   : > { %v14767_v39 = vadd.f32 %v14532_v19, %v5680_v26  ;;  %v17259_v26 = vld [vmem:[#allocation87_spill] sm:$0xff] }
 0x94a   : > { %v5613_v59 = vmul.f32 %v8718_v27, %v5612_v57 }
 0x94b   : > { %v5908_v22 = vpop.f32.mrf.mxu0  ;;  %v5744_v28 = vmax.f32 %v14767_v39, 0.0 }
 0x94c   : > { %v5617_v0 = vsel %vm5616_vm7, %v8718_v27, %v5613_v59  ;;  %v17260_v59 = vld [vmem:[#allocation35_spill] sm:$0xff] }
 0x94d   : > { %v5649_v49 = vmul.f32 %v5617_v0, %v5265_v30  ;;  %v17262_v30 = vld [vmem:[#allocation91_spill] sm:$0xff]  ;;  %v17263_v0 = vld [vmem:[#allocation92_spill] sm:$0xff] }
 0x94e   : > { %8475 = vmatmul.msk.f32.gmra.mxu0 %vm2744_vm13, %v5744_v28 }
 0x94f   : > { %v5681_v42 = vmul.f32 %v14526_v41, %v5649_v49  ;;  %v17264_v49 = vld [vmem:[#allocation93_spill] sm:$0xff] }
 0x951   : > { %v14776_v53 = vadd.f32 %v14532_v19, %v5681_v42  ;;  %v17265_v42 = vld [vmem:[#allocation51_spill] sm:$0xff] }
 0x953   : > { %v5911_v21 = vpop.f32.mrf.mxu0  ;;  %v5745_v58 = vmax.f32 %v14776_v53, 0.0 }
 0x954   : > { %6075 = vmatpush.msra.mxu2 %v5911_v21  ;;  %v17266_v21 = vld [vmem:[#allocation94_spill] sm:$0xff] }
 0x956   : > { %8476 = vmatmul.msk.f32.gmra.mxu0 %vm2744_vm13, %v5745_v58  ;;  %6076 = vmatpush.msra.mxu2 %v5908_v22  ;;  %v17261_v22 = vld [vmem:[#allocation89_spill] sm:$0xff] }
 0x958   : > { %6077 = vmatpush.msra.mxu2 %v5905_v24  ;;  %v17257_v24 = vld [vmem:[#allocation85_spill] sm:$0xff] }
 0x95a   : > { %6078 = vmatpush.msra.mxu2 %v5902_v61 }
 0x95b   : > { %v5914_v11 = vpop.f32.mrf.mxu0 }
 0x95c   : > { %6079 = vmatpush.msra.mxu2 %v14735_v20  ;;  %v17253_v20 = vld [vmem:[#allocation79_spill] sm:$0xff] }
 0x95e   : > { %6080 = vmatpush.msra.mxu2 %v14717_v37 }
 0x960   : > { %6081 = vmatpush.msra.mxu2 %v14699_v7 }
 0x962   : > { %6082 = vmatpush.msra.mxu2 %v14681_v38 }
 0x963   : > { %v5917_v41 = vpop.f32.mrf.mxu0 }
 0x964   : > { %6083 = vmatpush.msra.mxu2 %v14663_v51  ;;  %v17250_v51 = vld [vmem:[#allocation24_spill] sm:$0xff] }
 0x966   : > { %6084 = vmatpush.msra.mxu2 %v14645_v16 }
 0x968   : > { %6085 = vmatpush.msra.mxu2 %v14627_v46 }
 0x96a   : > { %6086 = vmatpush.msra.mxu2 %v14609_v63  ;;  %v17251_v63 = vld [vmem:[#allocation77_spill] sm:$0xff] }
 0x96b   : > { %v5920_v19 = vpop.f32.mrf.mxu0 }
 0x96c   : > { %6087 = vmatpush.msra.mxu2 %v14591_v2  ;;  %v17252_v2 = vld [vmem:[#allocation31_spill] sm:$0xff] }
 0x96e   : > { %6088 = vmatpush.msra.mxu2 %v14573_v55 }
 0x970   : > { %6089 = vmatpush.msra.mxu2 %v14555_v14 }
 0x972   : > { %6090 = vmatpush.msra.mxu2 %v14537_v47  ;;  %v17254_v47 = vld [vmem:[#allocation38_spill] sm:$0xff] }
 0x973   : > { %v5923_v7 = vpop.f32.mrf.mxu0  ;;  %6091 = vmatmul.f32.vlgmr.msra.gmra.mxu2 %v17095_v29  ;;  %v17255_v29 = vld [vmem:[#allocation83_spill] sm:$0xff] }
 0x97b   : > { %v5926_v38 = vpop.f32.mrf.mxu0  ;;  %6094 = vmatmul.f32.gmra.mxu2 %v17096_v34  ;;  %v17256_v34 = vld [vmem:[#allocation19_spill] sm:$0xff] }
 0x983   : > { %v5929_v16 = vpop.f32.mrf.mxu0  ;;  %6097 = vmatmul.f32.gmra.mxu2 %v17250_v51  ;;  %v17267_v51 = vld [vmem:[#allocation17_spill] sm:$0xff] }
 0x98b   : > { %v5932_v46 = vpop.f32.mrf.mxu0  ;;  %6100 = vmatmul.f32.gmra.mxu2 %v17251_v63  ;;  %v17268_v63 = vld [vmem:[#allocation95_spill] sm:$0xff] }
 0x993   : > { %v5935_v37 = vpop.f32.mrf.mxu0  ;;  %6103 = vmatmul.f32.gmra.mxu2 %v17252_v2  ;;  %v17277_v2 = vld [vmem:[#allocation61_spill] sm:$0xff] }
 0x99b   : > { %v5938_v55 = vpop.f32.mrf.mxu0  ;;  %6106 = vmatmul.f32.gmra.mxu2 %v17253_v20  ;;  %v17278_v20 = vld [vmem:[#allocation42_spill] sm:$0xff] }
 0x9a3   : > { %v5941_v14 = vpop.f32.mrf.mxu0  ;;  %6109 = vmatmul.f32.gmra.mxu2 %v17254_v47 }
 0x9ab   : > { %v5944_v33 = vpop.f32.mrf.mxu0  ;;  %6112 = vmatmul.f32.gmra.mxu2 %v17255_v29  ;;  %v17281_v29 = vld [vmem:[#allocation46_spill] sm:$0xff] }
 0x9b3   : > { %v5947_v61 = vpop.f32.mrf.mxu0  ;;  %6115 = vmatmul.f32.gmra.mxu2 %v17256_v34  ;;  %v17282_v34 = vld [vmem:[#allocation60_spill] sm:$0xff] }
 0x9bb   : > { %v5950_v27 = vpop.f32.mrf.mxu0  ;;  %6118 = vmatmul.f32.gmra.mxu2 %v17257_v24 }
 0x9c3   : > { %v5953_v17 = vpop.f32.mrf.mxu0  ;;  %6121 = vmatmul.f32.gmra.mxu2 %v17258_v9  ;;  %v17285_v9 = vld [vmem:[#allocation48_spill] sm:$0xff] }
 0x9cb   : > { %v5956_v48 = vpop.f32.mrf.mxu0  ;;  %6124 = vmatmul.f32.gmra.mxu2 %v17259_v26  ;;  %v17287_v26 = vld [vmem:[#allocation69_spill] sm:$0xff] }
 0x9d3   : > { %v5959_v57 = vpop.f32.mrf.mxu0  ;;  %6127 = vmatmul.f32.gmra.mxu2 %v17260_v59  ;;  %v17288_v59 = vld [vmem:[#allocation7_spill] sm:$0xff] }
 0x9d4   : > { %6188 = vmatpush.msra.mxu3 %v5959_v57 }
 0x9d6   : > { %6189 = vmatpush.msra.mxu3 %v5956_v48  ;;  %v17286_v48 = vld [vmem:[#allocation20_spill] sm:$0xff] }
 0x9d8   : > { %6190 = vmatpush.msra.mxu3 %v5953_v17  ;;  %v17284_v17 = vld [vmem:[#allocation37_spill] sm:$0xff] }
 0x9da   : > { %6191 = vmatpush.msra.mxu3 %v5950_v27  ;;  %v17283_v27 = vld [vmem:[#allocation67_spill] sm:$0xff] }
 0x9db   : > { %6130 = vmatmul.f32.gmra.mxu2 %v17261_v22  ;;  %v17289_v22 = vld [vmem:[#allocation50_spill] sm:$0xff] }
 0x9dc   : > { %6192 = vmatpush.msra.mxu3 %v5947_v61 }
 0x9de   : > { %6193 = vmatpush.msra.mxu3 %v5944_v33  ;;  %v17280_v33 = vld [vmem:[#allocation43_spill] sm:$0xff] }
 0x9e0   : > { %6194 = vmatpush.msra.mxu3 %v5941_v14  ;;  %v17279_v14 = vld [vmem:[#allocation33_spill] sm:$0xff] }
 0x9e2   : > { %6195 = vmatpush.msra.mxu3 %v5938_v55 }
 0x9e3   : > { %6133 = vmatmul.f32.gmra.mxu2 %v17262_v30 }
 0x9e4   : > { %6196 = vmatpush.msra.mxu3 %v5935_v37  ;;  %v17269_v37 = vld [vmem:[#allocation54_spill] sm:$0xff] }
 0x9e6   : > { %6197 = vmatpush.msra.mxu3 %v5932_v46  ;;  %v17276_v46 = vld [vmem:[#allocation57_spill] sm:$0xff] }
 0x9e8   : > { %6198 = vmatpush.msra.mxu3 %v5929_v16  ;;  %v17270_v16 = vld [vmem:[#allocation96_spill] sm:$0xff] }
 0x9ea   : > { %6199 = vmatpush.msra.mxu3 %v5926_v38  ;;  %v17271_v38 = vld [vmem:[#allocation55_spill] sm:$0xff] }
 0x9eb   : > { %6136 = vmatmul.f32.gmra.mxu2 %v17263_v0  ;;  %v17290_v0 = vld [vmem:[#allocation9_spill] sm:$0xff] }
 0x9ec   : > { %6200 = vmatpush.msra.mxu3 %v5923_v7  ;;  %v17272_v7 = vld [vmem:[#allocation97_spill] sm:$0xff] }
 0x9ee   : > { %6201 = vmatpush.msra.mxu3 %v5920_v19  ;;  %v17275_v19 = vld [vmem:[#allocation23_spill] sm:$0xff] }
 0x9f0   : > { %6202 = vmatpush.msra.mxu3 %v5917_v41  ;;  %v17273_v41 = vld [vmem:[#allocation25_spill] sm:$0xff] }
 0x9f2   : > { %6203 = vmatpush.msra.mxu3 %v5914_v11  ;;  %v17274_v11 = vld [vmem:[#allocation98_spill] sm:$0xff] }
 0x9f3   : > { %6139 = vmatmul.f32.gmra.mxu2 %v17264_v49  ;;  %6204 = vmatmul.f32.vlgmr.msra.gmra.mxu3 %v17265_v42  ;;  %v17291_v49 = vld [vmem:[#allocation73_spill] sm:$0xff] }
 0x9f6   : > { %v6092_v55 = vpop.f32.mrf.mxu2 }
 0x9fb   : > { %6142 = vmatmul.f32.gmra.mxu2 %v17266_v21  ;;  %6207 = vmatmul.f32.gmra.mxu3 %v17267_v51  ;;  %v17292_v21 = vld [vmem:[#allocation47_spill] sm:$0xff] }
 0x9fc   : > { %v17293_v51 = vld [vmem:[#allocation75_spill] sm:$0xff] }
 0x9fe   : > { %v6095_v47 = vpop.f32.mrf.mxu2 }
 0xa03   : > { %6145 = vmatmul.f32.gmra.mxu2 %v17268_v63  ;;  %6210 = vmatmul.f32.gmra.mxu3 %v17269_v37  ;;  %v17294_v37 = vld [vmem:[#allocation29_spill] sm:$0xff] }
 0xa06   : > { %v6098_v61 = vpop.f32.mrf.mxu2 }
 0xa0b   : > { %6148 = vmatmul.f32.gmra.mxu2 %v17270_v16  ;;  %6213 = vmatmul.f32.gmra.mxu3 %v17271_v38  ;;  %v17295_v16 = vld [vmem:[#allocation58_spill] sm:$0xff]  ;;  %v17296_v38 = vld [vmem:[#allocation63_spill] sm:$0xff] }
 0xa0e   : > { %v6101_v24 = vpop.f32.mrf.mxu2 }
 0xa13   : > { %6151 = vmatmul.f32.gmra.mxu2 %v17272_v7  ;;  %6216 = vmatmul.f32.gmra.mxu3 %v17273_v41  ;;  %v17297_v7 = vld [vmem:[#allocation28_spill] sm:$0xff] }
 0xa14   : > { %v6093_v41 = vadd.f32 %v6092_v55, %v17297_v7 }
 0xa16   : > { %v6104_v57 = vpop.f32.mrf.mxu2 }
 0xa1b   : > { %6154 = vmatmul.f32.gmra.mxu2 %v17274_v11  ;;  %6219 = vmatmul.f32.gmra.mxu3 %v17275_v19 }
 0xa1e   : > { %v14836_v30 = vpop.f32.mrf.mxu2 }
 0xa23   : > { %6157 = vmatmul.f32.gmra.mxu2 %v17276_v46  ;;  %6222 = vmatmul.f32.gmra.mxu3 %v17277_v2  ;;  %v17298_v46 = vld [vmem:[#allocation45_spill] sm:$0xff] }
 0xa24   : > { %v17299_v2 = vmax.f32 %v17298_v46, 0.0 }
 0xa26   : > { %v14840_v42 = vpop.f32.mrf.mxu2 }
 0xa2b   : > { %6160 = vmatmul.f32.gmra.mxu2 %v17278_v20  ;;  %6225 = vmatmul.f32.gmra.mxu3 %v17279_v14  ;;  %v17300_v14 = vld [vmem:[#allocation13_spill] sm:$0xff] }
 0xa2e   : > { %v14844_v63 = vpop.f32.mrf.mxu2 }
 0xa33   : > { %6163 = vmatmul.f32.gmra.mxu2 %v17280_v33  ;;  %6228 = vmatmul.f32.gmra.mxu3 %v17281_v29 }
 0xa3b   : > { %6166 = vmatmul.f32.gmra.mxu2 %v17282_v34  ;;  %6231 = vmatmul.f32.gmra.mxu3 %v17283_v27  ;;  %v17301_v34 = vld [vmem:[#allocation49_spill] sm:$0xff] }
 0xa3c   : > { %v6096_v27 = vadd.f32 %v6095_v47, %v17301_v34  ;;  %v17305_v47 = vld [vmem:[#allocation15_spill] sm:$0xff] }
 0xa43   : > { %6169 = vmatmul.f32.gmra.mxu2 %v17284_v17  ;;  %6234 = vmatmul.f32.gmra.mxu3 %v17285_v9 }
 0xa4b   : > { %6172 = vmatmul.f32.gmra.mxu2 %v17286_v48  ;;  %6237 = vmatmul.f32.gmra.mxu3 %v17287_v26  ;;  %v17302_v48 = vld [vmem:[#allocation32_spill] sm:$0xff] }
 0xa4c   : > { %v17303_v26 = vmax.f32 %v17302_v48, 0.0 }
 0xa53   : > { %6175 = vmatmul.f32.gmra.mxu2 %v17288_v59  ;;  %6240 = vmatmul.f32.gmra.mxu3 %v17289_v22  ;;  %v17304_v22 = vld [vmem:[#allocation81_spill] sm:$0xff] }
 0xa5b   : > { %6178 = vmatmul.f32.gmra.mxu2 %v17290_v0  ;;  %6243 = vmatmul.f32.gmra.mxu3 %v17291_v49 }
 0xa63   : > { %6181 = vmatmul.f32.gmra.mxu2 %v17292_v21  ;;  %6246 = vmatmul.f32.gmra.mxu3 %v17293_v51  ;;  %v14870_v21 = vpop.f32.mrf.mxu2  ;;  %v6099_v51 = vadd.f32 %v6098_v61, %v17305_v47  ;;  %v17308_v61 = vld [vmem:[#allocation53_spill] sm:$0xff] }
 0xa6b   : > { %6184 = vmatmul.f32.gmra.mxu2 %v17294_v37  ;;  %6249 = vmatmul.f32.gmra.mxu3 %v17295_v16  ;;  %v14874_v16 = vpop.f32.mrf.mxu1 }
 0xa73   : > { %6252 = vmatmul.f32.gmra.mxu3 %v17296_v38 }
 0xa76   : > { %v6205_v11 = vpop.f32.mrf.mxu3 }
 0xa77   : > { %v6206_v19 = vadd.f32 %v6205_v11, %v6093_v41  ;;  %v17306_v41 = vmax.f32 %v14128_v5, 0.0 }
 0xa79   : > { %v14852_v20 = vadd.f32 %v6206_v19, %v17299_v2  ;;  %v17307_v19 = vld [vmem:[#allocation70_spill] sm:$0xff] }
 0xa7b   : > { %6255 = vmatmul.f32.gmra.mxu3 %v17300_v14  ;;  %v6333_v33 = vsel %vm2744_vm13, %v14852_v20, 0.0  ;;  %v6461_v29 = vmul.f32 %v14852_v20, %v14852_v20  ;;  %v6102_v14 = vadd.f32 %v6101_v24, %v17308_v61 }
 0xa7c   : > { %6334 = vadd.xlane.f32.xlu2 %v6333_v33 }
 0xa7d   : > { %v6493_v17 = vsel %vm2744_vm13, %v6461_v29, 0.0  ;;  %v14887_v29 = vpop.f32.mrf.mxu2 }
 0xa7e   : > { %v6208_v55 = vpop.f32.mrf.mxu3  ;;  %6494 = vadd.xlane.f32.xlu0 %v6493_v17  ;;  %v17309_v17 = vmax.f32 %v14162_v18, 0.0  ;;  %v17312_v18 = vmax.f32 %v14196_v31, 0.0 }
 0xa7f   : > { %v6209_v9 = vadd.f32 %v6208_v55, %v6096_v27  ;;  %v14889_v27 = vpop.f32.mrf.mxu1 }
 0xa81   : > { %v14863_v59 = vadd.f32 %v6209_v9, %v17303_v26  ;;  %v17310_v9 = vld [vmem:[#allocation74_spill] sm:$0xff]  ;;  %v17311_v26 = vld [vmem:[#allocation99_spill] sm:$0xff] }
 0xa83   : > { %6258 = vmatmul.f32.gmra.mxu3 %v17304_v22  ;;  %v6336_v0 = vsel %vm2744_vm13, %v14863_v59, 0.0  ;;  %v6462_v49 = vmul.f32 %v14863_v59, %v14863_v59  ;;  %v6105_v22 = vadd.f32 %v6104_v57, %v17311_v26 }
 0xa84   : > { %6337 = vadd.xlane.f32.xlu1 %v6336_v0 }
 0xa85   : > { %v6496_v37 = vsel %vm2744_vm13, %v6462_v49, 0.0 }
 0xa86   : > { %v6211_v38 = vpop.f32.mrf.mxu3  ;;  %6497 = vadd.xlane.f32.xlu2 %v6496_v37 }
 0xa87   : > { %v6212_v7 = vadd.f32 %v6211_v38, %v6099_v51  ;;  %v14902_v51 = vpop.f32.mrf.mxu2  ;;  %v14908_v38 = vpop.f32.mrf.mxu1 }
 0xa89   : > { %v14878_v11 = vadd.f32 %v6212_v7, %v17306_v41  ;;  %v17313_v7 = vld [vmem:[#allocation30_spill] sm:$0xff] }
 0xa8b   : > { %6261 = vmatmul.f32.gmra.mxu3 %v17307_v19  ;;  %v6339_v46 = vsel %vm2744_vm13, %v14878_v11, 0.0  ;;  %v6463_v2 = vmul.f32 %v14878_v11, %v14878_v11  ;;  %v17314_v19 = vld [vmem:[#allocation59_spill] sm:$0xff] }
 0xa8c   : > { %6340 = vadd.xlane.f32.xlu0 %v6339_v46  ;;  %v6108_v46 = vadd.f32 %v14836_v30, %v17314_v19 }
 0xa8d   : > { %v6499_v33 = vsel %vm2744_vm13, %v6463_v2, 0.0 }
 0xa8e   : > { %v6214_v34 = vpop.f32.mrf.mxu3  ;;  %6500 = vadd.xlane.f32.xlu1 %v6499_v33 }
 0xa8f   : > { %v6215_v5 = vadd.f32 %v6214_v34, %v6102_v14  ;;  %v17315_v14 = vmax.f32 %v14228_v45, 0.0  ;;  %v14922_v34 = vpop.f32.mrf.mxu2  ;;  %v6012_v30 = vpop.f32.mrf.mxu1 }
 0xa91   : > { %v14893_v55 = vadd.f32 %v6215_v5, %v17309_v17  ;;  %v17316_v5 = vld [vmem:[#allocation80_spill] sm:$0xff] }
 0xa93   : > { %6264 = vmatmul.f32.gmra.mxu3 %v17310_v9  ;;  %v6342_v48 = vsel %vm2744_vm13, %v14893_v55, 0.0  ;;  %v6464_v24 = vmul.f32 %v14893_v55, %v14893_v55 }
 0xa94   : > { %6343 = vadd.xlane.f32.xlu2 %v6342_v48  ;;  %v17317_v48 = vld [vmem:[#allocation16_spill] sm:$0xff] }
 0xa95   : > { %v6502_v0 = vsel %vm2744_vm13, %v6464_v24, 0.0  ;;  %v6111_v24 = vadd.f32 %v14840_v42, %v17317_v48  ;;  %v17320_v42 = vld [vmem:[#allocation71_spill] sm:$0xff] }
 0xa96   : > { %v6217_v49 = vpop.f32.mrf.mxu3  ;;  %6503 = vadd.xlane.f32.xlu0 %v6502_v0  ;;  %v17318_v0 = vmax.f32 %v14260_v13, 0.0 }
 0xa97   : > { %v6218_v47 = vadd.f32 %v6217_v49, %v6105_v22 }
 0xa99   : > { %v14906_v37 = vadd.f32 %v6218_v47, %v17312_v18  ;;  %v17319_v47 = vld [vmem:[#allocation39_spill] sm:$0xff] }
 0xa9b   : > { %6267 = vmatmul.f32.gmra.mxu3 %v17313_v7  ;;  %v6345_v41 = vsel %vm2744_vm13, %v14906_v37, 0.0  ;;  %v6465_v57 = vmul.f32 %v14906_v37, %v14906_v37 }
 0xa9c   : > { %6346 = vadd.xlane.f32.xlu1 %v6345_v41  ;;  %v6128_v41 = vpop.f32.mrf.mxu2 }
 0xa9d   : > { %v6505_v2 = vsel %vm2744_vm13, %v6465_v57, 0.0  ;;  %v6114_v57 = vadd.f32 %v14844_v63, %v17320_v42  ;;  %v6117_v63 = vadd.f32 %v14870_v21, %v14874_v16  ;;  %v6120_v21 = vadd.f32 %v14887_v29, %v14889_v27 }
 0xa9e   : > { %v6220_v61 = vpop.f32.mrf.mxu3  ;;  %6506 = vadd.xlane.f32.xlu2 %v6505_v2  ;;  %v6123_v29 = vadd.f32 %v14902_v51, %v14908_v38  ;;  %v6126_v51 = vadd.f32 %v14922_v34, %v6012_v30 }
 0xa9f   : > { %v6221_v31 = vadd.f32 %v6220_v61, %v6108_v46  ;;  %v6015_v46 = vpop.f32.mrf.mxu1  ;;  %v17321_v61 = vmax.f32 %v14291_v10, 0.0 }
 0xaa0   : > { %v6129_v34 = vadd.f32 %v6128_v41, %v6015_v46 }
 0xaa1   : > { %v14920_v33 = vadd.f32 %v6221_v31, %v17315_v14  ;;  %v17322_v14 = vld [vmem:[#allocation82_spill] sm:$0xff] }
 0xaa3   : > { %6270 = vmatmul.f32.gmra.mxu3 %v17316_v5  ;;  %v6348_v17 = vsel %vm2744_vm13, %v14920_v33, 0.0  ;;  %v6466_v9 = vmul.f32 %v14920_v33, %v14920_v33 }
 0xaa4   : > { %6349 = vadd.xlane.f32.xlu0 %v6348_v17  ;;  %v6131_v48 = vpop.f32.mrf.mxu2 }
 0xaa5   : > { %v6508_v26 = vsel %vm2744_vm13, %v6466_v9, 0.0 }
 0xaa6   : > { %v6223_v45 = vpop.f32.mrf.mxu3  ;;  %6509 = vadd.xlane.f32.xlu1 %v6508_v26 }
 0xaa7   : > { %v6224_v22 = vadd.f32 %v6223_v45, %v6111_v24  ;;  %v6018_v26 = vpop.f32.mrf.mxu1  ;;  %v17323_v45 = vmax.f32 %v14322_v62, 0.0 }
 0xaa8   : > { %v6132_v41 = vadd.f32 %v6131_v48, %v6018_v26 }
 0xaa9   : > { %v14934_v49 = vadd.f32 %v6224_v22, %v17318_v0  ;;  %v17324_v0 = vld [vmem:[#allocation3_spill] sm:$0xff] }
 0xaab   : > { %6273 = vmatmul.f32.gmra.mxu3 %v17319_v47  ;;  %v6351_v18 = vsel %vm2744_vm13, %v14934_v49, 0.0  ;;  %v6467_v7 = vmul.f32 %v14934_v49, %v14934_v49 }
 0xaac   : > { %6352 = vadd.xlane.f32.xlu2 %v6351_v18  ;;  %v6134_v62 = vpop.f32.mrf.mxu2 }
 0xaad   : > { %v6511_v19 = vsel %vm2744_vm13, %v6467_v7, 0.0 }
 0xaae   : > { %v6226_v2 = vpop.f32.mrf.mxu3  ;;  %6512 = vadd.xlane.f32.xlu0 %v6511_v19 }
 0xaaf   : > { %v6227_v13 = vadd.f32 %v6226_v2, %v6114_v57  ;;  %v17325_v57 = vmax.f32 %v14353_v52, 0.0  ;;  %v6021_v2 = vpop.f32.mrf.mxu1 }
 0xab0   : > { %v6135_v26 = vadd.f32 %v6134_v62, %v6021_v2  ;;  %v7200_v2 = vld [vmem:[%s15819_s4 + $0xc0] sm:$0xff] }
 0xab1   : > { %v14946_v31 = vadd.f32 %v6227_v13, %v17321_v61  ;;  %v17326_v13 = vld [vmem:[#allocation18_spill] sm:$0xff]  ;;  %7311 = vmatpush.msra.mxu0 %v7200_v2 }
 0xab3   : > { %6276 = vmatmul.f32.gmra.mxu3 %v17322_v14  ;;  %v6354_v5 = vsel %vm2744_vm13, %v14946_v31, 0.0  ;;  %v6468_v17 = vmul.f32 %v14946_v31, %v14946_v31 }
 0xab4   : > { %6355 = vadd.xlane.f32.xlu1 %v6354_v5 }
 0xab5   : > { %v6514_v9 = vsel %vm2744_vm13, %v6468_v17, 0.0  ;;  %v17327_v17 = vmax.f32 %v14384_v3, 0.0 }
 0xab6   : > { %v6229_v24 = vpop.f32.mrf.mxu3  ;;  %6515 = vadd.xlane.f32.xlu2 %v6514_v9  ;;  %v6137_v9 = vpop.f32.mrf.mxu2 }
 0xab7   : > { %v6230_v10 = vadd.f32 %v6229_v24, %v6117_v63  ;;  %v17328_v24 = vld [vmem:[#allocation40_spill] sm:$0xff] }
 0xab9   : > { %v14958_v22 = vadd.f32 %v6230_v10, %v17323_v45 }
 0xabb   : > { %6279 = vmatmul.f32.gmra.mxu3 %v17324_v0  ;;  %v6357_v47 = vsel %vm2744_vm13, %v14958_v22, 0.0  ;;  %v6469_v18 = vmul.f32 %v14958_v22, %v14958_v22  ;;  %v6024_v0 = vpop.f32.mrf.mxu1 }
 0xabc   : > { %6358 = vadd.xlane.f32.xlu0 %v6357_v47 }
 0xabd   : > { %v6517_v16 = vsel %vm2744_vm13, %v6469_v18, 0.0  ;;  %v17329_v18 = vmax.f32 %v14415_v56, 0.0  ;;  %v17331_v56 = vmax.f32 %v14446_v1, 0.0 }
 0xabe   : > { %v6232_v7 = vpop.f32.mrf.mxu3  ;;  %6518 = vadd.xlane.f32.xlu1 %v6517_v16  ;;  %v17330_v16 = vld [vmem:[#allocation5_spill] sm:$0xff] }
 0xabf   : > { %v6233_v42 = vadd.f32 %v6232_v7, %v6120_v21 }
 0xac1   : > { %v14970_v19 = vadd.f32 %v6233_v42, %v17325_v57  ;;  %v6140_v57 = vpop.f32.mrf.mxu2 }
 0xac3   : > { %6282 = vmatmul.f32.gmra.mxu3 %v17326_v13  ;;  %v6360_v61 = vsel %vm2744_vm13, %v14970_v19, 0.0  ;;  %v6470_v14 = vmul.f32 %v14970_v19, %v14970_v19  ;;  %v6027_v13 = vpop.f32.mrf.mxu1 }
 0xac4   : > { %6361 = vadd.xlane.f32.xlu2 %v6360_v61 }
 0xac5   : > { %v6520_v27 = vsel %vm2744_vm13, %v6470_v14, 0.0 }
 0xac6   : > { %v6235_v5 = vpop.f32.mrf.mxu3  ;;  %6521 = vadd.xlane.f32.xlu0 %v6520_v27  ;;  %v17332_v27 = vld [vmem:[#allocation84_spill] sm:$0xff] }
 0xac7   : > { %v6236_v52 = vadd.f32 %v6235_v5, %v6123_v29 }
 0xac9   : > { %v14982_v63 = vadd.f32 %v6236_v52, %v17327_v17  ;;  %v15011_v17 = vpop.f32.mrf.mxu2 }
 0xacb   : > { %6285 = vmatmul.f32.gmra.mxu3 %v17328_v24  ;;  %v6363_v10 = vsel %vm2744_vm13, %v14982_v63, 0.0  ;;  %v6471_v45 = vmul.f32 %v14982_v63, %v14982_v63  ;;  %v6030_v1 = vpop.f32.mrf.mxu1 }
 0xacc   : > { %6364 = vadd.xlane.f32.xlu1 %v6363_v10 }
 0xacd   : > { %v6523_v38 = vsel %vm2744_vm13, %v6471_v45, 0.0  ;;  %v17333_v45 = vmax.f32 %v14474_v25, 0.0  ;;  %v17335_v25 = vmax.f32 %v14492_v40, 0.0 }
 0xace   : > { %v6238_v47 = vpop.f32.mrf.mxu3  ;;  %6524 = vadd.xlane.f32.xlu2 %v6523_v38  ;;  %v17334_v38 = vld [vmem:[#allocation6_spill] sm:$0xff] }
 0xacf   : > { %v6239_v3 = vadd.f32 %v6238_v47, %v6126_v51 }
 0xad1   : > { %v14993_v21 = vadd.f32 %v6239_v3, %v17329_v18 }
 0xad3   : > { %6288 = vmatmul.f32.gmra.mxu3 %v17330_v16  ;;  %v6366_v7 = vsel %vm2744_vm13, %v14993_v21, 0.0  ;;  %v6472_v42 = vmul.f32 %v14993_v21, %v14993_v21 }
 0xad4   : > { %6367 = vadd.xlane.f32.xlu0 %v6366_v7  ;;  %v15023_v7 = vpop.f32.mrf.mxu2 }
 0xad5   : > { %v6526_v30 = vsel %vm2744_vm13, %v6472_v42, 0.0 }
 0xad6   : > { %v6241_v61 = vpop.f32.mrf.mxu3  ;;  %6527 = vadd.xlane.f32.xlu1 %v6526_v30  ;;  %v17336_v30 = vld [vmem:[#allocation26_spill] sm:$0xff] }
 0xad7   : > { %v6242_v14 = vadd.f32 %v6241_v61, %v6129_v34  ;;  %v15029_v34 = vpop.f32.mrf.mxu1 }
 0xad9   : > { %v15003_v29 = vadd.f32 %v6242_v14, %v17331_v56  ;;  %v6138_v14 = vadd.f32 %v6137_v9, %v6024_v0  ;;  %v7199_v56 = vld [vmem:[%s15819_s4 + $0xb8] sm:$0xff]  ;;  %v17337_v9 = vmax.f32 %v14509_v44, 0.0 }
 0xada   : > { %7312 = vmatpush.msra.mxu0 %v7199_v56 }
 0xadb   : > { %6291 = vmatmul.f32.gmra.mxu3 %v17332_v27  ;;  %v6369_v5 = vsel %vm2744_vm13, %v15003_v29, 0.0  ;;  %v6473_v52 = vmul.f32 %v15003_v29, %v15003_v29 }
 0xadc   : > { %6370 = vadd.xlane.f32.xlu2 %v6369_v5 }
 0xadd   : > { %v6529_v46 = vsel %vm2744_vm13, %v6473_v52, 0.0 }
 0xade   : > { %v6244_v24 = vpop.f32.mrf.mxu3  ;;  %6530 = vadd.xlane.f32.xlu0 %v6529_v46 }
 0xadf   : > { %v6245_v10 = vadd.f32 %v6244_v24, %v6132_v41  ;;  %v7198_v41 = vld [vmem:[%s15819_s4 + $0xb0] sm:$0xff] }
 0xae0   : > { %7313 = vmatpush.msra.mxu0 %v7198_v41 }
 0xae1   : > { %v15015_v51 = vadd.f32 %v6245_v10, %v17333_v45  ;;  %v7197_v10 = vld [vmem:[%s15819_s4 + $0xa8] sm:$0xff]  ;;  %v15056_v45 = vpop.f32.mrf.mxu2 }
 0xae2   : > { %7314 = vmatpush.msra.mxu0 %v7197_v10 }
 0xae3   : > { %6294 = vmatmul.f32.gmra.mxu3 %v17334_v38  ;;  %v6372_v47 = vsel %vm2744_vm13, %v15015_v51, 0.0  ;;  %v6474_v48 = vmul.f32 %v15015_v51, %v15015_v51 }
 0xae4   : > { %6373 = vadd.xlane.f32.xlu1 %v6372_v47 }
 0xae5   : > { %v6532_v3 = vsel %vm2744_vm13, %v6474_v48, 0.0 }
 0xae6   : > { %v6247_v18 = vpop.f32.mrf.mxu3  ;;  %6533 = vadd.xlane.f32.xlu2 %v6532_v3 }
 0xae7   : > { %v6248_v16 = vadd.f32 %v6247_v18, %v6135_v26  ;;  %v15065_v26 = vpop.f32.mrf.mxu1  ;;  %v6141_v18 = vadd.f32 %v6140_v57, %v6027_v13 }
 0xae9   : > { %v15027_v42 = vadd.f32 %v6248_v16, %v17335_v25 }
 0xaeb   : > { %6297 = vmatmul.f32.gmra.mxu3 %v17336_v30  ;;  %v6375_v61 = vsel %vm2744_vm13, %v15027_v42, 0.0  ;;  %v6475_v62 = vmul.f32 %v15027_v42, %v15027_v42 }
 0xaec   : > { %6376 = vadd.xlane.f32.xlu0 %v6375_v61 }
 0xaed   : > { %v6535_v40 = vsel %vm2744_vm13, %v6475_v62, 0.0 }
 0xaee   : > { %v6250_v27 = vpop.f32.mrf.mxu3  ;;  %6536 = vadd.xlane.f32.xlu1 %v6535_v40 }
 0xaef   : > { %v6251_v5 = vadd.f32 %v6250_v27, %v6138_v14  ;;  %v6335_v52 = vpop.xlane.xlu2 %6334  ;;  %v17338_v14 = vmax.f32 %v14535_v60, 0.0  ;;  %v6144_v60 = vadd.f32 %v15011_v17, %v6030_v1  ;;  %v15086_v10 = vpop.f32.mrf.mxu1  ;;  %v17339_v17 = vmax.f32 %v14553_v8, 0.0 }
 0xaf0   : > { %v15047_v46 = vmul.f32 %v6335_v52, %v12653_v35  ;;  %v15082_v52 = vpop.f32.mrf.mxu2  ;;  %v6147_v8 = vadd.f32 %v15023_v7, %v15029_v34 }
 0xaf1   : > { %v15051_v0 = vadd.f32 %v6251_v5, %v17337_v9  ;;  %v6495_v24 = vpop.xlane.xlu0 %6494 }
 0xaf2   : > { %v6621_v38 = vmul.f32 %v15047_v46, %v15047_v46  ;;  %v6589_v47 = vmul.f32 %v6495_v24, %v12653_v35  ;;  %v6685_v7 = vsub.f32 %v14852_v20, %v15047_v46 }
 0xaf3   : > { %v6378_v48 = vsel %vm2744_vm13, %v15051_v0, 0.0  ;;  %v6476_v44 = vmul.f32 %v15051_v0, %v15051_v0 }
 0xaf4   : > { %v6653_v3 = vsub.f32 %v6589_v47, %v6621_v38  ;;  %6379 = vadd.xlane.f32.xlu2 %v6378_v48 }
 0xaf5   : > { %v6538_v16 = vsel %vm2744_vm13, %v6476_v44, 0.0 }
 0xaf6   : > { %v6717_v25 = vadd.f32 1e-05, %v6653_v3  ;;  %v6253_v30 = vpop.f32.mrf.mxu3  ;;  %6539 = vadd.xlane.f32.xlu0 %v6538_v16 }
 0xaf7   : > { %v6254_v61 = vadd.f32 %v6253_v30, %v6141_v18  ;;  %v6338_v62 = vpop.xlane.xlu1 %6337 }
 0xaf8   : > { %8719 = vrsqrt.f32 %v6717_v25  ;;  %v15069_v2 = vmul.f32 %v6338_v62, %v12653_v35  ;;  %vm6755_vm2 = vweird.f32 %v6717_v25 }
 0xaf9   : > { %v15073_v40 = vadd.f32 %v6254_v61, %v17338_v14  ;;  %v6498_v56 = vpop.xlane.xlu2 %6497 }
 0xafa   : > { %v6622_v27 = vmul.f32 %v15069_v2, %v15069_v2  ;;  %v6590_v57 = vmul.f32 %v6498_v56, %v12653_v35 }
 0xafb   : > { %v6381_v13 = vsel %vm2744_vm13, %v15073_v40, 0.0  ;;  %v6477_v5 = vmul.f32 %v15073_v40, %v15073_v40 }
 0xafc   : > { %v6654_v41 = vsub.f32 %v6590_v57, %v6622_v27  ;;  %6382 = vadd.xlane.f32.xlu1 %v6381_v13 }
 0xafd   : > { %v6541_v9 = vsel %vm2744_vm13, %v6477_v5, 0.0 }
 0xafe   : > { %v8720_v24 = vpop.eup %8719  ;;  %v15088_v38 = vadd.f32 1e-05, %v6654_v41  ;;  %v6256_v47 = vpop.f32.mrf.mxu3  ;;  %6542 = vadd.xlane.f32.xlu2 %v6541_v9 }
 0xaff   : > { %v6750_v48 = vmul.f32 %v8720_v24, %v6717_v25  ;;  %v6257_v44 = vadd.f32 %v6256_v47, %v6144_v60  ;;  %v6341_v3 = vpop.xlane.xlu0 %6340  ;;  %vm6756_vm15 = vweird.f32 %v8720_v24  ;;  %v15108_v60 = vpop.f32.mrf.mxu2 }
 0xb00   : > { %8721 = vrsqrt.f32 %v15088_v38  ;;  %v15092_v18 = vmul.f32 %v6341_v3, %v12653_v35  ;;  %vm6757_vm8 = vmor %vm6755_vm2, %vm6756_vm15  ;;  %vm6765_vm3 = vweird.f32 %v15088_v38 }
 0xb01   : > { %v6751_v16 = vmul.f32 %v8720_v24, %v6750_v48  ;;  %v15096_v1 = vadd.f32 %v6257_v44, %v17339_v17  ;;  %v6501_v30 = vpop.xlane.xlu1 %6500  ;;  %v15113_v17 = vpop.f32.mrf.mxu1 }
 0xb02   : > { %v6623_v61 = vmul.f32 %v15092_v18, %v15092_v18  ;;  %v6591_v62 = vmul.f32 %v6501_v30, %v12653_v35 }
 0xb03   : > { %v6752_v14 = vmul.f32 0.5, %v6751_v16  ;;  %v6384_v56 = vsel %vm2744_vm13, %v15096_v1, 0.0  ;;  %v6478_v27 = vmul.f32 %v15096_v1, %v15096_v1 }
 0xb04   : > { %v6655_v57 = vsub.f32 %v6591_v62, %v6623_v61  ;;  %6385 = vadd.xlane.f32.xlu0 %v6384_v56  ;;  %v17340_v62 = vmax.f32 %v14571_v4, 0.0  ;;  %v15135_v4 = vld [vmem:[%s15819_s4 + $0xc8] ss:$0 sm:$0xff] }
 0xb05   : > { %v6753_v13 = vsub.f32 1.5, %v6752_v14  ;;  %v6544_v5 = vsel %vm2744_vm13, %v6478_v27, 0.0 }
 0xb06   : > { %v8722_v41 = vpop.eup %8721  ;;  %v15110_v9 = vadd.f32 1e-05, %v6655_v57  ;;  %v6259_v47 = vpop.f32.mrf.mxu3  ;;  %6545 = vadd.xlane.f32.xlu1 %v6544_v5  ;;  %v6150_v5 = vadd.f32 %v15056_v45, %v15065_v26 }
 0xb07   : > { %v6754_v48 = vmul.f32 %v8720_v24, %v6753_v13  ;;  %v6760_v44 = vmul.f32 %v8722_v41, %v15088_v38  ;;  %v6260_v3 = vadd.f32 %v6259_v47, %v6147_v8  ;;  %v6344_v16 = vpop.xlane.xlu2 %6343  ;;  %vm6766_vm10 = vweird.f32 %v8722_v41 }
 0xb08   : > { %8723 = vrsqrt.f32 %v15110_v9  ;;  %v15119_v34 = vmul.f32 %v6344_v16, %v12653_v35  ;;  %vm6767_vm12 = vmor %vm6765_vm3, %vm6766_vm10  ;;  %v17341_v38 = vmax.f32 %v14589_v43, 0.0  ;;  %vm6775_vm9 = vweird.f32 %v15110_v9 }
 0xb09   : > { %v6758_v30 = vsel %vm6757_vm8, %v8720_v24, %v6754_v48  ;;  %v6761_v61 = vmul.f32 %v8722_v41, %v6760_v44  ;;  %v15123_v25 = vadd.f32 %v6260_v3, %v17340_v62  ;;  %v6504_v14 = vpop.xlane.xlu0 %6503  ;;  %v15144_v3 = vld [vmem:[%s15819_s4 + $0xd0] ss:$0 sm:$0xff] }
 0xb0a   : > { %v7069_v56 = vmul.f32 %v6758_v30, %v6685_v7  ;;  %v6624_v27 = vmul.f32 %v15119_v34, %v15119_v34  ;;  %v6592_v57 = vmul.f32 %v6504_v14, %v12653_v35  ;;  %v15151_v14 = vpop.f32.mrf.mxu2 }
 0xb0b   : > { %v6762_v20 = vmul.f32 0.5, %v6761_v61  ;;  %v6387_v46 = vsel %vm2744_vm13, %v15123_v25, 0.0  ;;  %v6479_v8 = vmul.f32 %v15123_v25, %v15123_v25 }
 0xb0c   : > { %v7101_v24 = vmul.f32 %v15135_v4, %v7069_v56  ;;  %v6656_v13 = vsub.f32 %v6592_v57, %v6624_v27  ;;  %6388 = vadd.xlane.f32.xlu2 %v6387_v46  ;;  %v6686_v27 = vsub.f32 %v14863_v59, %v15069_v2 }
 0xb0d   : > { %v6763_v47 = vsub.f32 1.5, %v6762_v20  ;;  %v6547_v48 = vsel %vm2744_vm13, %v6479_v8, 0.0 }
 0xb0e   : > { %v8724_v44 = vpop.eup %8723  ;;  %v7133_v16 = vadd.f32 %v15144_v3, %v7101_v24  ;;  %v15147_v7 = vadd.f32 1e-05, %v6656_v13  ;;  %v6262_v30 = vpop.f32.mrf.mxu3  ;;  %6548 = vadd.xlane.f32.xlu0 %v6547_v48 }
 0xb0f   : > { %v6764_v61 = vmul.f32 %v8722_v41, %v6763_v47  ;;  %v6770_v45 = vmul.f32 %v8724_v44, %v15110_v9  ;;  %v6263_v26 = vadd.f32 %v6262_v30, %v6150_v5  ;;  %v6347_v62 = vpop.xlane.xlu1 %6346  ;;  %v15164_v13 = vpop.f32.mrf.mxu1  ;;  %v6153_v30 = vadd.f32 %v15082_v52, %v15086_v10 }
 0xb10   : > { %v7165_v56 = vmax.f32 %v7133_v16, 0.0  ;;  %8725 = vrsqrt.f32 %v15147_v7  ;;  %v15158_v57 = vmul.f32 %v6347_v62, %v12653_v35  ;;  %vm6776_vm4 = vweird.f32 %v8724_v44 }
 0xb11   : > { %v6768_v20 = vsel %vm6767_vm12, %v8722_v41, %v6764_v61  ;;  %v6771_v46 = vmul.f32 %v8724_v44, %v6770_v45  ;;  %v15162_v8 = vadd.f32 %v6263_v26, %v17341_v38  ;;  %v6507_v24 = vpop.xlane.xlu2 %6506  ;;  %v6687_v52 = vsub.f32 %v14878_v11, %v15092_v18  ;;  %vm6777_vm1 = vmor %vm6775_vm9, %vm6776_vm4 }
 0xb12   : > { %v7070_v5 = vmul.f32 %v6768_v20, %v6686_v27  ;;  %v6625_v59 = vmul.f32 %v15158_v57, %v15158_v57  ;;  %v6593_v2 = vmul.f32 %v6507_v24, %v12653_v35  ;;  %8509 = vmatmul.msk.f32.vlgmr.msra.gmra.mxu0 %vm2744_vm13, %v7165_v56  ;;  %vm6785_vm14 = vweird.f32 %v15147_v7 }
 0xb13   : > { %v6772_v47 = vmul.f32 0.5, %v6771_v46  ;;  %v6390_v41 = vsel %vm2744_vm13, %v15162_v8, 0.0  ;;  %v6480_v43 = vmul.f32 %v15162_v8, %v15162_v8 }
 0xb14   : > { %v6657_v48 = vsub.f32 %v6593_v2, %v6625_v59  ;;  %6391 = vadd.xlane.f32.xlu1 %v6390_v41  ;;  %v7102_v16 = vmul.f32 %v15135_v4, %v7070_v5 }
 0xb15   : > { %v6773_v61 = vsub.f32 1.5, %v6772_v47  ;;  %v6550_v45 = vsel %vm2744_vm13, %v6480_v43, 0.0  ;;  %v17342_v47 = vmax.f32 %v14607_v50, 0.0  ;;  %v15193_v43 = vpop.f32.mrf.mxu2 }
 0xb16   : > { %v8726_v26 = vpop.eup %8725  ;;  %v15178_v62 = vadd.f32 1e-05, %v6657_v48  ;;  %v6265_v56 = vpop.f32.mrf.mxu3  ;;  %6551 = vadd.xlane.f32.xlu2 %v6550_v45  ;;  %v7134_v27 = vadd.f32 %v15144_v3, %v7102_v16 }
 0xb17   : > { %v6774_v20 = vmul.f32 %v8724_v44, %v6773_v61  ;;  %v6780_v46 = vmul.f32 %v8726_v26, %v15147_v7  ;;  %v6266_v38 = vadd.f32 %v6265_v56, %v6153_v30  ;;  %v6350_v24 = vpop.xlane.xlu0 %6349  ;;  %v15203_v30 = vpop.f32.mrf.mxu1  ;;  %v6156_v56 = vadd.f32 %v15108_v60, %v15113_v17 }
 0xb18   : > { %8727 = vrsqrt.f32 %v15178_v62  ;;  %v15187_v10 = vmul.f32 %v6350_v24, %v12653_v35  ;;  %v7166_v5 = vmax.f32 %v7134_v27, 0.0  ;;  %vm6786_vm0 = vweird.f32 %v8726_v26 }
 0xb19   : > { %v6778_v59 = vsel %vm6777_vm1, %v8724_v44, %v6774_v20  ;;  %v6781_v2 = vmul.f32 %v8726_v26, %v6780_v46  ;;  %v15191_v41 = vadd.f32 %v6266_v38, %v17342_v47  ;;  %v6510_v9 = vpop.xlane.xlu1 %6509  ;;  %v6688_v60 = vsub.f32 %v14893_v55, %v15119_v34  ;;  %vm6787_vm5 = vmor %vm6785_vm14, %vm6786_vm0 }
 0xb1a   : > { %v7071_v48 = vmul.f32 %v6778_v59, %v6687_v52  ;;  %v6626_v11 = vmul.f32 %v15187_v10, %v15187_v10  ;;  %v6594_v18 = vmul.f32 %v6510_v9, %v12653_v35  ;;  %8510 = vmatmul.msk.f32.gmra.mxu0 %vm2744_vm13, %v7166_v5  ;;  %vm6795_vm11 = vweird.f32 %v15178_v62 }
 0xb1b   : > { %v6782_v16 = vmul.f32 0.5, %v6781_v2  ;;  %v6393_v44 = vsel %vm2744_vm13, %v15191_v41, 0.0  ;;  %v6481_v50 = vmul.f32 %v15191_v41, %v15191_v41 }
 0xb1c   : > { %v6658_v61 = vsub.f32 %v6594_v18, %v6626_v11  ;;  %6394 = vadd.xlane.f32.xlu0 %v6393_v44  ;;  %v7103_v45 = vmul.f32 %v15135_v4, %v7071_v48  ;;  %v17343_v18 = vmax.f32 %v14625_v36, 0.0 }
 0xb1d   : > { %v6783_v27 = vsub.f32 1.5, %v6782_v16  ;;  %v6553_v20 = vsel %vm2744_vm13, %v6481_v50, 0.0 }
 0xb1e   : > { %v8728_v46 = vpop.eup %8727  ;;  %v15209_v38 = vadd.f32 1e-05, %v6658_v61  ;;  %v6268_v24 = vpop.f32.mrf.mxu3  ;;  %6554 = vadd.xlane.f32.xlu1 %v6553_v20  ;;  %v7135_v52 = vadd.f32 %v15144_v3, %v7103_v45 }
 0xb1f   : > { %v6784_v5 = vmul.f32 %v8726_v26, %v6783_v27  ;;  %v6790_v59 = vmul.f32 %v8728_v46, %v15178_v62  ;;  %v6269_v2 = vadd.f32 %v6268_v24, %v6156_v56  ;;  %v6353_v47 = vpop.xlane.xlu2 %6352  ;;  %v15232_v45 = vpop.f32.mrf.mxu2  ;;  %v6159_v27 = vadd.f32 %v15151_v14, %v15164_v13 }
 0xb20   : > { %8729 = vrsqrt.f32 %v15209_v38  ;;  %v15218_v17 = vmul.f32 %v6353_v47, %v12653_v35  ;;  %v7167_v9 = vmax.f32 %v7135_v52, 0.0  ;;  %vm6796_vm6 = vweird.f32 %v8728_v46 }
 0xb21   : > { %v6788_v48 = vsel %vm6787_vm5, %v8726_v26, %v6784_v5  ;;  %v6791_v11 = vmul.f32 %v8728_v46, %v6790_v59  ;;  %v15222_v16 = vadd.f32 %v6269_v2, %v17343_v18  ;;  %v6513_v7 = vpop.xlane.xlu0 %6512  ;;  %v15238_v5 = vpop.f32.mrf.mxu1  ;;  %v6689_v13 = vsub.f32 %v14906_v37, %v15158_v57  ;;  %vm6797_vm7 = vmor %vm6795_vm11, %vm6796_vm6 }
 0xb22   : > { %v7072_v44 = vmul.f32 %v6788_v48, %v6688_v60  ;;  %v6627_v50 = vmul.f32 %v15218_v17, %v15218_v17  ;;  %v6595_v55 = vmul.f32 %v6513_v7, %v12653_v35  ;;  %8511 = vmatmul.msk.f32.gmra.mxu0 %vm2744_vm13, %v7167_v9  ;;  %vm6805_vm2 = vweird.f32 %v15209_v38 }
 0xb23   : > { %v6792_v34 = vmul.f32 0.5, %v6791_v11  ;;  %v6396_v61 = vsel %vm2744_vm13, %v15222_v16, 0.0  ;;  %v6482_v26 = vmul.f32 %v15222_v16, %v15222_v16 }
 0xb24   : > { %v6659_v36 = vsub.f32 %v6595_v55, %v6627_v50  ;;  %6397 = vadd.xlane.f32.xlu2 %v6396_v61  ;;  %v7104_v56 = vmul.f32 %v15135_v4, %v7072_v44  ;;  %v17344_v50 = vld [vmem:[#allocation12_spill] sm:$0xff] }
 0xb25   : > { %v6793_v20 = vsub.f32 1.5, %v6792_v34  ;;  %v6556_v24 = vsel %vm2744_vm13, %v6482_v26, 0.0  ;;  %v17345_v55 = vmax.f32 %v17344_v50, 0.0 }
 0xb26   : > { %v8730_v52 = vpop.eup %8729  ;;  %v15240_v59 = vadd.f32 1e-05, %v6659_v36  ;;  %v6271_v2 = vpop.f32.mrf.mxu3  ;;  %6557 = vadd.xlane.f32.xlu0 %v6556_v24  ;;  %v7136_v47 = vadd.f32 %v15144_v3, %v7104_v56 }
 0xb27   : > { %v6794_v60 = vmul.f32 %v8728_v46, %v6793_v20  ;;  %v6800_v9 = vmul.f32 %v8730_v52, %v15209_v38  ;;  %v6272_v48 = vadd.f32 %v6271_v2, %v6159_v27  ;;  %v6356_v14 = vpop.xlane.xlu1 %6355  ;;  %v6162_v20 = vadd.f32 %v15193_v43, %v15203_v30 }
 0xb28   : > { %8731 = vrsqrt.f32 %v15240_v59  ;;  %v15249_v11 = vmul.f32 %v6356_v14, %v12653_v35  ;;  %v7168_v18 = vmax.f32 %v7136_v47, 0.0  ;;  %vm6806_vm15 = vweird.f32 %v8730_v52 }
 0xb29   : > { %v6798_v7 = vsel %vm6797_vm7, %v8728_v46, %v6794_v60  ;;  %v6801_v44 = vmul.f32 %v8730_v52, %v6800_v9  ;;  %v15253_v34 = vadd.f32 %v6272_v48, %v17345_v55  ;;  %v6516_v62 = vpop.xlane.xlu2 %6515  ;;  %v15267_v60 = vpop.f32.mrf.mxu2  ;;  %vm6807_vm8 = vmor %vm6805_vm2, %vm6806_vm15  ;;  %vm6815_vm3 = vweird.f32 %v15240_v59 }
 0xb2a   : > { %v7073_v61 = vmul.f32 %v6798_v7, %v6689_v13  ;;  %v6628_v26 = vmul.f32 %v15249_v11, %v15249_v11  ;;  %v6596_v37 = vmul.f32 %v6516_v62, %v12653_v35  ;;  %8512 = vmatmul.msk.f32.gmra.mxu0 %vm2744_vm13, %v7168_v18  ;;  %v6054_v30 = vpop.f32.mrf.mxu1 }
 0xb2b   : > { %v6802_v57 = vmul.f32 0.5, %v6801_v44  ;;  %v6399_v36 = vsel %vm2744_vm13, %v15253_v34, 0.0  ;;  %v6483_v46 = vmul.f32 %v15253_v34, %v15253_v34  ;;  %v6690_v44 = vsub.f32 %v14920_v33, %v15187_v10 }
 0xb2c   : > { %v6660_v56 = vsub.f32 %v6596_v37, %v6628_v26  ;;  %6400 = vadd.xlane.f32.xlu1 %v6399_v36  ;;  %v7105_v27 = vmul.f32 %v15135_v4, %v7073_v61  ;;  %v17346_v26 = vld [vmem:[#allocation4_spill] sm:$0xff] }
 0xb2d   : > { %v6803_v24 = vsub.f32 1.5, %v6802_v57  ;;  %v6559_v2 = vsel %vm2744_vm13, %v6483_v46, 0.0  ;;  %v17347_v38 = vmax.f32 %v17346_v26, 0.0 }
 0xb2e   : > { %v8732_v47 = vpop.eup %8731  ;;  %v15269_v9 = vadd.f32 1e-05, %v6660_v56  ;;  %v6274_v48 = vpop.f32.mrf.mxu3  ;;  %6560 = vadd.xlane.f32.xlu2 %v6559_v2  ;;  %v7137_v14 = vadd.f32 %v15144_v3, %v7105_v27 }
 0xb2f   : > { %v6804_v13 = vmul.f32 %v8730_v52, %v6803_v24  ;;  %v6810_v18 = vmul.f32 %v8732_v47, %v15240_v59  ;;  %v6275_v7 = vadd.f32 %v6274_v48, %v6162_v20  ;;  %v6359_v43 = vpop.xlane.xlu0 %6358  ;;  %v6165_v24 = vadd.f32 %v15232_v45, %v15238_v5 }
 0xb30   : > { %8733 = vrsqrt.f32 %v15269_v9  ;;  %v15279_v50 = vmul.f32 %v6359_v43, %v12653_v35  ;;  %v7169_v55 = vmax.f32 %v7137_v14, 0.0  ;;  %vm6816_vm10 = vweird.f32 %v8732_v47 }
 0xb31   : > { %v6808_v62 = vsel %vm6807_vm8, %v8730_v52, %v6804_v13  ;;  %v6811_v61 = vmul.f32 %v8732_v47, %v6810_v18  ;;  %v15283_v37 = vadd.f32 %v6275_v7, %v17347_v38  ;;  %v6519_v57 = vpop.xlane.xlu1 %6518  ;;  %v6691_v45 = vsub.f32 %v14934_v49, %v15218_v17  ;;  %vm6817_vm12 = vmor %vm6815_vm3, %vm6816_vm10 }
 0xb32   : > { %v7074_v36 = vmul.f32 %v6808_v62, %v6690_v44  ;;  %v6629_v46 = vmul.f32 %v15279_v50, %v15279_v50  ;;  %v6597_v33 = vmul.f32 %v6519_v57, %v12653_v35  ;;  %8513 = vmatmul.msk.f32.gmra.mxu0 %vm2744_vm13, %v7169_v55  ;;  %vm6825_vm9 = vweird.f32 %v15269_v9 }
 0xb33   : > { %v6812_v10 = vmul.f32 0.5, %v6811_v61  ;;  %v6402_v56 = vsel %vm2744_vm13, %v15283_v37, 0.0  ;;  %v6484_v52 = vmul.f32 %v15283_v37, %v15283_v37  ;;  %v6170_v61 = vpop.f32.mrf.mxu2 }
 0xb34   : > { %v6661_v27 = vsub.f32 %v6597_v33, %v6629_v46  ;;  %6403 = vadd.xlane.f32.xlu0 %v6402_v56  ;;  %v7106_v20 = vmul.f32 %v15135_v4, %v7074_v36  ;;  %v17348_v36 = vld [vmem:[#allocation65_spill] sm:$0xff] }
 0xb35   : > { %v6813_v2 = vsub.f32 1.5, %v6812_v10  ;;  %v6562_v48 = vsel %vm2744_vm13, %v6484_v52, 0.0  ;;  %v17349_v46 = vmax.f32 %v17348_v36, 0.0  ;;  %v6057_v10 = vpop.f32.mrf.mxu1 }
 0xb36   : > { %v8734_v14 = vpop.eup %8733  ;;  %v15297_v13 = vadd.f32 1e-05, %v6661_v27  ;;  %v6277_v18 = vpop.f32.mrf.mxu3  ;;  %6563 = vadd.xlane.f32.xlu1 %v6562_v48  ;;  %v7138_v7 = vadd.f32 %v15144_v3, %v7106_v20 }
 0xb37   : > { %v6814_v43 = vmul.f32 %v8732_v47, %v6813_v2  ;;  %v6820_v44 = vmul.f32 %v8734_v14, %v15269_v9  ;;  %v6278_v55 = vadd.f32 %v6277_v18, %v6165_v24  ;;  %v6362_v62 = vpop.xlane.xlu2 %6361  ;;  %v6168_v2 = vadd.f32 %v15267_v60, %v6054_v30 }
 0xb38   : > { %8735 = vrsqrt.f32 %v15297_v13  ;;  %v15306_v5 = vmul.f32 %v6362_v62, %v12653_v35  ;;  %v7170_v26 = vmax.f32 %v7138_v7, 0.0  ;;  %vm6826_vm4 = vweird.f32 %v8734_v14 }
 0xb39   : > { %v6818_v38 = vsel %vm6817_vm12, %v8732_v47, %v6814_v43  ;;  %v6821_v57 = vmul.f32 %v8734_v14, %v6820_v44  ;;  %v15310_v59 = vadd.f32 %v6278_v55, %v17349_v46  ;;  %v6522_v33 = vpop.xlane.xlu0 %6521  ;;  %v6692_v60 = vsub.f32 %v14946_v31, %v15249_v11  ;;  %vm6827_vm1 = vmor %vm6825_vm9, %vm6826_vm4 }
 0xb3a   : > { %v7075_v56 = vmul.f32 %v6818_v38, %v6691_v45  ;;  %v6630_v52 = vmul.f32 %v15306_v5, %v15306_v5  ;;  %v6598_v49 = vmul.f32 %v6522_v33, %v12653_v35  ;;  %8514 = vmatmul.msk.f32.gmra.mxu0 %vm2744_vm13, %v7170_v26  ;;  %v17350_v33 = vld [vmem:[#allocation78_spill] sm:$0xff]  ;;  %vm6835_vm14 = vweird.f32 %v15297_v13 }
 0xb3b   : > { %v6822_v17 = vmul.f32 0.5, %v6821_v57  ;;  %v6405_v27 = vsel %vm2744_vm13, %v15310_v59, 0.0  ;;  %v6485_v47 = vmul.f32 %v15310_v59, %v15310_v59 }
 0xb3c   : > { %v6662_v20 = vsub.f32 %v6598_v49, %v6630_v52  ;;  %6406 = vadd.xlane.f32.xlu2 %v6405_v27  ;;  %v7107_v24 = vmul.f32 %v15135_v4, %v7075_v56  ;;  %v17351_v56 = vmax.f32 %v17350_v33, 0.0  ;;  %v6173_v49 = vpop.f32.mrf.mxu2 }
 0xb3d   : > { %v6823_v48 = vsub.f32 1.5, %v6822_v17  ;;  %v6565_v18 = vsel %vm2744_vm13, %v6485_v47, 0.0 }
 0xb3e   : > { %v8736_v7 = vpop.eup %8735  ;;  %v15323_v43 = vadd.f32 1e-05, %v6662_v20  ;;  %v6280_v44 = vpop.f32.mrf.mxu3  ;;  %6566 = vadd.xlane.f32.xlu0 %v6565_v18  ;;  %v7139_v55 = vadd.f32 %v15144_v3, %v7107_v24 }
 0xb3f   : > { %v6824_v62 = vmul.f32 %v8734_v14, %v6823_v48  ;;  %v6830_v45 = vmul.f32 %v8736_v7, %v15297_v13  ;;  %v6281_v26 = vadd.f32 %v6280_v44, %v6168_v2  ;;  %v6365_v38 = vpop.xlane.xlu1 %6364  ;;  %v6060_v20 = vpop.f32.mrf.mxu1  ;;  %v6171_v48 = vadd.f32 %v6170_v61, %v6057_v10 }
 0xb40   : > { %8737 = vrsqrt.f32 %v15323_v43  ;;  %v15332_v30 = vmul.f32 %v6365_v38, %v12653_v35  ;;  %v7171_v57 = vmax.f32 %v7139_v55, 0.0  ;;  %vm6836_vm0 = vweird.f32 %v8736_v7 }
 0xb41   : > { %v6828_v36 = vsel %vm6827_vm1, %v8734_v14, %v6824_v62  ;;  %v6831_v46 = vmul.f32 %v8736_v7, %v6830_v45  ;;  %v15336_v52 = vadd.f32 %v6281_v26, %v17351_v56  ;;  %v6525_v9 = vpop.xlane.xlu2 %6524  ;;  %v6693_v61 = vsub.f32 %v14958_v22, %v15279_v50  ;;  %vm6837_vm5 = vmor %vm6835_vm14, %vm6836_vm0 }
 0xb42   : > { %v7076_v17 = vmul.f32 %v6828_v36, %v6692_v60  ;;  %v6631_v27 = vmul.f32 %v15332_v30, %v15332_v30  ;;  %v6599_v31 = vmul.f32 %v6525_v9, %v12653_v35  ;;  %8515 = vmatmul.msk.f32.gmra.mxu0 %vm2744_vm13, %v7171_v57  ;;  %v17352_v9 = vld [vmem:[#allocation68_spill] sm:$0xff]  ;;  %vm6845_vm11 = vweird.f32 %v15323_v43 }
 0xb43   : > { %v6832_v11 = vmul.f32 0.5, %v6831_v46  ;;  %v6408_v47 = vsel %vm2744_vm13, %v15336_v52, 0.0  ;;  %v6486_v14 = vmul.f32 %v15336_v52, %v15336_v52 }
 0xb44   : > { %v6663_v24 = vsub.f32 %v6599_v31, %v6631_v27  ;;  %6409 = vadd.xlane.f32.xlu1 %v6408_v47  ;;  %v7108_v2 = vmul.f32 %v15135_v4, %v7076_v17  ;;  %v17353_v17 = vmax.f32 %v17352_v9, 0.0 }
 0xb45   : > { %v6833_v18 = vsub.f32 1.5, %v6832_v11  ;;  %v6568_v44 = vsel %vm2744_vm13, %v6486_v14, 0.0  ;;  %v6176_v14 = vpop.f32.mrf.mxu2 }
 0xb46   : > { %v8738_v55 = vpop.eup %8737  ;;  %v15348_v62 = vadd.f32 1e-05, %v6663_v24  ;;  %v6283_v45 = vpop.f32.mrf.mxu3  ;;  %6569 = vadd.xlane.f32.xlu2 %v6568_v44  ;;  %v7140_v26 = vadd.f32 %v15144_v3, %v7108_v2 }
 0xb47   : > { %v6834_v38 = vmul.f32 %v8736_v7, %v6833_v18  ;;  %v6840_v60 = vmul.f32 %v8738_v55, %v15323_v43  ;;  %v6284_v57 = vadd.f32 %v6283_v45, %v6171_v48  ;;  %v6368_v36 = vpop.xlane.xlu0 %6367  ;;  %v6174_v48 = vadd.f32 %v6173_v49, %v6060_v20 }
 0xb48   : > { %8739 = vrsqrt.f32 %v15348_v62  ;;  %v15357_v10 = vmul.f32 %v6368_v36, %v12653_v35  ;;  %v7172_v46 = vmax.f32 %v7140_v26, 0.0  ;;  %vm6846_vm6 = vweird.f32 %v8738_v55  ;;  %v6063_v26 = vpop.f32.mrf.mxu1 }
 0xb49   : > { %v6838_v33 = vsel %vm6837_vm5, %v8736_v7, %v6834_v38  ;;  %v6841_v56 = vmul.f32 %v8738_v55, %v6840_v60  ;;  %v15361_v27 = vadd.f32 %v6284_v57, %v17353_v17  ;;  %v6528_v13 = vpop.xlane.xlu1 %6527  ;;  %v6694_v49 = vsub.f32 %v14970_v19, %v15306_v5  ;;  %vm6847_vm7 = vmor %vm6845_vm11, %vm6846_vm6 }
 0xb4a   : > { %v7077_v31 = vmul.f32 %v6838_v33, %v6693_v61  ;;  %v6632_v11 = vmul.f32 %v15357_v10, %v15357_v10  ;;  %v6600_v22 = vmul.f32 %v6528_v13, %v12653_v35  ;;  %8516 = vmatmul.msk.f32.gmra.mxu0 %vm2744_vm13, %v7172_v46  ;;  %vm6855_vm2 = vweird.f32 %v15348_v62 }
 0xb4b   : > { %v6842_v50 = vmul.f32 0.5, %v6841_v56  ;;  %v6411_v47 = vsel %vm2744_vm13, %v15361_v27, 0.0  ;;  %v6487_v7 = vmul.f32 %v15361_v27, %v15361_v27 }
 0xb4c   : > { %v6664_v24 = vsub.f32 %v6600_v22, %v6632_v11  ;;  %6412 = vadd.xlane.f32.xlu0 %v6411_v47  ;;  %v7109_v2 = vmul.f32 %v15135_v4, %v7077_v31 }
 0xb4d   : > { %v6843_v18 = vsub.f32 1.5, %v6842_v50  ;;  %v6571_v44 = vsel %vm2744_vm13, %v6487_v7, 0.0 }
 0xb4e   : > { %v8740_v45 = vpop.eup %8739  ;;  %v15373_v38 = vadd.f32 1e-05, %v6664_v24  ;;  %v6286_v60 = vpop.f32.mrf.mxu3  ;;  %6572 = vadd.xlane.f32.xlu1 %v6571_v44  ;;  %v7141_v57 = vadd.f32 %v15144_v3, %v7109_v2 }
 0xb4f   : > { %v6844_v36 = vmul.f32 %v8738_v55, %v6843_v18  ;;  %v6850_v61 = vmul.f32 %v8740_v45, %v15348_v62  ;;  %v6287_v46 = vadd.f32 %v6286_v60, %v6174_v48  ;;  %v6371_v33 = vpop.xlane.xlu2 %6370  ;;  %vm6856_vm15 = vweird.f32 %v8740_v45  ;;  %v6179_v2 = vpop.f32.mrf.mxu2 }
 0xb50   : > { %8741 = vrsqrt.f32 %v15373_v38  ;;  %v15382_v20 = vmul.f32 %v6371_v33, %v12653_v35  ;;  %v7173_v56 = vmax.f32 %v7141_v57, 0.0  ;;  %vm6857_vm8 = vmor %vm6855_vm2, %vm6856_vm15  ;;  %vm6865_vm3 = vweird.f32 %v15373_v38 }
 0xb51   : > { %v6848_v9 = vsel %vm6847_vm7, %v8738_v55, %v6844_v36  ;;  %v6851_v17 = vmul.f32 %v8740_v45, %v6850_v61  ;;  %v15386_v13 = vadd.f32 %v6287_v46, %v5741_v12  ;;  %v6531_v43 = vpop.xlane.xlu0 %6530  ;;  %v6177_v12 = vadd.f32 %v6176_v14, %v6063_v26  ;;  %v6066_v14 = vpop.f32.mrf.mxu1 }
 0xb52   : > { %v7078_v31 = vmul.f32 %v6848_v9, %v6694_v49  ;;  %v6633_v11 = vmul.f32 %v15382_v20, %v15382_v20  ;;  %v6601_v19 = vmul.f32 %v6531_v43, %v12653_v35  ;;  %8517 = vmatmul.msk.f32.gmra.mxu0 %vm2744_vm13, %v7173_v56  ;;  %v6695_v26 = vsub.f32 %v14982_v63, %v15332_v30 }
 0xb53   : > { %v6852_v5 = vmul.f32 0.5, %v6851_v17  ;;  %v6414_v22 = vsel %vm2744_vm13, %v15386_v13, 0.0  ;;  %v6488_v55 = vmul.f32 %v15386_v13, %v15386_v13 }
 0xb54   : > { %v6665_v50 = vsub.f32 %v6601_v19, %v6633_v11  ;;  %6415 = vadd.xlane.f32.xlu2 %v6414_v22  ;;  %v7110_v6 = vmul.f32 %v15135_v4, %v7078_v31 }
 0xb55   : > { %v6853_v47 = vsub.f32 1.5, %v6852_v5  ;;  %v6574_v7 = vsel %vm2744_vm13, %v6488_v55, 0.0 }
 0xb56   : > { %v8742_v24 = vpop.eup %8741  ;;  %v15398_v48 = vadd.f32 1e-05, %v6665_v50  ;;  %v6289_v18 = vpop.f32.mrf.mxu3  ;;  %6575 = vadd.xlane.f32.xlu0 %v6574_v7  ;;  %v7142_v44 = vadd.f32 %v15144_v3, %v7110_v6 }
 0xb57   : > { %v6854_v60 = vmul.f32 %v8740_v45, %v6853_v47  ;;  %v6860_v57 = vmul.f32 %v8742_v24, %v15373_v38  ;;  %v6290_v36 = vadd.f32 %v6289_v18, %v6177_v12  ;;  %v6374_v61 = vpop.xlane.xlu1 %6373  ;;  %vm6866_vm10 = vweird.f32 %v8742_v24 }
 0xb58   : > { %8743 = vrsqrt.f32 %v15398_v48  ;;  %v15408_v46 = vmul.f32 %v6374_v61, %v12653_v35  ;;  %v7174_v33 = vmax.f32 %v7142_v44, 0.0  ;;  %v6182_v44 = vpop.f32.mrf.mxu2  ;;  %vm6867_vm12 = vmor %vm6865_vm3, %vm6866_vm10  ;;  %vm6875_vm9 = vweird.f32 %v15398_v48 }
 0xb59   : > { %v6858_v49 = vsel %vm6857_vm8, %v8740_v45, %v6854_v60  ;;  %v6861_v56 = vmul.f32 %v8742_v24, %v6860_v57  ;;  %v15412_v62 = vadd.f32 %v6290_v36, %v5742_v15  ;;  %v6534_v9 = vpop.xlane.xlu2 %6533  ;;  %v6180_v15 = vadd.f32 %v6179_v2, %v6066_v14 }
 0xb5a   : > { %v7079_v17 = vmul.f32 %v6858_v49, %v6695_v26  ;;  %v6634_v43 = vmul.f32 %v15408_v46, %v15408_v46  ;;  %v6602_v63 = vmul.f32 %v6534_v9, %v12653_v35  ;;  %8518 = vmatmul.msk.f32.gmra.mxu0 %vm2744_vm13, %v7174_v33  ;;  %v6696_v2 = vsub.f32 %v14993_v21, %v15357_v10  ;;  %v6069_v26 = vpop.f32.mrf.mxu1 }
 0xb5b   : > { %v6862_v30 = vmul.f32 0.5, %v6861_v56  ;;  %v6417_v31 = vsel %vm2744_vm13, %v15412_v62, 0.0  ;;  %v6489_v45 = vmul.f32 %v15412_v62, %v15412_v62  ;;  %v6183_v9 = vadd.f32 %v6182_v44, %v6069_v26 }
 0xb5c   : > { %v6666_v11 = vsub.f32 %v6602_v63, %v6634_v43  ;;  %6418 = vadd.xlane.f32.xlu1 %v6417_v31  ;;  %v7111_v32 = vmul.f32 %v15135_v4, %v7079_v17 }
 0xb5d   : > { %v6863_v19 = vsub.f32 1.5, %v6862_v30  ;;  %v6577_v5 = vsel %vm2744_vm13, %v6489_v45, 0.0 }
 0xb5e   : > { %v8744_v22 = vpop.eup %8743  ;;  %v15424_v55 = vadd.f32 1e-05, %v6666_v11  ;;  %v6292_v50 = vpop.f32.mrf.mxu3  ;;  %6578 = vadd.xlane.f32.xlu2 %v6577_v5  ;;  %v7143_v6 = vadd.f32 %v15144_v3, %v7111_v32  ;;  %v6697_v5 = vsub.f32 %v15003_v29, %v15382_v20 }
 0xb5f   : > { %v6864_v12 = vmul.f32 %v8742_v24, %v6863_v19  ;;  %v6870_v47 = vmul.f32 %v8744_v22, %v15398_v48  ;;  %v6293_v7 = vadd.f32 %v6292_v50, %v6180_v15  ;;  %v6377_v18 = vpop.xlane.xlu0 %6376  ;;  %vm6876_vm4 = vweird.f32 %v8744_v22 }
 0xb60   : > { %8745 = vrsqrt.f32 %v15424_v55  ;;  %v15433_v60 = vmul.f32 %v6377_v18, %v12653_v35  ;;  %v7175_v57 = vmax.f32 %v7143_v6, 0.0  ;;  %vm6877_vm1 = vmor %vm6875_vm9, %vm6876_vm4  ;;  %v6185_v18 = vpop.f32.mrf.mxu2  ;;  %vm6885_vm14 = vweird.f32 %v15424_v55 }
 0xb61   : > { %v6868_v36 = vsel %vm6867_vm12, %v8742_v24, %v6864_v12  ;;  %v6871_v61 = vmul.f32 %v8744_v22, %v6870_v47  ;;  %v15437_v38 = vadd.f32 %v6293_v7, %v5743_v23  ;;  %v6537_v14 = vpop.xlane.xlu1 %6536 }
 0xb62   : > { %v7080_v33 = vmul.f32 %v6868_v36, %v6696_v2  ;;  %v6635_v49 = vmul.f32 %v15433_v60, %v15433_v60  ;;  %v6603_v21 = vmul.f32 %v6537_v14, %v12653_v35  ;;  %8519 = vmatmul.msk.f32.gmra.mxu0 %vm2744_vm13, %v7175_v57  ;;  %v6072_v39 = vpop.f32.mrf.mxu1 }
 0xb63   : > { %v6872_v10 = vmul.f32 0.5, %v6871_v61  ;;  %v6420_v56 = vsel %vm2744_vm13, %v15437_v38, 0.0  ;;  %v6490_v24 = vmul.f32 %v15437_v38, %v15437_v38  ;;  %v6186_v61 = vadd.f32 %v6185_v18, %v6072_v39 }
 0xb64   : > { %v6667_v54 = vsub.f32 %v6603_v21, %v6635_v49  ;;  %6421 = vadd.xlane.f32.xlu0 %v6420_v56  ;;  %v7112_v23 = vmul.f32 %v15135_v4, %v7080_v33 }
 0xb65   : > { %v6873_v17 = vsub.f32 1.5, %v6872_v10  ;;  %v6580_v43 = vsel %vm2744_vm13, %v6490_v24, 0.0 }
 0xb66   : > { %v8746_v63 = vpop.eup %8745  ;;  %v15449_v30 = vadd.f32 1e-05, %v6667_v54  ;;  %v6295_v31 = vpop.f32.mrf.mxu3  ;;  %6581 = vadd.xlane.f32.xlu1 %v6580_v43  ;;  %v7144_v45 = vadd.f32 %v15144_v3, %v7112_v23 }
 0xb67   : > { %v6874_v11 = vmul.f32 %v8744_v22, %v6873_v17  ;;  %v6880_v32 = vmul.f32 %v8746_v63, %v15424_v55  ;;  %v6296_v15 = vadd.f32 %v6295_v31, %v6183_v9  ;;  %v6380_v19 = vpop.xlane.xlu2 %6379  ;;  %vm6886_vm0 = vweird.f32 %v8746_v63 }
 0xb68   : > { %8747 = vrsqrt.f32 %v15449_v30  ;;  %v15458_v50 = vmul.f32 %v6380_v19, %v12653_v35  ;;  %v7176_v6 = vmax.f32 %v7144_v45, 0.0  ;;  %v6698_v9 = vsub.f32 %v15015_v51, %v15408_v46  ;;  %vm6887_vm5 = vmor %vm6885_vm14, %vm6886_vm0 }
 0xb69   : > { %v6878_v12 = vsel %vm6877_vm1, %v8744_v22, %v6874_v11  ;;  %v6881_v47 = vmul.f32 %v8746_v63, %v6880_v32  ;;  %v15462_v7 = vadd.f32 %v6296_v15, %v5744_v28  ;;  %v6540_v48 = vpop.xlane.xlu0 %6539  ;;  %vm6895_vm11 = vweird.f32 %v15449_v30 }
 0xb6a   : > { %v7081_v44 = vmul.f32 %v6878_v12, %v6697_v5  ;;  %v6636_v2 = vmul.f32 %v15458_v50, %v15458_v50  ;;  %v6604_v29 = vmul.f32 %v6540_v48, %v12653_v35  ;;  %8520 = vmatmul.msk.f32.gmra.mxu0 %vm2744_vm13, %v7176_v6 }
 0xb6b   : > { %v6882_v20 = vmul.f32 0.5, %v6881_v47  ;;  %v6423_v57 = vsel %vm2744_vm13, %v15462_v7, 0.0  ;;  %v6491_v22 = vmul.f32 %v15462_v7, %v15462_v7 }
 0xb6c   : > { %v6668_v28 = vsub.f32 %v6604_v29, %v6636_v2  ;;  %6424 = vadd.xlane.f32.xlu2 %v6423_v57  ;;  %v7113_v36 = vmul.f32 %v15135_v4, %v7081_v44  ;;  %v6699_v29 = vsub.f32 %v15027_v42, %v15433_v60 }
 0xb6d   : > { %v6883_v14 = vsub.f32 1.5, %v6882_v20  ;;  %v6583_v26 = vsel %vm2744_vm13, %v6491_v22, 0.0 }
 0xb6e   : > { %v8748_v33 = vpop.eup %8747  ;;  %v15474_v49 = vadd.f32 1e-05, %v6668_v28  ;;  %v6298_v21 = vpop.f32.mrf.mxu3  ;;  %6584 = vadd.xlane.f32.xlu0 %v6583_v26  ;;  %v7145_v10 = vadd.f32 %v15144_v3, %v7113_v36 }
 0xb6f   : > { %v6884_v56 = vmul.f32 %v8746_v63, %v6883_v14  ;;  %v6890_v24 = vmul.f32 %v8748_v33, %v15449_v30  ;;  %v6299_v54 = vadd.f32 %v6298_v21, %v6186_v61  ;;  %v6383_v23 = vpop.xlane.xlu1 %6382  ;;  %vm6896_vm6 = vweird.f32 %v8748_v33 }
 0xb70   : > { %8749 = vrsqrt.f32 %v15474_v49  ;;  %v15483_v17 = vmul.f32 %v6383_v23, %v12653_v35  ;;  %v7177_v43 = vmax.f32 %v7145_v10, 0.0  ;;  %vm6897_vm7 = vmor %vm6895_vm11, %vm6896_vm6  ;;  %vm6905_vm2 = vweird.f32 %v15474_v49 }
 0xb71   : > { %v6888_v31 = vsel %vm6887_vm5, %v8746_v63, %v6884_v56  ;;  %v6891_v45 = vmul.f32 %v8748_v33, %v6890_v24  ;;  %v15487_v11 = vadd.f32 %v6299_v54, %v5745_v58  ;;  %v6543_v55 = vpop.xlane.xlu2 %6542  ;;  %v6700_v23 = vsub.f32 %v15051_v0, %v15458_v50 }
 0xb72   : > { %v7082_v32 = vmul.f32 %v6888_v31, %v6698_v9  ;;  %v6637_v15 = vmul.f32 %v15483_v17, %v15483_v17  ;;  %v6605_v51 = vmul.f32 %v6543_v55, %v12653_v35  ;;  %8521 = vmatmul.msk.f32.gmra.mxu0 %vm2744_vm13, %v7177_v43 }
 0xb73   : > { %v6892_v46 = vmul.f32 0.5, %v6891_v45  ;;  %v6426_v19 = vsel %vm2744_vm13, %v15487_v11, 0.0  ;;  %v6492_v63 = vmul.f32 %v15487_v11, %v15487_v11 }
 0xb74   : > { %v6669_v5 = vsub.f32 %v6605_v51, %v6637_v15  ;;  %6427 = vadd.xlane.f32.xlu1 %v6426_v19  ;;  %v7114_v53 = vmul.f32 %v15135_v4, %v7082_v32 }
 0xb75   : > { %v6893_v58 = vsub.f32 1.5, %v6892_v46  ;;  %v6586_v6 = vsel %vm2744_vm13, %v6492_v63, 0.0 }
 0xb76   : > { %v8750_v12 = vpop.eup %8749  ;;  %v6733_v47 = vadd.f32 1e-05, %v6669_v5  ;;  %6587 = vadd.xlane.f32.xlu2 %v6586_v6  ;;  %v7146_v48 = vadd.f32 %v15144_v3, %v7114_v53 }
 0xb77   : > { %v6894_v18 = vmul.f32 %v8748_v33, %v6893_v58  ;;  %v6900_v44 = vmul.f32 %v8750_v12, %v15474_v49  ;;  %v6386_v2 = vpop.xlane.xlu0 %6385  ;;  %vm6906_vm15 = vweird.f32 %v8750_v12 }
 0xb78   : > { %8751 = vrsqrt.f32 %v6733_v47  ;;  %v15505_v20 = vmul.f32 %v6386_v2, %v12653_v35  ;;  %v7178_v57 = vmax.f32 %v7146_v48, 0.0  ;;  %vm6907_vm8 = vmor %vm6905_vm2, %vm6906_vm15  ;;  %vm6915_vm3 = vweird.f32 %v6733_v47 }
 0xb79   : > { %v6898_v22 = vsel %vm6897_vm7, %v8748_v33, %v6894_v18  ;;  %v6901_v39 = vmul.f32 %v8750_v12, %v6900_v44  ;;  %v6546_v28 = vpop.xlane.xlu1 %6545 }
 0xb7a   : > { %v7083_v36 = vmul.f32 %v6898_v22, %v6699_v29  ;;  %v6638_v61 = vmul.f32 %v15505_v20, %v15505_v20  ;;  %v6606_v30 = vmul.f32 %v6546_v28, %v12653_v35  ;;  %8522 = vmatmul.msk.f32.gmra.mxu0 %vm2744_vm13, %v7178_v57  ;;  %v15540_v57 = vld [vmem:[%s15819_s4 + $0xd8] ss:$0 sm:$0xff]  ;;  %v15545_v22 = vld [vmem:[%s15819_s4 + $0xc8] ss:$0 sm:$0xff] }
 0xb7b   : > { %v6902_v14 = vmul.f32 0.5, %v6901_v39 }
 0xb7c   : > { %v6670_v26 = vsub.f32 %v6606_v30, %v6638_v61  ;;  %v7115_v42 = vmul.f32 %v15135_v4, %v7083_v36  ;;  %v15553_v30 = vld [vmem:[%s15819_s4 + $0xd0] ss:$0 sm:$0xff] }
 0xb7d   : > { %v6903_v60 = vsub.f32 1.5, %v6902_v14 }
 0xb7e   : > { %v8752_v21 = vpop.eup %8751  ;;  %v6734_v10 = vadd.f32 1e-05, %v6670_v26  ;;  %v7147_v33 = vadd.f32 %v15144_v3, %v7115_v42 }
 0xb7f   : > { %v6904_v56 = vmul.f32 %v8750_v12, %v6903_v60  ;;  %v6910_v24 = vmul.f32 %v8752_v21, %v6733_v47  ;;  %v6389_v54 = vpop.xlane.xlu2 %6388  ;;  %vm6916_vm10 = vweird.f32 %v8752_v21 }
 0xb80   : > { %8753 = vrsqrt.f32 %v6734_v10  ;;  %v15517_v9 = vmul.f32 %v6389_v54, %v12653_v35  ;;  %v7179_v43 = vmax.f32 %v7147_v33, 0.0  ;;  %vm6917_vm12 = vmor %vm6915_vm3, %vm6916_vm10  ;;  %vm6925_vm9 = vweird.f32 %v6734_v10 }
 0xb81   : > { %v6908_v31 = vsel %vm6907_vm8, %v8750_v12, %v6904_v56  ;;  %v6911_v45 = vmul.f32 %v8752_v21, %v6910_v24  ;;  %v6549_v55 = vpop.xlane.xlu0 %6548  ;;  %v6701_v12 = vsub.f32 %v15073_v40, %v15483_v17  ;;  %v6702_v33 = vsub.f32 %v15096_v1, %v15505_v20 }
 0xb82   : > { %v7084_v32 = vmul.f32 %v6908_v31, %v6700_v23  ;;  %v6639_v15 = vmul.f32 %v15517_v9, %v15517_v9  ;;  %v6607_v49 = vmul.f32 %v6549_v55, %v12653_v35  ;;  %8523 = vmatmul.msk.f32.gmra.mxu0 %vm2744_vm13, %v7179_v43 }
 0xb83   : > { %v6912_v51 = vmul.f32 0.5, %v6911_v45 }
 0xb84   : > { %v6671_v46 = vsub.f32 %v6607_v49, %v6639_v15  ;;  %v7116_v0 = vmul.f32 %v15135_v4, %v7084_v32 }
 0xb85   : > { %v6913_v50 = vsub.f32 1.5, %v6912_v51 }
 0xb86   : > { %v8754_v19 = vpop.eup %8753  ;;  %v15524_v63 = vadd.f32 1e-05, %v6671_v46  ;;  %v7148_v5 = vadd.f32 %v15144_v3, %v7116_v0 }
 0xb87   : > { %v6914_v53 = vmul.f32 %v8752_v21, %v6913_v50  ;;  %v6920_v58 = vmul.f32 %v8754_v19, %v6734_v10  ;;  %v6392_v6 = vpop.xlane.xlu1 %6391  ;;  %vm6926_vm4 = vweird.f32 %v8754_v19 }
 0xb88   : > { %8755 = vrsqrt.f32 %v15524_v63  ;;  %v15531_v48 = vmul.f32 %v6392_v6, %v12653_v35  ;;  %v7180_v4 = vmax.f32 %v7148_v5, 0.0  ;;  %vm6927_vm1 = vmor %vm6925_vm9, %vm6926_vm4  ;;  %vm6935_vm14 = vweird.f32 %v15524_v63 }
 0xb89   : > { %v6918_v18 = vsel %vm6917_vm12, %v8752_v21, %v6914_v53  ;;  %v6921_v44 = vmul.f32 %v8754_v19, %v6920_v58  ;;  %v6552_v2 = vpop.xlane.xlu2 %6551  ;;  %v6703_v53 = vsub.f32 %v15123_v25, %v15517_v9 }
 0xb8a   : > { %v7085_v29 = vmul.f32 %v6918_v18, %v6701_v12  ;;  %v6640_v3 = vmul.f32 %v15531_v48, %v15531_v48  ;;  %v6608_v47 = vmul.f32 %v6552_v2, %v12653_v35  ;;  %8524 = vmatmul.msk.f32.gmra.mxu0 %vm2744_vm13, %v7180_v4 }
 0xb8b   : > { %v6922_v40 = vmul.f32 0.5, %v6921_v44 }
 0xb8c   : > { %v6672_v17 = vsub.f32 %v6608_v47, %v6640_v3  ;;  %v7117_v39 = vmul.f32 %v15545_v22, %v7085_v29 }
 0xb8d   : > { %v6923_v28 = vsub.f32 1.5, %v6922_v40 }
 0xb8e   : > { %v8756_v36 = vpop.eup %8755  ;;  %v15548_v61 = vadd.f32 1e-05, %v6672_v17  ;;  %v7149_v14 = vadd.f32 %v15553_v30, %v7117_v39 }
 0xb8f   : > { %v6924_v26 = vmul.f32 %v8754_v19, %v6923_v28  ;;  %v6930_v42 = vmul.f32 %v8756_v36, %v15524_v63  ;;  %v6395_v60 = vpop.xlane.xlu0 %6394  ;;  %v7316_v21 = vpop.f32.mrf.mxu0  ;;  %vm6936_vm0 = vweird.f32 %v8756_v36 }
 0xb90   : > { %8757 = vrsqrt.f32 %v15548_v61  ;;  %v15568_v56 = vmul.f32 %v6395_v60, %v12653_v35  ;;  %v7317_v10 = vadd.f32 %v15540_v57, %v7316_v21  ;;  %v7181_v43 = vmax.f32 %v7149_v14, 0.0  ;;  %vm6937_vm5 = vmor %vm6935_vm14, %vm6936_vm0 }
 0xb91   : > { %v6928_v24 = vsel %vm6927_vm1, %v8754_v19, %v6924_v26  ;;  %v6931_v54 = vmul.f32 %v8756_v36, %v6930_v42  ;;  %v6555_v23 = vpop.xlane.xlu1 %6554  ;;  %vm6945_vm11 = vweird.f32 %v15548_v61  ;;  %v6704_v42 = vsub.f32 %v15162_v8, %v15531_v48 }
 0xb92   : > { %v7086_v31 = vmul.f32 %v6928_v24, %v6702_v33  ;;  %v6641_v45 = vmul.f32 %v15568_v56, %v15568_v56  ;;  %7412 = vst.msk [vmem:[%s15562_s24] sm:$0xff] %vm2744_vm13, %v7317_v10  ;;  %v6609_v1 = vmul.f32 %v6555_v23, %v12653_v35  ;;  %8525 = vmatmul.msk.f32.gmra.mxu0 %vm2744_vm13, %v7181_v43 }
 0xb93   : > { %v6932_v20 = vmul.f32 0.5, %v6931_v54 }
 0xb94   : > { %v6673_v55 = vsub.f32 %v6609_v1, %v6641_v45  ;;  %v7118_v32 = vmul.f32 %v15545_v22, %v7086_v31 }
 0xb95   : > { %v6933_v15 = vsub.f32 1.5, %v6932_v20 }
 0xb96   : > { %v8758_v49 = vpop.eup %8757  ;;  %v6737_v51 = vadd.f32 1e-05, %v6673_v55  ;;  %v7150_v46 = vadd.f32 %v15553_v30, %v7118_v32 }
 0xb97   : > { %v6934_v0 = vmul.f32 %v8756_v36, %v6933_v15  ;;  %v6940_v50 = vmul.f32 %v8758_v49, %v15548_v61  ;;  %v7319_v19 = vpop.f32.mrf.mxu0  ;;  %v6398_v5 = vpop.xlane.xlu2 %6397  ;;  %vm6946_vm6 = vweird.f32 %v8758_v49 }
 0xb98   : > { %8759 = vrsqrt.f32 %v6737_v51  ;;  %v7320_v58 = vadd.f32 %v15540_v57, %v7319_v19  ;;  %v15585_v6 = vmul.f32 %v6398_v5, %v12653_v35  ;;  %v7182_v44 = vmax.f32 %v7150_v46, 0.0  ;;  %vm6947_vm7 = vmor %vm6945_vm11, %vm6946_vm6 }
 0xb99   : > { %v6938_v12 = vsel %vm6937_vm5, %v8756_v36, %v6934_v0  ;;  %v6941_v4 = vmul.f32 %v8758_v49, %v6940_v50  ;;  %v6558_v18 = vpop.xlane.xlu0 %6557  ;;  %vm6955_vm2 = vweird.f32 %v6737_v51  ;;  %v6705_v0 = vsub.f32 %v15191_v41, %v15568_v56 }
 0xb9a   : > { %v7087_v2 = vmul.f32 %v6938_v12, %v6703_v53  ;;  %7413 = vst.msk [vmem:[%s15562_s24 + $0x8] sm:$0xff] %vm2744_vm13, %v7320_v58  ;;  %v6642_v63 = vmul.f32 %v15585_v6, %v15585_v6  ;;  %v6610_v29 = vmul.f32 %v6558_v18, %v12653_v35  ;;  %8526 = vmatmul.msk.f32.gmra.mxu0 %vm2744_vm13, %v7182_v44 }
 0xb9b   : > { %v6942_v25 = vmul.f32 0.5, %v6941_v4 }
 0xb9c   : > { %v6674_v9 = vsub.f32 %v6610_v29, %v6642_v63  ;;  %v7119_v3 = vmul.f32 %v15545_v22, %v7087_v2 }
 0xb9d   : > { %v6943_v47 = vsub.f32 1.5, %v6942_v25 }
 0xb9e   : > { %v8760_v40 = vpop.eup %8759  ;;  %v6738_v17 = vadd.f32 1e-05, %v6674_v9  ;;  %v7151_v39 = vadd.f32 %v15553_v30, %v7119_v3 }
 0xb9f   : > { %v6944_v28 = vmul.f32 %v8758_v49, %v6943_v47  ;;  %v6950_v36 = vmul.f32 %v8760_v40, %v6737_v51  ;;  %v6401_v14 = vpop.xlane.xlu1 %6400  ;;  %v7322_v26 = vpop.f32.mrf.mxu0  ;;  %vm6956_vm15 = vweird.f32 %v8760_v40 }
 0xba0   : > { %8761 = vrsqrt.f32 %v6738_v17  ;;  %v15599_v60 = vmul.f32 %v6401_v14, %v12653_v35  ;;  %v7323_v21 = vadd.f32 %v15540_v57, %v7322_v26  ;;  %v7183_v54 = vmax.f32 %v7151_v39, 0.0  ;;  %vm6957_vm8 = vmor %vm6955_vm2, %vm6956_vm15 }
 0xba1   : > { %v6948_v33 = vsel %vm6947_vm7, %v8758_v49, %v6944_v28  ;;  %v6951_v10 = vmul.f32 %v8760_v40, %v6950_v36  ;;  %v6561_v24 = vpop.xlane.xlu2 %6560  ;;  %vm6965_vm3 = vweird.f32 %v6738_v17  ;;  %v6706_v39 = vsub.f32 %v15222_v16, %v15585_v6 }
 0xba2   : > { %v7088_v23 = vmul.f32 %v6948_v33, %v6704_v42  ;;  %v6643_v61 = vmul.f32 %v15599_v60, %v15599_v60  ;;  %7414 = vst.msk [vmem:[%s15562_s24 + $0x10] sm:$0xff] %vm2744_vm13, %v7323_v21  ;;  %v6611_v43 = vmul.f32 %v6561_v24, %v12653_v35  ;;  %8527 = vmatmul.msk.f32.gmra.mxu0 %vm2744_vm13, %v7183_v54 }
 0xba3   : > { %v6952_v8 = vmul.f32 0.5, %v6951_v10 }
 0xba4   : > { %v6675_v48 = vsub.f32 %v6611_v43, %v6643_v61  ;;  %v7120_v31 = vmul.f32 %v15545_v22, %v7088_v23 }
 0xba5   : > { %v6953_v45 = vsub.f32 1.5, %v6952_v8 }
 0xba6   : > { %v8762_v1 = vpop.eup %8761  ;;  %v6739_v20 = vadd.f32 1e-05, %v6675_v48  ;;  %v7152_v55 = vadd.f32 %v15553_v30, %v7120_v31 }
 0xba7   : > { %v6954_v32 = vmul.f32 %v8760_v40, %v6953_v45  ;;  %v6960_v15 = vmul.f32 %v8762_v1, %v6738_v17  ;;  %v6404_v49 = vpop.xlane.xlu0 %6403  ;;  %v7325_v46 = vpop.f32.mrf.mxu0  ;;  %vm6966_vm10 = vweird.f32 %v8762_v1 }
 0xba8   : > { %8763 = vrsqrt.f32 %v6739_v20  ;;  %v15613_v50 = vmul.f32 %v6404_v49, %v12653_v35  ;;  %v7326_v19 = vadd.f32 %v15540_v57, %v7325_v46  ;;  %v7184_v12 = vmax.f32 %v7152_v55, 0.0  ;;  %vm6967_vm12 = vmor %vm6965_vm3, %vm6966_vm10 }
 0xba9   : > { %v6958_v5 = vsel %vm6957_vm8, %v8760_v40, %v6954_v32  ;;  %v6961_v53 = vmul.f32 %v8762_v1, %v6960_v15  ;;  %v6564_v58 = vpop.xlane.xlu1 %6563  ;;  %vm6975_vm9 = vweird.f32 %v6739_v20 }
 0xbaa   : > { %v7089_v4 = vmul.f32 %v6958_v5, %v6705_v0  ;;  %v6644_v51 = vmul.f32 %v15613_v50, %v15613_v50  ;;  %7415 = vst.msk [vmem:[%s15562_s24 + $0x18] sm:$0xff] %vm2744_vm13, %v7326_v19  ;;  %v6612_v18 = vmul.f32 %v6564_v58, %v12653_v35  ;;  %8528 = vmatmul.msk.f32.gmra.mxu0 %vm2744_vm13, %v7184_v12 }
 0xbab   : > { %v6962_v41 = vmul.f32 0.5, %v6961_v53 }
 0xbac   : > { %v6676_v56 = vsub.f32 %v6612_v18, %v6644_v51  ;;  %v7121_v44 = vmul.f32 %v15545_v22, %v7089_v4 }
 0xbad   : > { %v6963_v2 = vsub.f32 1.5, %v6962_v41 }
 0xbae   : > { %v8764_v63 = vpop.eup %8763  ;;  %v6740_v29 = vadd.f32 1e-05, %v6676_v56  ;;  %v7153_v25 = vadd.f32 %v15553_v30, %v7121_v44 }
 0xbaf   : > { %v6964_v9 = vmul.f32 %v8762_v1, %v6963_v2  ;;  %v6970_v3 = vmul.f32 %v8764_v63, %v6739_v20  ;;  %v7328_v47 = vpop.f32.mrf.mxu0  ;;  %v6407_v40 = vpop.xlane.xlu2 %6406  ;;  %vm6976_vm4 = vweird.f32 %v8764_v63  ;;  %v6708_v2 = vsub.f32 %v15283_v37, %v15613_v50 }
 0xbb0   : > { %8765 = vrsqrt.f32 %v6740_v29  ;;  %v7329_v28 = vadd.f32 %v15540_v57, %v7328_v47  ;;  %v15628_v36 = vmul.f32 %v6407_v40, %v12653_v35  ;;  %v7185_v21 = vmax.f32 %v7153_v25, 0.0  ;;  %vm6977_vm1 = vmor %vm6975_vm9, %vm6976_vm4 }
 0xbb1   : > { %v6968_v14 = vsel %vm6967_vm12, %v8762_v1, %v6964_v9  ;;  %v6971_v26 = vmul.f32 %v8764_v63, %v6970_v3  ;;  %v6567_v42 = vpop.xlane.xlu0 %6566  ;;  %v6707_v1 = vsub.f32 %v15253_v34, %v15599_v60  ;;  %vm6985_vm14 = vweird.f32 %v6740_v29 }
 0xbb2   : > { %v7090_v33 = vmul.f32 %v6968_v14, %v6706_v39  ;;  %7416 = vst.msk [vmem:[%s15562_s24 + $0x20] sm:$0xff] %vm2744_vm13, %v7329_v28  ;;  %v6645_v17 = vmul.f32 %v15628_v36, %v15628_v36  ;;  %v6613_v10 = vmul.f32 %v6567_v42, %v12653_v35  ;;  %8529 = vmatmul.msk.f32.gmra.mxu0 %vm2744_vm13, %v7185_v21 }
 0xbb3   : > { %v6972_v16 = vmul.f32 0.5, %v6971_v26 }
 0xbb4   : > { %v6677_v6 = vsub.f32 %v6613_v10, %v6645_v17  ;;  %v7122_v24 = vmul.f32 %v15545_v22, %v7090_v33 }
 0xbb5   : > { %v6973_v54 = vsub.f32 1.5, %v6972_v16 }
 0xbb6   : > { %v8766_v23 = vpop.eup %8765  ;;  %v6741_v61 = vadd.f32 1e-05, %v6677_v6  ;;  %v7154_v43 = vadd.f32 %v15553_v30, %v7122_v24  ;;  %v6709_v24 = vsub.f32 %v15310_v59, %v15628_v36 }
 0xbb7   : > { %v6974_v8 = vmul.f32 %v8764_v63, %v6973_v54  ;;  %v6980_v48 = vmul.f32 %v8766_v23, %v6740_v29  ;;  %v6410_v31 = vpop.xlane.xlu1 %6409  ;;  %v7331_v45 = vpop.f32.mrf.mxu0  ;;  %vm6986_vm0 = vweird.f32 %v8766_v23 }
 0xbb8   : > { %8767 = vrsqrt.f32 %v6741_v61  ;;  %v15641_v55 = vmul.f32 %v6410_v31, %v12653_v35  ;;  %v7332_v32 = vadd.f32 %v15540_v57, %v7331_v45  ;;  %v7186_v0 = vmax.f32 %v7154_v43, 0.0  ;;  %vm6987_vm5 = vmor %vm6985_vm14, %vm6986_vm0 }
 0xbb9   : > { %v6978_v15 = vsel %vm6977_vm1, %v8764_v63, %v6974_v8  ;;  %v6981_v49 = vmul.f32 %v8766_v23, %v6980_v48  ;;  %v6570_v46 = vpop.xlane.xlu2 %6569  ;;  %vm6995_vm11 = vweird.f32 %v6741_v61 }
 0xbba   : > { %v7091_v19 = vmul.f32 %v6978_v15, %v6707_v1  ;;  %v6646_v20 = vmul.f32 %v15641_v55, %v15641_v55  ;;  %7417 = vst.msk [vmem:[%s15562_s24 + $0x28] sm:$0xff] %vm2744_vm13, %v7332_v32  ;;  %v6614_v5 = vmul.f32 %v6570_v46, %v12653_v35  ;;  %8530 = vmatmul.msk.f32.gmra.mxu0 %vm2744_vm13, %v7186_v0 }
 0xbbb   : > { %v6982_v34 = vmul.f32 0.5, %v6981_v49 }
 0xbbc   : > { %v6678_v60 = vsub.f32 %v6614_v5, %v6646_v20  ;;  %v7123_v53 = vmul.f32 %v15545_v22, %v7091_v19 }
 0xbbd   : > { %v6983_v58 = vsub.f32 1.5, %v6982_v34 }
 0xbbe   : > { %v8768_v12 = vpop.eup %8767  ;;  %v6742_v4 = vadd.f32 1e-05, %v6678_v60  ;;  %v7155_v51 = vadd.f32 %v15553_v30, %v7123_v53  ;;  %v6710_v60 = vsub.f32 %v15336_v52, %v15641_v55 }
 0xbbf   : > { %v6984_v18 = vmul.f32 %v8766_v23, %v6983_v58  ;;  %v6990_v41 = vmul.f32 %v8768_v12, %v6741_v61  ;;  %v6413_v56 = vpop.xlane.xlu0 %6412  ;;  %v7334_v44 = vpop.f32.mrf.mxu0  ;;  %vm6996_vm6 = vweird.f32 %v8768_v12 }
 0xbc0   : > { %8769 = vrsqrt.f32 %v6742_v4  ;;  %v15655_v63 = vmul.f32 %v6413_v56, %v12653_v35  ;;  %v7335_v25 = vadd.f32 %v15540_v57, %v7334_v44  ;;  %v7187_v40 = vmax.f32 %v7155_v51, 0.0  ;;  %vm6997_vm7 = vmor %vm6995_vm11, %vm6996_vm6 }
 0xbc1   : > { %v6988_v9 = vsel %vm6987_vm5, %v8766_v23, %v6984_v18  ;;  %v6991_v3 = vmul.f32 %v8768_v12, %v6990_v41  ;;  %v6573_v47 = vpop.xlane.xlu1 %6572  ;;  %vm7005_vm2 = vweird.f32 %v6742_v4 }
 0xbc2   : > { %v7092_v39 = vmul.f32 %v6988_v9, %v6708_v2  ;;  %v6647_v29 = vmul.f32 %v15655_v63, %v15655_v63  ;;  %7418 = vst.msk [vmem:[%s15562_s24 + $0x30] sm:$0xff] %vm2744_vm13, %v7335_v25  ;;  %v6615_v28 = vmul.f32 %v6573_v47, %v12653_v35  ;;  %8531 = vmatmul.msk.f32.gmra.mxu0 %vm2744_vm13, %v7187_v40 }
 0xbc3   : > { %v6992_v37 = vmul.f32 0.5, %v6991_v3 }
 0xbc4   : > { %v6679_v50 = vsub.f32 %v6615_v28, %v6647_v29  ;;  %v7124_v14 = vmul.f32 %v15545_v22, %v7092_v39 }
 0xbc5   : > { %v6993_v26 = vsub.f32 1.5, %v6992_v37  ;;  %v6711_v37 = vsub.f32 %v15361_v27, %v15655_v63 }
 0xbc6   : > { %v8770_v42 = vpop.eup %8769  ;;  %v6743_v21 = vadd.f32 1e-05, %v6679_v50  ;;  %v7156_v33 = vadd.f32 %v15553_v30, %v7124_v14 }
 0xbc7   : > { %v6994_v17 = vmul.f32 %v8768_v12, %v6993_v26  ;;  %v7000_v10 = vmul.f32 %v8770_v42, %v6742_v4  ;;  %v7337_v16 = vpop.f32.mrf.mxu0  ;;  %v6416_v6 = vpop.xlane.xlu2 %6415  ;;  %vm7006_vm15 = vweird.f32 %v8770_v42 }
 0xbc8   : > { %8771 = vrsqrt.f32 %v6743_v21  ;;  %v7338_v54 = vadd.f32 %v15540_v57, %v7337_v16  ;;  %v15670_v23 = vmul.f32 %v6416_v6, %v12653_v35  ;;  %v7188_v31 = vmax.f32 %v7156_v33, 0.0  ;;  %vm7007_vm8 = vmor %vm7005_vm2, %vm7006_vm15 }
 0xbc9   : > { %v6998_v43 = vsel %vm6997_vm7, %v8768_v12, %v6994_v17  ;;  %v7001_v8 = vmul.f32 %v8770_v42, %v7000_v10  ;;  %v6576_v48 = vpop.xlane.xlu0 %6575  ;;  %vm7015_vm3 = vweird.f32 %v6743_v21 }
 0xbca   : > { %v7093_v45 = vmul.f32 %v6998_v43, %v6709_v24  ;;  %7419 = vst.msk [vmem:[%s15562_s24 + $0x38] sm:$0xff] %vm2744_vm13, %v7338_v54  ;;  %v6648_v61 = vmul.f32 %v15670_v23, %v15670_v23  ;;  %v6616_v1 = vmul.f32 %v6576_v48, %v12653_v35  ;;  %8532 = vmatmul.msk.f32.gmra.mxu0 %vm2744_vm13, %v7188_v31 }
 0xbcb   : > { %v7002_v59 = vmul.f32 0.5, %v7001_v8 }
 0xbcc   : > { %v6680_v36 = vsub.f32 %v6616_v1, %v6648_v61  ;;  %v7125_v32 = vmul.f32 %v15545_v22, %v7093_v45  ;;  %v6712_v1 = vsub.f32 %v15386_v13, %v15670_v23 }
 0xbcd   : > { %v7003_v15 = vsub.f32 1.5, %v7002_v59 }
 0xbce   : > { %v8772_v49 = vpop.eup %8771  ;;  %v6744_v46 = vadd.f32 1e-05, %v6680_v36  ;;  %v7157_v0 = vadd.f32 %v15553_v30, %v7125_v32 }
 0xbcf   : > { %v7004_v19 = vmul.f32 %v8770_v42, %v7003_v15  ;;  %v7010_v20 = vmul.f32 %v8772_v49, %v6743_v21  ;;  %v6419_v5 = vpop.xlane.xlu1 %6418  ;;  %v7340_v34 = vpop.f32.mrf.mxu0  ;;  %vm7016_vm10 = vweird.f32 %v8772_v49 }
 0xbd0   : > { %8773 = vrsqrt.f32 %v6744_v46  ;;  %v15683_v53 = vmul.f32 %v6419_v5, %v12653_v35  ;;  %v7341_v58 = vadd.f32 %v15540_v57, %v7340_v34  ;;  %v7189_v41 = vmax.f32 %v7157_v0, 0.0  ;;  %vm7017_vm12 = vmor %vm7015_vm3, %vm7016_vm10 }
 0xbd1   : > { %v7008_v12 = vsel %vm7007_vm8, %v8770_v42, %v7004_v19  ;;  %v7011_v51 = vmul.f32 %v8772_v49, %v7010_v20  ;;  %v6579_v18 = vpop.xlane.xlu2 %6578  ;;  %vm7025_vm9 = vweird.f32 %v6744_v46 }
 0xbd2   : > { %v7094_v56 = vmul.f32 %v7008_v12, %v6710_v60  ;;  %v6649_v4 = vmul.f32 %v15683_v53, %v15683_v53  ;;  %7420 = vst.msk [vmem:[%s15562_s24 + $0x40] sm:$0xff] %vm2744_vm13, %v7341_v58  ;;  %v6617_v44 = vmul.f32 %v6579_v18, %v12653_v35  ;;  %8533 = vmatmul.msk.f32.gmra.mxu0 %vm2744_vm13, %v7189_v41 }
 0xbd3   : > { %v7012_v52 = vmul.f32 0.5, %v7011_v51 }
 0xbd4   : > { %v6681_v55 = vsub.f32 %v6617_v44, %v6649_v4  ;;  %v7126_v2 = vmul.f32 %v15545_v22, %v7094_v56  ;;  %v6713_v4 = vsub.f32 %v15412_v62, %v15683_v53 }
 0xbd5   : > { %v7013_v25 = vsub.f32 1.5, %v7012_v52 }
 0xbd6   : > { %v8774_v9 = vpop.eup %8773  ;;  %v6745_v3 = vadd.f32 1e-05, %v6681_v55  ;;  %v7158_v47 = vadd.f32 %v15553_v30, %v7126_v2 }
 0xbd7   : > { %v7014_v40 = vmul.f32 %v8772_v49, %v7013_v25  ;;  %v7020_v39 = vmul.f32 %v8774_v9, %v6744_v46  ;;  %v6422_v29 = vpop.xlane.xlu0 %6421  ;;  %v7343_v28 = vpop.f32.mrf.mxu0  ;;  %vm7026_vm4 = vweird.f32 %v8774_v9 }
 0xbd8   : > { %8775 = vrsqrt.f32 %v6745_v3  ;;  %v15697_v50 = vmul.f32 %v6422_v29, %v12653_v35  ;;  %v7344_v14 = vadd.f32 %v15540_v57, %v7343_v28  ;;  %v7190_v17 = vmax.f32 %v7158_v47, 0.0  ;;  %vm7027_vm1 = vmor %vm7025_vm9, %vm7026_vm4 }
 0xbd9   : > { %v7018_v26 = vsel %vm7017_vm12, %v8772_v49, %v7014_v40  ;;  %v7021_v42 = vmul.f32 %v8774_v9, %v7020_v39  ;;  %v6582_v33 = vpop.xlane.xlu1 %6581  ;;  %vm7035_vm14 = vweird.f32 %v6745_v3 }
 0xbda   : > { %v7095_v10 = vmul.f32 %v7018_v26, %v6711_v37  ;;  %v6650_v21 = vmul.f32 %v15697_v50, %v15697_v50  ;;  %7421 = vst.msk [vmem:[%s15562_s24 + $0x48] sm:$0xff] %vm2744_vm13, %v7344_v14  ;;  %v6618_v16 = vmul.f32 %v6582_v33, %v12653_v35  ;;  %8534 = vmatmul.msk.f32.gmra.mxu0 %vm2744_vm13, %v7190_v17 }
 0xbdb   : > { %v7022_v27 = vmul.f32 0.5, %v7021_v42 }
 0xbdc   : > { %v6682_v63 = vsub.f32 %v6618_v16, %v6650_v21  ;;  %v7127_v6 = vmul.f32 %v15545_v22, %v7095_v10 }
 0xbdd   : > { %v7023_v24 = vsub.f32 1.5, %v7022_v27 }
 0xbde   : > { %v8776_v54 = vpop.eup %8775  ;;  %v6746_v43 = vadd.f32 1e-05, %v6682_v63  ;;  %v7159_v8 = vadd.f32 %v15553_v30, %v7127_v6 }
 0xbdf   : > { %v7024_v48 = vmul.f32 %v8774_v9, %v7023_v24  ;;  %v7030_v31 = vmul.f32 %v8776_v54, %v6745_v3  ;;  %v7346_v45 = vpop.f32.mrf.mxu0  ;;  %v6425_v61 = vpop.xlane.xlu2 %6424  ;;  %vm7036_vm0 = vweird.f32 %v8776_v54 }
 0xbe0   : > { %8777 = vrsqrt.f32 %v6746_v43  ;;  %v7347_v59 = vadd.f32 %v15540_v57, %v7346_v45  ;;  %v15712_v36 = vmul.f32 %v6425_v61, %v12653_v35  ;;  %v7191_v0 = vmax.f32 %v7159_v8, 0.0  ;;  %vm7037_vm5 = vmor %vm7035_vm14, %vm7036_vm0 }
 0xbe1   : > { %v7028_v32 = vsel %vm7027_vm1, %v8774_v9, %v7024_v48  ;;  %v7031_v15 = vmul.f32 %v8776_v54, %v7030_v31  ;;  %v6585_v49 = vpop.xlane.xlu0 %6584  ;;  %vm7045_vm11 = vweird.f32 %v6746_v43 }
 0xbe2   : > { %v7096_v19 = vmul.f32 %v7028_v32, %v6712_v1  ;;  %7422 = vst.msk [vmem:[%s15562_s24 + $0x50] sm:$0xff] %vm2744_vm13, %v7347_v59  ;;  %v6651_v46 = vmul.f32 %v15712_v36, %v15712_v36  ;;  %v6619_v20 = vmul.f32 %v6585_v49, %v12653_v35  ;;  %8535 = vmatmul.msk.f32.gmra.mxu0 %vm2744_vm13, %v7191_v0 }
 0xbe3   : > { %v7032_v13 = vmul.f32 0.5, %v7031_v15  ;;  %v6715_v48 = vsub.f32 %v15462_v7, %v15712_v36 }
 0xbe4   : > { %v6683_v23 = vsub.f32 %v6619_v20, %v6651_v46  ;;  %v7128_v5 = vmul.f32 %v15545_v22, %v7096_v19 }
 0xbe5   : > { %v7033_v34 = vsub.f32 1.5, %v7032_v13 }
 0xbe6   : > { %v8778_v60 = vpop.eup %8777  ;;  %v6747_v58 = vadd.f32 1e-05, %v6683_v23  ;;  %v7160_v12 = vadd.f32 %v15553_v30, %v7128_v5 }
 0xbe7   : > { %v7034_v51 = vmul.f32 %v8776_v54, %v7033_v34  ;;  %v7040_v18 = vmul.f32 %v8778_v60, %v6746_v43  ;;  %v6428_v41 = vpop.xlane.xlu1 %6427  ;;  %v7349_v56 = vpop.f32.mrf.mxu0  ;;  %vm7046_vm6 = vweird.f32 %v8778_v60 }
 0xbe8   : > { %8779 = vrsqrt.f32 %v6747_v58  ;;  %v15725_v44 = vmul.f32 %v6428_v41, %v12653_v35  ;;  %v7350_v52 = vadd.f32 %v15540_v57, %v7349_v56  ;;  %v7192_v9 = vmax.f32 %v7160_v12, 0.0  ;;  %vm7047_vm7 = vmor %vm7045_vm11, %vm7046_vm6 }
 0xbe9   : > { %v7038_v55 = vsel %vm7037_vm5, %v8776_v54, %v7034_v51  ;;  %v7041_v2 = vmul.f32 %v8778_v60, %v7040_v18  ;;  %v6588_v25 = vpop.xlane.xlu2 %6587  ;;  %vm7055_vm2 = vweird.f32 %v6747_v58 }
 0xbea   : > { %v7097_v47 = vmul.f32 %v7038_v55, %v6713_v4  ;;  %v6652_v3 = vmul.f32 %v15725_v44, %v15725_v44  ;;  %7423 = vst.msk [vmem:[%s15562_s24 + $0x58] sm:$0xff] %vm2744_vm13, %v7350_v52  ;;  %v6620_v40 = vmul.f32 %v6588_v25, %v12653_v35  ;;  %8536 = vmatmul.msk.f32.gmra.mxu0 %vm2744_vm13, %v7192_v9 }
 0xbeb   : > { %v7042_v62 = vmul.f32 0.5, %v7041_v2  ;;  %v6714_v35 = vsub.f32 %v15437_v38, %v15697_v50  ;;  %v6716_v19 = vsub.f32 %v15487_v11, %v15725_v44 }
 0xbec   : > { %v6684_v53 = vsub.f32 %v6620_v40, %v6652_v3  ;;  %v7129_v39 = vmul.f32 %v15545_v22, %v7097_v47 }
 0xbed   : > { %v7043_v29 = vsub.f32 1.5, %v7042_v62 }
 0xbee   : > { %v8780_v28 = vpop.eup %8779  ;;  %v6748_v37 = vadd.f32 1e-05, %v6684_v53  ;;  %v7161_v14 = vadd.f32 %v15553_v30, %v7129_v39 }
 0xbef   : > { %v7044_v26 = vmul.f32 %v8778_v60, %v7043_v29  ;;  %v7050_v42 = vmul.f32 %v8780_v28, %v6747_v58  ;;  %v7352_v33 = vpop.f32.mrf.mxu0  ;;  %vm7056_vm15 = vweird.f32 %v8780_v28 }
 0xbf0   : > { %8781 = vrsqrt.f32 %v6748_v37  ;;  %v7353_v17 = vadd.f32 %v15540_v57, %v7352_v33  ;;  %v7193_v10 = vmax.f32 %v7161_v14, 0.0  ;;  %vm7057_vm8 = vmor %vm7055_vm2, %vm7056_vm15  ;;  %vm7065_vm3 = vweird.f32 %v6748_v37 }
 0xbf1   : > { %v7048_v21 = vsel %vm7047_vm7, %v8778_v60, %v7044_v26  ;;  %v7051_v16 = vmul.f32 %v8780_v28, %v7050_v42 }
 0xbf2   : > { %v7098_v27 = vmul.f32 %v7048_v21, %v6714_v35  ;;  %7424 = vst.msk [vmem:[%s15562_s24 + $0x60] sm:$0xff] %vm2744_vm13, %v7353_v17  ;;  %8537 = vmatmul.msk.f32.gmra.mxu0 %vm2744_vm13, %v7193_v10 }
 0xbf3   : > { %v7052_v63 = vmul.f32 0.5, %v7051_v16 }
 0xbf4   : > { %v7130_v6 = vmul.f32 %v15545_v22, %v7098_v27 }
 0xbf5   : > { %v7053_v24 = vsub.f32 1.5, %v7052_v63 }
 0xbf6   : > { %v8782_v54 = vpop.eup %8781  ;;  %v7162_v38 = vadd.f32 %v15553_v30, %v7130_v6 }
 0xbf7   : > { %v7054_v50 = vmul.f32 %v8780_v28, %v7053_v24  ;;  %v7060_v43 = vmul.f32 %v8782_v54, %v6748_v37  ;;  %v7355_v8 = vpop.f32.mrf.mxu0  ;;  %vm7066_vm10 = vweird.f32 %v8782_v54 }
 0xbf8   : > { %v7356_v31 = vadd.f32 %v15540_v57, %v7355_v8  ;;  %v7194_v45 = vmax.f32 %v7162_v38, 0.0  ;;  %vm7067_vm12 = vmor %vm7065_vm3, %vm7066_vm10 }
 0xbf9   : > { %v7058_v61 = vsel %vm7057_vm8, %v8780_v28, %v7054_v50  ;;  %v7061_v1 = vmul.f32 %v8782_v54, %v7060_v43 }
 0xbfa   : > { %v7099_v59 = vmul.f32 %v7058_v61, %v6715_v48  ;;  %7425 = vst.msk [vmem:[%s15562_s24 + $0x68] sm:$0xff] %vm2744_vm13, %v7356_v31  ;;  %8538 = vmatmul.msk.f32.gmra.mxu0 %vm2744_vm13, %v7194_v45 }
 0xbfb   : > { %v7062_v32 = vmul.f32 0.5, %v7061_v1 }
 0xbfc   : > { %v7131_v15 = vmul.f32 %v15545_v22, %v7099_v59 }
 0xbfd   : > { %v7063_v49 = vsub.f32 1.5, %v7062_v32 }
 0xbfe   : > { %v7163_v0 = vadd.f32 %v15553_v30, %v7131_v15 }
 0xbff   : > { %v7064_v7 = vmul.f32 %v8782_v54, %v7063_v49  ;;  %v7358_v36 = vpop.f32.mrf.mxu0 }
 0xc00   : > { %v7359_v46 = vadd.f32 %v15540_v57, %v7358_v36  ;;  %v7195_v20 = vmax.f32 %v7163_v0, 0.0 }
 0xc01   : > { %v7068_v13 = vsel %vm7067_vm12, %v8782_v54, %v7064_v7 }
 0xc02   : > { %v7100_v23 = vmul.f32 %v7068_v13, %v6716_v19  ;;  %7426 = vst.msk [vmem:[%s15562_s24 + $0x70] sm:$0xff] %vm2744_vm13, %v7359_v46  ;;  %8539 = vmatmul.msk.f32.gmra.mxu0 %vm2744_vm13, %v7195_v20 }
 0xc04   : > { %v7132_v5 = vmul.f32 %v15545_v22, %v7100_v23 }
 0xc06   : > { %v7164_v34 = vadd.f32 %v15553_v30, %v7132_v5 }
 0xc07   : > { %v7361_v60 = vpop.f32.mrf.mxu0 }
 0xc08   : > { %v7362_v11 = vadd.f32 %v15540_v57, %v7361_v60  ;;  %v7196_v58 = vmax.f32 %v7164_v34, 0.0 }
 0xc0a   : > { %7427 = vst.msk [vmem:[%s15562_s24 + $0x78] sm:$0xff] %vm2744_vm13, %v7362_v11  ;;  %8540 = vmatmul.msk.f32.gmra.mxu0 %vm2744_vm13, %v7196_v58 }
 0xc0f   : > { %v7364_v12 = vpop.f32.mrf.mxu0 }
 0xc10   : > { %v7365_v51 = vadd.f32 %v15540_v57, %v7364_v12 }
 0xc12   : > { %7428 = vst.msk [vmem:[%s15562_s24 + $0x80] sm:$0xff] %vm2744_vm13, %v7365_v51 }
 0xc17   : > { %v7367_v18 = vpop.f32.mrf.mxu0 }
 0xc18   : > { %v7368_v22 = vadd.f32 %v15540_v57, %v7367_v18 }
 0xc1a   : > { %7429 = vst.msk [vmem:[%s15562_s24 + $0x88] sm:$0xff] %vm2744_vm13, %v7368_v22 }
 0xc1f   : > { %v7370_v30 = vpop.f32.mrf.mxu0 }
 0xc20   : > { %v7371_v41 = vadd.f32 %v15540_v57, %v7370_v30 }
 0xc22   : > { %7430 = vst.msk [vmem:[%s15562_s24 + $0x90] sm:$0xff] %vm2744_vm13, %v7371_v41 }
 0xc27   : > { %v7373_v56 = vpop.f32.mrf.mxu0 }
 0xc28   : > { %v7374_v4 = vadd.f32 %v15540_v57, %v7373_v56 }
 0xc2a   : > { %7431 = vst.msk [vmem:[%s15562_s24 + $0x98] sm:$0xff] %vm2744_vm13, %v7374_v4 }
 0xc2f   : > { %v7376_v44 = vpop.f32.mrf.mxu0 }
 0xc30   : > { %v7377_v52 = vadd.f32 %v15540_v57, %v7376_v44 }
 0xc32   : > { %7432 = vst.msk [vmem:[%s15562_s24 + $0xa0] sm:$0xff] %vm2744_vm13, %v7377_v52 }
 0xc37   : > { %v7379_v55 = vpop.f32.mrf.mxu0 }
 0xc38   : > { %v7380_v2 = vadd.f32 %v15540_v57, %v7379_v55 }
 0xc3a   : > { %7433 = vst.msk [vmem:[%s15562_s24 + $0xa8] sm:$0xff] %vm2744_vm13, %v7380_v2 }
 0xc3f   : > { %v7382_v25 = vpop.f32.mrf.mxu0 }
 0xc40   : > { %v7383_v9 = vadd.f32 %v15540_v57, %v7382_v25 }
 0xc42   : > { %7434 = vst.msk [vmem:[%s15562_s24 + $0xb0] sm:$0xff] %vm2744_vm13, %v7383_v9 }
 0xc47   : > { %v7385_v47 = vpop.f32.mrf.mxu0 }
 0xc48   : > { %v7386_v3 = vadd.f32 %v15540_v57, %v7385_v47 }
 0xc4a   : > { %7435 = vst.msk [vmem:[%s15562_s24 + $0xb8] sm:$0xff] %vm2744_vm13, %v7386_v3 }
 0xc4f   : > { %v7388_v40 = vpop.f32.mrf.mxu0 }
 0xc50   : > { %v7389_v62 = vadd.f32 %v15540_v57, %v7388_v40 }
 0xc52   : > { %7436 = vst.msk [vmem:[%s15562_s24 + $0xc0] sm:$0xff] %vm2744_vm13, %v7389_v62 }
 0xc57   : > { %v7391_v53 = vpop.f32.mrf.mxu0 }
 0xc58   : > { %v7392_v39 = vadd.f32 %v15540_v57, %v7391_v53 }
 0xc5a   : > { %7437 = vst.msk [vmem:[%s15562_s24 + $0xc8] sm:$0xff] %vm2744_vm13, %v7392_v39 }
 0xc5f   : > { %v7394_v29 = vpop.f32.mrf.mxu0 }
 0xc60   : > { %v7395_v28 = vadd.f32 %v15540_v57, %v7394_v29 }
 0xc62   : > { %7438 = vst.msk [vmem:[%s15562_s24 + $0xd0] sm:$0xff] %vm2744_vm13, %v7395_v28 }
 0xc67   : > { %v7397_v37 = vpop.f32.mrf.mxu0 }
 0xc68   : > { %v7398_v14 = vadd.f32 %v15540_v57, %v7397_v37 }
 0xc6a   : > { %7439 = vst.msk [vmem:[%s15562_s24 + $0xd8] sm:$0xff] %vm2744_vm13, %v7398_v14 }
 0xc6f   : > { %v7400_v26 = vpop.f32.mrf.mxu0 }
 0xc70   : > { %v7401_v42 = vadd.f32 %v15540_v57, %v7400_v26 }
 0xc72   : > { %7440 = vst.msk [vmem:[%s15562_s24 + $0xe0] sm:$0xff] %vm2744_vm13, %v7401_v42 }
 0xc77   : > { %v7403_v33 = vpop.f32.mrf.mxu0 }
 0xc78   : > { %v7404_v35 = vadd.f32 %v15540_v57, %v7403_v33 }
 0xc7a   : > { %7441 = vst.msk [vmem:[%s15562_s24 + $0xe8] sm:$0xff] %vm2744_vm13, %v7404_v35 }
 0xc7f   : > { %v7406_v17 = vpop.f32.mrf.mxu0 }
 0xc80   : > { %v7407_v10 = vadd.f32 %v15540_v57, %v7406_v17 }
 0xc82   : > { %7442 = vst.msk [vmem:[%s15562_s24 + $0xf0] sm:$0xff] %vm2744_vm13, %v7407_v10 }
 0xc87   : > { %v7409_v21 = vpop.f32.mrf.mxu0 }
 0xc88   : > { %v7410_v16 = vadd.f32 %v15540_v57, %v7409_v21 }
 0xc8a   : > { %7443 = vst.msk [vmem:[%s15562_s24 + $0xf8] sm:$0xff] %vm2744_vm13, %v7410_v16 }
 0xc8b PF: > { %s15_s18 = sadd.s32 1, %s8831_s18  }
 0xc8c   : > { %p12_p4 = scmp.ge.s32.totalorder %s15_s18, 4  }
 0xc8e   :  { %14 = sbr.rel (!%p12_p4) target bundleno = 1 (0x1), region = 79 }

</bundles_post_ra>
